<compile_context>
chip_gen: v6e
topology: v6e:2x2x1
jax: 0.10.0
libtpu: 0.0.40
codegen_flags: <defaults>
</compile_context>

<pallas_src>
import math

import jax
import jax.numpy as jnp
from jax.experimental import pallas as pl
from jax.experimental.pallas import tpu as pltpu

HIDDEN = (2048, 1024, 512)
LANE = 128      # TPU lane width (last-dim alignment)
SUBLANE = 8     # TPU sublane width (second-to-last-dim alignment)


def _round_up(x, m):
    return ((x + m - 1) // m) * m


# ----------------------------------------------------------------------------
# Pallas kernel: fully fused 4-layer MLP, single invocation (grid = ())
# ----------------------------------------------------------------------------
def _fused_mlp_kernel(x_ref, w1_ref, b1_ref, w2_ref, b2_ref, w3_ref, b3_ref,
                      w4_ref, b4_ref, o_ref):
    """All weights (bf16) + activations resident in VMEM.

    Each layer: MXU matmul with f32 accumulation, bias add + ReLU in f32,
    re-cast to bf16 only as the next matmul's LHS.
    """
    def layer(h, w_ref, b_ref, relu):
        acc = jnp.dot(h.astype(w_ref.dtype), w_ref[...],
                      preferred_element_type=jnp.float32)
        acc = acc + b_ref[...]                 # bias broadcast over batch
        if relu:
            acc = jnp.maximum(acc, 0.0)
        return acc

    h = layer(x_ref[...], w1_ref, b1_ref, relu=True)
    h = layer(h, w2_ref, b2_ref, relu=True)
    h = layer(h, w3_ref, b3_ref, relu=True)
    o_ref[...] = layer(h, w4_ref, b4_ref, relu=False).astype(o_ref.dtype)


def fused_mlp_pallas(x, w1, b1, w2, b2, w3, b3, w4, b4):
    """out = mlp(x); x:(M,S) f32, w_i bf16 (in,out), b_i f32 (1,out).

    M must be a multiple of 8 and w4's output dim a multiple of 128 (both
    guaranteed by the wrapper / param init below).
    """
    M, S = x.shape
    n_out_pad = w4.shape[1]

    # Whole-array-in-VMEM specs: one DMA per operand, no per-tile stepping.
    vmem_spec = pl.BlockSpec(memory_space=pltpu.MemorySpace.VMEM)

    flops = 2 * M * (S * w1.shape[1]
                     + w1.shape[1] * w2.shape[1]
                     + w2.shape[1] * w3.shape[1]
                     + w3.shape[1] * n_out_pad)
    bytes_accessed = sum(int(a.size) * a.dtype.itemsize
                         for a in (x, w1, b1, w2, b2, w3, b3, w4, b4))
    bytes_accessed += M * n_out_pad * 4   # f32 output

    return pl.pallas_call(
        _fused_mlp_kernel,
        out_shape=jax.ShapeDtypeStruct((M, n_out_pad), jnp.float32),
        in_specs=[vmem_spec] * 9,
        out_specs=vmem_spec,
        compiler_params=pltpu.CompilerParams(
            # ~5.5 MB of operands; 32 MiB is plenty on v5e/v6e and leaves
            # comfortable headroom within v7x's 64 MiB physical VMEM.
            vmem_limit_bytes=32 * 1024 * 1024,
        ),
        cost_estimate=pl.CostEstimate(
            flops=flops, transcendentals=0, bytes_accessed=bytes_accessed),
    )(x, w1, b1, w2, b2, w3, b3, w4, b4)


# ----------------------------------------------------------------------------
# Parameter construction (mimics nn.Linear's default U(-1/sqrt(fan_in), +..))
# ----------------------------------------------------------------------------
def _init_linear(key, fan_in, fan_out, pad_out=None):
    kw, kb = jax.random.split(key)
    bound = 1.0 / math.sqrt(fan_in)
    w = jax.random.uniform(kw, (fan_in, fan_out), jnp.float32, -bound, bound)
    b = jax.random.uniform(kb, (1, fan_out), jnp.float32, -bound, bound)
    if pad_out is not None and pad_out > fan_out:
        # Lane-pad the final layer: zero columns, sliced off in the wrapper.
        w = jnp.pad(w, ((0, 0), (0, pad_out - fan_out)))
        b = jnp.pad(b, ((0, 0), (0, pad_out - fan_out)))
    # Weights in bf16 (weight-streaming bound regime); biases stay f32.
    return w.astype(jnp.bfloat16), b


def init_worker_nn_params(key, state_size, action_size):
    out_pad = _round_up(max(action_size, 1), LANE)
    layers = [(state_size, HIDDEN[0], None),
              (HIDDEN[0], HIDDEN[1], None),
              (HIDDEN[1], HIDDEN[2], None),
              (HIDDEN[2], action_size, out_pad)]
    keys = jax.random.split(key, len(layers))
    online = {}
    for i, ((fi, fo, pad), k) in enumerate(zip(layers, keys), start=1):
        w, b = _init_linear(k, fi, fo, pad)
        online[f"w{i}"] = w
        online[f"b{i}"] = b
    # target = copy.deepcopy(online): identical parameters, frozen (not trained here).
    target = {k: v for k, v in online.items()}
    return {"online": online, "target": target,
            "state_size": state_size, "action_size": action_size}


# ----------------------------------------------------------------------------
# Forward pass (equivalent to WorkerNeuralNetwork.forward(input, model))
# ----------------------------------------------------------------------------
def worker_nn_forward(params, x, model="online"):
    p = params[model]
    M, S = x.shape
    assert S == params["state_size"]
    # Pad batch to a sublane multiple (and >= 8) for clean layout; extra rows
    # are free in this weight-bandwidth-bound regime and sliced off below.
    m_pad = _round_up(max(M, SUBLANE), SUBLANE)
    if m_pad != M:
        x = jnp.pad(x, ((0, m_pad - M), (0, 0)))
    out = fused_mlp_pallas(x, p["w1"], p["b1"], p["w2"], p["b2"],
                           p["w3"], p["b3"], p["w4"], p["b4"])
    return out[:M, :params["action_size"]]


# TODO(synk): load_model/save_model/get_parameters/update_paramters are torch
# serialization & state_dict plumbing with no Pallas equivalent (use regular
# JAX pytree checkpointing instead).


if __name__ == "__main__":
    state_size = 32
    action_size = 8
    batch = 8

    key = jax.random.PRNGKey(0)
    k_params, k_x = jax.random.split(key)

    params = init_worker_nn_params(k_params, state_size, action_size)
    x = jax.random.normal(k_x, (batch, state_size), jnp.float32)

    out_online = worker_nn_forward(params, x, model="online")
    out_target = worker_nn_forward(params, x, model="target")
    jax.block_until_ready(out_online)
    jax.block_until_ready(out_target)

    # Sanity check against a pure-JAX reference doing the same bf16-weight /
    # f32-accumulation math.
    def ref_forward(p, x, action_size):
        def lin(h, w, b):
            return jnp.dot(h.astype(jnp.bfloat16), w,
                           preferred_element_type=jnp.float32) + b
        h = jnp.maximum(lin(x, p["w1"], p["b1"]), 0.0)
        h = jnp.maximum(lin(h, p["w2"], p["b2"]), 0.0)
        h = jnp.maximum(lin(h, p["w3"], p["b3"]), 0.0)
        return lin(h, p["w4"], p["b4"])[:, :action_size]

    ref = ref_forward(params["online"], x, action_size)
    assert out_online.shape == (batch, action_size)
    assert jnp.allclose(out_online, ref, atol=1e-2, rtol=1e-2)
    assert jnp.allclose(out_online, out_target)  # target is a deep copy

    print("KERNEL_OK")
</pallas_src>

<mosaic_0001>
module attributes {stable_mosaic.version = 11 : i64} {
  func.func @_fused_mlp_kernel(%arg0: memref<8x32xf32, #tpu.memory_space<vmem>>, %arg1: memref<32x2048xbf16, #tpu.memory_space<vmem>>, %arg2: memref<1x2048xf32, #tpu.memory_space<vmem>>, %arg3: memref<2048x1024xbf16, #tpu.memory_space<vmem>>, %arg4: memref<1x1024xf32, #tpu.memory_space<vmem>>, %arg5: memref<1024x512xbf16, #tpu.memory_space<vmem>>, %arg6: memref<1x512xf32, #tpu.memory_space<vmem>>, %arg7: memref<512x128xbf16, #tpu.memory_space<vmem>>, %arg8: memref<1x128xf32, #tpu.memory_space<vmem>>, %arg9: memref<8x128xf32, #tpu.memory_space<vmem>>) attributes {dimension_semantics = [], scalar_prefetch = 0 : i64, scratch_operands = 0 : i64, tpu.core_type = #tpu.core_type<tc>} {
    %c0 = arith.constant 0 : index
    %c0_0 = arith.constant 0 : index
    %0 = vector.load %arg0[%c0, %c0_0] : memref<8x32xf32, #tpu.memory_space<vmem>>, vector<8x32xf32>
    %1 = arith.truncf %0 : vector<8x32xf32> to vector<8x32xbf16>
    %c0_1 = arith.constant 0 : index
    %c0_2 = arith.constant 0 : index
    %2 = vector.load %arg1[%c0_1, %c0_2] : memref<32x2048xbf16, #tpu.memory_space<vmem>>, vector<32x2048xbf16>
    %cst = arith.constant dense<0.000000e+00> : vector<8x2048xf32>
    %3 = tpu.matmul %1, %2, %cst {dimension_numbers = #tpu.dot_dimension_numbers<[1], [0], [0], [1], [0, 0, 1, 1], [], []>} : vector<8x32xbf16>, vector<32x2048xbf16>, vector<8x2048xf32> -> vector<8x2048xf32>
    %c0_3 = arith.constant 0 : index
    %c0_4 = arith.constant 0 : index
    %4 = vector.load %arg2[%c0_3, %c0_4] : memref<1x2048xf32, #tpu.memory_space<vmem>>, vector<1x2048xf32>
    %5 = vector.broadcast %4 : vector<1x2048xf32> to vector<8x2048xf32>
    %6 = arith.addf %3, %5 : vector<8x2048xf32>
    %cst_5 = arith.constant 0.000000e+00 : f32
    %7 = vector.broadcast %cst_5 : f32 to vector<8x2048xf32>
    %8 = arith.maximumf %6, %7 : vector<8x2048xf32>
    %9 = arith.truncf %8 : vector<8x2048xf32> to vector<8x2048xbf16>
    %c0_6 = arith.constant 0 : index
    %c0_7 = arith.constant 0 : index
    %10 = vector.load %arg3[%c0_6, %c0_7] : memref<2048x1024xbf16, #tpu.memory_space<vmem>>, vector<2048x1024xbf16>
    %cst_8 = arith.constant dense<0.000000e+00> : vector<8x1024xf32>
    %11 = tpu.matmul %9, %10, %cst_8 {dimension_numbers = #tpu.dot_dimension_numbers<[1], [0], [0], [1], [0, 0, 1, 1], [], []>} : vector<8x2048xbf16>, vector<2048x1024xbf16>, vector<8x1024xf32> -> vector<8x1024xf32>
    %c0_9 = arith.constant 0 : index
    %c0_10 = arith.constant 0 : index
    %12 = vector.load %arg4[%c0_9, %c0_10] : memref<1x1024xf32, #tpu.memory_space<vmem>>, vector<1x1024xf32>
    %13 = vector.broadcast %12 : vector<1x1024xf32> to vector<8x1024xf32>
    %14 = arith.addf %11, %13 : vector<8x1024xf32>
    %cst_11 = arith.constant 0.000000e+00 : f32
    %15 = vector.broadcast %cst_11 : f32 to vector<8x1024xf32>
    %16 = arith.maximumf %14, %15 : vector<8x1024xf32>
    %17 = arith.truncf %16 : vector<8x1024xf32> to vector<8x1024xbf16>
    %c0_12 = arith.constant 0 : index
    %c0_13 = arith.constant 0 : index
    %18 = vector.load %arg5[%c0_12, %c0_13] : memref<1024x512xbf16, #tpu.memory_space<vmem>>, vector<1024x512xbf16>
    %cst_14 = arith.constant dense<0.000000e+00> : vector<8x512xf32>
    %19 = tpu.matmul %17, %18, %cst_14 {dimension_numbers = #tpu.dot_dimension_numbers<[1], [0], [0], [1], [0, 0, 1, 1], [], []>} : vector<8x1024xbf16>, vector<1024x512xbf16>, vector<8x512xf32> -> vector<8x512xf32>
    %c0_15 = arith.constant 0 : index
    %c0_16 = arith.constant 0 : index
    %20 = vector.load %arg6[%c0_15, %c0_16] : memref<1x512xf32, #tpu.memory_space<vmem>>, vector<1x512xf32>
    %21 = vector.broadcast %20 : vector<1x512xf32> to vector<8x512xf32>
    %22 = arith.addf %19, %21 : vector<8x512xf32>
    %cst_17 = arith.constant 0.000000e+00 : f32
    %23 = vector.broadcast %cst_17 : f32 to vector<8x512xf32>
    %24 = arith.maximumf %22, %23 : vector<8x512xf32>
    %25 = arith.truncf %24 : vector<8x512xf32> to vector<8x512xbf16>
    %c0_18 = arith.constant 0 : index
    %c0_19 = arith.constant 0 : index
    %26 = vector.load %arg7[%c0_18, %c0_19] : memref<512x128xbf16, #tpu.memory_space<vmem>>, vector<512x128xbf16>
    %cst_20 = arith.constant dense<0.000000e+00> : vector<8x128xf32>
    %27 = tpu.matmul %25, %26, %cst_20 {dimension_numbers = #tpu.dot_dimension_numbers<[1], [0], [0], [1], [0, 0, 1, 1], [], []>} : vector<8x512xbf16>, vector<512x128xbf16>, vector<8x128xf32> -> vector<8x128xf32>
    %c0_21 = arith.constant 0 : index
    %c0_22 = arith.constant 0 : index
    %28 = vector.load %arg8[%c0_21, %c0_22] : memref<1x128xf32, #tpu.memory_space<vmem>>, vector<1x128xf32>
    %29 = vector.broadcast %28 : vector<1x128xf32> to vector<8x128xf32>
    %30 = arith.addf %27, %29 : vector<8x128xf32>
    %c0_23 = arith.constant 0 : index
    %c0_24 = arith.constant 0 : index
    %31 = vector.load %arg9[%c0_23, %c0_24] : memref<8x128xf32, #tpu.memory_space<vmem>>, vector<8x128xf32>
    tpu.vector_store %arg9[%c0_23, %c0_24], %30 {strides = array<i32>} : memref<8x128xf32, #tpu.memory_space<vmem>>, vector<8x128xf32>,
    return
  }
}

</mosaic_0001>

<bundles_post_ra>
// kernel: tpu_custom_call.1
= control target key start
LH: loop header
LB: loop body
LE: loop exit
PB: predicated region body
PF: predicated region fallthrough
CT: control target
= control target key end

     0   :  { %14 = vsyncpa [#allocation3], 0  ;;  %s13091_s0 = inlined_call_operand.hbm [shape: f32[8,32], index: 0, kind: input, shape index: {}]   ;;  %s13092_s1 = inlined_call_operand.hbm [shape: bf16[32,2048], index: 1, kind: input, shape index: {}]   ;;  %s13093_s2 = inlined_call_operand.hbm [shape: f32[1,2048], index: 2, kind: input, shape index: {}]   ;;  %s13094_s3 = inlined_call_operand.hbm [shape: bf16[2048,1024], index: 3, kind: input, shape index: {}]   ;;  %s13095_s4 = inlined_call_operand.hbm [shape: f32[1,1024], index: 4, kind: input, shape index: {}]   ;;  %s13096_s5 = inlined_call_operand.hbm [shape: bf16[1024,512], index: 5, kind: input, shape index: {}]   ;;  %s13097_s6 = inlined_call_operand.hbm [shape: f32[1,512], index: 6, kind: input, shape index: {}]   ;;  %s13098_s7 = inlined_call_operand.hbm [shape: bf16[512,128], index: 7, kind: input, shape index: {}]   ;;  %s13099_s8 = inlined_call_operand.hbm [shape: f32[1,128], index: 8, kind: input, shape index: {}]   ;;  %s13100_s9 = inlined_call_operand.hbm [shape: f32[8,128], index: 9, kind: output, shape index: {}]  }
   0x1   :  { %15 = vsyncpa [#allocation6], 0 }
   0x2   :  { %16 = vsyncpa [#allocation9], 0 }
   0x3   :  { %17 = vsyncpa [#allocation12], 0 }
   0x4   :  { %18 = vsyncpa [#allocation15], 0 }
   0x5   :  { %19 = vsyncpa [#allocation4], 0  ;;  %s12605_s30 = smov [#allocation5]  }
   0x6   :  { %s35_s10 = sshll.u32 %s12605_s30, 4  ;;  %s36_s10 = int_to_ptr.vmem [resolvable:$true] %s35_s10 }
   0x7   :  { %s12401_s11 = scalar_lea.vmem %s36_s10, 4096  ;;  %p12406_p1 = scmp.lt.s32.totalorder %s36_s10, %s36_s10 }
   0x8   :  { %p12402_p0 = scmp.ne.s32.totalorder %s36_s10, %s12401_s11  ;;  %p12407_p2 = scmp.lt.s32.totalorder %s12401_s11, %s12401_s11 }
   0xa   :  { %p12408_p3 = por %p12407_p2, %p12406_p1 }
   0xc   :  { %p12409_p4 = pnand %p12408_p3, %p12402_p0 }
   0xe   :  { %12412 = shalt.err (!%p12409_p4)
}
   0xf   :  { %s12606_s12 = smov 1024   ;;  %s12607_s13 = smov 64  }
  0x10   :  { %41 = dma.hbm_to_vmem [thread:$0]  %s13092_s1, 4096, %s36_s10, [#allocation6], %s12606_s12, %s12606_s12, %s12607_s13  }
  0x11   :  { %s12608_s16 = smov [#allocation8]  }
  0x12   :  { %s57_s17 = sshll.u32 %s12608_s16, 4  ;;  %s58_s17 = int_to_ptr.vmem [resolvable:$true] %s57_s17 }
  0x13   :  { %s12421_s18 = scalar_lea.vmem %s58_s17, 131072  ;;  %p12426_p6 = scmp.lt.s32.totalorder %s58_s17, %s58_s17 }
  0x14   :  { %p12422_p5 = scmp.ne.s32.totalorder %s58_s17, %s12421_s18  ;;  %p12427_p7 = scmp.lt.s32.totalorder %s12421_s18, %s12421_s18 }
  0x16   :  { %p12428_p8 = por %p12427_p7, %p12426_p6 }
  0x18   :  { %p12429_p9 = pnand %p12428_p8, %p12422_p5 }
  0x1a   :  { %12432 = shalt.err (!%p12429_p9)
}
  0x1b   :  { %s12609_s19 = smov 512   ;;  %s12610_s20 = smov 32  }
  0x1c   :  { %63 = dma.hbm_to_vmem [thread:$0]  %s13094_s3, 131072, %s58_s17, [#allocation9], %s12609_s19, %s12609_s19, %s12610_s20  }
  0x1d   :  { %s12611_s23 = smov [#allocation11]  }
  0x1e   :  { %s79_s24 = sshll.u32 %s12611_s23, 4  ;;  %s80_s24 = int_to_ptr.vmem [resolvable:$true] %s79_s24 }
  0x1f   :  { %s12441_s1 = scalar_lea.vmem %s80_s24, 32768  ;;  %p12446_p11 = scmp.lt.s32.totalorder %s80_s24, %s80_s24 }
  0x20   :  { %p12442_p10 = scmp.ne.s32.totalorder %s80_s24, %s12441_s1  ;;  %p12447_p12 = scmp.lt.s32.totalorder %s12441_s1, %s12441_s1 }
  0x22   :  { %p12448_p13 = por %p12447_p12, %p12446_p11 }
  0x24   :  { %p12449_p0 = pnand %p12448_p13, %p12442_p10 }
  0x26   :  { %12452 = shalt.err (!%p12449_p0)
}
  0x27   :  { %s12612_s25 = smov 256   ;;  %s12613_s26 = smov 16  }
  0x28   :  { %85 = dma.hbm_to_vmem [thread:$0]  %s13096_s5, 32768, %s80_s24, [#allocation12], %s12612_s25, %s12612_s25, %s12613_s26  }
  0x29   :  { %s12614_s29 = smov [#allocation14]  }
  0x2a   :  { %s101_s30 = sshll.u32 %s12614_s29, 4  ;;  %s102_s30 = int_to_ptr.vmem [resolvable:$true] %s101_s30 }
  0x2b   :  { %s12461_s3 = scalar_lea.vmem %s102_s30, 4096  ;;  %p12466_p2 = scmp.lt.s32.totalorder %s102_s30, %s102_s30 }
  0x2c   :  { %p12462_p1 = scmp.ne.s32.totalorder %s102_s30, %s12461_s3  ;;  %p12467_p3 = scmp.lt.s32.totalorder %s12461_s3, %s12461_s3 }
  0x2e   :  { %p12468_p4 = por %p12467_p3, %p12466_p2 }
  0x30   :  { %p12469_p5 = pnand %p12468_p4, %p12462_p1 }
  0x32   :  { %12472 = shalt.err (!%p12469_p5)
}
  0x33   :  { %s12615_s10 = smov 4   ;;  %s12616_s14 = smov [#allocation2]  }
  0x34   :  { %107 = dma.hbm_to_vmem [thread:$0]  %s13098_s7, 4096, %s102_s30, [#allocation15], %s12607_s13, %s12607_s13, %s12615_s10  }
  0x35   :  { %s26_s15 = sshll.u32 %s12616_s14, 4  ;;  %s12617_s5 = smov [#allocation7]   ;;  %s27_s15 = int_to_ptr.vmem [resolvable:$true] %s26_s15 }
  0x36   :  { %s48_s16 = sshll.u32 %s12617_s5, 4  ;;  %s12481_s17 = scalar_lea.vmem %s27_s15, 128  ;;  %s49_s16 = int_to_ptr.vmem [resolvable:$true] %s48_s16 }
  0x37   :  { %p12482_p6 = scmp.ne.s32.totalorder %s27_s15, %s12481_s17  ;;  %p12486_p7 = scmp.lt.s32.totalorder %s27_s15, %s27_s15 }
  0x38   :  { %p12487_p8 = scmp.lt.s32.totalorder %s12481_s17, %s12481_s17 }
  0x3a   :  { %p12488_p9 = por %p12487_p8, %p12486_p7 }
  0x3c   :  { %p12489_p10 = pnand %p12488_p9, %p12482_p6 }
  0x3e   :  { %12492 = shalt.err (!%p12489_p10)
}
  0x3f   :  { %29 = dma.hbm_to_vmem [thread:$0]  %s13091_s0, 128, %s27_s15, [#allocation3]  }
  0x40   :  { %s12501_s20 = scalar_lea.vmem %s49_s16, 256  ;;  %p12506_p12 = scmp.lt.s32.totalorder %s49_s16, %s49_s16 }
  0x41   :  { %p12502_p11 = scmp.ne.s32.totalorder %s49_s16, %s12501_s20  ;;  %p12507_p13 = scmp.lt.s32.totalorder %s12501_s20, %s12501_s20 }
  0x43   :  { %p12508_p0 = por %p12507_p13, %p12506_p12 }
  0x45   :  { %p12509_p1 = pnand %p12508_p0, %p12502_p11 }
  0x47   :  { %12512 = shalt.err (!%p12509_p1)
}
  0x48   :  { %51 = dma.hbm_to_vmem [thread:$0]  %s13093_s2, 256, %s49_s16, [#allocation6]  }
  0x49   :  { %s12618_s21 = smov [#allocation10]   ;;  %s12619_s23 = smov [#allocation13]  }
  0x4a   :  { %s70_s22 = sshll.u32 %s12618_s21, 4  ;;  %s92_s24 = sshll.u32 %s12619_s23, 4  ;;  %s71_s22 = int_to_ptr.vmem [resolvable:$true] %s70_s22  ;;  %s93_s24 = int_to_ptr.vmem [resolvable:$true] %s92_s24 }
  0x4b   :  { %s12521_s1 = scalar_lea.vmem %s71_s22, 128  ;;  %p12526_p3 = scmp.lt.s32.totalorder %s71_s22, %s71_s22 }
  0x4c   :  { %p12522_p2 = scmp.ne.s32.totalorder %s71_s22, %s12521_s1  ;;  %p12527_p4 = scmp.lt.s32.totalorder %s12521_s1, %s12521_s1 }
  0x4e   :  { %p12528_p5 = por %p12527_p4, %p12526_p3 }
  0x50   :  { %p12529_p6 = pnand %p12528_p5, %p12522_p2 }
  0x52   :  { %12532 = shalt.err (!%p12529_p6)
}
  0x53   :  { %73 = dma.hbm_to_vmem [thread:$0]  %s13095_s4, 128, %s71_s22, [#allocation9]  }
  0x54   :  { %s12541_s26 = scalar_lea.vmem %s93_s24, 64  ;;  %p12546_p8 = scmp.lt.s32.totalorder %s93_s24, %s93_s24 }
  0x55   :  { %p12542_p7 = scmp.ne.s32.totalorder %s93_s24, %s12541_s26  ;;  %p12547_p9 = scmp.lt.s32.totalorder %s12541_s26, %s12541_s26 }
  0x57   :  { %p12548_p10 = por %p12547_p9, %p12546_p8 }
  0x59   :  { %p12549_p11 = pnand %p12548_p10, %p12542_p7 }
  0x5b   :  { %12552 = shalt.err (!%p12549_p11)
}
  0x5c   :  { %95 = dma.hbm_to_vmem [thread:$0]  %s13097_s6, 64, %s93_s24, [#allocation12]  }
  0x5d   :  { %s12620_s28 = smov [#allocation16]  }
  0x5e   :  { %s114_s29 = sshll.u32 %s12620_s28, 4  ;;  %s115_s29 = int_to_ptr.vmem [resolvable:$true] %s114_s29 }
  0x5f   :  { %s12561_s30 = scalar_lea.vmem %s115_s29, 16  ;;  %s12565_s3 = scalar_lea.vmem %s115_s29, 32 }
  0x60   :  { %p12562_p12 = scmp.ne.s32.totalorder %s115_s29, %s12561_s30  ;;  %p12566_p13 = scmp.lt.s32.totalorder %s115_s29, %s115_s29 }
  0x61   :  { %p12567_p0 = scmp.lt.s32.totalorder %s12565_s3, %s12561_s30 }
  0x63   :  { %p12568_p1 = por %p12567_p0, %p12566_p13 }
  0x65   :  { %p12569_p2 = pnand %p12568_p1, %p12562_p12 }
  0x67   :  { %12572 = shalt.err (!%p12569_p2)
}
  0x68   :  { %117 = dma.hbm_to_vmem [thread:$0]  %s13099_s8, 16, %s115_s29, [#allocation15]  }
  0x69   :  { %12593 = dma.done.wait [#allocation3], 128  }
  0x6a   :  { %12594 = vsyncadd [#allocation3], 4294967168 }
  0x6b   :  { %12595 = dma.done.wait [#allocation6], 4352  }
  0x6c   :  { %12596 = vsyncadd [#allocation6], 4294962944 }
  0x6d   :  { %12597 = dma.done.wait [#allocation9], 131200  }
  0x6e   :  { %12598 = vsyncadd [#allocation9], 4294836096 }
  0x6f   :  { %12599 = dma.done.wait [#allocation12], 32832  }
  0x70   :  { %12600 = vsyncadd [#allocation12], 4294934464 }
  0x71   :  { %12601 = dma.done.wait [#allocation15], 4112  }
  0x72   :  { %12602 = vsyncadd [#allocation15], 4294963184  ;;  %v12621_v0 = vmov 0   ;;  %v164_v1 = vld [vmem:[#allocation5 + $0x80] sm:$0xff]  ;;  %v165_v3 = vld [vmem:[#allocation5 + $0x88] sm:$0xff]  ;;  %vm424_vm0 = vcmask 261120  }
  0x73   :  { %460 = vmatprep.mubr.bf16.mxu0 %v12621_v0  ;;  %501 = vmatprep.mubr.bf16.mxu1 %v12621_v0  ;;  %v172_v2 = vld [vmem:[#allocation5 + $0xc0] sm:$0xff]  ;;  %v173_v5 = vld [vmem:[#allocation5 + $0xc8] sm:$0xff]  ;;  %v166_v15 = vld [vmem:[#allocation5 + $0x90] sm:$0xff]  ;;  %s12622_s6 = smov [#allocation17]  }
  0x74   :  { %v10576_v4 = vcombine.high %v164_v1, %v172_v2  ;;  %v10575_v6 = vcombine.low %v164_v1, %v172_v2  ;;  %v148_v7 = vld [vmem:[#allocation5] sm:$0xff]  ;;  %v10578_v9 = vcombine.high %v165_v3, %v173_v5  ;;  %v10577_v10 = vcombine.low %v165_v3, %v173_v5  ;;  %v149_v12 = vld [vmem:[#allocation5 + $0x8] sm:$0xff]  ;;  %v174_v16 = vld [vmem:[#allocation5 + $0xd0] sm:$0xff]  ;;  %s10546_s8 = sshll.u32 %s12622_s6, 4  ;;  %s10547_s8 = int_to_ptr.vmem [resolvable:$true] %s10546_s8 }
  0x75   :  { %v156_v8 = vld [vmem:[#allocation5 + $0x40] sm:$0xff]  ;;  %v157_v13 = vld [vmem:[#allocation5 + $0x48] sm:$0xff]  ;;  %v167_v17 = vld [vmem:[#allocation5 + $0x98] sm:$0xff]  ;;  %v10580_v22 = vcombine.high %v166_v15, %v174_v16  ;;  %v10579_v29 = vcombine.low %v166_v15, %v174_v16  ;;  %s12573_s11 = scalar_lea.vmem %s10547_s8, 128  ;;  %p12578_p4 = scmp.lt.s32.totalorder %s10547_s8, %s10547_s8 }
  0x76   :  { %v10560_v11 = vcombine.high %v148_v7, %v156_v8  ;;  %440 = vmatprep.subr.bf16.mxu0 %v10576_v4  ;;  %v10562_v14 = vcombine.high %v149_v12, %v157_v13  ;;  %481 = vmatprep.subr.bf16.mxu1 %v10578_v9  ;;  %v10559_v18 = vcombine.low %v148_v7, %v156_v8  ;;  %v146_v19 = vld [vmem:[#allocation2] sm:$0xff]  ;;  %v150_v24 = vld [vmem:[#allocation5 + $0x10] sm:$0xff]  ;;  %v168_v33 = vld [vmem:[#allocation5 + $0xa0] sm:$0xff]  ;;  %p12574_p3 = scmp.ne.s32.totalorder %s10547_s8, %s12573_s11  ;;  %p12579_p5 = scmp.lt.s32.totalorder %s12573_s11, %s12573_s11 }
  0x77   :  { %441 = vmatpush1.bf16.msra.mxu0 %v10575_v6  ;;  %v175_v20 = vld [vmem:[#allocation5 + $0xd8] sm:$0xff]  ;;  %482 = vmatpush1.bf16.msra.mxu1 %v10577_v10  ;;  %v10561_v21 = vcombine.low %v149_v12, %v157_v13  ;;  %v158_v25 = vld [vmem:[#allocation5 + $0x50] sm:$0xff]  ;;  %v12705_v26 = vpack.c.bf16 %v146_v19, %v146_v19  ;;  %v176_v34 = vld [vmem:[#allocation5 + $0xe0] sm:$0xff] }
  0x78   :  { %442 = vmatprep.subr.bf16.mxu0 %v10560_v11  ;;  %483 = vmatprep.subr.bf16.mxu1 %v10562_v14  ;;  %v10582_v23 = vcombine.high %v167_v17, %v175_v20  ;;  %v151_v27 = vld [vmem:[#allocation5 + $0x18] sm:$0xff]  ;;  %v10581_v30 = vcombine.low %v167_v17, %v175_v20  ;;  %v10564_v31 = vcombine.high %v150_v24, %v158_v25  ;;  %v169_v35 = vld [vmem:[#allocation5 + $0xa8] sm:$0xff]  ;;  %v152_v41 = vld [vmem:[#allocation5 + $0x20] sm:$0xff]  ;;  %p12580_p6 = por %p12579_p5, %p12578_p4 }
  0x79   :  { %v159_v28 = vld [vmem:[#allocation5 + $0x58] sm:$0xff]  ;;  %v177_v36 = vld [vmem:[#allocation5 + $0xe8] sm:$0xff]  ;;  %v10563_v37 = vcombine.low %v150_v24, %v158_v25  ;;  %v10584_v39 = vcombine.high %v168_v33, %v176_v34  ;;  %v160_v42 = vld [vmem:[#allocation5 + $0x60] sm:$0xff]  ;;  %v10583_v45 = vcombine.low %v168_v33, %v176_v34 }
  0x7a   :  { %v10566_v32 = vcombine.high %v151_v27, %v159_v28  ;;  %v10565_v38 = vcombine.low %v151_v27, %v159_v28  ;;  %v10586_v40 = vcombine.high %v169_v35, %v177_v36  ;;  %v153_v43 = vld [vmem:[#allocation5 + $0x28] sm:$0xff]  ;;  %v10585_v46 = vcombine.low %v169_v35, %v177_v36  ;;  %v170_v49 = vld [vmem:[#allocation5 + $0xb0] sm:$0xff]  ;;  %v171_v51 = vld [vmem:[#allocation5 + $0xb8] sm:$0xff]  ;;  %p12581_p7 = pnand %p12580_p6, %p12574_p3 }
  0x7b   :  { %443 = vmatpush1.bf16.msra.mxu0 %v10559_v18  ;;  %484 = vmatpush1.bf16.msra.mxu1 %v10561_v21  ;;  %v161_v44 = vld [vmem:[#allocation5 + $0x68] sm:$0xff]  ;;  %v10568_v47 = vcombine.high %v152_v41, %v160_v42  ;;  %v178_v50 = vld [vmem:[#allocation5 + $0xf0] sm:$0xff]  ;;  %v179_v52 = vld [vmem:[#allocation5 + $0xf8] sm:$0xff]  ;;  %v10567_v53 = vcombine.low %v152_v41, %v160_v42 }
  0x7c   :  { %522 = vmatprep.subr.bf16.mxu0 %v10580_v22  ;;  %563 = vmatprep.subr.bf16.mxu1 %v10582_v23  ;;  %v10570_v48 = vcombine.high %v153_v43, %v161_v44  ;;  %v10569_v54 = vcombine.low %v153_v43, %v161_v44  ;;  %v10588_v55 = vcombine.high %v170_v49, %v178_v50  ;;  %v154_v57 = vld [vmem:[#allocation5 + $0x30] sm:$0xff]  ;;  %v155_v59 = vld [vmem:[#allocation5 + $0x38] sm:$0xff] }
  0x7d   :  { %v10590_v56 = vcombine.high %v171_v51, %v179_v52  ;;  %v162_v58 = vld [vmem:[#allocation5 + $0x70] sm:$0xff]  ;;  %v163_v60 = vld [vmem:[#allocation5 + $0x78] sm:$0xff]  ;;  %v10587_v61 = vcombine.low %v170_v49, %v178_v50  ;;  %v10589_v62 = vcombine.low %v171_v51, %v179_v52 }
  0x7e   :  { %10591 = vmatmul.mubr.msk.bf16.vlgmr.msra.gmra.mxu0 %vm424_vm0, %v12705_v26  ;;  %10592 = vmatmul.mubr.msk.bf16.vlgmr.msra.gmra.mxu1 %vm424_vm0, %v12705_v26  ;;  %v10572_v63 = vcombine.high %v154_v57, %v162_v58  ;;  %v10574_v1 = vcombine.high %v155_v59, %v163_v60  ;;  %v844_v2 = vld [vmem:[#allocation8 + $0x1c0] sm:$0xff]  ;;  %v10571_v6 = vcombine.low %v154_v57, %v162_v58 }
  0x7f   :  { %523 = vmatpush1.bf16.msra.mxu0 %v10579_v29  ;;  %564 = vmatpush1.bf16.msra.mxu1 %v10581_v30  ;;  %v848_v3 = vld [vmem:[#allocation8 + $0x1e0] sm:$0xff]  ;;  %v10573_v8 = vcombine.low %v155_v59, %v163_v60 }
  0x80   :  { %524 = vmatprep.subr.bf16.mxu0 %v10564_v31  ;;  %565 = vmatprep.subr.bf16.mxu1 %v10566_v32  ;;  %v972_v4 = vld [vmem:[#allocation8 + $0x5c0] sm:$0xff]  ;;  %v10656_v9 = vcombine.high %v844_v2, %v848_v3  ;;  %v10655_v14 = vcombine.low %v844_v2, %v848_v3 }
  0x81   :  { %542 = vmatprep.mubr.bf16.mxu0 %v12621_v0  ;;  %583 = vmatprep.mubr.bf16.mxu1 %v12621_v0  ;;  %v976_v5 = vld [vmem:[#allocation8 + $0x5e0] sm:$0xff] }
  0x82   :  { %v836_v7 = vld [vmem:[#allocation8 + $0x180] sm:$0xff]  ;;  %v10784_v13 = vcombine.high %v972_v4, %v976_v5  ;;  %v10783_v17 = vcombine.low %v972_v4, %v976_v5 }
  0x83   :  { %525 = vmatpush1.bf16.msra.mxu0 %v10563_v37  ;;  %566 = vmatpush1.bf16.msra.mxu1 %v10565_v38  ;;  %v840_v10 = vld [vmem:[#allocation8 + $0x1a0] sm:$0xff] }
  0x84   :  { %604 = vmatprep.subr.bf16.mxu0 %v10584_v39  ;;  %645 = vmatprep.subr.bf16.mxu1 %v10586_v40  ;;  %v964_v11 = vld [vmem:[#allocation8 + $0x580] sm:$0xff]  ;;  %v10648_v18 = vcombine.high %v836_v7, %v840_v10 }
  0x85   :  { %v968_v12 = vld [vmem:[#allocation8 + $0x5a0] sm:$0xff] }
  0x86   :  { %10593 = vmatmul.mubr.msk.bf16.vlgmr.msra.gmra.mxu0 %vm424_vm0, %v12705_v26  ;;  %10594 = vmatmul.mubr.msk.bf16.vlgmr.msra.gmra.mxu1 %vm424_vm0, %v12705_v26  ;;  %v828_v15 = vld [vmem:[#allocation8 + $0x140] sm:$0xff]  ;;  %v10776_v21 = vcombine.high %v964_v11, %v968_v12  ;;  %v10775_v24 = vcombine.low %v964_v11, %v968_v12 }
  0x87   :  { %605 = vmatpush1.bf16.msra.mxu0 %v10583_v45  ;;  %646 = vmatpush1.bf16.msra.mxu1 %v10585_v46  ;;  %v832_v16 = vld [vmem:[#allocation8 + $0x160] sm:$0xff] }
  0x88   :  { %606 = vmatprep.subr.bf16.mxu0 %v10568_v47  ;;  %647 = vmatprep.subr.bf16.mxu1 %v10570_v48  ;;  %v956_v19 = vld [vmem:[#allocation8 + $0x540] sm:$0xff]  ;;  %v10640_v25 = vcombine.high %v828_v15, %v832_v16  ;;  %v10639_v30 = vcombine.low %v828_v15, %v832_v16 }
  0x89   :  { %624 = vmatprep.mubr.bf16.mxu0 %v12621_v0  ;;  %665 = vmatprep.mubr.bf16.mxu1 %v12621_v0  ;;  %v960_v20 = vld [vmem:[#allocation8 + $0x560] sm:$0xff] }
  0x8a   :  { %v820_v22 = vld [vmem:[#allocation8 + $0x100] sm:$0xff]  ;;  %v10768_v29 = vcombine.high %v956_v19, %v960_v20  ;;  %v10767_v33 = vcombine.low %v956_v19, %v960_v20 }
  0x8b   :  { %607 = vmatpush1.bf16.msra.mxu0 %v10567_v53  ;;  %648 = vmatpush1.bf16.msra.mxu1 %v10569_v54  ;;  %v824_v23 = vld [vmem:[#allocation8 + $0x120] sm:$0xff] }
  0x8c   :  { %686 = vmatprep.subr.bf16.mxu0 %v10588_v55  ;;  %727 = vmatprep.subr.bf16.mxu1 %v10590_v56  ;;  %v948_v27 = vld [vmem:[#allocation8 + $0x500] sm:$0xff]  ;;  %v10631_v37 = vcombine.low %v820_v22, %v824_v23 }
  0x8d   :  { %v952_v28 = vld [vmem:[#allocation8 + $0x520] sm:$0xff] }
  0x8e   :  { %10595 = vmatmul.mubr.msk.bf16.vlgmr.msra.gmra.mxu0 %vm424_vm0, %v12705_v26  ;;  %10596 = vmatmul.mubr.msk.bf16.vlgmr.msra.gmra.mxu1 %vm424_vm0, %v12705_v26  ;;  %v812_v31 = vld [vmem:[#allocation8 + $0xc0] sm:$0xff]  ;;  %v10760_v36 = vcombine.high %v948_v27, %v952_v28  ;;  %v10759_v40 = vcombine.low %v948_v27, %v952_v28 }
  0x8f   :  { %687 = vmatpush1.bf16.msra.mxu0 %v10587_v61  ;;  %728 = vmatpush1.bf16.msra.mxu1 %v10589_v62  ;;  %v816_v32 = vld [vmem:[#allocation8 + $0xe0] sm:$0xff] }
  0x90   :  { %688 = vmatprep.subr.bf16.mxu0 %v10572_v63  ;;  %729 = vmatprep.subr.bf16.mxu1 %v10574_v1  ;;  %v940_v34 = vld [vmem:[#allocation8 + $0x4c0] sm:$0xff]  ;;  %v10624_v41 = vcombine.high %v812_v31, %v816_v32  ;;  %v10623_v45 = vcombine.low %v812_v31, %v816_v32 }
  0x91   :  { %706 = vmatprep.mubr.bf16.mxu0 %v12621_v0  ;;  %747 = vmatprep.mubr.bf16.mxu1 %v12621_v0  ;;  %v10647_v0 = vcombine.low %v836_v7, %v840_v10  ;;  %v944_v35 = vld [vmem:[#allocation8 + $0x4e0] sm:$0xff] }
  0x92   :  { %v804_v38 = vld [vmem:[#allocation8 + $0x80] sm:$0xff]  ;;  %v10752_v44 = vcombine.high %v940_v34, %v944_v35  ;;  %v10751_v48 = vcombine.low %v940_v34, %v944_v35 }
  0x93   :  { %689 = vmatpush1.bf16.msra.mxu0 %v10571_v6  ;;  %730 = vmatpush1.bf16.msra.mxu1 %v10573_v8  ;;  %v808_v39 = vld [vmem:[#allocation8 + $0xa0] sm:$0xff] }
  0x94   :  { %6974 = vmatprep.subr.bf16.mxu0 %v10656_v9  ;;  %7015 = vmatprep.subr.bf16.mxu1 %v10784_v13  ;;  %v932_v42 = vld [vmem:[#allocation8 + $0x480] sm:$0xff]  ;;  %v10616_v49 = vcombine.high %v804_v38, %v808_v39  ;;  %v10615_v53 = vcombine.low %v804_v38, %v808_v39 }
  0x95   :  { %v936_v43 = vld [vmem:[#allocation8 + $0x4a0] sm:$0xff] }
  0x96   :  { %10597 = vmatmul.mubr.msk.bf16.vlgmr.msra.gmra.mxu0 %vm424_vm0, %v12705_v26  ;;  %10598 = vmatmul.mubr.msk.bf16.vlgmr.msra.gmra.mxu1 %vm424_vm0, %v12705_v26  ;;  %v10632_v26 = vcombine.high %v820_v22, %v824_v23  ;;  %v796_v46 = vld [vmem:[#allocation8 + $0x40] sm:$0xff]  ;;  %v10744_v52 = vcombine.high %v932_v42, %v936_v43  ;;  %v10743_v56 = vcombine.low %v932_v42, %v936_v43 }
  0x97   :  { %6975 = vmatpush1.bf16.msra.mxu0 %v10655_v14  ;;  %7016 = vmatpush1.bf16.msra.mxu1 %v10783_v17  ;;  %v800_v47 = vld [vmem:[#allocation8 + $0x60] sm:$0xff] }
  0x98   :  { %6976 = vmatprep.subr.bf16.mxu0 %v10648_v18  ;;  %7017 = vmatprep.subr.bf16.mxu1 %v10776_v21  ;;  %v924_v50 = vld [vmem:[#allocation8 + $0x440] sm:$0xff]  ;;  %v10608_v57 = vcombine.high %v796_v46, %v800_v47  ;;  %v10607_v61 = vcombine.low %v796_v46, %v800_v47 }
  0x99   :  { %v928_v51 = vld [vmem:[#allocation8 + $0x460] sm:$0xff] }
  0x9a   :  { %v788_v54 = vld [vmem:[#allocation8] sm:$0xff]  ;;  %v10736_v60 = vcombine.high %v924_v50, %v928_v51  ;;  %v10735_v1 = vcombine.low %v924_v50, %v928_v51 }
  0x9b   :  { %6977 = vmatpush1.bf16.msra.mxu0 %v10647_v0  ;;  %7018 = vmatpush1.bf16.msra.mxu1 %v10775_v24  ;;  %v792_v55 = vld [vmem:[#allocation8 + $0x20] sm:$0xff] }
  0x9c   :  { %6978 = vmatprep.subr.bf16.mxu0 %v10640_v25  ;;  %7019 = vmatprep.subr.bf16.mxu1 %v10768_v29  ;;  %v916_v58 = vld [vmem:[#allocation8 + $0x400] sm:$0xff]  ;;  %v10600_v2 = vcombine.high %v788_v54, %v792_v55  ;;  %v10599_v6 = vcombine.low %v788_v54, %v792_v55 }
  0x9d   :  { %v920_v59 = vld [vmem:[#allocation8 + $0x420] sm:$0xff] }
  0x9e   :  { %v908_v62 = vld [vmem:[#allocation8 + $0x3c0] sm:$0xff]  ;;  %v10728_v5 = vcombine.high %v916_v58, %v920_v59  ;;  %v10727_v9 = vcombine.low %v916_v58, %v920_v59 }
  0x9f   :  { %6979 = vmatpush1.bf16.msra.mxu0 %v10639_v30  ;;  %7020 = vmatpush1.bf16.msra.mxu1 %v10767_v33  ;;  %v912_v63 = vld [vmem:[#allocation8 + $0x3e0] sm:$0xff] }
  0xa0   :  { %6980 = vmatprep.subr.bf16.mxu0 %v10632_v26  ;;  %7021 = vmatprep.subr.bf16.mxu1 %v10760_v36  ;;  %v1036_v3 = vld [vmem:[#allocation8 + $0x7c0] sm:$0xff]  ;;  %v10720_v10 = vcombine.high %v908_v62, %v912_v63  ;;  %v10719_v14 = vcombine.low %v908_v62, %v912_v63 }
  0xa1   :  { %v1040_v4 = vld [vmem:[#allocation8 + $0x7e0] sm:$0xff] }
  0xa2   :  { %v900_v7 = vld [vmem:[#allocation8 + $0x380] sm:$0xff]  ;;  %v10848_v13 = vcombine.high %v1036_v3, %v1040_v4  ;;  %v10847_v17 = vcombine.low %v1036_v3, %v1040_v4 }
  0xa3   :  { %6981 = vmatpush1.bf16.msra.mxu0 %v10631_v37  ;;  %7022 = vmatpush1.bf16.msra.mxu1 %v10759_v40  ;;  %v904_v8 = vld [vmem:[#allocation8 + $0x3a0] sm:$0xff] }
  0xa4   :  { %6982 = vmatprep.subr.bf16.mxu0 %v10624_v41  ;;  %7023 = vmatprep.subr.bf16.mxu1 %v10752_v44  ;;  %v1028_v11 = vld [vmem:[#allocation8 + $0x780] sm:$0xff]  ;;  %v10712_v18 = vcombine.high %v900_v7, %v904_v8  ;;  %v10711_v0 = vcombine.low %v900_v7, %v904_v8 }
  0xa5   :  { %v1032_v12 = vld [vmem:[#allocation8 + $0x7a0] sm:$0xff] }
  0xa6   :  { %v892_v15 = vld [vmem:[#allocation8 + $0x340] sm:$0xff]  ;;  %v10840_v21 = vcombine.high %v1028_v11, %v1032_v12  ;;  %v10839_v24 = vcombine.low %v1028_v11, %v1032_v12  ;;  %v184_v12 = vlaneseq }
  0xa7   :  { %6983 = vmatpush1.bf16.msra.mxu0 %v10623_v45  ;;  %7024 = vmatpush1.bf16.msra.mxu1 %v10751_v48  ;;  %v896_v16 = vld [vmem:[#allocation8 + $0x360] sm:$0xff] }
  0xa8   :  { %6984 = vmatprep.subr.bf16.mxu0 %v10616_v49  ;;  %7025 = vmatprep.subr.bf16.mxu1 %v10744_v52  ;;  %v1020_v19 = vld [vmem:[#allocation8 + $0x740] sm:$0xff]  ;;  %v10704_v25 = vcombine.high %v892_v15, %v896_v16  ;;  %v10703_v30 = vcombine.low %v892_v15, %v896_v16  ;;  %v12750_v15 = vld [vmem:[#allocation7] sm:$0xff] }
  0xa9   :  { %v1024_v20 = vld [vmem:[#allocation8 + $0x760] sm:$0xff] }
  0xaa   :  { %v884_v22 = vld [vmem:[#allocation8 + $0x300] sm:$0xff]  ;;  %v10832_v29 = vcombine.high %v1020_v19, %v1024_v20  ;;  %v10831_v31 = vcombine.low %v1020_v19, %v1024_v20 }
  0xab   :  { %6985 = vmatpush1.bf16.msra.mxu0 %v10615_v53  ;;  %7026 = vmatpush1.bf16.msra.mxu1 %v10743_v56  ;;  %v888_v23 = vld [vmem:[#allocation8 + $0x320] sm:$0xff] }
  0xac   :  { %6986 = vmatprep.subr.bf16.mxu0 %v10608_v57  ;;  %7027 = vmatprep.subr.bf16.mxu1 %v10736_v60  ;;  %v1012_v27 = vld [vmem:[#allocation8 + $0x700] sm:$0xff]  ;;  %v10696_v32 = vcombine.high %v884_v22, %v888_v23  ;;  %v10695_v37 = vcombine.low %v884_v22, %v888_v23 }
  0xad   :  { %v1016_v28 = vld [vmem:[#allocation8 + $0x720] sm:$0xff] }
  0xae   :  { %v10824_v33 = vcombine.high %v1012_v27, %v1016_v28  ;;  %v876_v26 = vld [vmem:[#allocation8 + $0x2c0] sm:$0xff]  ;;  %v10823_v38 = vcombine.low %v1012_v27, %v1016_v28 }
  0xaf   :  { %6987 = vmatpush1.bf16.msra.mxu0 %v10607_v61  ;;  %7028 = vmatpush1.bf16.msra.mxu1 %v10735_v1  ;;  %v880_v34 = vld [vmem:[#allocation8 + $0x2e0] sm:$0xff] }
  0xb0   :  { %6988 = vmatprep.subr.bf16.mxu0 %v10600_v2  ;;  %7029 = vmatprep.subr.bf16.mxu1 %v10728_v5  ;;  %v1004_v35 = vld [vmem:[#allocation8 + $0x6c0] sm:$0xff]  ;;  %v10688_v39 = vcombine.high %v876_v26, %v880_v34  ;;  %v10687_v45 = vcombine.low %v876_v26, %v880_v34 }
  0xb1   :  { %v1008_v36 = vld [vmem:[#allocation8 + $0x6e0] sm:$0xff] }
  0xb2   :  { %v10816_v40 = vcombine.high %v1004_v35, %v1008_v36  ;;  %v868_v41 = vld [vmem:[#allocation8 + $0x280] sm:$0xff]  ;;  %v10815_v48 = vcombine.low %v1004_v35, %v1008_v36 }
  0xb3   :  { %6989 = vmatpush1.bf16.msra.mxu0 %v10599_v6  ;;  %7030 = vmatpush1.bf16.msra.mxu1 %v10727_v9  ;;  %v872_v42 = vld [vmem:[#allocation8 + $0x2a0] sm:$0xff] }
  0xb4   :  { %6990 = vmatprep.subr.bf16.mxu0 %v10720_v10  ;;  %7031 = vmatprep.subr.bf16.mxu1 %v10848_v13  ;;  %v996_v43 = vld [vmem:[#allocation8 + $0x680] sm:$0xff]  ;;  %v10680_v49 = vcombine.high %v868_v41, %v872_v42  ;;  %v10679_v57 = vcombine.low %v868_v41, %v872_v42  ;;  %v12745_v13 = vshrl.u32 %v184_v12, 7 }
  0xb5   :  { %v1000_v44 = vld [vmem:[#allocation8 + $0x6a0] sm:$0xff] }
  0xb6   :  { %v860_v46 = vld [vmem:[#allocation8 + $0x240] sm:$0xff]  ;;  %v10808_v52 = vcombine.high %v996_v43, %v1000_v44  ;;  %v10807_v62 = vcombine.low %v996_v43, %v1000_v44  ;;  %v12753_v16 = vsub.s32 2, %v12745_v13  ;;  %v12773_v34 = vsub.s32 7, %v12745_v13 }
  0xb7   :  { %6991 = vmatpush2.bf16.msra.mxu0 %v10719_v14  ;;  %7032 = vmatpush2.bf16.msra.mxu1 %v10847_v17  ;;  %v864_v47 = vld [vmem:[#allocation8 + $0x260] sm:$0xff]  ;;  %v12748_v14 = vsub.s32 0, %v12745_v13  ;;  %v12756_v17 = vsub.s32 1, %v12745_v13 }
  0xb8   :  { %6992 = vmatprep.subr.bf16.mxu0 %v10712_v18  ;;  %7033 = vmatprep.subr.bf16.mxu1 %v10840_v21  ;;  %v988_v50 = vld [vmem:[#allocation8 + $0x640] sm:$0xff]  ;;  %v10672_v63 = vcombine.high %v860_v46, %v864_v47  ;;  %v10671_v4 = vcombine.low %v860_v46, %v864_v47  ;;  %v12759_v18 = vsub.s32 3, %v12745_v13  ;;  %v195_v20 = vrot.slane %v12750_v15, %v12753_v16 }
  0xb9   :  { %v992_v51 = vld [vmem:[#allocation8 + $0x660] sm:$0xff]  ;;  %v187_v19 = vrot.slane %v12750_v15, %v12748_v14  ;;  %v191_v21 = vrot.slane %v12750_v15, %v12756_v17 }
  0xba   :  { %v12729_v53 = vld [vmem:[#allocation8 + $0x9c0] sm:$0xff]  ;;  %v10800_v1 = vcombine.high %v988_v50, %v992_v51  ;;  %v10799_v5 = vcombine.low %v988_v50, %v992_v51  ;;  %v199_v22 = vrot.slane %v12750_v15, %v12759_v18  ;;  %v215_v51 = vrot.slane %v12750_v15, %v12773_v34 }
  0xbb   :  { %6993 = vmatpush2.bf16.msra.mxu0 %v10711_v0  ;;  %7034 = vmatpush2.bf16.msra.mxu1 %v10839_v24  ;;  %v12731_v54 = vld [vmem:[#allocation8 + $0x9e0] sm:$0xff] }
  0xbc   :  { %6994 = vmatprep.subr.bf16.mxu0 %v10704_v25  ;;  %7035 = vmatprep.subr.bf16.mxu1 %v10832_v29  ;;  %v12733_v55 = vld [vmem:[#allocation8 + $0xdc0] sm:$0xff]  ;;  %v10911_v60 = vcombine.low %v12729_v53, %v12731_v54  ;;  %v10912_v10 = vcombine.high %v12729_v53, %v12731_v54 }
  0xbd   :  { %v12735_v56 = vld [vmem:[#allocation8 + $0xde0] sm:$0xff] }
  0xbe   :  { %v852_v58 = vld [vmem:[#allocation8 + $0x200] sm:$0xff]  ;;  %v11039_v61 = vcombine.low %v12733_v55, %v12735_v56  ;;  %v11040_v11 = vcombine.high %v12733_v55, %v12735_v56 }
  0xbf   :  { %6995 = vmatpush2.bf16.msra.mxu0 %v10703_v30  ;;  %7036 = vmatpush2.bf16.msra.mxu1 %v10831_v31  ;;  %v856_v59 = vld [vmem:[#allocation8 + $0x220] sm:$0xff]  ;;  %v12770_v30 = vsub.s32 5, %v12745_v13 }
  0xc0   :  { %6996 = vmatprep.subr.bf16.mxu0 %v10696_v32  ;;  %7037 = vmatprep.subr.bf16.mxu1 %v10824_v33  ;;  %v980_v2 = vld [vmem:[#allocation8 + $0x600] sm:$0xff]  ;;  %v10664_v6 = vcombine.high %v852_v58, %v856_v59  ;;  %v10663_v8 = vcombine.low %v852_v58, %v856_v59 }
  0xc1   :  { %v984_v3 = vld [vmem:[#allocation8 + $0x620] sm:$0xff]  ;;  %v207_v46 = vrot.slane %v12750_v15, %v12770_v30 }
  0xc2   :  { %v10792_v7 = vcombine.high %v980_v2, %v984_v3  ;;  %v10791_v9 = vcombine.low %v980_v2, %v984_v3  ;;  %v1220_v41 = vld [vmem:[#allocation8 + $0xd80] sm:$0xff] }
  0xc3   :  { %6997 = vmatpush2.bf16.msra.mxu0 %v10695_v37  ;;  %7038 = vmatpush2.bf16.msra.mxu1 %v10823_v38  ;;  %v1092_v37 = vld [vmem:[#allocation8 + $0x980] sm:$0xff] }
  0xc4   :  { %6998 = vmatprep.subr.bf16.mxu0 %v10688_v39  ;;  %7039 = vmatprep.subr.bf16.mxu1 %v10816_v40  ;;  %v1096_v38 = vld [vmem:[#allocation8 + $0x9a0] sm:$0xff] }
  0xc5   :  { %v1224_v42 = vld [vmem:[#allocation8 + $0xda0] sm:$0xff]  ;;  %v10903_v2 = vcombine.low %v1092_v37, %v1096_v38 }
  0xc6   :  { %v1088_v58 = vld [vmem:[#allocation8 + $0x960] sm:$0xff] }
  0xc7   :  { %6999 = vmatpush2.bf16.msra.mxu0 %v10687_v45  ;;  %7040 = vmatpush2.bf16.msra.mxu1 %v10815_v48  ;;  %v1204_v53 = vld [vmem:[#allocation8 + $0xd00] sm:$0xff] }
  0xc8   :  { %7000 = vmatprep.subr.bf16.mxu0 %v10680_v49  ;;  %7041 = vmatprep.subr.bf16.mxu1 %v10808_v52  ;;  %v10904_v49 = vcombine.high %v1092_v37, %v1096_v38  ;;  %v11032_v52 = vcombine.high %v1220_v41, %v1224_v42  ;;  %v1208_v54 = vld [vmem:[#allocation8 + $0xd20] sm:$0xff]  ;;  %v12819_v38 = vsub.s32 6, %v12745_v13 }
  0xcb   :  { %7001 = vmatpush2.bf16.msra.mxu0 %v10679_v57  ;;  %7042 = vmatpush2.bf16.msra.mxu1 %v10807_v62  ;;  %v1084_v57 = vld [vmem:[#allocation8 + $0x940] sm:$0xff] }
  0xcc   :  { %7002 = vmatprep.subr.bf16.mxu0 %v10672_v63  ;;  %7043 = vmatprep.subr.bf16.mxu1 %v10800_v1  ;;  %v1212_v62 = vld [vmem:[#allocation8 + $0xd40] sm:$0xff] }
  0xcd   :  { %v1216_v63 = vld [vmem:[#allocation8 + $0xd60] sm:$0xff] }
  0xce   :  { %v11023_v56 = vcombine.low %v1212_v62, %v1216_v63 }
  0xcf   :  { %7003 = vmatpush2.bf16.msra.mxu0 %v10671_v4  ;;  %7044 = vmatpush2.bf16.msra.mxu1 %v10799_v5  ;;  %v11031_v5 = vcombine.low %v1220_v41, %v1224_v42  ;;  %v1060_v42 = vld [vmem:[#allocation8 + $0x880] sm:$0xff] }
  0xd0   :  { %7004 = vmatprep.subr.bf16.mxu0 %v10664_v6  ;;  %7045 = vmatprep.subr.bf16.mxu1 %v10792_v7  ;;  %v10896_v6 = vcombine.high %v1084_v57, %v1088_v58 }
  0xd3   :  { %7005 = vmatpush2.bf16.msra.mxu0 %v10663_v8  ;;  %7046 = vmatpush2.bf16.msra.mxu1 %v10791_v9  ;;  %v11024_v9 = vcombine.high %v1212_v62, %v1216_v63 }
  0xd4   :  { %7056 = vmatprep.subr.bf16.mxu0 %v10912_v10  ;;  %7097 = vmatprep.subr.bf16.mxu1 %v11040_v11  ;;  %v1076_v10 = vld [vmem:[#allocation8 + $0x900] sm:$0xff] }
  0xd5   :  { %v1080_v11 = vld [vmem:[#allocation8 + $0x920] sm:$0xff] }
 0x13e   :  { %v462_v0 = vpop.f32.mrf.mxu0  ;;  %v503_v24 = vpop.f32.mrf.mxu1 }
 0x13f   :  { %v463_v23 = vadd.f32 %v462_v0, %v187_v19  ;;  %v504_v25 = vadd.f32 %v503_v24, %v195_v20  ;;  %v11016_v24 = vcombine.high %v1204_v53, %v1208_v54 }
 0x140   :  { %v464_v27 = vpop.f32.mrf.mxu0  ;;  %v505_v29 = vpop.f32.mrf.mxu1 }
 0x141   :  { %v465_v28 = vadd.f32 %v464_v27, %v191_v21  ;;  %v756_v31 = vmax.f32 %v463_v23, 0.0  ;;  %v758_v32 = vmax.f32 %v504_v25, 0.0  ;;  %v506_v33 = vadd.f32 %v505_v29, %v199_v22  ;;  %v1068_v25 = vld [vmem:[#allocation8 + $0x8c0] sm:$0xff] }
 0x142   :  { %v466_v26 = vpop.f32.mrf.mxu0  ;;  %v507_v36 = vpop.f32.mrf.mxu1  ;;  %v10895_v21 = vcombine.low %v1084_v57, %v1088_v58  ;;  %v1072_v27 = vld [vmem:[#allocation8 + $0x8e0] sm:$0xff] }
 0x143   :  { %v757_v35 = vmax.f32 %v465_v28, 0.0  ;;  %v759_v39 = vmax.f32 %v506_v33, 0.0  ;;  %v12775_v43 = vpack.c.bf16 %v758_v32, %v758_v32  ;;  %v12781_v47 = vpack.c.bf16 %v756_v31, %v756_v31  ;;  %v1196_v29 = vld [vmem:[#allocation8 + $0xcc0] sm:$0xff] }
 0x144   :  { %v467_v40 = vpop.f32.mrf.mxu0  ;;  %v508_v45 = vpop.f32.mrf.mxu1  ;;  %v1200_v31 = vld [vmem:[#allocation8 + $0xce0] sm:$0xff]  ;;  %v10887_v33 = vcombine.low %v1076_v10, %v1080_v11  ;;  %v12814_v26 = vsub.s32 4, %v12745_v13  ;;  %v11015_v36 = vcombine.low %v1204_v53, %v1208_v54  ;;  %v10880_v37 = vcombine.high %v1068_v25, %v1072_v27 }
 0x145   :  { %v12777_v44 = vpack.c.bf16 %v757_v35, %v757_v35  ;;  %v12783_v48 = vpack.c.bf16 %v759_v39, %v759_v39  ;;  %v12821_v39 = vld [vmem:[#allocation7 + $0x8] sm:$0xff]  ;;  %v11008_v41 = vcombine.high %v1196_v29, %v1200_v31  ;;  %v1064_v45 = vld [vmem:[#allocation8 + $0x8a0] sm:$0xff]  ;;  %v10879_v13 = vcombine.low %v1068_v25, %v1072_v27 }
 0x146   :  { %v12785_v50 = vpop.f32.mrf.mxu0  ;;  %v12790_v59 = vpop.f32.mrf.mxu1  ;;  %v243_v58 = vrot.slane %v12821_v39, %v12819_v38  ;;  %v239_v63 = vrot.slane %v12821_v39, %v12770_v30  ;;  %v10871_v53 = vcombine.low %v1060_v42, %v1064_v45  ;;  %v1048_v25 = vld [vmem:[#allocation8 + $0x820] sm:$0xff] }
 0x147   :  { %7006 = vmatprep.mubr.bf16.mxu0 %v12777_v44  ;;  %7047 = vmatprep.mubr.bf16.mxu1 %v12783_v48 }
 0x148   :  { %7007 = vmatmul.mubr.bf16.vlgmr.msra.gmra.mxu0 %v12781_v47  ;;  %v546_v1 = vpop.f32.mrf.mxu0  ;;  %7048 = vmatmul.mubr.bf16.vlgmr.msra.gmra.mxu1 %v12775_v43  ;;  %v587_v4 = vpop.f32.mrf.mxu1 }
 0x149   :  { %7057 = vmatpush1.bf16.msra.mxu0 %v10911_v60  ;;  %v547_v3 = vadd.f32 %v546_v1, %v207_v46  ;;  %7098 = vmatpush1.bf16.msra.mxu1 %v11039_v61  ;;  %v588_v8 = vadd.f32 %v587_v4, %v215_v51  ;;  %v10888_v61 = vcombine.high %v1076_v10, %v1080_v11  ;;  %v1188_v51 = vld [vmem:[#allocation8 + $0xc80] sm:$0xff] }
 0x14a   :  { %7058 = vmatprep.subr.bf16.mxu0 %v10904_v49  ;;  %v548_v7 = vpop.f32.mrf.mxu0  ;;  %7099 = vmatprep.subr.bf16.mxu1 %v11032_v52  ;;  %v589_v19 = vpop.f32.mrf.mxu1  ;;  %v235_v49 = vrot.slane %v12821_v39, %v12814_v26  ;;  %v1192_v52 = vld [vmem:[#allocation8 + $0xca0] sm:$0xff]  ;;  %v11007_v1 = vcombine.low %v1196_v29, %v1200_v31  ;;  %v247_v4 = vrot.slane %v12821_v39, %v12773_v34 }
 0x14b   :  { %v761_v12 = vmax.f32 %v547_v3, 0.0  ;;  %v763_v60 = vmax.f32 %v588_v8, 0.0  ;;  %v1056_v7 = vld [vmem:[#allocation8 + $0x860] sm:$0xff] }
 0x14c   :  { %v549_v20 = vpop.f32.mrf.mxu0  ;;  %v590_v55 = vpop.f32.mrf.mxu1  ;;  %v1180_v10 = vld [vmem:[#allocation8 + $0xc40] sm:$0xff] }
 0x14d   :  { %7059 = vmatpush1.bf16.msra.mxu0 %v10903_v2  ;;  %v12801_v0 = vpack.c.bf16 %v761_v12, %v761_v12  ;;  %7100 = vmatpush1.bf16.msra.mxu1 %v11031_v5  ;;  %v12803_v22 = vpack.c.bf16 %v763_v60, %v763_v60  ;;  %v10872_v2 = vcombine.high %v1060_v42, %v1064_v45  ;;  %v1184_v11 = vld [vmem:[#allocation8 + $0xc60] sm:$0xff] }
 0x14e   :  { %7060 = vmatprep.subr.bf16.mxu0 %v10896_v6  ;;  %v12805_v23 = vpop.f32.mrf.mxu0  ;;  %7101 = vmatprep.subr.bf16.mxu1 %v11024_v9  ;;  %v12808_v28 = vpop.f32.mrf.mxu1  ;;  %v11000_v5 = vcombine.high %v1188_v51, %v1192_v52  ;;  %v1052_v6 = vld [vmem:[#allocation8 + $0x840] sm:$0xff]  ;;  %v10999_v20 = vcombine.low %v1188_v51, %v1192_v52 }
 0x14f   :  { %7088 = vmatprep.mubr.bf16.mxu0 %v12801_v0  ;;  %7129 = vmatprep.mubr.bf16.mxu1 %v12803_v22  ;;  %v1172_v29 = vld [vmem:[#allocation8 + $0xc00] sm:$0xff] }
 0x150   :  { %v12811_v32 = vpop.f32.mrf.mxu0  ;;  %v12816_v35 = vpop.f32.mrf.mxu1  ;;  %v1176_v31 = vld [vmem:[#allocation8 + $0xc20] sm:$0xff] }
 0x151   :  { %7061 = vmatpush1.bf16.msra.mxu0 %v10895_v21  ;;  %7102 = vmatpush1.bf16.msra.mxu1 %v11023_v56  ;;  %v10864_v21 = vcombine.high %v1052_v6, %v1056_v7  ;;  %v10984_v42 = vcombine.high %v1172_v29, %v1176_v31  ;;  %v1164_v45 = vld [vmem:[#allocation8 + $0xbc0] sm:$0xff] }
 0x152   :  { %7062 = vmatprep.subr.bf16.mxu0 %v10888_v61  ;;  %v630_v40 = vpop.f32.mrf.mxu0  ;;  %7103 = vmatprep.subr.bf16.mxu1 %v11016_v24  ;;  %v671_v46 = vpop.f32.mrf.mxu1  ;;  %v10992_v61 = vcombine.high %v1180_v10, %v1184_v11  ;;  %v1044_v24 = vld [vmem:[#allocation8 + $0x800] sm:$0xff] }
 0x153   :  { %v10991_v40 = vcombine.low %v1180_v10, %v1184_v11  ;;  %v1168_v46 = vld [vmem:[#allocation8 + $0xbe0] sm:$0xff]  ;;  %v10855_v52 = vcombine.low %v1044_v24, %v1048_v25 }
 0x154   :  { %v631_v57 = vpop.f32.mrf.mxu0  ;;  %v672_v62 = vpop.f32.mrf.mxu1  ;;  %v1296_v51 = vld [vmem:[#allocation8 + $0xfe0] sm:$0xff] }
 0x155   :  { %7063 = vmatpush1.bf16.msra.mxu0 %v10887_v33  ;;  %7104 = vmatpush1.bf16.msra.mxu1 %v11015_v36  ;;  %v10863_v36 = vcombine.low %v1052_v6, %v1056_v7  ;;  %v10983_v57 = vcombine.low %v1172_v29, %v1176_v31  ;;  %v1156_v62 = vld [vmem:[#allocation8 + $0xb80] sm:$0xff] }
 0x156   :  { %7064 = vmatprep.subr.bf16.mxu0 %v10880_v37  ;;  %v708_v3 = vpop.f32.mrf.mxu0  ;;  %7105 = vmatprep.subr.bf16.mxu1 %v11008_v41  ;;  %v749_v9 = vpop.f32.mrf.mxu1  ;;  %v10856_v41 = vcombine.high %v1044_v24, %v1048_v25  ;;  %v1148_v7 = vld [vmem:[#allocation8 + $0xb40] sm:$0xff] }
 0x157   :  { %v12831_v8 = vadd.f32 %v708_v3, %v235_v49  ;;  %v12833_v19 = vadd.f32 %v749_v9, %v243_v58  ;;  %v1292_v49 = vld [vmem:[#allocation8 + $0xfc0] sm:$0xff]  ;;  %v10976_v58 = vcombine.high %v1164_v45, %v1168_v46  ;;  %v10975_v3 = vcombine.low %v1164_v45, %v1168_v46 }
 0x158   :  { %v710_v12 = vpop.f32.mrf.mxu0  ;;  %v751_v60 = vpop.f32.mrf.mxu1  ;;  %v1152_v9 = vld [vmem:[#allocation8 + $0xb60] sm:$0xff] }
 0x159   :  { %7065 = vmatpush1.bf16.msra.mxu0 %v10879_v13  ;;  %v12835_v54 = vadd.f32 %v710_v12, %v239_v63  ;;  %7106 = vmatpush1.bf16.msra.mxu1 %v11007_v1  ;;  %v12837_v56 = vadd.f32 %v751_v60, %v247_v4  ;;  %v11104_v13 = vcombine.high %v1292_v49, %v1296_v51  ;;  %v1160_v63 = vld [vmem:[#allocation8 + $0xba0] sm:$0xff] }
 0x15a   :  { %7066 = vmatprep.subr.bf16.mxu0 %v10872_v2  ;;  %v712_v55 = vpop.f32.mrf.mxu0  ;;  %7107 = vmatprep.subr.bf16.mxu1 %v11000_v5  ;;  %v753_v27 = vpop.f32.mrf.mxu1  ;;  %v1284_v1 = vld [vmem:[#allocation8 + $0xf80] sm:$0xff]  ;;  %v11103_v4 = vcombine.low %v1292_v49, %v1296_v51  ;;  %v10968_v5 = vcombine.high %v1156_v62, %v1160_v63  ;;  %v10967_v12 = vcombine.low %v1156_v62, %v1160_v63 }
 0x15b   :  { %v1288_v2 = vld [vmem:[#allocation8 + $0xfa0] sm:$0xff]  ;;  %v10960_v60 = vcombine.high %v1148_v7, %v1152_v9  ;;  %v10959_v25 = vcombine.low %v1148_v7, %v1152_v9  ;;  %v203_v7 = vrot.slane %v12750_v15, %v12814_v26 }
 0x15c   :  { %v713_v33 = vpop.f32.mrf.mxu0  ;;  %v754_v37 = vpop.f32.mrf.mxu1  ;;  %v11096_v6 = vcombine.high %v1284_v1, %v1288_v2  ;;  %v1276_v10 = vld [vmem:[#allocation8 + $0xf40] sm:$0xff] }
 0x15d   :  { %7067 = vmatpush1.bf16.msra.mxu0 %v10871_v53  ;;  %7108 = vmatpush1.bf16.msra.mxu1 %v10999_v20  ;;  %v1280_v11 = vld [vmem:[#allocation8 + $0xf60] sm:$0xff]  ;;  %v11095_v53 = vcombine.low %v1284_v1, %v1288_v2 }
 0x15e   :  { %7068 = vmatprep.subr.bf16.mxu0 %v10864_v21  ;;  %7109 = vmatprep.subr.bf16.mxu1 %v10992_v61  ;;  %v11088_v20 = vcombine.high %v1276_v10, %v1280_v11  ;;  %v1140_v21 = vld [vmem:[#allocation8 + $0xb00] sm:$0xff]  ;;  %v11087_v27 = vcombine.low %v1276_v10, %v1280_v11 }
 0x15f   :  { %v1144_v55 = vld [vmem:[#allocation8 + $0xb20] sm:$0xff] }
 0x160   :  { %v1268_v61 = vld [vmem:[#allocation8 + $0xf00] sm:$0xff]  ;;  %v10952_v29 = vcombine.high %v1140_v21, %v1144_v55 }
 0x161   :  { %7069 = vmatpush1.bf16.msra.mxu0 %v10863_v36  ;;  %7110 = vmatpush1.bf16.msra.mxu1 %v10991_v40  ;;  %v1272_v24 = vld [vmem:[#allocation8 + $0xf20] sm:$0xff] }
 0x162   :  { %7070 = vmatprep.subr.bf16.mxu0 %v10856_v41  ;;  %7111 = vmatprep.subr.bf16.mxu1 %v10984_v42  ;;  %v11080_v31 = vcombine.high %v1268_v61, %v1272_v24  ;;  %v1132_v33 = vld [vmem:[#allocation8 + $0xac0] sm:$0xff]  ;;  %v10951_v41 = vcombine.low %v1140_v21, %v1144_v55  ;;  %v11079_v42 = vcombine.low %v1268_v61, %v1272_v24 }
 0x163   :  { %v1136_v36 = vld [vmem:[#allocation8 + $0xae0] sm:$0xff]  ;;  %v231_v55 = vrot.slane %v12821_v39, %v12759_v18  ;;  %v545_v24 = vadd.f32 %v12785_v50, %v203_v7 }
 0x164   :  { %v1260_v37 = vld [vmem:[#allocation8 + $0xec0] sm:$0xff]  ;;  %v10944_v45 = vcombine.high %v1132_v33, %v1136_v36 }
 0x165   :  { %7071 = vmatpush1.bf16.msra.mxu0 %v10855_v52  ;;  %7112 = vmatpush1.bf16.msra.mxu1 %v10983_v57  ;;  %v1264_v40 = vld [vmem:[#allocation8 + $0xee0] sm:$0xff] }
 0x166   :  { %7072 = vmatprep.subr.bf16.mxu0 %v10976_v58  ;;  %7113 = vmatprep.subr.bf16.mxu1 %v11104_v13  ;;  %v11072_v46 = vcombine.high %v1260_v37, %v1264_v40  ;;  %v1124_v49 = vld [vmem:[#allocation8 + $0xa80] sm:$0xff]  ;;  %v10943_v58 = vcombine.low %v1132_v33, %v1136_v36  ;;  %v11071_v13 = vcombine.low %v1260_v37, %v1264_v40 }
 0x167   :  { %v1128_v51 = vld [vmem:[#allocation8 + $0xaa0] sm:$0xff] }
 0x168   :  { %v1252_v52 = vld [vmem:[#allocation8 + $0xe80] sm:$0xff]  ;;  %v10936_v62 = vcombine.high %v1124_v49, %v1128_v51 }
 0x169   :  { %7073 = vmatpush2.bf16.msra.mxu0 %v10975_v3  ;;  %7114 = vmatpush2.bf16.msra.mxu1 %v11103_v4  ;;  %v1256_v57 = vld [vmem:[#allocation8 + $0xea0] sm:$0xff] }
 0x16a   :  { %7074 = vmatprep.subr.bf16.mxu0 %v10968_v5  ;;  %7115 = vmatprep.subr.bf16.mxu1 %v11096_v6  ;;  %v11064_v63 = vcombine.high %v1252_v52, %v1256_v57  ;;  %v1116_v1 = vld [vmem:[#allocation8 + $0xa40] sm:$0xff]  ;;  %v211_v5 = vrot.slane %v12750_v15, %v12819_v38  ;;  %v10935_v6 = vcombine.low %v1124_v49, %v1128_v51 }
 0x16b   :  { %v1120_v2 = vld [vmem:[#allocation8 + $0xa60] sm:$0xff]  ;;  %v11063_v9 = vcombine.low %v1252_v52, %v1256_v57 }
 0x16c   :  { %v1244_v3 = vld [vmem:[#allocation8 + $0xe40] sm:$0xff]  ;;  %v10928_v10 = vcombine.high %v1116_v1, %v1120_v2  ;;  %v586_v61 = vadd.f32 %v12790_v59, %v211_v5  ;;  %v10927_v15 = vcombine.low %v1116_v1, %v1120_v2 }
 0x16d   :  { %7075 = vmatpush2.bf16.msra.mxu0 %v10967_v12  ;;  %7116 = vmatpush2.bf16.msra.mxu1 %v11095_v53  ;;  %v1248_v4 = vld [vmem:[#allocation8 + $0xe60] sm:$0xff] }
 0x16e   :  { %7076 = vmatprep.subr.bf16.mxu0 %v10960_v60  ;;  %7117 = vmatprep.subr.bf16.mxu1 %v11088_v20  ;;  %v11056_v11 = vcombine.high %v1244_v3, %v1248_v4  ;;  %v1108_v12 = vld [vmem:[#allocation8 + $0xa00] sm:$0xff]  ;;  %v223_v60 = vrot.slane %v12821_v39, %v12756_v17 }
 0x16f   :  { %v1112_v53 = vld [vmem:[#allocation8 + $0xa20] sm:$0xff] }
 0x170   :  { %v1236_v20 = vld [vmem:[#allocation8 + $0xe00] sm:$0xff]  ;;  %v629_v36 = vadd.f32 %v12811_v32, %v223_v60  ;;  %v10919_v59 = vcombine.low %v1108_v12, %v1112_v53 }
 0x171   :  { %7077 = vmatpush2.bf16.msra.mxu0 %v10959_v25  ;;  %7118 = vmatpush2.bf16.msra.mxu1 %v11087_v27  ;;  %v1240_v21 = vld [vmem:[#allocation8 + $0xe20] sm:$0xff]  ;;  %v11055_v25 = vcombine.low %v1244_v3, %v1248_v4  ;;  %v10920_v27 = vcombine.high %v1108_v12, %v1112_v53 }
 0x172   :  { %7078 = vmatprep.subr.bf16.mxu0 %v10952_v29  ;;  %7119 = vmatprep.subr.bf16.mxu1 %v11080_v31  ;;  %v11048_v29 = vcombine.high %v1236_v20, %v1240_v21  ;;  %v1356_v31 = vld [vmem:[#allocation8 + $0x11c0] sm:$0xff]  ;;  %v11047_v50 = vcombine.low %v1236_v20, %v1240_v21  ;;  %v765_v57 = vmax.f32 %v629_v36, 0.0 }
 0x173   :  { %v1360_v33 = vld [vmem:[#allocation8 + $0x11e0] sm:$0xff] }
 0x174   :  { %v1484_v37 = vld [vmem:[#allocation8 + $0x15c0] sm:$0xff] }
 0x175   :  { %7079 = vmatpush2.bf16.msra.mxu0 %v10951_v41  ;;  %7120 = vmatpush2.bf16.msra.mxu1 %v11079_v42  ;;  %v1488_v40 = vld [vmem:[#allocation8 + $0x15e0] sm:$0xff]  ;;  %v670_v41 = vadd.f32 %v12816_v35, %v231_v55  ;;  %v762_v42 = vmax.f32 %v586_v61, 0.0  ;;  %v11167_v35 = vcombine.low %v1356_v31, %v1360_v33 }
 0x176   :  { %7080 = vmatprep.subr.bf16.mxu0 %v10944_v45  ;;  %7121 = vmatprep.subr.bf16.mxu1 %v11072_v46  ;;  %v760_v45 = vmax.f32 %v545_v24, 0.0  ;;  %v11168_v46 = vcombine.high %v1356_v31, %v1360_v33  ;;  %v11296_v49 = vcombine.high %v1484_v37, %v1488_v40  ;;  %v1348_v51 = vld [vmem:[#allocation8 + $0x1180] sm:$0xff]  ;;  %v11295_v1 = vcombine.low %v1484_v37, %v1488_v40 }
 0x177   :  { %v1352_v52 = vld [vmem:[#allocation8 + $0x11a0] sm:$0xff]  ;;  %v767_v32 = vmax.f32 %v670_v41, 0.0 }
 0x178   :  { %v11160_v2 = vcombine.high %v1348_v51, %v1352_v52  ;;  %v1340_v4 = vld [vmem:[#allocation8 + $0x1140] sm:$0xff] }
 0x179   :  { %7081 = vmatpush2.bf16.msra.mxu0 %v10943_v58  ;;  %7122 = vmatpush2.bf16.msra.mxu1 %v11071_v13  ;;  %v1476_v58 = vld [vmem:[#allocation8 + $0x1580] sm:$0xff] }
 0x17a   :  { %7082 = vmatprep.subr.bf16.mxu0 %v10936_v62  ;;  %7123 = vmatprep.subr.bf16.mxu1 %v11064_v63  ;;  %v1480_v13 = vld [vmem:[#allocation8 + $0x15a0] sm:$0xff]  ;;  %v12851_v62 = vpack.c.bf16 %v762_v42, %v762_v42  ;;  %v12853_v63 = vpack.c.bf16 %v760_v45, %v760_v45 }
 0x17b   :  { %v11288_v3 = vcombine.high %v1476_v58, %v1480_v13  ;;  %v1344_v5 = vld [vmem:[#allocation8 + $0x1160] sm:$0xff]  ;;  %v11287_v12 = vcombine.low %v1476_v58, %v1480_v13 }
 0x17c   :  { %v1468_v7 = vld [vmem:[#allocation8 + $0x1540] sm:$0xff]  ;;  %v11152_v53 = vcombine.high %v1340_v4, %v1344_v5 }
 0x17d   :  { %7083 = vmatpush2.bf16.msra.mxu0 %v10935_v6  ;;  %7124 = vmatpush2.bf16.msra.mxu1 %v11063_v9  ;;  %v12855_v6 = vpack.c.bf16 %v765_v57, %v765_v57  ;;  %v1472_v9 = vld [vmem:[#allocation8 + $0x1560] sm:$0xff] }
 0x17e   :  { %7084 = vmatprep.subr.bf16.mxu0 %v10928_v10  ;;  %7125 = vmatprep.subr.bf16.mxu1 %v11056_v11  ;;  %v12858_v10 = vpack.c.bf16 %v767_v32, %v767_v32  ;;  %v11159_v11 = vcombine.low %v1348_v51, %v1352_v52  ;;  %v11280_v60 = vcombine.high %v1468_v7, %v1472_v9  ;;  %v1332_v20 = vld [vmem:[#allocation8 + $0x1100] sm:$0xff] }
 0x17f   :  { %v1336_v21 = vld [vmem:[#allocation8 + $0x1120] sm:$0xff]  ;;  %v11279_v24 = vcombine.low %v1468_v7, %v1472_v9 }
 0x180   :  { %v1460_v55 = vld [vmem:[#allocation8 + $0x1500] sm:$0xff]  ;;  %v11143_v37 = vcombine.low %v1332_v20, %v1336_v21 }
 0x181   :  { %7085 = vmatpush2.bf16.msra.mxu0 %v10927_v15  ;;  %7126 = vmatpush2.bf16.msra.mxu1 %v11055_v25  ;;  %v1464_v61 = vld [vmem:[#allocation8 + $0x1520] sm:$0xff]  ;;  %v11151_v15 = vcombine.low %v1340_v4, %v1344_v5  ;;  %v11144_v25 = vcombine.high %v1332_v20, %v1336_v21 }
 0x182   :  { %7086 = vmatprep.subr.bf16.mxu0 %v10920_v27  ;;  %7127 = vmatprep.subr.bf16.mxu1 %v11048_v29  ;;  %v11272_v27 = vcombine.high %v1460_v55, %v1464_v61  ;;  %v1324_v29 = vld [vmem:[#allocation8 + $0x10c0] sm:$0xff]  ;;  %v11271_v40 = vcombine.low %v1460_v55, %v1464_v61 }
 0x183   :  { %v1328_v31 = vld [vmem:[#allocation8 + $0x10e0] sm:$0xff] }
 0x184   :  { %v1452_v33 = vld [vmem:[#allocation8 + $0x14c0] sm:$0xff]  ;;  %v11136_v41 = vcombine.high %v1324_v29, %v1328_v31 }
 0x185   :  { %7087 = vmatpush2.bf16.msra.mxu0 %v10919_v59  ;;  %7128 = vmatpush2.bf16.msra.mxu1 %v11047_v50  ;;  %v1456_v36 = vld [vmem:[#allocation8 + $0x14e0] sm:$0xff] }
 0x186   :  { %7138 = vmatprep.subr.bf16.mxu0 %v11168_v46  ;;  %7179 = vmatprep.subr.bf16.mxu1 %v11296_v49  ;;  %v11264_v42 = vcombine.high %v1452_v33, %v1456_v36  ;;  %v1316_v59 = vld [vmem:[#allocation8 + $0x1080] sm:$0xff]  ;;  %v11135_v49 = vcombine.low %v1324_v29, %v1328_v31  ;;  %v11263_v51 = vcombine.low %v1452_v33, %v1456_v36 }
 0x187   :  { %v1320_v45 = vld [vmem:[#allocation8 + $0x10a0] sm:$0xff] }
 0x188   :  { %7089 = vmatmul.mubr.bf16.vlgmr.msra.gmra.mxu0 %v12853_v63  ;;  %7130 = vmatmul.mubr.bf16.vlgmr.msra.gmra.mxu1 %v12851_v62  ;;  %v1444_v50 = vld [vmem:[#allocation8 + $0x1480] sm:$0xff]  ;;  %v11128_v52 = vcombine.high %v1316_v59, %v1320_v45 }
 0x189   :  { %7139 = vmatpush1.bf16.msra.mxu0 %v11167_v35  ;;  %7180 = vmatpush1.bf16.msra.mxu1 %v11295_v1  ;;  %v1448_v46 = vld [vmem:[#allocation8 + $0x14a0] sm:$0xff]  ;;  %v11127_v1 = vcombine.low %v1316_v59, %v1320_v45 }
 0x18a   :  { %7140 = vmatprep.subr.bf16.mxu0 %v11160_v2  ;;  %7181 = vmatprep.subr.bf16.mxu1 %v11288_v3  ;;  %v11256_v57 = vcombine.high %v1444_v50, %v1448_v46  ;;  %v1308_v58 = vld [vmem:[#allocation8 + $0x1040] sm:$0xff]  ;;  %v11255_v2 = vcombine.low %v1444_v50, %v1448_v46 }
 0x18b   :  { %7170 = vmatprep.mubr.bf16.mxu0 %v12855_v6  ;;  %7211 = vmatprep.mubr.bf16.mxu1 %v12858_v10  ;;  %v1312_v13 = vld [vmem:[#allocation8 + $0x1060] sm:$0xff] }
 0x18c   :  { %v1436_v32 = vld [vmem:[#allocation8 + $0x1440] sm:$0xff]  ;;  %v11120_v3 = vcombine.high %v1308_v58, %v1312_v13 }
 0x18d   :  { %7141 = vmatpush1.bf16.msra.mxu0 %v11159_v11  ;;  %7182 = vmatpush1.bf16.msra.mxu1 %v11287_v12  ;;  %v1440_v35 = vld [vmem:[#allocation8 + $0x1460] sm:$0xff]  ;;  %v11119_v12 = vcombine.low %v1308_v58, %v1312_v13 }
 0x18e   :  { %7142 = vmatprep.subr.bf16.mxu0 %v11152_v53  ;;  %7183 = vmatprep.subr.bf16.mxu1 %v11280_v60  ;;  %v11248_v4 = vcombine.high %v1436_v32, %v1440_v35  ;;  %v1300_v5 = vld [vmem:[#allocation8 + $0x1000] sm:$0xff]  ;;  %v11247_v53 = vcombine.low %v1436_v32, %v1440_v35 }
 0x18f   :  { %v1304_v7 = vld [vmem:[#allocation8 + $0x1020] sm:$0xff] }
 0x190   :  { %v1428_v9 = vld [vmem:[#allocation8 + $0x1400] sm:$0xff]  ;;  %v11112_v60 = vcombine.high %v1300_v5, %v1304_v7 }
 0x191   :  { %7143 = vmatpush1.bf16.msra.mxu0 %v11151_v15  ;;  %7184 = vmatpush1.bf16.msra.mxu1 %v11279_v24  ;;  %v1432_v11 = vld [vmem:[#allocation8 + $0x1420] sm:$0xff]  ;;  %v11111_v24 = vcombine.low %v1300_v5, %v1304_v7 }
 0x192   :  { %7144 = vmatprep.subr.bf16.mxu0 %v11144_v25  ;;  %7185 = vmatprep.subr.bf16.mxu1 %v11272_v27  ;;  %v11240_v20 = vcombine.high %v1428_v9, %v1432_v11  ;;  %v1420_v21 = vld [vmem:[#allocation8 + $0x13c0] sm:$0xff]  ;;  %v11239_v25 = vcombine.low %v1428_v9, %v1432_v11 }
 0x193   :  { %v1424_v55 = vld [vmem:[#allocation8 + $0x13e0] sm:$0xff] }
 0x194   :  { %v1548_v61 = vld [vmem:[#allocation8 + $0x17c0] sm:$0xff]  ;;  %v11232_v27 = vcombine.high %v1420_v21, %v1424_v55 }
 0x195   :  { %7145 = vmatpush1.bf16.msra.mxu0 %v11143_v37  ;;  %7186 = vmatpush1.bf16.msra.mxu1 %v11271_v40  ;;  %v1552_v15 = vld [vmem:[#allocation8 + $0x17e0] sm:$0xff]  ;;  %v11231_v40 = vcombine.low %v1420_v21, %v1424_v55 }
 0x196   :  { %7146 = vmatprep.subr.bf16.mxu0 %v11136_v41  ;;  %7187 = vmatprep.subr.bf16.mxu1 %v11264_v42  ;;  %v11360_v29 = vcombine.high %v1548_v61, %v1552_v15  ;;  %v1412_v31 = vld [vmem:[#allocation8 + $0x1380] sm:$0xff]  ;;  %v11359_v41 = vcombine.low %v1548_v61, %v1552_v15 }
 0x197   :  { %v1416_v33 = vld [vmem:[#allocation8 + $0x13a0] sm:$0xff] }
 0x198   :  { %v1540_v36 = vld [vmem:[#allocation8 + $0x1780] sm:$0xff]  ;;  %v11224_v42 = vcombine.high %v1412_v31, %v1416_v33 }
 0x199   :  { %7147 = vmatpush1.bf16.msra.mxu0 %v11135_v49  ;;  %7188 = vmatpush1.bf16.msra.mxu1 %v11263_v51  ;;  %v1544_v37 = vld [vmem:[#allocation8 + $0x17a0] sm:$0xff]  ;;  %v11223_v51 = vcombine.low %v1412_v31, %v1416_v33 }
 0x19a   :  { %7148 = vmatprep.subr.bf16.mxu0 %v11128_v52  ;;  %7189 = vmatprep.subr.bf16.mxu1 %v11256_v57  ;;  %v11352_v59 = vcombine.high %v1540_v36, %v1544_v37  ;;  %v1404_v45 = vld [vmem:[#allocation8 + $0x1340] sm:$0xff]  ;;  %v11351_v52 = vcombine.low %v1540_v36, %v1544_v37 }
 0x19b   :  { %v1408_v50 = vld [vmem:[#allocation8 + $0x1360] sm:$0xff] }
 0x19c   :  { %v1532_v46 = vld [vmem:[#allocation8 + $0x1740] sm:$0xff]  ;;  %v11216_v57 = vcombine.high %v1404_v45, %v1408_v50 }
 0x19d   :  { %7149 = vmatpush1.bf16.msra.mxu0 %v11127_v1  ;;  %7190 = vmatpush1.bf16.msra.mxu1 %v11255_v2  ;;  %v1536_v49 = vld [vmem:[#allocation8 + $0x1760] sm:$0xff]  ;;  %v11215_v2 = vcombine.low %v1404_v45, %v1408_v50 }
 0x19e   :  { %7150 = vmatprep.subr.bf16.mxu0 %v11120_v3  ;;  %7191 = vmatprep.subr.bf16.mxu1 %v11248_v4  ;;  %v11344_v58 = vcombine.high %v1532_v46, %v1536_v49  ;;  %v1396_v13 = vld [vmem:[#allocation8 + $0x1300] sm:$0xff]  ;;  %v11343_v3 = vcombine.low %v1532_v46, %v1536_v49 }
 0x19f   :  { %v1400_v32 = vld [vmem:[#allocation8 + $0x1320] sm:$0xff] }
 0x1a0   :  { %v1524_v35 = vld [vmem:[#allocation8 + $0x1700] sm:$0xff]  ;;  %v11208_v4 = vcombine.high %v1396_v13, %v1400_v32 }
 0x1a1   :  { %7151 = vmatpush1.bf16.msra.mxu0 %v11119_v12  ;;  %7192 = vmatpush1.bf16.msra.mxu1 %v11247_v53  ;;  %v1528_v1 = vld [vmem:[#allocation8 + $0x1720] sm:$0xff]  ;;  %v11207_v53 = vcombine.low %v1396_v13, %v1400_v32 }
 0x1a2   :  { %7152 = vmatprep.subr.bf16.mxu0 %v11112_v60  ;;  %7193 = vmatprep.subr.bf16.mxu1 %v11240_v20  ;;  %v11336_v5 = vcombine.high %v1524_v35, %v1528_v1  ;;  %v1388_v7 = vld [vmem:[#allocation8 + $0x12c0] sm:$0xff]  ;;  %v11335_v60 = vcombine.low %v1524_v35, %v1528_v1 }
 0x1a3   :  { %v1392_v9 = vld [vmem:[#allocation8 + $0x12e0] sm:$0xff] }
 0x1a4   :  { %v1516_v11 = vld [vmem:[#allocation8 + $0x16c0] sm:$0xff]  ;;  %v11200_v20 = vcombine.high %v1388_v7, %v1392_v9 }
 0x1a5   :  { %7153 = vmatpush1.bf16.msra.mxu0 %v11111_v24  ;;  %7194 = vmatpush1.bf16.msra.mxu1 %v11239_v25  ;;  %v1520_v12 = vld [vmem:[#allocation8 + $0x16e0] sm:$0xff]  ;;  %v11199_v25 = vcombine.low %v1388_v7, %v1392_v9 }
 0x1a6   :  { %7154 = vmatprep.subr.bf16.mxu0 %v11232_v27  ;;  %7195 = vmatprep.subr.bf16.mxu1 %v11360_v29  ;;  %v11328_v21 = vcombine.high %v1516_v11, %v1520_v12  ;;  %v1380_v55 = vld [vmem:[#allocation8 + $0x1280] sm:$0xff]  ;;  %v11327_v27 = vcombine.low %v1516_v11, %v1520_v12 }
 0x1a7   :  { %v1384_v61 = vld [vmem:[#allocation8 + $0x12a0] sm:$0xff] }
 0x1a8   :  { %v1508_v15 = vld [vmem:[#allocation8 + $0x1680] sm:$0xff]  ;;  %v11192_v29 = vcombine.high %v1380_v55, %v1384_v61 }
 0x1a9   :  { %7155 = vmatpush2.bf16.msra.mxu0 %v11231_v40  ;;  %7196 = vmatpush2.bf16.msra.mxu1 %v11359_v41  ;;  %v1512_v24 = vld [vmem:[#allocation8 + $0x16a0] sm:$0xff]  ;;  %v227_v41 = vrot.slane %v12821_v39, %v12753_v16 }
 0x1aa   :  { %7156 = vmatprep.subr.bf16.mxu0 %v11224_v42  ;;  %7197 = vmatprep.subr.bf16.mxu1 %v11352_v59  ;;  %v11320_v31 = vcombine.high %v1508_v15, %v1512_v24  ;;  %v1372_v33 = vld [vmem:[#allocation8 + $0x1240] sm:$0xff]  ;;  %v11191_v42 = vcombine.low %v1380_v55, %v1384_v61  ;;  %v219_v59 = vrot.slane %v12821_v39, %v12748_v14 }
 0x1ab   :  { %v1376_v36 = vld [vmem:[#allocation8 + $0x1260] sm:$0xff]  ;;  %v11319_v45 = vcombine.low %v1508_v15, %v1512_v24 }
 0x1ac   :  { %v1500_v37 = vld [vmem:[#allocation8 + $0x1640] sm:$0xff]  ;;  %v11184_v50 = vcombine.high %v1372_v33, %v1376_v36  ;;  %v11183_v13 = vcombine.low %v1372_v33, %v1376_v36  ;;  %v627_v32 = vadd.f32 %v12805_v23, %v219_v59  ;;  %v769_v23 = vmax.f32 %v12835_v54, 0.0 }
 0x1ad   :  { %7157 = vmatpush2.bf16.msra.mxu0 %v11223_v51  ;;  %7198 = vmatpush2.bf16.msra.mxu1 %v11351_v52  ;;  %v1504_v40 = vld [vmem:[#allocation8 + $0x1660] sm:$0xff] }
 0x1ae   :  { %7158 = vmatprep.subr.bf16.mxu0 %v11216_v57  ;;  %7199 = vmatprep.subr.bf16.mxu1 %v11344_v58  ;;  %v11312_v46 = vcombine.high %v1500_v37, %v1504_v40  ;;  %v1364_v49 = vld [vmem:[#allocation8 + $0x1200] sm:$0xff]  ;;  %v668_v58 = vadd.f32 %v12808_v28, %v227_v41  ;;  %v11311_v35 = vcombine.low %v1500_v37, %v1504_v40  ;;  %v764_v11 = vmax.f32 %v627_v32, 0.0 }
 0x1af   :  { %v1368_v51 = vld [vmem:[#allocation8 + $0x1220] sm:$0xff] }
 0x1b0   :  { %v1492_v52 = vld [vmem:[#allocation8 + $0x1600] sm:$0xff]  ;;  %v11176_v39 = vcombine.high %v1364_v49, %v1368_v51  ;;  %v766_v7 = vmax.f32 %v668_v58, 0.0  ;;  %v11175_v9 = vcombine.low %v1364_v49, %v1368_v51 }
 0x1b1   :  { %7159 = vmatpush2.bf16.msra.mxu0 %v11215_v2  ;;  %7200 = vmatpush2.bf16.msra.mxu1 %v11343_v3  ;;  %v1496_v57 = vld [vmem:[#allocation8 + $0x1620] sm:$0xff] }
 0x1b2   :  { %7160 = vmatprep.subr.bf16.mxu0 %v11208_v4  ;;  %7201 = vmatprep.subr.bf16.mxu1 %v11336_v5  ;;  %v11304_v1 = vcombine.high %v1492_v52, %v1496_v57  ;;  %v1612_v2 = vld [vmem:[#allocation8 + $0x19c0] sm:$0xff]  ;;  %v11303_v28 = vcombine.low %v1492_v52, %v1496_v57  ;;  %v12871_v15 = vpack.c.bf16 %v766_v7, %v766_v7 }
 0x1b3   :  { %v1616_v3 = vld [vmem:[#allocation8 + $0x19e0] sm:$0xff] }
 0x1b4   :  { %v1740_v4 = vld [vmem:[#allocation8 + $0x1dc0] sm:$0xff]  ;;  %v11424_v12 = vcombine.high %v1612_v2, %v1616_v3  ;;  %v11423_v24 = vcombine.low %v1612_v2, %v1616_v3 }
 0x1b5   :  { %7161 = vmatpush2.bf16.msra.mxu0 %v11207_v53  ;;  %7202 = vmatpush2.bf16.msra.mxu1 %v11335_v60  ;;  %v1744_v5 = vld [vmem:[#allocation8 + $0x1de0] sm:$0xff] }
 0x1b6   :  { %7162 = vmatprep.subr.bf16.mxu0 %v11200_v20  ;;  %7203 = vmatprep.subr.bf16.mxu1 %v11328_v21  ;;  %v11552_v53 = vcombine.high %v1740_v4, %v1744_v5  ;;  %v1604_v60 = vld [vmem:[#allocation8 + $0x1980] sm:$0xff]  ;;  %v771_v21 = vmax.f32 %v12837_v56, 0.0 }
 0x1b7   :  { %v1608_v20 = vld [vmem:[#allocation8 + $0x19a0] sm:$0xff] }
 0x1b8   :  { %v1732_v55 = vld [vmem:[#allocation8 + $0x1d80] sm:$0xff]  ;;  %v12877_v37 = vpack.c.bf16 %v771_v21, %v771_v21  ;;  %v11415_v41 = vcombine.low %v1604_v60, %v1608_v20 }
 0x1b9   :  { %7163 = vmatpush2.bf16.msra.mxu0 %v11199_v25  ;;  %7204 = vmatpush2.bf16.msra.mxu1 %v11327_v27  ;;  %v1736_v61 = vld [vmem:[#allocation8 + $0x1da0] sm:$0xff]  ;;  %v12873_v25 = vpack.c.bf16 %v764_v11, %v764_v11  ;;  %v11551_v27 = vcombine.low %v1740_v4, %v1744_v5 }
 0x1ba   :  { %7164 = vmatprep.subr.bf16.mxu0 %v11192_v29  ;;  %7205 = vmatprep.subr.bf16.mxu1 %v11320_v31  ;;  %v11416_v29 = vcombine.high %v1604_v60, %v1608_v20  ;;  %v12875_v31 = vpack.c.bf16 %v769_v23, %v769_v23  ;;  %v11544_v54 = vcombine.high %v1732_v55, %v1736_v61  ;;  %v1596_v33 = vld [vmem:[#allocation8 + $0x1940] sm:$0xff] }
 0x1bb   :  { %v1600_v36 = vld [vmem:[#allocation8 + $0x1960] sm:$0xff] }
 0x1bc   :  { %v1724_v56 = vld [vmem:[#allocation8 + $0x1d40] sm:$0xff]  ;;  %v11408_v59 = vcombine.high %v1596_v33, %v1600_v36  ;;  %v11407_v52 = vcombine.low %v1596_v33, %v1600_v36 }
 0x1bd   :  { %7165 = vmatpush2.bf16.msra.mxu0 %v11191_v42  ;;  %7206 = vmatpush2.bf16.msra.mxu1 %v11319_v45  ;;  %v1728_v40 = vld [vmem:[#allocation8 + $0x1d60] sm:$0xff]  ;;  %v11543_v42 = vcombine.low %v1732_v55, %v1736_v61 }
 0x1be   :  { %7166 = vmatprep.subr.bf16.mxu0 %v11184_v50  ;;  %7207 = vmatprep.subr.bf16.mxu1 %v11312_v46  ;;  %v11536_v45 = vcombine.high %v1724_v56, %v1728_v40  ;;  %v1588_v50 = vld [vmem:[#allocation8 + $0x1900] sm:$0xff]  ;;  %v11535_v57 = vcombine.low %v1724_v56, %v1728_v40 }
 0x1bf   :  { %v1592_v46 = vld [vmem:[#allocation8 + $0x1920] sm:$0xff] }
 0x1c0   :  { %v1716_v49 = vld [vmem:[#allocation8 + $0x1d00] sm:$0xff]  ;;  %v11400_v58 = vcombine.high %v1588_v50, %v1592_v46  ;;  %v11399_v2 = vcombine.low %v1588_v50, %v1592_v46 }
 0x1c1   :  { %7167 = vmatpush2.bf16.msra.mxu0 %v11183_v13  ;;  %7208 = vmatpush2.bf16.msra.mxu1 %v11311_v35  ;;  %v1720_v51 = vld [vmem:[#allocation8 + $0x1d20] sm:$0xff] }
 0x1c2   :  { %7168 = vmatprep.subr.bf16.mxu0 %v11176_v39  ;;  %7209 = vmatprep.subr.bf16.mxu1 %v11304_v1  ;;  %v11528_v13 = vcombine.high %v1716_v49, %v1720_v51  ;;  %v1580_v32 = vld [vmem:[#allocation8 + $0x18c0] sm:$0xff]  ;;  %v11527_v3 = vcombine.low %v1716_v49, %v1720_v51 }
 0x1c3   :  { %v1584_v35 = vld [vmem:[#allocation8 + $0x18e0] sm:$0xff] }
 0x1c4   :  { %v1708_v39 = vld [vmem:[#allocation8 + $0x1cc0] sm:$0xff]  ;;  %v11392_v4 = vcombine.high %v1580_v32, %v1584_v35 }
 0x1c5   :  { %7169 = vmatpush2.bf16.msra.mxu0 %v11175_v9  ;;  %7210 = vmatpush2.bf16.msra.mxu1 %v11303_v28  ;;  %v1712_v1 = vld [vmem:[#allocation8 + $0x1ce0] sm:$0xff] }
 0x1c6   :  { %7220 = vmatprep.subr.bf16.mxu0 %v11424_v12  ;;  %7261 = vmatprep.subr.bf16.mxu1 %v11552_v53  ;;  %v11520_v5 = vcombine.high %v1708_v39, %v1712_v1  ;;  %v1572_v7 = vld [vmem:[#allocation8 + $0x1880] sm:$0xff]  ;;  %v11391_v12 = vcombine.low %v1580_v32, %v1584_v35  ;;  %v11519_v23 = vcombine.low %v1708_v39, %v1712_v1 }
 0x1c7   :  { %v1576_v9 = vld [vmem:[#allocation8 + $0x18a0] sm:$0xff] }
 0x1c8   :  { %7171 = vmatmul.mubr.bf16.vlgmr.msra.gmra.mxu0 %v12873_v25  ;;  %7212 = vmatmul.mubr.bf16.vlgmr.msra.gmra.mxu1 %v12871_v15  ;;  %v1700_v11 = vld [vmem:[#allocation8 + $0x1c80] sm:$0xff]  ;;  %v11384_v53 = vcombine.high %v1572_v7, %v1576_v9 }
 0x1c9   :  { %7221 = vmatpush1.bf16.msra.mxu0 %v11423_v24  ;;  %7262 = vmatpush1.bf16.msra.mxu1 %v11551_v27  ;;  %v1704_v28 = vld [vmem:[#allocation8 + $0x1ca0] sm:$0xff]  ;;  %v11383_v24 = vcombine.low %v1572_v7, %v1576_v9 }
 0x1ca   :  { %7222 = vmatprep.subr.bf16.mxu0 %v11416_v29  ;;  %7263 = vmatprep.subr.bf16.mxu1 %v11544_v54  ;;  %v11512_v60 = vcombine.high %v1700_v11, %v1704_v28  ;;  %v1564_v20 = vld [vmem:[#allocation8 + $0x1840] sm:$0xff]  ;;  %v11511_v27 = vcombine.low %v1700_v11, %v1704_v28 }
 0x1cb   :  { %7252 = vmatprep.mubr.bf16.mxu0 %v12875_v31  ;;  %7293 = vmatprep.mubr.bf16.mxu1 %v12877_v37  ;;  %v1568_v21 = vld [vmem:[#allocation8 + $0x1860] sm:$0xff] }
 0x1cc   :  { %v1692_v55 = vld [vmem:[#allocation8 + $0x1c40] sm:$0xff]  ;;  %v11376_v29 = vcombine.high %v1564_v20, %v1568_v21 }
 0x1cd   :  { %7223 = vmatpush1.bf16.msra.mxu0 %v11415_v41  ;;  %7264 = vmatpush1.bf16.msra.mxu1 %v11543_v42  ;;  %v1696_v61 = vld [vmem:[#allocation8 + $0x1c60] sm:$0xff]  ;;  %v11375_v41 = vcombine.low %v1564_v20, %v1568_v21 }
 0x1ce   :  { %7224 = vmatprep.subr.bf16.mxu0 %v11408_v59  ;;  %7265 = vmatprep.subr.bf16.mxu1 %v11536_v45  ;;  %v11504_v54 = vcombine.high %v1692_v55, %v1696_v61  ;;  %v1556_v33 = vld [vmem:[#allocation8 + $0x1800] sm:$0xff]  ;;  %v11503_v42 = vcombine.low %v1692_v55, %v1696_v61 }
 0x1cf   :  { %v1560_v36 = vld [vmem:[#allocation8 + $0x1820] sm:$0xff] }
 0x1d0   :  { %v1684_v56 = vld [vmem:[#allocation8 + $0x1c00] sm:$0xff]  ;;  %v11368_v59 = vcombine.high %v1556_v33, %v1560_v36 }
 0x1d1   :  { %7225 = vmatpush1.bf16.msra.mxu0 %v11407_v52  ;;  %7266 = vmatpush1.bf16.msra.mxu1 %v11535_v57  ;;  %v1688_v40 = vld [vmem:[#allocation8 + $0x1c20] sm:$0xff]  ;;  %v11367_v52 = vcombine.low %v1556_v33, %v1560_v36 }
 0x1d2   :  { %7226 = vmatprep.subr.bf16.mxu0 %v11400_v58  ;;  %7267 = vmatprep.subr.bf16.mxu1 %v11528_v13  ;;  %v11496_v45 = vcombine.high %v1684_v56, %v1688_v40  ;;  %v1676_v50 = vld [vmem:[#allocation8 + $0x1bc0] sm:$0xff]  ;;  %v11495_v57 = vcombine.low %v1684_v56, %v1688_v40 }
 0x1d3   :  { %v1680_v46 = vld [vmem:[#allocation8 + $0x1be0] sm:$0xff] }
 0x1d4   :  { %v1804_v49 = vld [vmem:[#allocation8 + $0x1fc0] sm:$0xff]  ;;  %v11488_v58 = vcombine.high %v1676_v50, %v1680_v46 }
 0x1d5   :  { %7227 = vmatpush1.bf16.msra.mxu0 %v11399_v2  ;;  %7268 = vmatpush1.bf16.msra.mxu1 %v11527_v3  ;;  %v1808_v51 = vld [vmem:[#allocation8 + $0x1fe0] sm:$0xff]  ;;  %v11487_v2 = vcombine.low %v1676_v50, %v1680_v46 }
 0x1d6   :  { %7228 = vmatprep.subr.bf16.mxu0 %v11392_v4  ;;  %7269 = vmatprep.subr.bf16.mxu1 %v11520_v5  ;;  %v11616_v13 = vcombine.high %v1804_v49, %v1808_v51  ;;  %v1668_v32 = vld [vmem:[#allocation8 + $0x1b80] sm:$0xff]  ;;  %v11615_v3 = vcombine.low %v1804_v49, %v1808_v51 }
 0x1d7   :  { %v1672_v35 = vld [vmem:[#allocation8 + $0x1ba0] sm:$0xff] }
 0x1d8   :  { %v1796_v39 = vld [vmem:[#allocation8 + $0x1f80] sm:$0xff]  ;;  %v11480_v4 = vcombine.high %v1668_v32, %v1672_v35 }
 0x1d9   :  { %7229 = vmatpush1.bf16.msra.mxu0 %v11391_v12  ;;  %7270 = vmatpush1.bf16.msra.mxu1 %v11519_v23  ;;  %v1800_v1 = vld [vmem:[#allocation8 + $0x1fa0] sm:$0xff]  ;;  %v11479_v12 = vcombine.low %v1668_v32, %v1672_v35 }
 0x1da   :  { %7230 = vmatprep.subr.bf16.mxu0 %v11384_v53  ;;  %7271 = vmatprep.subr.bf16.mxu1 %v11512_v60  ;;  %v11608_v5 = vcombine.high %v1796_v39, %v1800_v1  ;;  %v1660_v7 = vld [vmem:[#allocation8 + $0x1b40] sm:$0xff]  ;;  %v11607_v23 = vcombine.low %v1796_v39, %v1800_v1 }
 0x1db   :  { %v1664_v9 = vld [vmem:[#allocation8 + $0x1b60] sm:$0xff] }
 0x1dc   :  { %v1788_v11 = vld [vmem:[#allocation8 + $0x1f40] sm:$0xff]  ;;  %v11472_v53 = vcombine.high %v1660_v7, %v1664_v9 }
 0x1dd   :  { %7231 = vmatpush1.bf16.msra.mxu0 %v11383_v24  ;;  %7272 = vmatpush1.bf16.msra.mxu1 %v11511_v27  ;;  %v1792_v28 = vld [vmem:[#allocation8 + $0x1f60] sm:$0xff]  ;;  %v11471_v24 = vcombine.low %v1660_v7, %v1664_v9 }
 0x1de   :  { %7232 = vmatprep.subr.bf16.mxu0 %v11376_v29  ;;  %7273 = vmatprep.subr.bf16.mxu1 %v11504_v54  ;;  %v11600_v60 = vcombine.high %v1788_v11, %v1792_v28  ;;  %v1652_v20 = vld [vmem:[#allocation8 + $0x1b00] sm:$0xff]  ;;  %v11599_v27 = vcombine.low %v1788_v11, %v1792_v28 }
 0x1df   :  { %v1656_v21 = vld [vmem:[#allocation8 + $0x1b20] sm:$0xff] }
 0x1e0   :  { %v1780_v55 = vld [vmem:[#allocation8 + $0x1f00] sm:$0xff]  ;;  %v11464_v29 = vcombine.high %v1652_v20, %v1656_v21 }
 0x1e1   :  { %7233 = vmatpush1.bf16.msra.mxu0 %v11375_v41  ;;  %7274 = vmatpush1.bf16.msra.mxu1 %v11503_v42  ;;  %v1784_v61 = vld [vmem:[#allocation8 + $0x1f20] sm:$0xff]  ;;  %v11463_v41 = vcombine.low %v1652_v20, %v1656_v21  ;;  %v845_v20 = vld [vmem:[#allocation8 + $0x1c8] sm:$0xff] }
 0x1e2   :  { %7234 = vmatprep.subr.bf16.mxu0 %v11368_v59  ;;  %7275 = vmatprep.subr.bf16.mxu1 %v11496_v45  ;;  %v11592_v54 = vcombine.high %v1780_v55, %v1784_v61  ;;  %v1644_v33 = vld [vmem:[#allocation8 + $0x1ac0] sm:$0xff]  ;;  %v11591_v42 = vcombine.low %v1780_v55, %v1784_v61  ;;  %v849_v21 = vld [vmem:[#allocation8 + $0x1e8] sm:$0xff] }
 0x1e3   :  { %v1648_v36 = vld [vmem:[#allocation8 + $0x1ae0] sm:$0xff]  ;;  %v973_v55 = vld [vmem:[#allocation8 + $0x5c8] sm:$0xff] }
 0x1e4   :  { %v1772_v56 = vld [vmem:[#allocation8 + $0x1ec0] sm:$0xff]  ;;  %v11456_v59 = vcombine.high %v1644_v33, %v1648_v36  ;;  %v977_v61 = vld [vmem:[#allocation8 + $0x5e8] sm:$0xff] }
 0x1e5   :  { %7235 = vmatpush1.bf16.msra.mxu0 %v11367_v52  ;;  %7276 = vmatpush1.bf16.msra.mxu1 %v11495_v57  ;;  %v1776_v40 = vld [vmem:[#allocation8 + $0x1ee0] sm:$0xff]  ;;  %v11455_v52 = vcombine.low %v1644_v33, %v1648_v36  ;;  %v770_v36 = vmax.f32 %v12833_v19, 0.0 }
 0x1e6   :  { %7236 = vmatprep.subr.bf16.mxu0 %v11488_v58  ;;  %7277 = vmatprep.subr.bf16.mxu1 %v11616_v13  ;;  %v11584_v45 = vcombine.high %v1772_v56, %v1776_v40  ;;  %v1636_v50 = vld [vmem:[#allocation8 + $0x1a80] sm:$0xff]  ;;  %v11583_v57 = vcombine.low %v1772_v56, %v1776_v40  ;;  %v10786_v56 = vcombine.high %v973_v55, %v977_v61  ;;  %v837_v40 = vld [vmem:[#allocation8 + $0x188] sm:$0xff] }
 0x1e7   :  { %v1640_v46 = vld [vmem:[#allocation8 + $0x1aa0] sm:$0xff] }
 0x1e8   :  { %v1764_v49 = vld [vmem:[#allocation8 + $0x1e80] sm:$0xff]  ;;  %v11448_v58 = vcombine.high %v1636_v50, %v1640_v46 }
 0x1e9   :  { %7237 = vmatpush2.bf16.msra.mxu0 %v11487_v2  ;;  %7278 = vmatpush2.bf16.msra.mxu1 %v11615_v3  ;;  %v1768_v51 = vld [vmem:[#allocation8 + $0x1ea0] sm:$0xff]  ;;  %v11447_v2 = vcombine.low %v1636_v50, %v1640_v46  ;;  %v969_v50 = vld [vmem:[#allocation8 + $0x5a8] sm:$0xff] }
 0x1ea   :  { %7238 = vmatprep.subr.bf16.mxu0 %v11480_v4  ;;  %7279 = vmatprep.subr.bf16.mxu1 %v11608_v5  ;;  %v11576_v13 = vcombine.high %v1764_v49, %v1768_v51  ;;  %v1628_v32 = vld [vmem:[#allocation8 + $0x1a40] sm:$0xff]  ;;  %v11575_v3 = vcombine.low %v1764_v49, %v1768_v51  ;;  %v12888_v49 = vpack.c.bf16 %v770_v36, %v770_v36  ;;  %v813_v36 = vld [vmem:[#allocation8 + $0xc8] sm:$0xff] }
 0x1eb   :  { %v1632_v35 = vld [vmem:[#allocation8 + $0x1a60] sm:$0xff] }
 0x1ec   :  { %v1756_v39 = vld [vmem:[#allocation8 + $0x1e40] sm:$0xff]  ;;  %v11440_v4 = vcombine.high %v1628_v32, %v1632_v35 }
 0x1ed   :  { %7239 = vmatpush2.bf16.msra.mxu0 %v11479_v12  ;;  %7280 = vmatpush2.bf16.msra.mxu1 %v11607_v23  ;;  %v1760_v1 = vld [vmem:[#allocation8 + $0x1e60] sm:$0xff]  ;;  %v11439_v12 = vcombine.low %v1628_v32, %v1632_v35  ;;  %v957_v32 = vld [vmem:[#allocation8 + $0x548] sm:$0xff] }
 0x1ee   :  { %7240 = vmatprep.subr.bf16.mxu0 %v11472_v53  ;;  %7281 = vmatprep.subr.bf16.mxu1 %v11600_v60  ;;  %v11568_v5 = vcombine.high %v1756_v39, %v1760_v1  ;;  %v1620_v7 = vld [vmem:[#allocation8 + $0x1a00] sm:$0xff]  ;;  %v11567_v23 = vcombine.low %v1756_v39, %v1760_v1  ;;  %v961_v35 = vld [vmem:[#allocation8 + $0x568] sm:$0xff] }
 0x1ef   :  { %v1624_v9 = vld [vmem:[#allocation8 + $0x1a20] sm:$0xff] }
 0x1f0   :  { %v1748_v11 = vld [vmem:[#allocation8 + $0x1e00] sm:$0xff]  ;;  %v11432_v53 = vcombine.high %v1620_v7, %v1624_v9 }
 0x1f1   :  { %7241 = vmatpush2.bf16.msra.mxu0 %v11471_v24  ;;  %7282 = vmatpush2.bf16.msra.mxu1 %v11599_v27  ;;  %v1752_v28 = vld [vmem:[#allocation8 + $0x1e20] sm:$0xff]  ;;  %v11431_v24 = vcombine.low %v1620_v7, %v1624_v9  ;;  %v768_v27 = vmax.f32 %v12831_v8, 0.0  ;;  %v10785_v8 = vcombine.low %v973_v55, %v977_v61 }
 0x1f2   :  { %7242 = vmatprep.subr.bf16.mxu0 %v11464_v29  ;;  %7283 = vmatprep.subr.bf16.mxu1 %v11592_v54  ;;  %v11560_v60 = vcombine.high %v1748_v11, %v1752_v28  ;;  %v11559_v29 = vcombine.low %v1748_v11, %v1752_v28  ;;  %v10658_v54 = vcombine.high %v845_v20, %v849_v21  ;;  %v1812_v33 = vld [vmem:[#allocation10] sm:$0xff] }
 0x1f3   :  { %v12886_v46 = vpack.c.bf16 %v768_v27, %v768_v27  ;;  %v1821_v19 = vrot.slane %v1812_v33, %v12756_v17  ;;  %v10770_v28 = vcombine.high %v957_v32, %v961_v35  ;;  %v10769_v27 = vcombine.low %v957_v32, %v961_v35  ;;  %v797_v35 = vld [vmem:[#allocation8 + $0x48] sm:$0xff] }
 0x1f5   :  { %7243 = vmatpush2.bf16.msra.mxu0 %v11463_v41  ;;  %7284 = vmatpush2.bf16.msra.mxu1 %v11591_v42  ;;  %v841_v41 = vld [vmem:[#allocation8 + $0x1a8] sm:$0xff]  ;;  %v10657_v42 = vcombine.low %v845_v20, %v849_v21 }
 0x1f6   :  { %7244 = vmatprep.subr.bf16.mxu0 %v11456_v59  ;;  %7285 = vmatprep.subr.bf16.mxu1 %v11584_v45  ;;  %v1817_v59 = vrot.slane %v1812_v33, %v12748_v14  ;;  %v965_v45 = vld [vmem:[#allocation8 + $0x588] sm:$0xff]  ;;  %v10650_v51 = vcombine.high %v837_v40, %v841_v41 }
 0x1f7   :  { %v953_v20 = vld [vmem:[#allocation8 + $0x528] sm:$0xff] }
 0x1f9   :  { %7245 = vmatpush2.bf16.msra.mxu0 %v11455_v52  ;;  %7286 = vmatpush2.bf16.msra.mxu1 %v11583_v57  ;;  %v829_v52 = vld [vmem:[#allocation8 + $0x148] sm:$0xff] }
 0x1fa   :  { %7246 = vmatprep.subr.bf16.mxu0 %v11448_v58  ;;  %7287 = vmatprep.subr.bf16.mxu1 %v11576_v13  ;;  %v833_v57 = vld [vmem:[#allocation8 + $0x168] sm:$0xff]  ;;  %v10778_v13 = vcombine.high %v965_v45, %v969_v50 }
 0x1fb   :  { %v10641_v61 = vcombine.low %v829_v52, %v833_v57 }
 0x1fd   :  { %7247 = vmatpush2.bf16.msra.mxu0 %v11447_v2  ;;  %7288 = vmatpush2.bf16.msra.mxu1 %v11575_v3  ;;  %v10649_v2 = vcombine.low %v837_v40, %v841_v41  ;;  %v941_v40 = vld [vmem:[#allocation8 + $0x4c8] sm:$0xff] }
 0x1fe   :  { %7248 = vmatprep.subr.bf16.mxu0 %v11440_v4  ;;  %7289 = vmatprep.subr.bf16.mxu1 %v11568_v5  ;;  %v10777_v4 = vcombine.low %v965_v45, %v969_v50  ;;  %v10642_v5 = vcombine.high %v829_v52, %v833_v57  ;;  %v945_v41 = vld [vmem:[#allocation8 + $0x4e8] sm:$0xff] }
 0x1ff   :  { %v10754_v50 = vcombine.high %v941_v40, %v945_v41  ;;  %v937_v52 = vld [vmem:[#allocation8 + $0x4a8] sm:$0xff] }
 0x201   :  { %7249 = vmatpush2.bf16.msra.mxu0 %v11439_v12  ;;  %7290 = vmatpush2.bf16.msra.mxu1 %v11567_v23  ;;  %v821_v12 = vld [vmem:[#allocation8 + $0x108] sm:$0xff] }
 0x202   :  { %7250 = vmatprep.subr.bf16.mxu0 %v11432_v53  ;;  %7291 = vmatprep.subr.bf16.mxu1 %v11560_v60  ;;  %v825_v23 = vld [vmem:[#allocation8 + $0x128] sm:$0xff] }
 0x203   :  { %v949_v60 = vld [vmem:[#allocation8 + $0x508] sm:$0xff] }
 0x204   :  { %v10762_v33 = vcombine.high %v949_v60, %v953_v20 }
 0x205   :  { %7251 = vmatpush2.bf16.msra.mxu0 %v11431_v24  ;;  %7292 = vmatpush2.bf16.msra.mxu1 %v11559_v29  ;;  %v10634_v29 = vcombine.high %v821_v12, %v825_v23 }
 0x206   :  { %7302 = vmatprep.subr.bf16.mxu0 %v10658_v54  ;;  %7343 = vmatprep.subr.bf16.mxu1 %v10786_v56  ;;  %v817_v56 = vld [vmem:[#allocation8 + $0xe8] sm:$0xff] }
 0x207   :  { %v10626_v45 = vcombine.high %v813_v36, %v817_v56  ;;  %v10625_v57 = vcombine.low %v813_v36, %v817_v56 }
 0x208   :  { %7253 = vmatmul.mubr.bf16.vlgmr.msra.gmra.mxu0 %v12886_v46  ;;  %v7008_v58 = vpop.f32.mrf.mxu0  ;;  %7294 = vmatmul.mubr.bf16.vlgmr.msra.gmra.mxu1 %v12888_v49  ;;  %v7049_v1 = vpop.f32.mrf.mxu1 }
 0x209   :  { %v7009_v39 = vadd.f32 %v7008_v58, %v1817_v59  ;;  %7303 = vmatpush1.bf16.msra.mxu0 %v10657_v42  ;;  %7334 = vmatprep.mubr.bf16.mxu0 %v12777_v44  ;;  %v10633_v42 = vcombine.low %v821_v12, %v825_v23  ;;  %v10761_v59 = vcombine.low %v949_v60, %v953_v20  ;;  %v917_v12 = vld [vmem:[#allocation8 + $0x408] sm:$0xff] }
 0x20a   :  { %7344 = vmatpush1.bf16.msra.mxu1 %v10785_v8  ;;  %v7010_v3 = vpop.f32.mrf.mxu0  ;;  %7375 = vmatprep.mubr.bf16.mxu1 %v12783_v48  ;;  %v7051_v11 = vpop.f32.mrf.mxu1  ;;  %v805_v8 = vld [vmem:[#allocation8 + $0x88] sm:$0xff]  ;;  %v10753_v58 = vcombine.low %v941_v40, %v945_v41 }
 0x20b   :  { %v12894_v7 = vadd.f32 %v7049_v1, %v7009_v39  ;;  %v7011_v9 = vadd.f32 %v7010_v3, %v1821_v19  ;;  %7304 = vmatprep.subr.bf16.mxu0 %v10650_v51  ;;  %7345 = vmatprep.subr.bf16.mxu1 %v10778_v13  ;;  %v809_v19 = vld [vmem:[#allocation8 + $0xa8] sm:$0xff] }
 0x20c   :  { %v7012_v53 = vpop.f32.mrf.mxu0  ;;  %v7053_v55 = vpop.f32.mrf.mxu1  ;;  %v933_v51 = vld [vmem:[#allocation8 + $0x488] sm:$0xff]  ;;  %v10618_v13 = vcombine.high %v805_v8, %v809_v19  ;;  %v10617_v3 = vcombine.low %v805_v8, %v809_v19 }
 0x20d   :  { %v12897_v21 = vadd.f32 %v7051_v11, %v7011_v9  ;;  %7305 = vmatpush1.bf16.msra.mxu0 %v10649_v2  ;;  %v10746_v32 = vcombine.high %v933_v51, %v937_v52  ;;  %v801_v39 = vld [vmem:[#allocation8 + $0x68] sm:$0xff] }
 0x20e   :  { %7346 = vmatpush1.bf16.msra.mxu1 %v10777_v4  ;;  %v7013_v24 = vpop.f32.mrf.mxu0  ;;  %7306 = vmatprep.subr.bf16.mxu0 %v10642_v5  ;;  %v7054_v54 = vpop.f32.mrf.mxu1  ;;  %v925_v1 = vld [vmem:[#allocation8 + $0x448] sm:$0xff]  ;;  %v10745_v4 = vcombine.low %v933_v51, %v937_v52  ;;  %v10610_v5 = vcombine.high %v797_v35, %v801_v39  ;;  %v10609_v53 = vcombine.low %v797_v35, %v801_v39 }
 0x20f   :  { %7347 = vmatprep.subr.bf16.mxu1 %v10770_v28  ;;  %v929_v2 = vld [vmem:[#allocation8 + $0x468] sm:$0xff] }
 0x210   :  { %v10738_v9 = vcombine.high %v925_v1, %v929_v2  ;;  %v789_v11 = vld [vmem:[#allocation8 + $0x8] sm:$0xff]  ;;  %v10737_v60 = vcombine.low %v925_v1, %v929_v2 }
 0x211   :  { %7307 = vmatpush1.bf16.msra.mxu0 %v10641_v61  ;;  %v793_v28 = vld [vmem:[#allocation8 + $0x28] sm:$0xff] }
 0x212   :  { %7348 = vmatpush1.bf16.msra.mxu1 %v10769_v27  ;;  %7308 = vmatprep.subr.bf16.mxu0 %v10634_v29  ;;  %v921_v23 = vld [vmem:[#allocation8 + $0x428] sm:$0xff]  ;;  %v10602_v20 = vcombine.high %v789_v11, %v793_v28  ;;  %v10601_v54 = vcombine.low %v789_v11, %v793_v28 }
 0x213   :  { %7349 = vmatprep.subr.bf16.mxu1 %v10762_v33  ;;  %v10730_v55 = vcombine.high %v917_v12, %v921_v23  ;;  %v909_v61 = vld [vmem:[#allocation8 + $0x3c8] sm:$0xff]  ;;  %v10729_v33 = vcombine.low %v917_v12, %v921_v23 }
 0x214   :  { %v913_v24 = vld [vmem:[#allocation8 + $0x3e8] sm:$0xff] }
 0x215   :  { %7309 = vmatpush1.bf16.msra.mxu0 %v10633_v42  ;;  %v1037_v27 = vld [vmem:[#allocation8 + $0x7c8] sm:$0xff]  ;;  %v10722_v36 = vcombine.high %v909_v61, %v913_v24 }
 0x216   :  { %7350 = vmatpush1.bf16.msra.mxu1 %v10761_v59  ;;  %7310 = vmatprep.subr.bf16.mxu0 %v10626_v45  ;;  %v1041_v29 = vld [vmem:[#allocation8 + $0x7e8] sm:$0xff]  ;;  %v10721_v45 = vcombine.low %v909_v61, %v913_v24 }
 0x217   :  { %7351 = vmatprep.subr.bf16.mxu1 %v10754_v50  ;;  %v10850_v56 = vcombine.high %v1037_v27, %v1041_v29  ;;  %v901_v40 = vld [vmem:[#allocation8 + $0x388] sm:$0xff]  ;;  %v10849_v50 = vcombine.low %v1037_v27, %v1041_v29 }
 0x218   :  { %v905_v41 = vld [vmem:[#allocation8 + $0x3a8] sm:$0xff] }
 0x219   :  { %7311 = vmatpush1.bf16.msra.mxu0 %v10625_v57  ;;  %v1029_v42 = vld [vmem:[#allocation8 + $0x788] sm:$0xff]  ;;  %v10714_v8 = vcombine.high %v901_v40, %v905_v41 }
 0x21a   :  { %7352 = vmatpush1.bf16.msra.mxu1 %v10753_v58  ;;  %7312 = vmatprep.subr.bf16.mxu0 %v10618_v13  ;;  %v1033_v59 = vld [vmem:[#allocation8 + $0x7a8] sm:$0xff]  ;;  %v10713_v13 = vcombine.low %v901_v40, %v905_v41 }
 0x21b   :  { %7353 = vmatprep.subr.bf16.mxu1 %v10746_v32  ;;  %v10842_v19 = vcombine.high %v1029_v42, %v1033_v59  ;;  %v893_v51 = vld [vmem:[#allocation8 + $0x348] sm:$0xff]  ;;  %v10841_v32 = vcombine.low %v1029_v42, %v1033_v59 }
 0x21c   :  { %v897_v52 = vld [vmem:[#allocation8 + $0x368] sm:$0xff] }
 0x21d   :  { %7313 = vmatpush1.bf16.msra.mxu0 %v10617_v3  ;;  %v1021_v57 = vld [vmem:[#allocation8 + $0x748] sm:$0xff]  ;;  %v10706_v35 = vcombine.high %v893_v51, %v897_v52 }
 0x21e   :  { %7354 = vmatpush1.bf16.msra.mxu1 %v10745_v4  ;;  %7314 = vmatprep.subr.bf16.mxu0 %v10610_v5  ;;  %v1025_v58 = vld [vmem:[#allocation8 + $0x768] sm:$0xff]  ;;  %v10705_v5 = vcombine.low %v893_v51, %v897_v52 }
 0x21f   :  { %7355 = vmatprep.subr.bf16.mxu1 %v10738_v9  ;;  %v10834_v39 = vcombine.high %v1021_v57, %v1025_v58  ;;  %v885_v1 = vld [vmem:[#allocation8 + $0x308] sm:$0xff]  ;;  %v10833_v9 = vcombine.low %v1021_v57, %v1025_v58 }
 0x220   :  { %v889_v2 = vld [vmem:[#allocation8 + $0x328] sm:$0xff] }
 0x221   :  { %7315 = vmatpush1.bf16.msra.mxu0 %v10609_v53  ;;  %v1013_v3 = vld [vmem:[#allocation8 + $0x708] sm:$0xff]  ;;  %v10698_v11 = vcombine.high %v885_v1, %v889_v2 }
 0x222   :  { %7356 = vmatpush1.bf16.msra.mxu1 %v10737_v60  ;;  %7316 = vmatprep.subr.bf16.mxu0 %v10602_v20  ;;  %v1017_v4 = vld [vmem:[#allocation8 + $0x728] sm:$0xff]  ;;  %v10697_v20 = vcombine.low %v885_v1, %v889_v2 }
 0x223   :  { %7357 = vmatprep.subr.bf16.mxu1 %v10730_v55  ;;  %v10826_v28 = vcombine.high %v1013_v3, %v1017_v4  ;;  %v877_v12 = vld [vmem:[#allocation8 + $0x2c8] sm:$0xff]  ;;  %v10825_v55 = vcombine.low %v1013_v3, %v1017_v4 }
 0x224   :  { %v881_v23 = vld [vmem:[#allocation8 + $0x2e8] sm:$0xff] }
 0x225   :  { %7317 = vmatpush1.bf16.msra.mxu0 %v10601_v54  ;;  %v1005_v53 = vld [vmem:[#allocation8 + $0x6c8] sm:$0xff]  ;;  %v10690_v61 = vcombine.high %v877_v12, %v881_v23 }
 0x226   :  { %7358 = vmatpush1.bf16.msra.mxu1 %v10729_v33  ;;  %7318 = vmatprep.subr.bf16.mxu0 %v10722_v36  ;;  %v1009_v60 = vld [vmem:[#allocation8 + $0x6e8] sm:$0xff]  ;;  %v10689_v36 = vcombine.low %v877_v12, %v881_v23 }
 0x227   :  { %7359 = vmatprep.subr.bf16.mxu1 %v10850_v56  ;;  %v10818_v24 = vcombine.high %v1005_v53, %v1009_v60  ;;  %v869_v27 = vld [vmem:[#allocation8 + $0x288] sm:$0xff]  ;;  %v10817_v56 = vcombine.low %v1005_v53, %v1009_v60 }
 0x228   :  { %v873_v29 = vld [vmem:[#allocation8 + $0x2a8] sm:$0xff] }
 0x229   :  { %7319 = vmatpush2.bf16.msra.mxu0 %v10721_v45  ;;  %v997_v54 = vld [vmem:[#allocation8 + $0x688] sm:$0xff]  ;;  %v10682_v40 = vcombine.high %v869_v27, %v873_v29 }
 0x22a   :  { %7360 = vmatpush2.bf16.msra.mxu1 %v10849_v50  ;;  %7320 = vmatprep.subr.bf16.mxu0 %v10714_v8  ;;  %v1001_v33 = vld [vmem:[#allocation8 + $0x6a8] sm:$0xff]  ;;  %v10681_v8 = vcombine.low %v869_v27, %v873_v29 }
 0x22b   :  { %7361 = vmatprep.subr.bf16.mxu1 %v10842_v19  ;;  %v10810_v41 = vcombine.high %v997_v54, %v1001_v33  ;;  %v861_v42 = vld [vmem:[#allocation8 + $0x248] sm:$0xff]  ;;  %v10809_v19 = vcombine.low %v997_v54, %v1001_v33 }
 0x22c   :  { %v865_v59 = vld [vmem:[#allocation8 + $0x268] sm:$0xff] }
 0x22d   :  { %7321 = vmatpush2.bf16.msra.mxu0 %v10713_v13  ;;  %v989_v45 = vld [vmem:[#allocation8 + $0x648] sm:$0xff]  ;;  %v10674_v51 = vcombine.high %v861_v42, %v865_v59 }
 0x22e   :  { %7362 = vmatpush2.bf16.msra.mxu1 %v10841_v32  ;;  %7322 = vmatprep.subr.bf16.mxu0 %v10706_v35  ;;  %v993_v50 = vld [vmem:[#allocation8 + $0x668] sm:$0xff]  ;;  %v10673_v35 = vcombine.low %v861_v42, %v865_v59 }
 0x22f   :  { %7363 = vmatprep.subr.bf16.mxu1 %v10834_v39  ;;  %v10802_v52 = vcombine.high %v989_v45, %v993_v50  ;;  %v853_v57 = vld [vmem:[#allocation8 + $0x208] sm:$0xff]  ;;  %v10801_v39 = vcombine.low %v989_v45, %v993_v50 }
 0x230   :  { %v857_v58 = vld [vmem:[#allocation8 + $0x228] sm:$0xff] }
 0x231   :  { %7323 = vmatpush2.bf16.msra.mxu0 %v10705_v5  ;;  %v981_v13 = vld [vmem:[#allocation8 + $0x608] sm:$0xff]  ;;  %v10666_v1 = vcombine.high %v853_v57, %v857_v58 }
 0x232   :  { %7364 = vmatpush2.bf16.msra.mxu1 %v10833_v9  ;;  %7324 = vmatprep.subr.bf16.mxu0 %v10698_v11  ;;  %v985_v32 = vld [vmem:[#allocation8 + $0x628] sm:$0xff]  ;;  %v10665_v11 = vcombine.low %v853_v57, %v857_v58 }
 0x233   :  { %7365 = vmatprep.subr.bf16.mxu1 %v10826_v28  ;;  %v10794_v2 = vcombine.high %v981_v13, %v985_v32  ;;  %v1101_v3 = vld [vmem:[#allocation8 + $0x9c8] sm:$0xff]  ;;  %v10793_v28 = vcombine.low %v981_v13, %v985_v32 }
 0x234   :  { %v1105_v4 = vld [vmem:[#allocation8 + $0x9e8] sm:$0xff] }
 0x235   :  { %7325 = vmatpush2.bf16.msra.mxu0 %v10697_v20  ;;  %v1229_v5 = vld [vmem:[#allocation8 + $0xdc8] sm:$0xff]  ;;  %v10914_v12 = vcombine.high %v1101_v3, %v1105_v4  ;;  %v10913_v20 = vcombine.low %v1101_v3, %v1105_v4 }
 0x236   :  { %7366 = vmatpush2.bf16.msra.mxu1 %v10825_v55  ;;  %7326 = vmatprep.subr.bf16.mxu0 %v10690_v61  ;;  %v1233_v9 = vld [vmem:[#allocation8 + $0xde8] sm:$0xff] }
 0x237   :  { %7367 = vmatprep.subr.bf16.mxu1 %v10818_v24  ;;  %v11042_v23 = vcombine.high %v1229_v5, %v1233_v9  ;;  %v1093_v53 = vld [vmem:[#allocation8 + $0x988] sm:$0xff]  ;;  %v11041_v24 = vcombine.low %v1229_v5, %v1233_v9 }
 0x238   :  { %v1097_v60 = vld [vmem:[#allocation8 + $0x9a8] sm:$0xff] }
 0x239   :  { %7327 = vmatpush2.bf16.msra.mxu0 %v10689_v36  ;;  %v1221_v55 = vld [vmem:[#allocation8 + $0xd88] sm:$0xff]  ;;  %v10906_v27 = vcombine.high %v1093_v53, %v1097_v60  ;;  %v10905_v59 = vcombine.low %v1093_v53, %v1097_v60 }
 0x23a   :  { %7368 = vmatpush2.bf16.msra.mxu1 %v10817_v56  ;;  %7328 = vmatprep.subr.bf16.mxu0 %v10682_v40  ;;  %v1225_v61 = vld [vmem:[#allocation8 + $0xda8] sm:$0xff] }
 0x23b   :  { %7369 = vmatprep.subr.bf16.mxu1 %v10810_v41  ;;  %v1085_v29 = vld [vmem:[#allocation8 + $0x948] sm:$0xff]  ;;  %v11034_v36 = vcombine.high %v1221_v55, %v1225_v61  ;;  %v11033_v50 = vcombine.low %v1221_v55, %v1225_v61 }
 0x23c   :  { %v1089_v54 = vld [vmem:[#allocation8 + $0x968] sm:$0xff] }
 0x23d   :  { %7329 = vmatpush2.bf16.msra.mxu0 %v10681_v8  ;;  %v1213_v56 = vld [vmem:[#allocation8 + $0xd48] sm:$0xff]  ;;  %v10898_v8 = vcombine.high %v1085_v29, %v1089_v54 }
 0x23e   :  { %7370 = vmatpush2.bf16.msra.mxu1 %v10809_v19  ;;  %7330 = vmatprep.subr.bf16.mxu0 %v10674_v51  ;;  %v1217_v40 = vld [vmem:[#allocation8 + $0xd68] sm:$0xff] }
 0x23f   :  { %7371 = vmatprep.subr.bf16.mxu1 %v10802_v52  ;;  %v1077_v57 = vld [vmem:[#allocation8 + $0x908] sm:$0xff]  ;;  %v11025_v4 = vcombine.low %v1213_v56, %v1217_v40 }
 0x240   :  { %v1081_v58 = vld [vmem:[#allocation8 + $0x928] sm:$0xff] }
 0x241   :  { %7331 = vmatpush2.bf16.msra.mxu0 %v10673_v35  ;;  %v1205_v32 = vld [vmem:[#allocation8 + $0xd08] sm:$0xff]  ;;  %v10890_v5 = vcombine.high %v1077_v57, %v1081_v58  ;;  %v10889_v53 = vcombine.low %v1077_v57, %v1081_v58 }
 0x242   :  { %7372 = vmatpush2.bf16.msra.mxu1 %v10801_v39  ;;  %7332 = vmatprep.subr.bf16.mxu0 %v10666_v1  ;;  %v1209_v35 = vld [vmem:[#allocation8 + $0xd28] sm:$0xff] }
 0x243   :  { %7373 = vmatprep.subr.bf16.mxu1 %v10794_v2  ;;  %v10897_v2 = vcombine.low %v1085_v29, %v1089_v54  ;;  %v11018_v9 = vcombine.high %v1205_v32, %v1209_v35  ;;  %v11017_v60 = vcombine.low %v1205_v32, %v1209_v35  ;;  %v1061_v61 = vld [vmem:[#allocation8 + $0x888] sm:$0xff] }
 0x244   :  { %v1193_v29 = vld [vmem:[#allocation8 + $0xca8] sm:$0xff] }
 0x245   :  { %7333 = vmatpush2.bf16.msra.mxu0 %v10665_v11  ;;  %v1069_v11 = vld [vmem:[#allocation8 + $0x8c8] sm:$0xff] }
 0x246   :  { %7374 = vmatpush2.bf16.msra.mxu1 %v10793_v28  ;;  %7384 = vmatprep.subr.bf16.mxu0 %v10914_v12  ;;  %v1073_v28 = vld [vmem:[#allocation8 + $0x8e8] sm:$0xff] }
 0x247   :  { %7425 = vmatprep.subr.bf16.mxu1 %v11042_v23  ;;  %v1197_v12 = vld [vmem:[#allocation8 + $0xcc8] sm:$0xff]  ;;  %v10881_v54 = vcombine.low %v1069_v11, %v1073_v28 }
 0x248   :  { %v7090_v33 = vpop.f32.mrf.mxu0  ;;  %7335 = vmatmul.mubr.bf16.vlgmr.msra.gmra.mxu0 %v12781_v47  ;;  %v7131_v42 = vpop.f32.mrf.mxu1  ;;  %v1201_v23 = vld [vmem:[#allocation8 + $0xce8] sm:$0xff] }
 0x249   :  { %v7091_v41 = vadd.f32 %v7090_v33, %v12894_v7  ;;  %7376 = vmatmul.mubr.bf16.vlgmr.msra.gmra.mxu1 %v12775_v43  ;;  %7385 = vmatpush1.bf16.msra.mxu0 %v10913_v20  ;;  %v11026_v7 = vcombine.high %v1213_v56, %v1217_v40  ;;  %v10882_v20 = vcombine.high %v1069_v11, %v1073_v28  ;;  %v1053_v40 = vld [vmem:[#allocation8 + $0x848] sm:$0xff] }
 0x24a   :  { %7416 = vmatprep.mubr.bf16.mxu0 %v12801_v0  ;;  %7426 = vmatpush1.bf16.msra.mxu1 %v11041_v24  ;;  %v7092_v45 = vpop.f32.mrf.mxu0  ;;  %v7133_v52 = vpop.f32.mrf.mxu1  ;;  %v11010_v55 = vcombine.high %v1197_v12, %v1201_v23  ;;  %v1065_v24 = vld [vmem:[#allocation8 + $0x8a8] sm:$0xff]  ;;  %v11009_v33 = vcombine.low %v1197_v12, %v1201_v23 }
 0x24b   :  { %v12903_v19 = vadd.f32 %v7131_v42, %v7091_v41  ;;  %7457 = vmatprep.mubr.bf16.mxu1 %v12803_v22  ;;  %v7093_v51 = vadd.f32 %v7092_v45, %v12897_v21  ;;  %7386 = vmatprep.subr.bf16.mxu0 %v10906_v27  ;;  %v1189_v27 = vld [vmem:[#allocation8 + $0xc88] sm:$0xff]  ;;  %v10873_v45 = vcombine.low %v1061_v61, %v1065_v24 }
 0x24c   :  { %v7094_v13 = vpop.f32.mrf.mxu0  ;;  %7427 = vmatprep.subr.bf16.mxu1 %v11034_v36  ;;  %v7135_v1 = vpop.f32.mrf.mxu1  ;;  %v10874_v36 = vcombine.high %v1061_v61, %v1065_v24  ;;  %v11002_v56 = vcombine.high %v1189_v27, %v1193_v29  ;;  %v1057_v41 = vld [vmem:[#allocation8 + $0x868] sm:$0xff] }
 0x24d   :  { %v12907_v39 = vadd.f32 %v7133_v52, %v7093_v51  ;;  %7387 = vmatpush1.bf16.msra.mxu0 %v10905_v59  ;;  %v1181_v42 = vld [vmem:[#allocation8 + $0xc48] sm:$0xff]  ;;  %v10865_v13 = vcombine.low %v1053_v40, %v1057_v41 }
 0x24e   :  { %7428 = vmatpush1.bf16.msra.mxu1 %v11033_v50  ;;  %v7095_v3 = vpop.f32.mrf.mxu0  ;;  %7388 = vmatprep.subr.bf16.mxu0 %v10898_v8  ;;  %v7136_v21 = vpop.f32.mrf.mxu1  ;;  %v1185_v59 = vld [vmem:[#allocation8 + $0xc68] sm:$0xff]  ;;  %v11001_v50 = vcombine.low %v1189_v27, %v1193_v29  ;;  %v10866_v8 = vcombine.high %v1053_v40, %v1057_v41 }
 0x24f   :  { %7429 = vmatprep.subr.bf16.mxu1 %v11026_v7  ;;  %v10994_v51 = vcombine.high %v1181_v42, %v1185_v59  ;;  %v1045_v52 = vld [vmem:[#allocation8 + $0x808] sm:$0xff]  ;;  %v10993_v32 = vcombine.low %v1181_v42, %v1185_v59 }
 0x250   :  { %v1049_v7 = vld [vmem:[#allocation8 + $0x828] sm:$0xff] }
 0x251   :  { %7389 = vmatpush1.bf16.msra.mxu0 %v10897_v2  ;;  %v1173_v57 = vld [vmem:[#allocation8 + $0xc08] sm:$0xff]  ;;  %v10858_v35 = vcombine.high %v1045_v52, %v1049_v7  ;;  %v10857_v21 = vcombine.low %v1045_v52, %v1049_v7 }
 0x252   :  { %7430 = vmatpush1.bf16.msra.mxu1 %v11025_v4  ;;  %7390 = vmatprep.subr.bf16.mxu0 %v10890_v5  ;;  %v1177_v58 = vld [vmem:[#allocation8 + $0xc28] sm:$0xff] }
 0x253   :  { %7431 = vmatprep.subr.bf16.mxu1 %v11018_v9  ;;  %v10986_v1 = vcombine.high %v1173_v57, %v1177_v58  ;;  %v1165_v2 = vld [vmem:[#allocation8 + $0xbc8] sm:$0xff]  ;;  %v10985_v9 = vcombine.low %v1173_v57, %v1177_v58 }
 0x254   :  { %v1169_v3 = vld [vmem:[#allocation8 + $0xbe8] sm:$0xff] }
 0x255   :  { %7391 = vmatpush1.bf16.msra.mxu0 %v10889_v53  ;;  %v1293_v4 = vld [vmem:[#allocation8 + $0xfc8] sm:$0xff]  ;;  %v10978_v11 = vcombine.high %v1165_v2, %v1169_v3 }
 0x256   :  { %7432 = vmatpush1.bf16.msra.mxu1 %v11017_v60  ;;  %7392 = vmatprep.subr.bf16.mxu0 %v10882_v20  ;;  %v1297_v5 = vld [vmem:[#allocation8 + $0xfe8] sm:$0xff]  ;;  %v10977_v20 = vcombine.low %v1165_v2, %v1169_v3 }
 0x257   :  { %7433 = vmatprep.subr.bf16.mxu1 %v11010_v55  ;;  %v11106_v28 = vcombine.high %v1293_v4, %v1297_v5  ;;  %v1157_v12 = vld [vmem:[#allocation8 + $0xb88] sm:$0xff]  ;;  %v11105_v55 = vcombine.low %v1293_v4, %v1297_v5 }
 0x258   :  { %v1161_v23 = vld [vmem:[#allocation8 + $0xba8] sm:$0xff] }
 0x259   :  { %7393 = vmatpush1.bf16.msra.mxu0 %v10881_v54  ;;  %v1285_v53 = vld [vmem:[#allocation8 + $0xf88] sm:$0xff]  ;;  %v10970_v61 = vcombine.high %v1157_v12, %v1161_v23 }
 0x25a   :  { %7434 = vmatpush1.bf16.msra.mxu1 %v11009_v33  ;;  %7394 = vmatprep.subr.bf16.mxu0 %v10874_v36  ;;  %v1289_v60 = vld [vmem:[#allocation8 + $0xfa8] sm:$0xff]  ;;  %v10969_v36 = vcombine.low %v1157_v12, %v1161_v23 }
 0x25b   :  { %7435 = vmatprep.subr.bf16.mxu1 %v11002_v56  ;;  %v11098_v24 = vcombine.high %v1285_v53, %v1289_v60  ;;  %v1149_v27 = vld [vmem:[#allocation8 + $0xb48] sm:$0xff]  ;;  %v11097_v56 = vcombine.low %v1285_v53, %v1289_v60 }
 0x25c   :  { %v1153_v29 = vld [vmem:[#allocation8 + $0xb68] sm:$0xff] }
 0x25d   :  { %7395 = vmatpush1.bf16.msra.mxu0 %v10873_v45  ;;  %v1277_v54 = vld [vmem:[#allocation8 + $0xf48] sm:$0xff]  ;;  %v10962_v40 = vcombine.high %v1149_v27, %v1153_v29 }
 0x25e   :  { %7436 = vmatpush1.bf16.msra.mxu1 %v11001_v50  ;;  %7396 = vmatprep.subr.bf16.mxu0 %v10866_v8  ;;  %v1281_v33 = vld [vmem:[#allocation8 + $0xf68] sm:$0xff]  ;;  %v10961_v8 = vcombine.low %v1149_v27, %v1153_v29 }
 0x25f   :  { %7437 = vmatprep.subr.bf16.mxu1 %v10994_v51  ;;  %v11090_v41 = vcombine.high %v1277_v54, %v1281_v33  ;;  %v1141_v42 = vld [vmem:[#allocation8 + $0xb08] sm:$0xff]  ;;  %v11089_v51 = vcombine.low %v1277_v54, %v1281_v33 }
 0x260   :  { %v1145_v59 = vld [vmem:[#allocation8 + $0xb28] sm:$0xff] }
 0x261   :  { %7397 = vmatpush1.bf16.msra.mxu0 %v10865_v13  ;;  %v1269_v45 = vld [vmem:[#allocation8 + $0xf08] sm:$0xff]  ;;  %v10954_v52 = vcombine.high %v1141_v42, %v1145_v59 }
 0x262   :  { %7438 = vmatpush1.bf16.msra.mxu1 %v10993_v32  ;;  %7398 = vmatprep.subr.bf16.mxu0 %v10858_v35  ;;  %v1273_v50 = vld [vmem:[#allocation8 + $0xf28] sm:$0xff]  ;;  %v10953_v35 = vcombine.low %v1141_v42, %v1145_v59 }
 0x263   :  { %7439 = vmatprep.subr.bf16.mxu1 %v10986_v1  ;;  %v11082_v7 = vcombine.high %v1269_v45, %v1273_v50  ;;  %v1133_v57 = vld [vmem:[#allocation8 + $0xac8] sm:$0xff]  ;;  %v11081_v1 = vcombine.low %v1269_v45, %v1273_v50 }
 0x264   :  { %v1137_v58 = vld [vmem:[#allocation8 + $0xae8] sm:$0xff] }
 0x265   :  { %7399 = vmatpush1.bf16.msra.mxu0 %v10857_v21  ;;  %v1261_v13 = vld [vmem:[#allocation8 + $0xec8] sm:$0xff]  ;;  %v10946_v2 = vcombine.high %v1133_v57, %v1137_v58 }
 0x266   :  { %7440 = vmatpush1.bf16.msra.mxu1 %v10985_v9  ;;  %7400 = vmatprep.subr.bf16.mxu0 %v10978_v11  ;;  %v1265_v32 = vld [vmem:[#allocation8 + $0xee8] sm:$0xff]  ;;  %v10945_v11 = vcombine.low %v1133_v57, %v1137_v58 }
 0x267   :  { %7441 = vmatprep.subr.bf16.mxu1 %v11106_v28  ;;  %v11074_v3 = vcombine.high %v1261_v13, %v1265_v32  ;;  %v1125_v4 = vld [vmem:[#allocation8 + $0xa88] sm:$0xff]  ;;  %v11073_v28 = vcombine.low %v1261_v13, %v1265_v32 }
 0x268   :  { %v1129_v5 = vld [vmem:[#allocation8 + $0xaa8] sm:$0xff] }
 0x269   :  { %7401 = vmatpush2.bf16.msra.mxu0 %v10977_v20  ;;  %v1253_v21 = vld [vmem:[#allocation8 + $0xe88] sm:$0xff]  ;;  %v10938_v12 = vcombine.high %v1125_v4, %v1129_v5 }
 0x26a   :  { %7442 = vmatpush2.bf16.msra.mxu1 %v11105_v55  ;;  %7402 = vmatprep.subr.bf16.mxu0 %v10970_v61  ;;  %v1257_v9 = vld [vmem:[#allocation8 + $0xea8] sm:$0xff]  ;;  %v10937_v61 = vcombine.low %v1125_v4, %v1129_v5 }
 0x26b   :  { %7443 = vmatprep.subr.bf16.mxu1 %v11098_v24  ;;  %v11066_v23 = vcombine.high %v1253_v21, %v1257_v9  ;;  %v1117_v53 = vld [vmem:[#allocation8 + $0xa48] sm:$0xff]  ;;  %v11065_v24 = vcombine.low %v1253_v21, %v1257_v9 }
 0x26c   :  { %v1121_v60 = vld [vmem:[#allocation8 + $0xa68] sm:$0xff] }
 0x26d   :  { %7403 = vmatpush2.bf16.msra.mxu0 %v10969_v36  ;;  %v1245_v20 = vld [vmem:[#allocation8 + $0xe48] sm:$0xff]  ;;  %v10930_v27 = vcombine.high %v1117_v53, %v1121_v60 }
 0x26e   :  { %7444 = vmatpush2.bf16.msra.mxu1 %v11097_v56  ;;  %7404 = vmatprep.subr.bf16.mxu0 %v10962_v40  ;;  %v1249_v55 = vld [vmem:[#allocation8 + $0xe68] sm:$0xff]  ;;  %v10929_v40 = vcombine.low %v1117_v53, %v1121_v60 }
 0x26f   :  { %7445 = vmatprep.subr.bf16.mxu1 %v11090_v41  ;;  %v11058_v29 = vcombine.high %v1245_v20, %v1249_v55  ;;  %v1109_v54 = vld [vmem:[#allocation8 + $0xa08] sm:$0xff]  ;;  %v11057_v41 = vcombine.low %v1245_v20, %v1249_v55 }
 0x270   :  { %v1113_v33 = vld [vmem:[#allocation8 + $0xa28] sm:$0xff] }
 0x271   :  { %7405 = vmatpush2.bf16.msra.mxu0 %v10961_v8  ;;  %v1237_v36 = vld [vmem:[#allocation8 + $0xe08] sm:$0xff]  ;;  %v10922_v42 = vcombine.high %v1109_v54, %v1113_v33 }
 0x272   :  { %7446 = vmatpush2.bf16.msra.mxu1 %v11089_v51  ;;  %7406 = vmatprep.subr.bf16.mxu0 %v10954_v52  ;;  %v1241_v56 = vld [vmem:[#allocation8 + $0xe28] sm:$0xff]  ;;  %v10921_v52 = vcombine.low %v1109_v54, %v1113_v33 }
 0x273   :  { %7447 = vmatprep.subr.bf16.mxu1 %v11082_v7  ;;  %v11050_v59 = vcombine.high %v1237_v36, %v1241_v56  ;;  %v1357_v45 = vld [vmem:[#allocation8 + $0x11c8] sm:$0xff]  ;;  %v11049_v7 = vcombine.low %v1237_v36, %v1241_v56 }
 0x274   :  { %v1361_v50 = vld [vmem:[#allocation8 + $0x11e8] sm:$0xff] }
 0x275   :  { %7407 = vmatpush2.bf16.msra.mxu0 %v10953_v35  ;;  %v1485_v8 = vld [vmem:[#allocation8 + $0x15c8] sm:$0xff]  ;;  %v11170_v57 = vcombine.high %v1357_v45, %v1361_v50  ;;  %v11169_v35 = vcombine.low %v1357_v45, %v1361_v50 }
 0x276   :  { %7448 = vmatpush2.bf16.msra.mxu1 %v11081_v1  ;;  %7408 = vmatprep.subr.bf16.mxu0 %v10946_v2  ;;  %v1489_v51 = vld [vmem:[#allocation8 + $0x15e8] sm:$0xff] }
 0x277   :  { %7449 = vmatprep.subr.bf16.mxu1 %v11074_v3  ;;  %v11298_v58 = vcombine.high %v1485_v8, %v1489_v51  ;;  %v1349_v13 = vld [vmem:[#allocation8 + $0x1188] sm:$0xff]  ;;  %v11297_v3 = vcombine.low %v1485_v8, %v1489_v51 }
 0x278   :  { %v1353_v32 = vld [vmem:[#allocation8 + $0x11a8] sm:$0xff] }
 0x279   :  { %7409 = vmatpush2.bf16.msra.mxu0 %v10945_v11  ;;  %v1477_v1 = vld [vmem:[#allocation8 + $0x1588] sm:$0xff]  ;;  %v11162_v4 = vcombine.high %v1349_v13, %v1353_v32  ;;  %v11161_v60 = vcombine.low %v1349_v13, %v1353_v32 }
 0x27a   :  { %7450 = vmatpush2.bf16.msra.mxu1 %v11073_v28  ;;  %7410 = vmatprep.subr.bf16.mxu0 %v10938_v12  ;;  %v1481_v2 = vld [vmem:[#allocation8 + $0x15a8] sm:$0xff] }
 0x27b   :  { %7451 = vmatprep.subr.bf16.mxu1 %v11066_v23  ;;  %v1341_v5 = vld [vmem:[#allocation8 + $0x1148] sm:$0xff]  ;;  %v11290_v11 = vcombine.high %v1477_v1, %v1481_v2  ;;  %v11289_v55 = vcombine.low %v1477_v1, %v1481_v2 }
 0x27c   :  { %v1345_v21 = vld [vmem:[#allocation8 + $0x1168] sm:$0xff] }
 0x27d   :  { %7411 = vmatpush2.bf16.msra.mxu0 %v10937_v61  ;;  %v1469_v28 = vld [vmem:[#allocation8 + $0x1548] sm:$0xff]  ;;  %v11154_v61 = vcombine.high %v1341_v5, %v1345_v21 }
 0x27e   :  { %7452 = vmatpush2.bf16.msra.mxu1 %v11065_v24  ;;  %7412 = vmatprep.subr.bf16.mxu0 %v10930_v27  ;;  %v1473_v12 = vld [vmem:[#allocation8 + $0x1568] sm:$0xff] }
 0x27f   :  { %7453 = vmatprep.subr.bf16.mxu1 %v11058_v29  ;;  %v1333_v54 = vld [vmem:[#allocation8 + $0x1108] sm:$0xff]  ;;  %v11281_v50 = vcombine.low %v1469_v28, %v1473_v12 }
 0x280   :  { %v1337_v33 = vld [vmem:[#allocation8 + $0x1128] sm:$0xff] }
 0x281   :  { %7413 = vmatpush2.bf16.msra.mxu0 %v10929_v40  ;;  %v1461_v56 = vld [vmem:[#allocation8 + $0x1508] sm:$0xff]  ;;  %v11146_v8 = vcombine.high %v1333_v54, %v1337_v33  ;;  %v11145_v13 = vcombine.low %v1333_v54, %v1337_v33 }
 0x282   :  { %7454 = vmatpush2.bf16.msra.mxu1 %v11057_v41  ;;  %7414 = vmatprep.subr.bf16.mxu0 %v10922_v42  ;;  %v1465_v40 = vld [vmem:[#allocation8 + $0x1528] sm:$0xff] }
 0x283   :  { %7455 = vmatprep.subr.bf16.mxu1 %v11050_v59  ;;  %v11153_v59 = vcombine.low %v1341_v5, %v1345_v21  ;;  %v11274_v51 = vcombine.high %v1461_v56, %v1465_v40  ;;  %v11273_v32 = vcombine.low %v1461_v56, %v1465_v40  ;;  %v1317_v2 = vld [vmem:[#allocation8 + $0x1088] sm:$0xff] }
 0x284   :  { %v1449_v5 = vld [vmem:[#allocation8 + $0x14a8] sm:$0xff] }
 0x285   :  { %7415 = vmatpush2.bf16.msra.mxu0 %v10921_v52  ;;  %v1325_v52 = vld [vmem:[#allocation8 + $0x10c8] sm:$0xff] }
 0x286   :  { %7456 = vmatpush2.bf16.msra.mxu1 %v11049_v7  ;;  %7466 = vmatprep.subr.bf16.mxu0 %v11170_v57  ;;  %v1329_v7 = vld [vmem:[#allocation8 + $0x10e8] sm:$0xff] }
 0x287   :  { %7507 = vmatprep.subr.bf16.mxu1 %v11298_v58  ;;  %v1453_v57 = vld [vmem:[#allocation8 + $0x14c8] sm:$0xff]  ;;  %v11137_v21 = vcombine.low %v1325_v52, %v1329_v7 }
 0x288   :  { %v7172_v9 = vpop.f32.mrf.mxu0  ;;  %7417 = vmatmul.mubr.bf16.vlgmr.msra.gmra.mxu0 %v12853_v63  ;;  %v7213_v53 = vpop.f32.mrf.mxu1  ;;  %v1457_v58 = vld [vmem:[#allocation8 + $0x14e8] sm:$0xff] }
 0x289   :  { %v7173_v23 = vadd.f32 %v7172_v9, %v12903_v19  ;;  %7458 = vmatmul.mubr.bf16.vlgmr.msra.gmra.mxu1 %v12851_v62  ;;  %7467 = vmatpush1.bf16.msra.mxu0 %v11169_v35  ;;  %v11282_v19 = vcombine.high %v1469_v28, %v1473_v12  ;;  %v11138_v35 = vcombine.high %v1325_v52, %v1329_v7  ;;  %v1309_v12 = vld [vmem:[#allocation8 + $0x1048] sm:$0xff] }
 0x28a   :  { %7498 = vmatprep.mubr.bf16.mxu0 %v12855_v6  ;;  %7508 = vmatpush1.bf16.msra.mxu1 %v11297_v3  ;;  %v7174_v20 = vpop.f32.mrf.mxu0  ;;  %v7215_v29 = vpop.f32.mrf.mxu1  ;;  %v11266_v1 = vcombine.high %v1453_v57, %v1457_v58  ;;  %v1321_v3 = vld [vmem:[#allocation8 + $0x10a8] sm:$0xff]  ;;  %v11265_v9 = vcombine.low %v1453_v57, %v1457_v58 }
 0x28b   :  { %v12913_v24 = vadd.f32 %v7213_v53, %v7173_v23  ;;  %7539 = vmatprep.mubr.bf16.mxu1 %v12858_v10  ;;  %v7175_v27 = vadd.f32 %v7174_v20, %v12907_v39  ;;  %7468 = vmatprep.subr.bf16.mxu0 %v11162_v4  ;;  %v1445_v4 = vld [vmem:[#allocation8 + $0x1488] sm:$0xff]  ;;  %v11129_v20 = vcombine.low %v1317_v2, %v1321_v3 }
 0x28c   :  { %v7176_v36 = vpop.f32.mrf.mxu0  ;;  %7509 = vmatprep.subr.bf16.mxu1 %v11290_v11  ;;  %v7217_v42 = vpop.f32.mrf.mxu1  ;;  %v11130_v11 = vcombine.high %v1317_v2, %v1321_v3  ;;  %v11258_v28 = vcombine.high %v1445_v4, %v1449_v5  ;;  %v1313_v23 = vld [vmem:[#allocation8 + $0x1068] sm:$0xff] }
 0x28d   :  { %v12917_v41 = vadd.f32 %v7215_v29, %v7175_v27  ;;  %7469 = vmatpush1.bf16.msra.mxu0 %v11161_v60  ;;  %v1437_v53 = vld [vmem:[#allocation8 + $0x1448] sm:$0xff]  ;;  %v11121_v36 = vcombine.low %v1309_v12, %v1313_v23 }
 0x28e   :  { %7510 = vmatpush1.bf16.msra.mxu1 %v11289_v55  ;;  %v7177_v45 = vpop.f32.mrf.mxu0  ;;  %7470 = vmatprep.subr.bf16.mxu0 %v11154_v61  ;;  %v7218_v39 = vpop.f32.mrf.mxu1  ;;  %v1441_v60 = vld [vmem:[#allocation8 + $0x1468] sm:$0xff]  ;;  %v11257_v55 = vcombine.low %v1445_v4, %v1449_v5  ;;  %v11122_v61 = vcombine.high %v1309_v12, %v1313_v23 }
 0x28f   :  { %7511 = vmatprep.subr.bf16.mxu1 %v11282_v19  ;;  %v11250_v27 = vcombine.high %v1437_v53, %v1441_v60  ;;  %v1301_v29 = vld [vmem:[#allocation8 + $0x1008] sm:$0xff]  ;;  %v11249_v56 = vcombine.low %v1437_v53, %v1441_v60 }
 0x290   :  { %v1305_v19 = vld [vmem:[#allocation8 + $0x1028] sm:$0xff] }
 0x291   :  { %7471 = vmatpush1.bf16.msra.mxu0 %v11153_v59  ;;  %v1429_v54 = vld [vmem:[#allocation8 + $0x1408] sm:$0xff]  ;;  %v11114_v40 = vcombine.high %v1301_v29, %v1305_v19  ;;  %v11113_v39 = vcombine.low %v1301_v29, %v1305_v19 }
 0x292   :  { %7512 = vmatpush1.bf16.msra.mxu1 %v11281_v50  ;;  %7472 = vmatprep.subr.bf16.mxu0 %v11146_v8  ;;  %v1433_v33 = vld [vmem:[#allocation8 + $0x1428] sm:$0xff] }
 0x293   :  { %7513 = vmatprep.subr.bf16.mxu1 %v11274_v51  ;;  %v11242_v42 = vcombine.high %v1429_v54, %v1433_v33  ;;  %v1421_v59 = vld [vmem:[#allocation8 + $0x13c8] sm:$0xff]  ;;  %v11241_v51 = vcombine.low %v1429_v54, %v1433_v33 }
 0x294   :  { %v1425_v45 = vld [vmem:[#allocation8 + $0x13e8] sm:$0xff] }
 0x295   :  { %7473 = vmatpush1.bf16.msra.mxu0 %v11145_v13  ;;  %v1549_v50 = vld [vmem:[#allocation8 + $0x17c8] sm:$0xff]  ;;  %v11234_v52 = vcombine.high %v1421_v59, %v1425_v45 }
 0x296   :  { %7514 = vmatpush1.bf16.msra.mxu1 %v11273_v32  ;;  %7474 = vmatprep.subr.bf16.mxu0 %v11138_v35  ;;  %v1553_v8 = vld [vmem:[#allocation8 + $0x17e8] sm:$0xff]  ;;  %v11233_v35 = vcombine.low %v1421_v59, %v1425_v45 }
 0x297   :  { %7515 = vmatprep.subr.bf16.mxu1 %v11266_v1  ;;  %v11362_v7 = vcombine.high %v1549_v50, %v1553_v8  ;;  %v1413_v57 = vld [vmem:[#allocation8 + $0x1388] sm:$0xff]  ;;  %v11361_v1 = vcombine.low %v1549_v50, %v1553_v8 }
 0x298   :  { %v1417_v58 = vld [vmem:[#allocation8 + $0x13a8] sm:$0xff] }
 0x299   :  { %7475 = vmatpush1.bf16.msra.mxu0 %v11137_v21  ;;  %v1541_v13 = vld [vmem:[#allocation8 + $0x1788] sm:$0xff]  ;;  %v11226_v2 = vcombine.high %v1413_v57, %v1417_v58 }
 0x29a   :  { %7516 = vmatpush1.bf16.msra.mxu1 %v11265_v9  ;;  %7476 = vmatprep.subr.bf16.mxu0 %v11130_v11  ;;  %v1545_v32 = vld [vmem:[#allocation8 + $0x17a8] sm:$0xff]  ;;  %v11225_v11 = vcombine.low %v1413_v57, %v1417_v58 }
 0x29b   :  { %7517 = vmatprep.subr.bf16.mxu1 %v11258_v28  ;;  %v11354_v3 = vcombine.high %v1541_v13, %v1545_v32  ;;  %v1405_v4 = vld [vmem:[#allocation8 + $0x1348] sm:$0xff]  ;;  %v11353_v28 = vcombine.low %v1541_v13, %v1545_v32 }
 0x29c   :  { %v1409_v5 = vld [vmem:[#allocation8 + $0x1368] sm:$0xff] }
 0x29d   :  { %7477 = vmatpush1.bf16.msra.mxu0 %v11129_v20  ;;  %v1533_v21 = vld [vmem:[#allocation8 + $0x1748] sm:$0xff]  ;;  %v11218_v12 = vcombine.high %v1405_v4, %v1409_v5 }
 0x29e   :  { %7518 = vmatpush1.bf16.msra.mxu1 %v11257_v55  ;;  %7478 = vmatprep.subr.bf16.mxu0 %v11122_v61  ;;  %v1537_v9 = vld [vmem:[#allocation8 + $0x1768] sm:$0xff]  ;;  %v11217_v61 = vcombine.low %v1405_v4, %v1409_v5 }
 0x29f   :  { %7519 = vmatprep.subr.bf16.mxu1 %v11250_v27  ;;  %v11346_v23 = vcombine.high %v1533_v21, %v1537_v9  ;;  %v1397_v53 = vld [vmem:[#allocation8 + $0x1308] sm:$0xff]  ;;  %v11345_v27 = vcombine.low %v1533_v21, %v1537_v9 }
 0x2a0   :  { %v1401_v60 = vld [vmem:[#allocation8 + $0x1328] sm:$0xff] }
 0x2a1   :  { %7479 = vmatpush1.bf16.msra.mxu0 %v11121_v36  ;;  %v1525_v20 = vld [vmem:[#allocation8 + $0x1708] sm:$0xff]  ;;  %v11210_v29 = vcombine.high %v1397_v53, %v1401_v60 }
 0x2a2   :  { %7520 = vmatpush1.bf16.msra.mxu1 %v11249_v56  ;;  %7480 = vmatprep.subr.bf16.mxu0 %v11114_v40  ;;  %v1529_v55 = vld [vmem:[#allocation8 + $0x1728] sm:$0xff]  ;;  %v11209_v40 = vcombine.low %v1397_v53, %v1401_v60 }
 0x2a3   :  { %7521 = vmatprep.subr.bf16.mxu1 %v11242_v42  ;;  %v11338_v19 = vcombine.high %v1525_v20, %v1529_v55  ;;  %v1389_v54 = vld [vmem:[#allocation8 + $0x12c8] sm:$0xff]  ;;  %v11337_v42 = vcombine.low %v1525_v20, %v1529_v55 }
 0x2a4   :  { %v1393_v33 = vld [vmem:[#allocation8 + $0x12e8] sm:$0xff] }
 0x2a5   :  { %7481 = vmatpush1.bf16.msra.mxu0 %v11113_v39  ;;  %v1517_v36 = vld [vmem:[#allocation8 + $0x16c8] sm:$0xff]  ;;  %v11202_v59 = vcombine.high %v1389_v54, %v1393_v33 }
 0x2a6   :  { %7522 = vmatpush1.bf16.msra.mxu1 %v11241_v51  ;;  %7482 = vmatprep.subr.bf16.mxu0 %v11234_v52  ;;  %v1521_v56 = vld [vmem:[#allocation8 + $0x16e8] sm:$0xff]  ;;  %v11201_v52 = vcombine.low %v1389_v54, %v1393_v33 }
 0x2a7   :  { %7523 = vmatprep.subr.bf16.mxu1 %v11362_v7  ;;  %v11330_v45 = vcombine.high %v1517_v36, %v1521_v56  ;;  %v1381_v50 = vld [vmem:[#allocation8 + $0x1288] sm:$0xff]  ;;  %v11329_v7 = vcombine.low %v1517_v36, %v1521_v56 }
 0x2a8   :  { %v1385_v8 = vld [vmem:[#allocation8 + $0x12a8] sm:$0xff] }
 0x2a9   :  { %7483 = vmatpush2.bf16.msra.mxu0 %v11233_v35  ;;  %v1509_v39 = vld [vmem:[#allocation8 + $0x1688] sm:$0xff]  ;;  %v11194_v57 = vcombine.high %v1381_v50, %v1385_v8 }
 0x2aa   :  { %7524 = vmatpush2.bf16.msra.mxu1 %v11361_v1  ;;  %7484 = vmatprep.subr.bf16.mxu0 %v11226_v2  ;;  %v1513_v51 = vld [vmem:[#allocation8 + $0x16a8] sm:$0xff]  ;;  %v11193_v2 = vcombine.low %v1381_v50, %v1385_v8 }
 0x2ab   :  { %7525 = vmatprep.subr.bf16.mxu1 %v11354_v3  ;;  %v11322_v58 = vcombine.high %v1509_v39, %v1513_v51  ;;  %v1373_v13 = vld [vmem:[#allocation8 + $0x1248] sm:$0xff]  ;;  %v11321_v3 = vcombine.low %v1509_v39, %v1513_v51 }
 0x2ac   :  { %v1377_v32 = vld [vmem:[#allocation8 + $0x1268] sm:$0xff] }
 0x2ad   :  { %7485 = vmatpush2.bf16.msra.mxu0 %v11225_v11  ;;  %v1501_v35 = vld [vmem:[#allocation8 + $0x1648] sm:$0xff]  ;;  %v11186_v4 = vcombine.high %v1373_v13, %v1377_v32 }
 0x2ae   :  { %7526 = vmatpush2.bf16.msra.mxu1 %v11353_v28  ;;  %7486 = vmatprep.subr.bf16.mxu0 %v11218_v12  ;;  %v1505_v1 = vld [vmem:[#allocation8 + $0x1668] sm:$0xff]  ;;  %v11185_v12 = vcombine.low %v1373_v13, %v1377_v32 }
 0x2af   :  { %7527 = vmatprep.subr.bf16.mxu1 %v11346_v23  ;;  %v11314_v5 = vcombine.high %v1501_v35, %v1505_v1  ;;  %v1365_v21 = vld [vmem:[#allocation8 + $0x1208] sm:$0xff]  ;;  %v11313_v23 = vcombine.low %v1501_v35, %v1505_v1 }
 0x2b0   :  { %v1369_v9 = vld [vmem:[#allocation8 + $0x1228] sm:$0xff] }
 0x2b1   :  { %7487 = vmatpush2.bf16.msra.mxu0 %v11217_v61  ;;  %v1493_v11 = vld [vmem:[#allocation8 + $0x1608] sm:$0xff]  ;;  %v11178_v53 = vcombine.high %v1365_v21, %v1369_v9 }
 0x2b2   :  { %7528 = vmatpush2.bf16.msra.mxu1 %v11345_v27  ;;  %7488 = vmatprep.subr.bf16.mxu0 %v11210_v29  ;;  %v1497_v28 = vld [vmem:[#allocation8 + $0x1628] sm:$0xff]  ;;  %v11177_v29 = vcombine.low %v1365_v21, %v1369_v9 }
 0x2b3   :  { %7529 = vmatprep.subr.bf16.mxu1 %v11338_v19  ;;  %v11306_v60 = vcombine.high %v1493_v11, %v1497_v28  ;;  %v1613_v20 = vld [vmem:[#allocation8 + $0x19c8] sm:$0xff]  ;;  %v11305_v19 = vcombine.low %v1493_v11, %v1497_v28 }
 0x2b4   :  { %v1617_v55 = vld [vmem:[#allocation8 + $0x19e8] sm:$0xff] }
 0x2b5   :  { %7489 = vmatpush2.bf16.msra.mxu0 %v11209_v40  ;;  %v1741_v61 = vld [vmem:[#allocation8 + $0x1dc8] sm:$0xff]  ;;  %v11426_v54 = vcombine.high %v1613_v20, %v1617_v55  ;;  %v11425_v40 = vcombine.low %v1613_v20, %v1617_v55 }
 0x2b6   :  { %7530 = vmatpush2.bf16.msra.mxu1 %v11337_v42  ;;  %7490 = vmatprep.subr.bf16.mxu0 %v11202_v59  ;;  %v1745_v27 = vld [vmem:[#allocation8 + $0x1de8] sm:$0xff] }
 0x2b7   :  { %7531 = vmatprep.subr.bf16.mxu1 %v11330_v45  ;;  %v11554_v33 = vcombine.high %v1741_v61, %v1745_v27  ;;  %v1605_v36 = vld [vmem:[#allocation8 + $0x1988] sm:$0xff]  ;;  %v11553_v45 = vcombine.low %v1741_v61, %v1745_v27 }
 0x2b8   :  { %v1609_v56 = vld [vmem:[#allocation8 + $0x19a8] sm:$0xff] }
 0x2b9   :  { %7491 = vmatpush2.bf16.msra.mxu0 %v11201_v52  ;;  %v1733_v42 = vld [vmem:[#allocation8 + $0x1d88] sm:$0xff]  ;;  %v11418_v50 = vcombine.high %v1605_v36, %v1609_v56  ;;  %v11417_v32 = vcombine.low %v1605_v36, %v1609_v56 }
 0x2ba   :  { %7532 = vmatpush2.bf16.msra.mxu1 %v11329_v7  ;;  %7492 = vmatprep.subr.bf16.mxu0 %v11194_v57  ;;  %v1737_v59 = vld [vmem:[#allocation8 + $0x1da8] sm:$0xff] }
 0x2bb   :  { %7533 = vmatprep.subr.bf16.mxu1 %v11322_v58  ;;  %v1597_v8 = vld [vmem:[#allocation8 + $0x1948] sm:$0xff]  ;;  %v11546_v52 = vcombine.high %v1733_v42, %v1737_v59  ;;  %v11545_v1 = vcombine.low %v1733_v42, %v1737_v59 }
 0x2bc   :  { %v1601_v39 = vld [vmem:[#allocation8 + $0x1968] sm:$0xff] }
 0x2bd   :  { %7493 = vmatpush2.bf16.msra.mxu0 %v11193_v2  ;;  %v1725_v7 = vld [vmem:[#allocation8 + $0x1d48] sm:$0xff]  ;;  %v11410_v2 = vcombine.high %v1597_v8, %v1601_v39 }
 0x2be   :  { %7534 = vmatpush2.bf16.msra.mxu1 %v11321_v3  ;;  %7494 = vmatprep.subr.bf16.mxu0 %v11186_v4  ;;  %v1729_v57 = vld [vmem:[#allocation8 + $0x1d68] sm:$0xff] }
 0x2bf   :  { %7535 = vmatprep.subr.bf16.mxu1 %v11314_v5  ;;  %v1589_v21 = vld [vmem:[#allocation8 + $0x1908] sm:$0xff]  ;;  %v11537_v55 = vcombine.low %v1725_v7, %v1729_v57 }
 0x2c0   :  { %v1593_v9 = vld [vmem:[#allocation8 + $0x1928] sm:$0xff] }
 0x2c1   :  { %7495 = vmatpush2.bf16.msra.mxu0 %v11185_v12  ;;  %v1717_v28 = vld [vmem:[#allocation8 + $0x1d08] sm:$0xff]  ;;  %v11402_v61 = vcombine.high %v1589_v21, %v1593_v9  ;;  %v11401_v36 = vcombine.low %v1589_v21, %v1593_v9 }
 0x2c2   :  { %7536 = vmatpush2.bf16.msra.mxu1 %v11313_v23  ;;  %7496 = vmatprep.subr.bf16.mxu0 %v11178_v53  ;;  %v1721_v12 = vld [vmem:[#allocation8 + $0x1d28] sm:$0xff] }
 0x2c3   :  { %7537 = vmatprep.subr.bf16.mxu1 %v11306_v60  ;;  %v11409_v60 = vcombine.low %v1597_v8, %v1601_v39  ;;  %v11530_v27 = vcombine.high %v1717_v28, %v1721_v12  ;;  %v11529_v56 = vcombine.low %v1717_v28, %v1721_v12  ;;  %v1573_v59 = vld [vmem:[#allocation8 + $0x1888] sm:$0xff] }
 0x2c4   :  { %v1705_v8 = vld [vmem:[#allocation8 + $0x1ca8] sm:$0xff] }
 0x2c5   :  { %7497 = vmatpush2.bf16.msra.mxu0 %v11177_v29  ;;  %v1581_v29 = vld [vmem:[#allocation8 + $0x18c8] sm:$0xff] }
 0x2c6   :  { %7538 = vmatpush2.bf16.msra.mxu1 %v11305_v19  ;;  %7548 = vmatprep.subr.bf16.mxu0 %v11426_v54  ;;  %v1585_v19 = vld [vmem:[#allocation8 + $0x18e8] sm:$0xff] }
 0x2c7   :  { %7589 = vmatprep.subr.bf16.mxu1 %v11554_v33  ;;  %v1709_v54 = vld [vmem:[#allocation8 + $0x1cc8] sm:$0xff]  ;;  %v11393_v39 = vcombine.low %v1581_v29, %v1585_v19 }
 0x2c8   :  { %v7254_v51 = vpop.f32.mrf.mxu0  ;;  %7499 = vmatmul.mubr.bf16.vlgmr.msra.gmra.mxu0 %v12873_v25  ;;  %v7295_v13 = vpop.f32.mrf.mxu1  ;;  %v1713_v33 = vld [vmem:[#allocation8 + $0x1ce8] sm:$0xff] }
 0x2c9   :  { %v7255_v58 = vadd.f32 %v7254_v51, %v12913_v24  ;;  %7540 = vmatmul.mubr.bf16.vlgmr.msra.gmra.mxu1 %v12871_v15  ;;  %7549 = vmatpush1.bf16.msra.mxu0 %v11425_v40  ;;  %v11538_v24 = vcombine.high %v1725_v7, %v1729_v57  ;;  %v11394_v40 = vcombine.high %v1581_v29, %v1585_v19  ;;  %v1565_v57 = vld [vmem:[#allocation8 + $0x1848] sm:$0xff] }
 0x2ca   :  { %7580 = vmatprep.mubr.bf16.mxu0 %v12875_v31  ;;  %7590 = vmatpush1.bf16.msra.mxu1 %v11553_v45  ;;  %v7256_v35 = vpop.f32.mrf.mxu0  ;;  %v7297_v5 = vpop.f32.mrf.mxu1  ;;  %v11522_v42 = vcombine.high %v1709_v54, %v1713_v33  ;;  %v1577_v45 = vld [vmem:[#allocation8 + $0x18a8] sm:$0xff]  ;;  %v11521_v51 = vcombine.low %v1709_v54, %v1713_v33 }
 0x2cb   :  { %v12923_v3 = vadd.f32 %v7295_v13, %v7255_v58  ;;  %7621 = vmatprep.mubr.bf16.mxu1 %v12877_v37  ;;  %v7257_v4 = vadd.f32 %v7256_v35, %v12917_v41  ;;  %7550 = vmatprep.subr.bf16.mxu0 %v11418_v50  ;;  %v1701_v50 = vld [vmem:[#allocation8 + $0x1c88] sm:$0xff]  ;;  %v11385_v35 = vcombine.low %v1573_v59, %v1577_v45 }
 0x2cc   :  { %v7258_v11 = vpop.f32.mrf.mxu0  ;;  %7591 = vmatprep.subr.bf16.mxu1 %v11546_v52  ;;  %v7299_v53 = vpop.f32.mrf.mxu1  ;;  %v11386_v52 = vcombine.high %v1573_v59, %v1577_v45  ;;  %v11514_v7 = vcombine.high %v1701_v50, %v1705_v8  ;;  %v1569_v58 = vld [vmem:[#allocation8 + $0x1868] sm:$0xff] }
 0x2cd   :  { %v12927_v23 = vadd.f32 %v7297_v5, %v7257_v4  ;;  %7551 = vmatpush1.bf16.msra.mxu0 %v11417_v32  ;;  %v1693_v13 = vld [vmem:[#allocation8 + $0x1c48] sm:$0xff]  ;;  %v11377_v11 = vcombine.low %v1565_v57, %v1569_v58 }
 0x2ce   :  { %7592 = vmatpush1.bf16.msra.mxu1 %v11545_v1  ;;  %v7259_v20 = vpop.f32.mrf.mxu0  ;;  %7552 = vmatprep.subr.bf16.mxu0 %v11410_v2  ;;  %v7300_v41 = vpop.f32.mrf.mxu1  ;;  %v1697_v32 = vld [vmem:[#allocation8 + $0x1c68] sm:$0xff]  ;;  %v11513_v1 = vcombine.low %v1701_v50, %v1705_v8  ;;  %v11378_v2 = vcombine.high %v1565_v57, %v1569_v58 }
 0x2cf   :  { %7593 = vmatprep.subr.bf16.mxu1 %v11538_v24  ;;  %v11506_v4 = vcombine.high %v1693_v13, %v1697_v32  ;;  %v1557_v5 = vld [vmem:[#allocation8 + $0x1808] sm:$0xff]  ;;  %v11505_v28 = vcombine.low %v1693_v13, %v1697_v32 }
 0x2d0   :  { %v1561_v24 = vld [vmem:[#allocation8 + $0x1828] sm:$0xff] }
 0x2d1   :  { %7553 = vmatpush1.bf16.msra.mxu0 %v11409_v60  ;;  %v1685_v21 = vld [vmem:[#allocation8 + $0x1c08] sm:$0xff]  ;;  %v11370_v12 = vcombine.high %v1557_v5, %v1561_v24  ;;  %v11369_v41 = vcombine.low %v1557_v5, %v1561_v24 }
 0x2d2   :  { %7594 = vmatpush1.bf16.msra.mxu1 %v11537_v55  ;;  %7554 = vmatprep.subr.bf16.mxu0 %v11402_v61  ;;  %v1689_v9 = vld [vmem:[#allocation8 + $0x1c28] sm:$0xff] }
 0x2d3   :  { %7595 = vmatprep.subr.bf16.mxu1 %v11530_v27  ;;  %v11498_v53 = vcombine.high %v1685_v21, %v1689_v9  ;;  %v1677_v60 = vld [vmem:[#allocation8 + $0x1bc8] sm:$0xff]  ;;  %v11497_v27 = vcombine.low %v1685_v21, %v1689_v9 }
 0x2d4   :  { %v1681_v20 = vld [vmem:[#allocation8 + $0x1be8] sm:$0xff] }
 0x2d5   :  { %7555 = vmatpush1.bf16.msra.mxu0 %v11401_v36  ;;  %v1805_v55 = vld [vmem:[#allocation8 + $0x1fc8] sm:$0xff]  ;;  %v11490_v29 = vcombine.high %v1677_v60, %v1681_v20 }
 0x2d6   :  { %7596 = vmatpush1.bf16.msra.mxu1 %v11529_v56  ;;  %7556 = vmatprep.subr.bf16.mxu0 %v11394_v40  ;;  %v1809_v61 = vld [vmem:[#allocation8 + $0x1fe8] sm:$0xff]  ;;  %v11489_v40 = vcombine.low %v1677_v60, %v1681_v20 }
 0x2d7   :  { %7597 = vmatprep.subr.bf16.mxu1 %v11522_v42  ;;  %v11618_v19 = vcombine.high %v1805_v55, %v1809_v61  ;;  %v1669_v54 = vld [vmem:[#allocation8 + $0x1b88] sm:$0xff]  ;;  %v11617_v42 = vcombine.low %v1805_v55, %v1809_v61 }
 0x2d8   :  { %v1673_v33 = vld [vmem:[#allocation8 + $0x1ba8] sm:$0xff] }
 0x2d9   :  { %7557 = vmatpush1.bf16.msra.mxu0 %v11393_v39  ;;  %v1797_v36 = vld [vmem:[#allocation8 + $0x1f88] sm:$0xff]  ;;  %v11482_v59 = vcombine.high %v1669_v54, %v1673_v33 }
 0x2da   :  { %7598 = vmatpush1.bf16.msra.mxu1 %v11521_v51  ;;  %7558 = vmatprep.subr.bf16.mxu0 %v11386_v52  ;;  %v1801_v56 = vld [vmem:[#allocation8 + $0x1fa8] sm:$0xff]  ;;  %v11481_v52 = vcombine.low %v1669_v54, %v1673_v33 }
 0x2db   :  { %7599 = vmatprep.subr.bf16.mxu1 %v11514_v7  ;;  %v11610_v45 = vcombine.high %v1797_v36, %v1801_v56  ;;  %v1661_v50 = vld [vmem:[#allocation8 + $0x1b48] sm:$0xff]  ;;  %v11609_v7 = vcombine.low %v1797_v36, %v1801_v56 }
 0x2dc   :  { %v1665_v8 = vld [vmem:[#allocation8 + $0x1b68] sm:$0xff] }
 0x2dd   :  { %7559 = vmatpush1.bf16.msra.mxu0 %v11385_v35  ;;  %v1789_v39 = vld [vmem:[#allocation8 + $0x1f48] sm:$0xff]  ;;  %v11474_v57 = vcombine.high %v1661_v50, %v1665_v8 }
 0x2de   :  { %7600 = vmatpush1.bf16.msra.mxu1 %v11513_v1  ;;  %7560 = vmatprep.subr.bf16.mxu0 %v11378_v2  ;;  %v1793_v51 = vld [vmem:[#allocation8 + $0x1f68] sm:$0xff]  ;;  %v11473_v2 = vcombine.low %v1661_v50, %v1665_v8 }
 0x2df   :  { %7601 = vmatprep.subr.bf16.mxu1 %v11506_v4  ;;  %v11602_v58 = vcombine.high %v1789_v39, %v1793_v51  ;;  %v1653_v13 = vld [vmem:[#allocation8 + $0x1b08] sm:$0xff]  ;;  %v11601_v4 = vcombine.low %v1789_v39, %v1793_v51 }
 0x2e0   :  { %v1657_v32 = vld [vmem:[#allocation8 + $0x1b28] sm:$0xff] }
 0x2e1   :  { %7561 = vmatpush1.bf16.msra.mxu0 %v11377_v11  ;;  %v1781_v35 = vld [vmem:[#allocation8 + $0x1f08] sm:$0xff]  ;;  %v11466_v5 = vcombine.high %v1653_v13, %v1657_v32 }
 0x2e2   :  { %7602 = vmatpush1.bf16.msra.mxu1 %v11505_v28  ;;  %7562 = vmatprep.subr.bf16.mxu0 %v11370_v12  ;;  %v1785_v1 = vld [vmem:[#allocation8 + $0x1f28] sm:$0xff]  ;;  %v11465_v12 = vcombine.low %v1653_v13, %v1657_v32 }
 0x2e3   :  { %7603 = vmatprep.subr.bf16.mxu1 %v11498_v53  ;;  %v11594_v24 = vcombine.high %v1781_v35, %v1785_v1  ;;  %v1645_v21 = vld [vmem:[#allocation8 + $0x1ac8] sm:$0xff]  ;;  %v11593_v53 = vcombine.low %v1781_v35, %v1785_v1  ;;  %v846_v35 = vld [vmem:[#allocation8 + $0x1d0] sm:$0xff] }
 0x2e4   :  { %v1649_v9 = vld [vmem:[#allocation8 + $0x1ae8] sm:$0xff]  ;;  %v850_v1 = vld [vmem:[#allocation8 + $0x1f0] sm:$0xff] }
 0x2e5   :  { %7563 = vmatpush1.bf16.msra.mxu0 %v11369_v41  ;;  %v1773_v11 = vld [vmem:[#allocation8 + $0x1ec8] sm:$0xff]  ;;  %v11458_v60 = vcombine.high %v1645_v21, %v1649_v9 }
 0x2e6   :  { %7604 = vmatpush1.bf16.msra.mxu1 %v11497_v27  ;;  %7564 = vmatprep.subr.bf16.mxu0 %v11490_v29  ;;  %v1777_v28 = vld [vmem:[#allocation8 + $0x1ee8] sm:$0xff]  ;;  %v11457_v29 = vcombine.low %v1645_v21, %v1649_v9  ;;  %v10660_v21 = vcombine.high %v846_v35, %v850_v1 }
 0x2e7   :  { %7605 = vmatprep.subr.bf16.mxu1 %v11618_v19  ;;  %v11586_v20 = vcombine.high %v1773_v11, %v1777_v28  ;;  %v1637_v55 = vld [vmem:[#allocation8 + $0x1a88] sm:$0xff]  ;;  %v11585_v19 = vcombine.low %v1773_v11, %v1777_v28  ;;  %v838_v11 = vld [vmem:[#allocation8 + $0x190] sm:$0xff] }
 0x2e8   :  { %v1641_v61 = vld [vmem:[#allocation8 + $0x1aa8] sm:$0xff]  ;;  %v842_v28 = vld [vmem:[#allocation8 + $0x1b0] sm:$0xff] }
 0x2e9   :  { %7565 = vmatpush2.bf16.msra.mxu0 %v11489_v40  ;;  %v1765_v41 = vld [vmem:[#allocation8 + $0x1e88] sm:$0xff]  ;;  %v11450_v54 = vcombine.high %v1637_v55, %v1641_v61 }
 0x2ea   :  { %7606 = vmatpush2.bf16.msra.mxu1 %v11617_v42  ;;  %7566 = vmatprep.subr.bf16.mxu0 %v11482_v59  ;;  %v1769_v27 = vld [vmem:[#allocation8 + $0x1ea8] sm:$0xff]  ;;  %v11449_v59 = vcombine.low %v1637_v55, %v1641_v61  ;;  %v970_v55 = vld [vmem:[#allocation8 + $0x5b0] sm:$0xff] }
 0x2eb   :  { %7607 = vmatprep.subr.bf16.mxu1 %v11610_v45  ;;  %v11578_v33 = vcombine.high %v1765_v41, %v1769_v27  ;;  %v1629_v36 = vld [vmem:[#allocation8 + $0x1a48] sm:$0xff]  ;;  %v11577_v45 = vcombine.low %v1765_v41, %v1769_v27  ;;  %v10652_v27 = vcombine.high %v838_v11, %v842_v28 }
 0x2ec   :  { %v1633_v56 = vld [vmem:[#allocation8 + $0x1a68] sm:$0xff] }
 0x2ed   :  { %7567 = vmatpush2.bf16.msra.mxu0 %v11481_v52  ;;  %v1757_v40 = vld [vmem:[#allocation8 + $0x1e48] sm:$0xff]  ;;  %v11442_v50 = vcombine.high %v1629_v36, %v1633_v56 }
 0x2ee   :  { %7608 = vmatpush2.bf16.msra.mxu1 %v11609_v7  ;;  %7568 = vmatprep.subr.bf16.mxu0 %v11474_v57  ;;  %v1761_v42 = vld [vmem:[#allocation8 + $0x1e68] sm:$0xff]  ;;  %v11441_v57 = vcombine.low %v1629_v36, %v1633_v56  ;;  %v958_v36 = vld [vmem:[#allocation8 + $0x550] sm:$0xff] }
 0x2ef   :  { %7609 = vmatprep.subr.bf16.mxu1 %v11602_v58  ;;  %v11570_v8 = vcombine.high %v1757_v40, %v1761_v42  ;;  %v1621_v39 = vld [vmem:[#allocation8 + $0x1a08] sm:$0xff]  ;;  %v11569_v58 = vcombine.low %v1757_v40, %v1761_v42  ;;  %v962_v56 = vld [vmem:[#allocation8 + $0x570] sm:$0xff] }
 0x2f0   :  { %v1625_v51 = vld [vmem:[#allocation8 + $0x1a28] sm:$0xff] }
 0x2f1   :  { %7569 = vmatpush2.bf16.msra.mxu0 %v11473_v2  ;;  %v1749_v52 = vld [vmem:[#allocation8 + $0x1e08] sm:$0xff]  ;;  %v11434_v13 = vcombine.high %v1621_v39, %v1625_v51  ;;  %v974_v2 = vld [vmem:[#allocation8 + $0x5d0] sm:$0xff] }
 0x2f2   :  { %7610 = vmatpush2.bf16.msra.mxu1 %v11601_v4  ;;  %7570 = vmatprep.subr.bf16.mxu0 %v11466_v5  ;;  %v1753_v7 = vld [vmem:[#allocation8 + $0x1e28] sm:$0xff]  ;;  %v978_v4 = vld [vmem:[#allocation8 + $0x5f0] sm:$0xff]  ;;  %v11433_v5 = vcombine.low %v1621_v39, %v1625_v51 }
 0x2f3   :  { %7611 = vmatprep.subr.bf16.mxu1 %v11594_v24  ;;  %v11562_v32 = vcombine.high %v1749_v52, %v1753_v7  ;;  %v11561_v24 = vcombine.low %v1749_v52, %v1753_v7  ;;  %v10788_v9 = vcombine.high %v974_v2, %v978_v4  ;;  %v10787_v61 = vcombine.low %v974_v2, %v978_v4 }
 0x2f4   :  { %v10772_v7 = vcombine.high %v958_v36, %v962_v56 }
 0x2f5   :  { %7571 = vmatpush2.bf16.msra.mxu0 %v11465_v12  ;;  %v12390_v12 = vld [vmem:[#allocation10] sm:$0xff] }
 0x2f6   :  { %7612 = vmatpush2.bf16.msra.mxu1 %v11593_v53  ;;  %7572 = vmatprep.subr.bf16.mxu0 %v11458_v60  ;;  %v1825_v53 = vrot.slane %v12390_v12, %v12753_v16  ;;  %v10659_v60 = vcombine.low %v846_v35, %v850_v1  ;;  %v1829_v41 = vrot.slane %v12390_v12, %v12759_v18  ;;  %v954_v35 = vld [vmem:[#allocation8 + $0x530] sm:$0xff] }
 0x2f7   :  { %7613 = vmatprep.subr.bf16.mxu1 %v11586_v20  ;;  %v966_v20 = vld [vmem:[#allocation8 + $0x590] sm:$0xff] }
 0x2f8   :  { %v818_v12 = vld [vmem:[#allocation8 + $0xf0] sm:$0xff] }
 0x2f9   :  { %7573 = vmatpush2.bf16.msra.mxu0 %v11457_v29  ;;  %v830_v29 = vld [vmem:[#allocation8 + $0x150] sm:$0xff] }
 0x2fa   :  { %7614 = vmatpush2.bf16.msra.mxu1 %v11585_v19  ;;  %7574 = vmatprep.subr.bf16.mxu0 %v11450_v54  ;;  %v834_v19 = vld [vmem:[#allocation8 + $0x170] sm:$0xff] }
 0x2fb   :  { %7615 = vmatprep.subr.bf16.mxu1 %v11578_v33  ;;  %v10780_v33 = vcombine.high %v966_v20, %v970_v55  ;;  %v10643_v4 = vcombine.low %v830_v29, %v834_v19 }
 0x2fd   :  { %7575 = vmatpush2.bf16.msra.mxu0 %v11449_v59  ;;  %v10651_v59 = vcombine.low %v838_v11, %v842_v28  ;;  %v814_v28 = vld [vmem:[#allocation8 + $0xd0] sm:$0xff] }
 0x2fe   :  { %7616 = vmatpush2.bf16.msra.mxu1 %v11577_v45  ;;  %7576 = vmatprep.subr.bf16.mxu0 %v11442_v50  ;;  %v10779_v50 = vcombine.low %v966_v20, %v970_v55 }
 0x2ff   :  { %7617 = vmatprep.subr.bf16.mxu1 %v11570_v8  ;;  %v10644_v8 = vcombine.high %v830_v29, %v834_v19  ;;  %v810_v29 = vld [vmem:[#allocation8 + $0xb0] sm:$0xff] }
 0x300   :  { %v934_v19 = vld [vmem:[#allocation8 + $0x490] sm:$0xff] }
 0x301   :  { %7577 = vmatpush2.bf16.msra.mxu0 %v11441_v57  ;;  %v822_v57 = vld [vmem:[#allocation8 + $0x110] sm:$0xff] }
 0x302   :  { %7618 = vmatpush2.bf16.msra.mxu1 %v11569_v58  ;;  %7578 = vmatprep.subr.bf16.mxu0 %v11434_v13  ;;  %v826_v58 = vld [vmem:[#allocation8 + $0x130] sm:$0xff] }
 0x303   :  { %7619 = vmatprep.subr.bf16.mxu1 %v11562_v32  ;;  %v950_v32 = vld [vmem:[#allocation8 + $0x510] sm:$0xff]  ;;  %v10635_v20 = vcombine.low %v822_v57, %v826_v58 }
 0x304   :  { %v10764_v11 = vcombine.high %v950_v32, %v954_v35  ;;  %v10763_v55 = vcombine.low %v950_v32, %v954_v35  ;;  %v922_v32 = vld [vmem:[#allocation8 + $0x430] sm:$0xff] }
 0x305   :  { %7579 = vmatpush2.bf16.msra.mxu0 %v11433_v5 }
 0x306   :  { %7620 = vmatpush2.bf16.msra.mxu1 %v11561_v24  ;;  %7630 = vmatprep.subr.bf16.mxu0 %v10660_v21  ;;  %v10771_v24 = vcombine.low %v958_v36, %v962_v56  ;;  %v10636_v21 = vcombine.high %v822_v57, %v826_v58  ;;  %v790_v57 = vld [vmem:[#allocation8 + $0x10] sm:$0xff] }
 0x307   :  { %7671 = vmatprep.subr.bf16.mxu1 %v10788_v9  ;;  %v794_v58 = vld [vmem:[#allocation8 + $0x30] sm:$0xff] }
 0x308   :  { %v7336_v54 = vpop.f32.mrf.mxu0  ;;  %7581 = vmatmul.mubr.bf16.vlgmr.msra.gmra.mxu0 %v12886_v46 }
 0x309   :  { %v7337_v40 = vadd.f32 %v7336_v54, %v1825_v53  ;;  %v7377_v42 = vpop.f32.mrf.mxu1  ;;  %7622 = vmatmul.mubr.bf16.vlgmr.msra.gmra.mxu1 %v12888_v49  ;;  %7631 = vmatpush1.bf16.msra.mxu0 %v10659_v60  ;;  %v942_v53 = vld [vmem:[#allocation8 + $0x4d0] sm:$0xff] }
 0x30a   :  { %7662 = vmatprep.mubr.bf16.mxu0 %v12777_v44  ;;  %7672 = vmatpush1.bf16.msra.mxu1 %v10787_v61  ;;  %v7338_v45 = vpop.f32.mrf.mxu0  ;;  %v946_v60 = vld [vmem:[#allocation8 + $0x4f0] sm:$0xff]  ;;  %v10628_v61 = vcombine.high %v814_v28, %v818_v12 }
 0x30b   :  { %v12934_v39 = vadd.f32 %v7377_v42, %v7337_v40  ;;  %7703 = vmatprep.mubr.bf16.mxu1 %v12783_v48  ;;  %v7339_v51 = vadd.f32 %v7338_v45, %v1829_v41  ;;  %v7379_v52 = vpop.f32.mrf.mxu1  ;;  %7632 = vmatprep.subr.bf16.mxu0 %v10652_v27  ;;  %v10756_v41 = vcombine.high %v942_v53, %v946_v60  ;;  %v806_v27 = vld [vmem:[#allocation8 + $0x90] sm:$0xff] }
 0x30c   :  { %v7340_v13 = vpop.f32.mrf.mxu0  ;;  %7673 = vmatprep.subr.bf16.mxu1 %v10780_v33  ;;  %v938_v54 = vld [vmem:[#allocation8 + $0x4b0] sm:$0xff]  ;;  %v10627_v33 = vcombine.low %v814_v28, %v818_v12  ;;  %v10755_v36 = vcombine.low %v942_v53, %v946_v60  ;;  %v10620_v56 = vcombine.high %v806_v27, %v810_v29  ;;  %v10603_v28 = vcombine.low %v790_v57, %v794_v58 }
 0x30d   :  { %v12937_v1 = vadd.f32 %v7379_v52, %v7339_v51  ;;  %v7381_v2 = vpop.f32.mrf.mxu1  ;;  %7633 = vmatpush1.bf16.msra.mxu0 %v10651_v59  ;;  %v10748_v40 = vcombine.high %v934_v19, %v938_v54  ;;  %v798_v42 = vld [vmem:[#allocation8 + $0x50] sm:$0xff]  ;;  %v10747_v51 = vcombine.low %v934_v19, %v938_v54 }
 0x30e   :  { %7674 = vmatpush1.bf16.msra.mxu1 %v10779_v50  ;;  %v7341_v5 = vpop.f32.mrf.mxu0  ;;  %7634 = vmatprep.subr.bf16.mxu0 %v10644_v8  ;;  %v802_v59 = vld [vmem:[#allocation8 + $0x70] sm:$0xff]  ;;  %v10619_v8 = vcombine.low %v806_v27, %v810_v29 }
 0x30f   :  { %v7382_v9 = vpop.f32.mrf.mxu1  ;;  %7675 = vmatprep.subr.bf16.mxu1 %v10772_v7  ;;  %v926_v45 = vld [vmem:[#allocation8 + $0x450] sm:$0xff]  ;;  %v10612_v52 = vcombine.high %v798_v42, %v802_v59  ;;  %v10611_v35 = vcombine.low %v798_v42, %v802_v59 }
 0x310   :  { %v930_v50 = vld [vmem:[#allocation8 + $0x470] sm:$0xff] }
 0x311   :  { %7635 = vmatpush1.bf16.msra.mxu0 %v10643_v4  ;;  %v10740_v7 = vcombine.high %v926_v45, %v930_v50  ;;  %v918_v13 = vld [vmem:[#allocation8 + $0x410] sm:$0xff]  ;;  %v10739_v2 = vcombine.low %v926_v45, %v930_v50  ;;  %v10604_v4 = vcombine.high %v790_v57, %v794_v58 }
 0x312   :  { %7676 = vmatpush1.bf16.msra.mxu1 %v10771_v24  ;;  %7636 = vmatprep.subr.bf16.mxu0 %v10636_v21  ;;  %v10732_v5 = vcombine.high %v918_v13, %v922_v32  ;;  %v910_v24 = vld [vmem:[#allocation8 + $0x3d0] sm:$0xff]  ;;  %v10731_v12 = vcombine.low %v918_v13, %v922_v32 }
 0x313   :  { %7677 = vmatprep.subr.bf16.mxu1 %v10764_v11  ;;  %v914_v21 = vld [vmem:[#allocation8 + $0x3f0] sm:$0xff] }
 0x314   :  { %v1038_v9 = vld [vmem:[#allocation8 + $0x7d0] sm:$0xff]  ;;  %v10724_v53 = vcombine.high %v910_v24, %v914_v21  ;;  %v10723_v27 = vcombine.low %v910_v24, %v914_v21 }
 0x315   :  { %7637 = vmatpush1.bf16.msra.mxu0 %v10635_v20  ;;  %v1042_v11 = vld [vmem:[#allocation8 + $0x7f0] sm:$0xff] }
 0x316   :  { %7678 = vmatpush1.bf16.msra.mxu1 %v10763_v55  ;;  %7638 = vmatprep.subr.bf16.mxu0 %v10628_v61  ;;  %v10852_v60 = vcombine.high %v1038_v9, %v1042_v11  ;;  %v902_v20 = vld [vmem:[#allocation8 + $0x390] sm:$0xff]  ;;  %v10851_v29 = vcombine.low %v1038_v9, %v1042_v11 }
 0x317   :  { %7679 = vmatprep.subr.bf16.mxu1 %v10756_v41  ;;  %v906_v55 = vld [vmem:[#allocation8 + $0x3b0] sm:$0xff] }
 0x318   :  { %v1030_v61 = vld [vmem:[#allocation8 + $0x790] sm:$0xff]  ;;  %v10716_v19 = vcombine.high %v902_v20, %v906_v55  ;;  %v10715_v42 = vcombine.low %v902_v20, %v906_v55 }
 0x319   :  { %7639 = vmatpush1.bf16.msra.mxu0 %v10627_v33  ;;  %v1034_v41 = vld [vmem:[#allocation8 + $0x7b0] sm:$0xff] }
 0x31a   :  { %7680 = vmatpush1.bf16.msra.mxu1 %v10755_v36  ;;  %7640 = vmatprep.subr.bf16.mxu0 %v10620_v56  ;;  %v10844_v54 = vcombine.high %v1030_v61, %v1034_v41  ;;  %v894_v33 = vld [vmem:[#allocation8 + $0x350] sm:$0xff]  ;;  %v10843_v59 = vcombine.low %v1030_v61, %v1034_v41 }
 0x31b   :  { %7681 = vmatprep.subr.bf16.mxu1 %v10748_v40  ;;  %v898_v36 = vld [vmem:[#allocation8 + $0x370] sm:$0xff] }
 0x31c   :  { %v1022_v56 = vld [vmem:[#allocation8 + $0x750] sm:$0xff]  ;;  %v10708_v45 = vcombine.high %v894_v33, %v898_v36  ;;  %v10707_v57 = vcombine.low %v894_v33, %v898_v36 }
 0x31d   :  { %7641 = vmatpush1.bf16.msra.mxu0 %v10619_v8  ;;  %v1026_v40 = vld [vmem:[#allocation8 + $0x770] sm:$0xff] }
 0x31e   :  { %7682 = vmatpush1.bf16.msra.mxu1 %v10747_v51  ;;  %7642 = vmatprep.subr.bf16.mxu0 %v10612_v52  ;;  %v10836_v50 = vcombine.high %v1022_v56, %v1026_v40  ;;  %v886_v8 = vld [vmem:[#allocation8 + $0x310] sm:$0xff]  ;;  %v10835_v58 = vcombine.low %v1022_v56, %v1026_v40 }
 0x31f   :  { %7683 = vmatprep.subr.bf16.mxu1 %v10740_v7  ;;  %v890_v51 = vld [vmem:[#allocation8 + $0x330] sm:$0xff] }
 0x320   :  { %v1014_v52 = vld [vmem:[#allocation8 + $0x710] sm:$0xff]  ;;  %v10700_v13 = vcombine.high %v886_v8, %v890_v51  ;;  %v10699_v24 = vcombine.low %v886_v8, %v890_v51 }
 0x321   :  { %7643 = vmatpush1.bf16.msra.mxu0 %v10611_v35  ;;  %v1018_v7 = vld [vmem:[#allocation8 + $0x730] sm:$0xff] }
 0x322   :  { %7684 = vmatpush1.bf16.msra.mxu1 %v10739_v2  ;;  %7644 = vmatprep.subr.bf16.mxu0 %v10604_v4  ;;  %v10828_v32 = vcombine.high %v1014_v52, %v1018_v7  ;;  %v878_v35 = vld [vmem:[#allocation8 + $0x2d0] sm:$0xff]  ;;  %v10827_v21 = vcombine.low %v1014_v52, %v1018_v7 }
 0x323   :  { %7685 = vmatprep.subr.bf16.mxu1 %v10732_v5  ;;  %v882_v2 = vld [vmem:[#allocation8 + $0x2f0] sm:$0xff] }
 0x324   :  { %v1006_v4 = vld [vmem:[#allocation8 + $0x6d0] sm:$0xff]  ;;  %v10692_v9 = vcombine.high %v878_v35, %v882_v2  ;;  %v10691_v20 = vcombine.low %v878_v35, %v882_v2 }
 0x325   :  { %7645 = vmatpush1.bf16.msra.mxu0 %v10603_v28  ;;  %v1010_v5 = vld [vmem:[#allocation8 + $0x6f0] sm:$0xff] }
 0x326   :  { %7686 = vmatpush1.bf16.msra.mxu1 %v10731_v12  ;;  %7646 = vmatprep.subr.bf16.mxu0 %v10724_v53  ;;  %v10820_v11 = vcombine.high %v1006_v4, %v1010_v5  ;;  %v870_v28 = vld [vmem:[#allocation8 + $0x290] sm:$0xff]  ;;  %v10819_v55 = vcombine.low %v1006_v4, %v1010_v5 }
 0x327   :  { %7687 = vmatprep.subr.bf16.mxu1 %v10852_v60  ;;  %v874_v12 = vld [vmem:[#allocation8 + $0x2b0] sm:$0xff] }
 0x328   :  { %v998_v53 = vld [vmem:[#allocation8 + $0x690] sm:$0xff]  ;;  %v10684_v61 = vcombine.high %v870_v28, %v874_v12  ;;  %v10683_v33 = vcombine.low %v870_v28, %v874_v12 }
 0x329   :  { %7647 = vmatpush2.bf16.msra.mxu0 %v10723_v27  ;;  %v1002_v60 = vld [vmem:[#allocation8 + $0x6b0] sm:$0xff] }
 0x32a   :  { %7688 = vmatpush2.bf16.msra.mxu1 %v10851_v29  ;;  %7648 = vmatprep.subr.bf16.mxu0 %v10716_v19  ;;  %v10812_v41 = vcombine.high %v998_v53, %v1002_v60  ;;  %v862_v27 = vld [vmem:[#allocation8 + $0x250] sm:$0xff]  ;;  %v10811_v36 = vcombine.low %v998_v53, %v1002_v60 }
 0x32b   :  { %7689 = vmatprep.subr.bf16.mxu1 %v10844_v54  ;;  %v866_v29 = vld [vmem:[#allocation8 + $0x270] sm:$0xff] }
 0x32c   :  { %v990_v19 = vld [vmem:[#allocation8 + $0x650] sm:$0xff]  ;;  %v10676_v56 = vcombine.high %v862_v27, %v866_v29  ;;  %v10675_v8 = vcombine.low %v862_v27, %v866_v29 }
 0x32d   :  { %7649 = vmatpush2.bf16.msra.mxu0 %v10715_v42  ;;  %v994_v54 = vld [vmem:[#allocation8 + $0x670] sm:$0xff] }
 0x32e   :  { %7690 = vmatpush2.bf16.msra.mxu1 %v10843_v59  ;;  %7650 = vmatprep.subr.bf16.mxu0 %v10708_v45  ;;  %v10804_v40 = vcombine.high %v990_v19, %v994_v54  ;;  %v854_v42 = vld [vmem:[#allocation8 + $0x210] sm:$0xff]  ;;  %v10803_v51 = vcombine.low %v990_v19, %v994_v54 }
 0x32f   :  { %7691 = vmatprep.subr.bf16.mxu1 %v10836_v50  ;;  %v858_v59 = vld [vmem:[#allocation8 + $0x230] sm:$0xff] }
 0x330   :  { %v982_v45 = vld [vmem:[#allocation8 + $0x610] sm:$0xff]  ;;  %v10668_v52 = vcombine.high %v854_v42, %v858_v59  ;;  %v10667_v35 = vcombine.low %v854_v42, %v858_v59 }
 0x331   :  { %7651 = vmatpush2.bf16.msra.mxu0 %v10707_v57  ;;  %v986_v50 = vld [vmem:[#allocation8 + $0x630] sm:$0xff] }
 0x332   :  { %7692 = vmatpush2.bf16.msra.mxu1 %v10835_v58  ;;  %7652 = vmatprep.subr.bf16.mxu0 %v10700_v13  ;;  %v10796_v7 = vcombine.high %v982_v45, %v986_v50  ;;  %v1102_v57 = vld [vmem:[#allocation8 + $0x9d0] sm:$0xff]  ;;  %v10795_v2 = vcombine.low %v982_v45, %v986_v50 }
 0x333   :  { %7693 = vmatprep.subr.bf16.mxu1 %v10828_v32  ;;  %v1106_v58 = vld [vmem:[#allocation8 + $0x9f0] sm:$0xff] }
 0x334   :  { %v1230_v13 = vld [vmem:[#allocation8 + $0xdd0] sm:$0xff]  ;;  %v10916_v4 = vcombine.high %v1102_v57, %v1106_v58 }
 0x335   :  { %7653 = vmatpush2.bf16.msra.mxu0 %v10699_v24  ;;  %v1234_v32 = vld [vmem:[#allocation8 + $0xdf0] sm:$0xff] }
 0x336   :  { %7694 = vmatpush2.bf16.msra.mxu1 %v10827_v21  ;;  %7654 = vmatprep.subr.bf16.mxu0 %v10692_v9  ;;  %v11044_v5 = vcombine.high %v1230_v13, %v1234_v32  ;;  %v1094_v24 = vld [vmem:[#allocation8 + $0x990] sm:$0xff]  ;;  %v10915_v9 = vcombine.low %v1102_v57, %v1106_v58  ;;  %v11043_v12 = vcombine.low %v1230_v13, %v1234_v32 }
 0x337   :  { %7695 = vmatprep.subr.bf16.mxu1 %v10820_v11  ;;  %v1098_v21 = vld [vmem:[#allocation8 + $0x9b0] sm:$0xff] }
 0x338   :  { %v1222_v11 = vld [vmem:[#allocation8 + $0xd90] sm:$0xff]  ;;  %v10908_v53 = vcombine.high %v1094_v24, %v1098_v21  ;;  %v10907_v54 = vcombine.low %v1094_v24, %v1098_v21 }
 0x339   :  { %7655 = vmatpush2.bf16.msra.mxu0 %v10691_v20  ;;  %v1226_v28 = vld [vmem:[#allocation8 + $0xdb0] sm:$0xff] }
 0x33a   :  { %7696 = vmatpush2.bf16.msra.mxu1 %v10819_v55  ;;  %7656 = vmatprep.subr.bf16.mxu0 %v10684_v61  ;;  %v1086_v60 = vld [vmem:[#allocation8 + $0x950] sm:$0xff]  ;;  %v11036_v61 = vcombine.high %v1222_v11, %v1226_v28 }
 0x33b   :  { %7697 = vmatprep.subr.bf16.mxu1 %v10812_v41  ;;  %v1090_v20 = vld [vmem:[#allocation8 + $0x970] sm:$0xff] }
 0x33c   :  { %v1214_v41 = vld [vmem:[#allocation8 + $0xd50] sm:$0xff]  ;;  %v10899_v58 = vcombine.low %v1086_v60, %v1090_v20 }
 0x33d   :  { %7657 = vmatpush2.bf16.msra.mxu0 %v10683_v33  ;;  %v1218_v27 = vld [vmem:[#allocation8 + $0xd70] sm:$0xff] }
 0x33e   :  { %7698 = vmatpush2.bf16.msra.mxu1 %v10811_v36  ;;  %7658 = vmatprep.subr.bf16.mxu0 %v10676_v56  ;;  %v11035_v36 = vcombine.low %v1222_v11, %v1226_v28  ;;  %v10900_v56 = vcombine.high %v1086_v60, %v1090_v20  ;;  %v1078_v45 = vld [vmem:[#allocation8 + $0x910] sm:$0xff]  ;;  %v11027_v32 = vcombine.low %v1214_v41, %v1218_v27 }
 0x33f   :  { %7699 = vmatprep.subr.bf16.mxu1 %v10804_v40  ;;  %v1082_v50 = vld [vmem:[#allocation8 + $0x930] sm:$0xff] }
 0x340   :  { %v1198_v24 = vld [vmem:[#allocation8 + $0xcd0] sm:$0xff] }
 0x341   :  { %7659 = vmatpush2.bf16.msra.mxu0 %v10675_v8  ;;  %v1202_v21 = vld [vmem:[#allocation8 + $0xcf0] sm:$0xff] }
 0x342   :  { %7700 = vmatpush2.bf16.msra.mxu1 %v10803_v51  ;;  %7660 = vmatprep.subr.bf16.mxu0 %v10668_v52  ;;  %v1206_v51 = vld [vmem:[#allocation8 + $0xd10] sm:$0xff] }
 0x343   :  { %7701 = vmatprep.subr.bf16.mxu1 %v10796_v7  ;;  %v1210_v52 = vld [vmem:[#allocation8 + $0xd30] sm:$0xff] }
 0x344   :  { %v11019_v11 = vcombine.low %v1206_v51, %v1210_v52  ;;  %v1066_v60 = vld [vmem:[#allocation8 + $0x8b0] sm:$0xff] }
 0x345   :  { %7661 = vmatpush2.bf16.msra.mxu0 %v10667_v35  ;;  %v10892_v35 = vcombine.high %v1078_v45, %v1082_v50  ;;  %v1190_v20 = vld [vmem:[#allocation8 + $0xc90] sm:$0xff] }
 0x346   :  { %7702 = vmatpush2.bf16.msra.mxu1 %v10795_v2  ;;  %7712 = vmatprep.subr.bf16.mxu0 %v10916_v4  ;;  %v11020_v2 = vcombine.high %v1206_v51, %v1210_v52  ;;  %v1070_v4 = vld [vmem:[#allocation8 + $0x8d0] sm:$0xff] }
 0x347   :  { %7753 = vmatprep.subr.bf16.mxu1 %v11044_v5  ;;  %v1074_v5 = vld [vmem:[#allocation8 + $0x8f0] sm:$0xff] }
 0x348   :  { %v7418_v55 = vpop.f32.mrf.mxu0  ;;  %7663 = vmatmul.mubr.bf16.vlgmr.msra.gmra.mxu0 %v12781_v47  ;;  %v10884_v28 = vcombine.high %v1070_v4, %v1074_v5  ;;  %v1178_v51 = vld [vmem:[#allocation8 + $0xc30] sm:$0xff] }
 0x349   :  { %v7419_v29 = vadd.f32 %v7418_v55, %v12934_v39  ;;  %v7459_v19 = vpop.f32.mrf.mxu1  ;;  %7704 = vmatmul.mubr.bf16.vlgmr.msra.gmra.mxu1 %v12775_v43  ;;  %7713 = vmatpush1.bf16.msra.mxu0 %v10915_v9  ;;  %v11028_v39 = vcombine.high %v1214_v41, %v1218_v27  ;;  %v10891_v9 = vcombine.low %v1078_v45, %v1082_v50  ;;  %v1194_v55 = vld [vmem:[#allocation8 + $0xcb0] sm:$0xff] }
 0x34a   :  { %7744 = vmatprep.mubr.bf16.mxu0 %v12801_v0  ;;  %7754 = vmatpush1.bf16.msra.mxu1 %v11043_v12  ;;  %v7420_v33 = vpop.f32.mrf.mxu0  ;;  %v11012_v12 = vcombine.high %v1198_v24, %v1202_v21  ;;  %v11011_v41 = vcombine.low %v1198_v24, %v1202_v21  ;;  %v1046_v45 = vld [vmem:[#allocation8 + $0x810] sm:$0xff] }
 0x34b   :  { %v12943_v40 = vadd.f32 %v7459_v19, %v7419_v29  ;;  %7785 = vmatprep.mubr.bf16.mxu1 %v12803_v22  ;;  %v7421_v42 = vadd.f32 %v7420_v33, %v12937_v1  ;;  %v7461_v59 = vpop.f32.mrf.mxu1  ;;  %7714 = vmatprep.subr.bf16.mxu0 %v10908_v53  ;;  %v1062_v53 = vld [vmem:[#allocation8 + $0x890] sm:$0xff]  ;;  %v11004_v29 = vcombine.high %v1190_v20, %v1194_v55 }
 0x34c   :  { %v7422_v8 = vpop.f32.mrf.mxu0  ;;  %7755 = vmatprep.subr.bf16.mxu1 %v11036_v61  ;;  %v10883_v61 = vcombine.low %v1070_v4, %v1074_v5  ;;  %v10876_v27 = vcombine.high %v1062_v53, %v1066_v60  ;;  %v1054_v19 = vld [vmem:[#allocation8 + $0x850] sm:$0xff] }
 0x34d   :  { %v12947_v7 = vadd.f32 %v7461_v59, %v7421_v42  ;;  %v7463_v57 = vpop.f32.mrf.mxu1  ;;  %7715 = vmatpush1.bf16.msra.mxu0 %v10907_v54  ;;  %v1058_v54 = vld [vmem:[#allocation8 + $0x870] sm:$0xff]  ;;  %v11003_v42 = vcombine.low %v1190_v20, %v1194_v55 }
 0x34e   :  { %7756 = vmatpush1.bf16.msra.mxu1 %v11035_v36  ;;  %v7423_v13 = vpop.f32.mrf.mxu0  ;;  %7716 = vmatprep.subr.bf16.mxu0 %v10900_v56  ;;  %v1182_v33 = vld [vmem:[#allocation8 + $0xc50] sm:$0xff]  ;;  %v10875_v56 = vcombine.low %v1062_v53, %v1066_v60  ;;  %v10868_v59 = vcombine.high %v1054_v19, %v1058_v54  ;;  %v10867_v52 = vcombine.low %v1054_v19, %v1058_v54 }
 0x34f   :  { %v7464_v1 = vpop.f32.mrf.mxu1  ;;  %7757 = vmatprep.subr.bf16.mxu1 %v11028_v39  ;;  %v1186_v36 = vld [vmem:[#allocation8 + $0xc70] sm:$0xff] }
 0x350   :  { %v10996_v39 = vcombine.high %v1182_v33, %v1186_v36  ;;  %v1050_v50 = vld [vmem:[#allocation8 + $0x830] sm:$0xff]  ;;  %v10995_v57 = vcombine.low %v1182_v33, %v1186_v36 }
 0x351   :  { %7717 = vmatpush1.bf16.msra.mxu0 %v10899_v58  ;;  %v1174_v8 = vld [vmem:[#allocation8 + $0xc10] sm:$0xff]  ;;  %v10860_v58 = vcombine.high %v1046_v45, %v1050_v50  ;;  %v10859_v4 = vcombine.low %v1046_v45, %v1050_v50 }
 0x352   :  { %7758 = vmatpush1.bf16.msra.mxu1 %v11027_v32  ;;  %7718 = vmatprep.subr.bf16.mxu0 %v10892_v35  ;;  %v10988_v13 = vcombine.high %v1174_v8, %v1178_v51  ;;  %v1166_v32 = vld [vmem:[#allocation8 + $0xbd0] sm:$0xff]  ;;  %v10987_v5 = vcombine.low %v1174_v8, %v1178_v51 }
 0x353   :  { %7759 = vmatprep.subr.bf16.mxu1 %v11020_v2  ;;  %v1170_v35 = vld [vmem:[#allocation8 + $0xbf0] sm:$0xff] }
 0x354   :  { %v1294_v1 = vld [vmem:[#allocation8 + $0xfd0] sm:$0xff]  ;;  %v10980_v24 = vcombine.high %v1166_v32, %v1170_v35  ;;  %v10979_v53 = vcombine.low %v1166_v32, %v1170_v35 }
 0x355   :  { %7719 = vmatpush1.bf16.msra.mxu0 %v10891_v9  ;;  %v1298_v2 = vld [vmem:[#allocation8 + $0xff0] sm:$0xff] }
 0x356   :  { %7760 = vmatpush1.bf16.msra.mxu1 %v11019_v11  ;;  %7720 = vmatprep.subr.bf16.mxu0 %v10884_v28  ;;  %v11108_v21 = vcombine.high %v1294_v1, %v1298_v2  ;;  %v1158_v9 = vld [vmem:[#allocation8 + $0xb90] sm:$0xff]  ;;  %v11107_v60 = vcombine.low %v1294_v1, %v1298_v2 }
 0x357   :  { %7761 = vmatprep.subr.bf16.mxu1 %v11012_v12  ;;  %v1162_v11 = vld [vmem:[#allocation8 + $0xbb0] sm:$0xff] }
 0x358   :  { %v1286_v28 = vld [vmem:[#allocation8 + $0xf90] sm:$0xff]  ;;  %v10972_v20 = vcombine.high %v1158_v9, %v1162_v11  ;;  %v10971_v19 = vcombine.low %v1158_v9, %v1162_v11 }
 0x359   :  { %7721 = vmatpush1.bf16.msra.mxu0 %v10883_v61  ;;  %v1290_v12 = vld [vmem:[#allocation8 + $0xfb0] sm:$0xff] }
 0x35a   :  { %7762 = vmatpush1.bf16.msra.mxu1 %v11011_v41  ;;  %7722 = vmatprep.subr.bf16.mxu0 %v10876_v27  ;;  %v11100_v55 = vcombine.high %v1286_v28, %v1290_v12  ;;  %v1150_v61 = vld [vmem:[#allocation8 + $0xb50] sm:$0xff]  ;;  %v11099_v54 = vcombine.low %v1286_v28, %v1290_v12 }
 0x35b   :  { %7763 = vmatprep.subr.bf16.mxu1 %v11004_v29  ;;  %v1154_v41 = vld [vmem:[#allocation8 + $0xb70] sm:$0xff] }
 0x35c   :  { %v1278_v27 = vld [vmem:[#allocation8 + $0xf50] sm:$0xff]  ;;  %v10964_v33 = vcombine.high %v1150_v61, %v1154_v41  ;;  %v10963_v45 = vcombine.low %v1150_v61, %v1154_v41 }
 0x35d   :  { %7723 = vmatpush1.bf16.msra.mxu0 %v10875_v56  ;;  %v1282_v29 = vld [vmem:[#allocation8 + $0xf70] sm:$0xff] }
 0x35e   :  { %7764 = vmatpush1.bf16.msra.mxu1 %v11003_v42  ;;  %7724 = vmatprep.subr.bf16.mxu0 %v10868_v59  ;;  %v11092_v36 = vcombine.high %v1278_v27, %v1282_v29  ;;  %v1142_v56 = vld [vmem:[#allocation8 + $0xb10] sm:$0xff]  ;;  %v11091_v50 = vcombine.low %v1278_v27, %v1282_v29 }
 0x35f   :  { %7765 = vmatprep.subr.bf16.mxu1 %v10996_v39  ;;  %v1146_v42 = vld [vmem:[#allocation8 + $0xb30] sm:$0xff] }
 0x360   :  { %v1270_v59 = vld [vmem:[#allocation8 + $0xf10] sm:$0xff]  ;;  %v10956_v8 = vcombine.high %v1142_v56, %v1146_v42  ;;  %v10955_v32 = vcombine.low %v1142_v56, %v1146_v42 }
 0x361   :  { %7725 = vmatpush1.bf16.msra.mxu0 %v10867_v52  ;;  %v1274_v39 = vld [vmem:[#allocation8 + $0xf30] sm:$0xff] }
 0x362   :  { %7766 = vmatpush1.bf16.msra.mxu1 %v10995_v57  ;;  %7726 = vmatprep.subr.bf16.mxu0 %v10860_v58  ;;  %v11084_v51 = vcombine.high %v1270_v59, %v1274_v39  ;;  %v1134_v52 = vld [vmem:[#allocation8 + $0xad0] sm:$0xff]  ;;  %v11083_v35 = vcombine.low %v1270_v59, %v1274_v39 }
 0x363   :  { %7767 = vmatprep.subr.bf16.mxu1 %v10988_v13  ;;  %v1138_v57 = vld [vmem:[#allocation8 + $0xaf0] sm:$0xff] }
 0x364   :  { %v1262_v58 = vld [vmem:[#allocation8 + $0xed0] sm:$0xff]  ;;  %v10948_v1 = vcombine.high %v1134_v52, %v1138_v57  ;;  %v10947_v9 = vcombine.low %v1134_v52, %v1138_v57 }
 0x365   :  { %7727 = vmatpush1.bf16.msra.mxu0 %v10859_v4  ;;  %v1266_v13 = vld [vmem:[#allocation8 + $0xef0] sm:$0xff] }
 0x366   :  { %7768 = vmatpush1.bf16.msra.mxu1 %v10987_v5  ;;  %7728 = vmatprep.subr.bf16.mxu0 %v10980_v24  ;;  %v11076_v2 = vcombine.high %v1262_v58, %v1266_v13  ;;  %v1126_v4 = vld [vmem:[#allocation8 + $0xa90] sm:$0xff]  ;;  %v11075_v11 = vcombine.low %v1262_v58, %v1266_v13 }
 0x367   :  { %7769 = vmatprep.subr.bf16.mxu1 %v11108_v21  ;;  %v1130_v5 = vld [vmem:[#allocation8 + $0xab0] sm:$0xff] }
 0x368   :  { %v1254_v24 = vld [vmem:[#allocation8 + $0xe90] sm:$0xff]  ;;  %v10940_v28 = vcombine.high %v1126_v4, %v1130_v5  ;;  %v10939_v61 = vcombine.low %v1126_v4, %v1130_v5 }
 0x369   :  { %7729 = vmatpush2.bf16.msra.mxu0 %v10979_v53  ;;  %v1258_v21 = vld [vmem:[#allocation8 + $0xeb0] sm:$0xff] }
 0x36a   :  { %7770 = vmatpush2.bf16.msra.mxu1 %v11107_v60  ;;  %7730 = vmatprep.subr.bf16.mxu0 %v10972_v20  ;;  %v11068_v12 = vcombine.high %v1254_v24, %v1258_v21  ;;  %v1118_v53 = vld [vmem:[#allocation8 + $0xa50] sm:$0xff]  ;;  %v11067_v41 = vcombine.low %v1254_v24, %v1258_v21 }
 0x36b   :  { %7771 = vmatprep.subr.bf16.mxu1 %v11100_v55  ;;  %v1122_v60 = vld [vmem:[#allocation8 + $0xa70] sm:$0xff] }
 0x36c   :  { %v1246_v20 = vld [vmem:[#allocation8 + $0xe50] sm:$0xff]  ;;  %v10932_v27 = vcombine.high %v1118_v53, %v1122_v60  ;;  %v10931_v56 = vcombine.low %v1118_v53, %v1122_v60 }
 0x36d   :  { %7731 = vmatpush2.bf16.msra.mxu0 %v10971_v19  ;;  %v1250_v55 = vld [vmem:[#allocation8 + $0xe70] sm:$0xff] }
 0x36e   :  { %7772 = vmatpush2.bf16.msra.mxu1 %v11099_v54  ;;  %7732 = vmatprep.subr.bf16.mxu0 %v10964_v33  ;;  %v11060_v29 = vcombine.high %v1246_v20, %v1250_v55  ;;  %v1110_v19 = vld [vmem:[#allocation8 + $0xa10] sm:$0xff]  ;;  %v11059_v42 = vcombine.low %v1246_v20, %v1250_v55 }
 0x36f   :  { %7773 = vmatprep.subr.bf16.mxu1 %v11092_v36  ;;  %v1114_v54 = vld [vmem:[#allocation8 + $0xa30] sm:$0xff] }
 0x370   :  { %v1238_v33 = vld [vmem:[#allocation8 + $0xe10] sm:$0xff]  ;;  %v10924_v59 = vcombine.high %v1110_v19, %v1114_v54  ;;  %v10923_v52 = vcombine.low %v1110_v19, %v1114_v54 }
 0x371   :  { %7733 = vmatpush2.bf16.msra.mxu0 %v10963_v45  ;;  %v1242_v36 = vld [vmem:[#allocation8 + $0xe30] sm:$0xff] }
 0x372   :  { %7774 = vmatpush2.bf16.msra.mxu1 %v11091_v50  ;;  %7734 = vmatprep.subr.bf16.mxu0 %v10956_v8  ;;  %v11052_v39 = vcombine.high %v1238_v33, %v1242_v36  ;;  %v1358_v45 = vld [vmem:[#allocation8 + $0x11d0] sm:$0xff]  ;;  %v11051_v57 = vcombine.low %v1238_v33, %v1242_v36 }
 0x373   :  { %7775 = vmatprep.subr.bf16.mxu1 %v11084_v51  ;;  %v1362_v50 = vld [vmem:[#allocation8 + $0x11f0] sm:$0xff] }
 0x374   :  { %v1486_v8 = vld [vmem:[#allocation8 + $0x15d0] sm:$0xff]  ;;  %v11172_v58 = vcombine.high %v1358_v45, %v1362_v50 }
 0x375   :  { %7735 = vmatpush2.bf16.msra.mxu0 %v10955_v32  ;;  %v1490_v51 = vld [vmem:[#allocation8 + $0x15f0] sm:$0xff] }
 0x376   :  { %7776 = vmatpush2.bf16.msra.mxu1 %v11083_v35  ;;  %7736 = vmatprep.subr.bf16.mxu0 %v10948_v1  ;;  %v11300_v13 = vcombine.high %v1486_v8, %v1490_v51  ;;  %v1350_v32 = vld [vmem:[#allocation8 + $0x1190] sm:$0xff]  ;;  %v11171_v1 = vcombine.low %v1358_v45, %v1362_v50  ;;  %v11299_v5 = vcombine.low %v1486_v8, %v1490_v51 }
 0x377   :  { %7777 = vmatprep.subr.bf16.mxu1 %v11076_v2  ;;  %v1354_v35 = vld [vmem:[#allocation8 + $0x11b0] sm:$0xff] }
 0x378   :  { %v1478_v2 = vld [vmem:[#allocation8 + $0x1590] sm:$0xff]  ;;  %v11164_v24 = vcombine.high %v1350_v32, %v1354_v35  ;;  %v11163_v55 = vcombine.low %v1350_v32, %v1354_v35 }
 0x379   :  { %7737 = vmatpush2.bf16.msra.mxu0 %v10947_v9  ;;  %v1482_v4 = vld [vmem:[#allocation8 + $0x15b0] sm:$0xff] }
 0x37a   :  { %7778 = vmatpush2.bf16.msra.mxu1 %v11075_v11  ;;  %7738 = vmatprep.subr.bf16.mxu0 %v10940_v28  ;;  %v1342_v21 = vld [vmem:[#allocation8 + $0x1150] sm:$0xff]  ;;  %v11292_v28 = vcombine.high %v1478_v2, %v1482_v4 }
 0x37b   :  { %7779 = vmatprep.subr.bf16.mxu1 %v11068_v12  ;;  %v1346_v9 = vld [vmem:[#allocation8 + $0x1170] sm:$0xff] }
 0x37c   :  { %v1470_v12 = vld [vmem:[#allocation8 + $0x1550] sm:$0xff]  ;;  %v11155_v50 = vcombine.low %v1342_v21, %v1346_v9 }
 0x37d   :  { %7739 = vmatpush2.bf16.msra.mxu0 %v10939_v61  ;;  %v1474_v53 = vld [vmem:[#allocation8 + $0x1570] sm:$0xff] }
 0x37e   :  { %7780 = vmatpush2.bf16.msra.mxu1 %v11067_v41  ;;  %7740 = vmatprep.subr.bf16.mxu0 %v10932_v27  ;;  %v11291_v41 = vcombine.low %v1478_v2, %v1482_v4  ;;  %v11156_v27 = vcombine.high %v1342_v21, %v1346_v9  ;;  %v1334_v33 = vld [vmem:[#allocation8 + $0x1110] sm:$0xff]  ;;  %v11283_v51 = vcombine.low %v1470_v12, %v1474_v53 }
 0x37f   :  { %7781 = vmatprep.subr.bf16.mxu1 %v11060_v29  ;;  %v1338_v36 = vld [vmem:[#allocation8 + $0x1130] sm:$0xff] }
 0x380   :  { %v1454_v32 = vld [vmem:[#allocation8 + $0x14d0] sm:$0xff] }
 0x381   :  { %7741 = vmatpush2.bf16.msra.mxu0 %v10931_v56  ;;  %v1458_v35 = vld [vmem:[#allocation8 + $0x14f0] sm:$0xff] }
 0x382   :  { %7782 = vmatpush2.bf16.msra.mxu1 %v11059_v42  ;;  %7742 = vmatprep.subr.bf16.mxu0 %v10924_v59  ;;  %v1462_v42 = vld [vmem:[#allocation8 + $0x1510] sm:$0xff] }
 0x383   :  { %7783 = vmatprep.subr.bf16.mxu1 %v11052_v39  ;;  %v1466_v59 = vld [vmem:[#allocation8 + $0x1530] sm:$0xff] }
 0x384   :  { %v11275_v2 = vcombine.low %v1462_v42, %v1466_v59  ;;  %v1322_v21 = vld [vmem:[#allocation8 + $0x10b0] sm:$0xff] }
 0x385   :  { %7743 = vmatpush2.bf16.msra.mxu0 %v10923_v52  ;;  %v11148_v52 = vcombine.high %v1334_v33, %v1338_v36  ;;  %v1446_v9 = vld [vmem:[#allocation8 + $0x1490] sm:$0xff] }
 0x386   :  { %7784 = vmatpush2.bf16.msra.mxu1 %v11051_v57  ;;  %7794 = vmatprep.subr.bf16.mxu0 %v11172_v58  ;;  %v11276_v57 = vcombine.high %v1462_v42, %v1466_v59  ;;  %v1326_v58 = vld [vmem:[#allocation8 + $0x10d0] sm:$0xff] }
 0x387   :  { %7835 = vmatprep.subr.bf16.mxu1 %v11300_v13  ;;  %v1330_v13 = vld [vmem:[#allocation8 + $0x10f0] sm:$0xff] }
 0x388   :  { %v7500_v11 = vpop.f32.mrf.mxu0  ;;  %7745 = vmatmul.mubr.bf16.vlgmr.msra.gmra.mxu0 %v12853_v63  ;;  %v11140_v4 = vcombine.high %v1326_v58, %v1330_v13  ;;  %v1434_v42 = vld [vmem:[#allocation8 + $0x1430] sm:$0xff] }
 0x389   :  { %v7501_v60 = vadd.f32 %v7500_v11, %v12943_v40  ;;  %v7541_v20 = vpop.f32.mrf.mxu1  ;;  %7786 = vmatmul.mubr.bf16.vlgmr.msra.gmra.mxu1 %v12851_v62  ;;  %7795 = vmatpush1.bf16.msra.mxu0 %v11171_v1  ;;  %v11284_v40 = vcombine.high %v1470_v12, %v1474_v53  ;;  %v11147_v1 = vcombine.low %v1334_v33, %v1338_v36  ;;  %v1450_v11 = vld [vmem:[#allocation8 + $0x14b0] sm:$0xff] }
 0x38a   :  { %7826 = vmatprep.mubr.bf16.mxu0 %v12855_v6  ;;  %7836 = vmatpush1.bf16.msra.mxu1 %v11299_v5  ;;  %v7502_v61 = vpop.f32.mrf.mxu0  ;;  %v11268_v5 = vcombine.high %v1454_v32, %v1458_v35  ;;  %v11267_v12 = vcombine.low %v1454_v32, %v1458_v35  ;;  %v1302_v33 = vld [vmem:[#allocation8 + $0x1010] sm:$0xff] }
 0x38b   :  { %v12953_v29 = vadd.f32 %v7541_v20, %v7501_v60  ;;  %7867 = vmatprep.mubr.bf16.mxu1 %v12858_v10  ;;  %v7503_v19 = vadd.f32 %v7502_v61, %v12947_v7  ;;  %v7543_v54 = vpop.f32.mrf.mxu1  ;;  %7796 = vmatprep.subr.bf16.mxu0 %v11164_v24  ;;  %v1318_v24 = vld [vmem:[#allocation8 + $0x1090] sm:$0xff]  ;;  %v11260_v60 = vcombine.high %v1446_v9, %v1450_v11 }
 0x38c   :  { %v7504_v56 = vpop.f32.mrf.mxu0  ;;  %7837 = vmatprep.subr.bf16.mxu1 %v11292_v28  ;;  %v11139_v28 = vcombine.low %v1326_v58, %v1330_v13  ;;  %v11132_v53 = vcombine.high %v1318_v24, %v1322_v21  ;;  %v1310_v20 = vld [vmem:[#allocation8 + $0x1050] sm:$0xff] }
 0x38d   :  { %v12957_v39 = vadd.f32 %v7543_v54, %v7503_v19  ;;  %v7545_v45 = vpop.f32.mrf.mxu1  ;;  %7797 = vmatpush1.bf16.msra.mxu0 %v11163_v55  ;;  %v1314_v55 = vld [vmem:[#allocation8 + $0x1070] sm:$0xff]  ;;  %v11259_v19 = vcombine.low %v1446_v9, %v1450_v11 }
 0x38e   :  { %7838 = vmatpush1.bf16.msra.mxu1 %v11291_v41  ;;  %v7505_v8 = vpop.f32.mrf.mxu0  ;;  %7798 = vmatprep.subr.bf16.mxu0 %v11156_v27  ;;  %v1438_v61 = vld [vmem:[#allocation8 + $0x1450] sm:$0xff]  ;;  %v11131_v27 = vcombine.low %v1318_v24, %v1322_v21  ;;  %v11124_v54 = vcombine.high %v1310_v20, %v1314_v55  ;;  %v11123_v59 = vcombine.low %v1310_v20, %v1314_v55 }
 0x38f   :  { %v7546_v7 = vpop.f32.mrf.mxu1  ;;  %7839 = vmatprep.subr.bf16.mxu1 %v11284_v40  ;;  %v1442_v41 = vld [vmem:[#allocation8 + $0x1470] sm:$0xff] }
 0x390   :  { %v11252_v40 = vcombine.high %v1438_v61, %v1442_v41  ;;  %v1306_v36 = vld [vmem:[#allocation8 + $0x1030] sm:$0xff]  ;;  %v11251_v45 = vcombine.low %v1438_v61, %v1442_v41 }
 0x391   :  { %7799 = vmatpush1.bf16.msra.mxu0 %v11155_v50  ;;  %v1430_v56 = vld [vmem:[#allocation8 + $0x1410] sm:$0xff]  ;;  %v11116_v50 = vcombine.high %v1302_v33, %v1306_v36  ;;  %v11115_v58 = vcombine.low %v1302_v33, %v1306_v36 }
 0x392   :  { %7840 = vmatpush1.bf16.msra.mxu1 %v11283_v51  ;;  %7800 = vmatprep.subr.bf16.mxu0 %v11148_v52  ;;  %v11244_v8 = vcombine.high %v1430_v56, %v1434_v42  ;;  %v1422_v51 = vld [vmem:[#allocation8 + $0x13d0] sm:$0xff]  ;;  %v11243_v13 = vcombine.low %v1430_v56, %v1434_v42 }
 0x393   :  { %7841 = vmatprep.subr.bf16.mxu1 %v11276_v57  ;;  %v1426_v52 = vld [vmem:[#allocation8 + $0x13f0] sm:$0xff] }
 0x394   :  { %v1550_v7 = vld [vmem:[#allocation8 + $0x17d0] sm:$0xff]  ;;  %v11236_v32 = vcombine.high %v1422_v51, %v1426_v52  ;;  %v11235_v24 = vcombine.low %v1422_v51, %v1426_v52 }
 0x395   :  { %7801 = vmatpush1.bf16.msra.mxu0 %v11147_v1  ;;  %v1554_v57 = vld [vmem:[#allocation8 + $0x17f0] sm:$0xff] }
 0x396   :  { %7842 = vmatpush1.bf16.msra.mxu1 %v11275_v2  ;;  %7802 = vmatprep.subr.bf16.mxu0 %v11140_v4  ;;  %v11364_v35 = vcombine.high %v1550_v7, %v1554_v57  ;;  %v1414_v1 = vld [vmem:[#allocation8 + $0x1390] sm:$0xff]  ;;  %v11363_v21 = vcombine.low %v1550_v7, %v1554_v57 }
 0x397   :  { %7843 = vmatprep.subr.bf16.mxu1 %v11268_v5  ;;  %v1418_v2 = vld [vmem:[#allocation8 + $0x13b0] sm:$0xff] }
 0x398   :  { %v1542_v4 = vld [vmem:[#allocation8 + $0x1790] sm:$0xff]  ;;  %v11228_v9 = vcombine.high %v1414_v1, %v1418_v2  ;;  %v11227_v20 = vcombine.low %v1414_v1, %v1418_v2 }
 0x399   :  { %7803 = vmatpush1.bf16.msra.mxu0 %v11139_v28  ;;  %v1546_v5 = vld [vmem:[#allocation8 + $0x17b0] sm:$0xff] }
 0x39a   :  { %7844 = vmatpush1.bf16.msra.mxu1 %v11267_v12  ;;  %7804 = vmatprep.subr.bf16.mxu0 %v11132_v53  ;;  %v11356_v11 = vcombine.high %v1542_v4, %v1546_v5  ;;  %v1406_v28 = vld [vmem:[#allocation8 + $0x1350] sm:$0xff]  ;;  %v11355_v55 = vcombine.low %v1542_v4, %v1546_v5 }
 0x39b   :  { %7845 = vmatprep.subr.bf16.mxu1 %v11260_v60  ;;  %v1410_v12 = vld [vmem:[#allocation8 + $0x1370] sm:$0xff] }
 0x39c   :  { %v1534_v53 = vld [vmem:[#allocation8 + $0x1750] sm:$0xff]  ;;  %v11220_v61 = vcombine.high %v1406_v28, %v1410_v12  ;;  %v11219_v33 = vcombine.low %v1406_v28, %v1410_v12 }
 0x39d   :  { %7805 = vmatpush1.bf16.msra.mxu0 %v11131_v27  ;;  %v1538_v60 = vld [vmem:[#allocation8 + $0x1770] sm:$0xff] }
 0x39e   :  { %7846 = vmatpush1.bf16.msra.mxu1 %v11259_v19  ;;  %7806 = vmatprep.subr.bf16.mxu0 %v11124_v54  ;;  %v11348_v41 = vcombine.high %v1534_v53, %v1538_v60  ;;  %v1398_v27 = vld [vmem:[#allocation8 + $0x1310] sm:$0xff]  ;;  %v11347_v36 = vcombine.low %v1534_v53, %v1538_v60 }
 0x39f   :  { %7847 = vmatprep.subr.bf16.mxu1 %v11252_v40  ;;  %v1402_v19 = vld [vmem:[#allocation8 + $0x1330] sm:$0xff] }
 0x3a0   :  { %v1526_v54 = vld [vmem:[#allocation8 + $0x1710] sm:$0xff]  ;;  %v11212_v56 = vcombine.high %v1398_v27, %v1402_v19  ;;  %v11211_v51 = vcombine.low %v1398_v27, %v1402_v19 }
 0x3a1   :  { %7807 = vmatpush1.bf16.msra.mxu0 %v11123_v59  ;;  %v1530_v40 = vld [vmem:[#allocation8 + $0x1730] sm:$0xff] }
 0x3a2   :  { %7848 = vmatpush1.bf16.msra.mxu1 %v11251_v45  ;;  %7808 = vmatprep.subr.bf16.mxu0 %v11116_v50  ;;  %v11340_v42 = vcombine.high %v1526_v54, %v1530_v40  ;;  %v1390_v59 = vld [vmem:[#allocation8 + $0x12d0] sm:$0xff]  ;;  %v11339_v52 = vcombine.low %v1526_v54, %v1530_v40 }
 0x3a3   :  { %7849 = vmatprep.subr.bf16.mxu1 %v11244_v8  ;;  %v1394_v45 = vld [vmem:[#allocation8 + $0x12f0] sm:$0xff] }
 0x3a4   :  { %v1518_v50 = vld [vmem:[#allocation8 + $0x16d0] sm:$0xff]  ;;  %v11204_v7 = vcombine.high %v1390_v59, %v1394_v45  ;;  %v11203_v1 = vcombine.low %v1390_v59, %v1394_v45 }
 0x3a5   :  { %7809 = vmatpush1.bf16.msra.mxu0 %v11115_v58  ;;  %v1522_v8 = vld [vmem:[#allocation8 + $0x16f0] sm:$0xff] }
 0x3a6   :  { %7850 = vmatpush1.bf16.msra.mxu1 %v11243_v13  ;;  %7810 = vmatprep.subr.bf16.mxu0 %v11236_v32  ;;  %v11332_v57 = vcombine.high %v1518_v50, %v1522_v8  ;;  %v1382_v58 = vld [vmem:[#allocation8 + $0x1290] sm:$0xff]  ;;  %v11331_v2 = vcombine.low %v1518_v50, %v1522_v8 }
 0x3a7   :  { %7851 = vmatprep.subr.bf16.mxu1 %v11364_v35  ;;  %v1386_v13 = vld [vmem:[#allocation8 + $0x12b0] sm:$0xff] }
 0x3a8   :  { %v1510_v32 = vld [vmem:[#allocation8 + $0x1690] sm:$0xff]  ;;  %v11196_v4 = vcombine.high %v1382_v58, %v1386_v13  ;;  %v11195_v28 = vcombine.low %v1382_v58, %v1386_v13 }
 0x3a9   :  { %7811 = vmatpush2.bf16.msra.mxu0 %v11235_v24  ;;  %v1514_v35 = vld [vmem:[#allocation8 + $0x16b0] sm:$0xff] }
 0x3aa   :  { %7852 = vmatpush2.bf16.msra.mxu1 %v11363_v21  ;;  %7812 = vmatprep.subr.bf16.mxu0 %v11228_v9  ;;  %v11324_v5 = vcombine.high %v1510_v32, %v1514_v35  ;;  %v1374_v24 = vld [vmem:[#allocation8 + $0x1250] sm:$0xff]  ;;  %v11323_v12 = vcombine.low %v1510_v32, %v1514_v35 }
 0x3ab   :  { %7853 = vmatprep.subr.bf16.mxu1 %v11356_v11  ;;  %v1378_v21 = vld [vmem:[#allocation8 + $0x1270] sm:$0xff] }
 0x3ac   :  { %v1502_v9 = vld [vmem:[#allocation8 + $0x1650] sm:$0xff]  ;;  %v11188_v53 = vcombine.high %v1374_v24, %v1378_v21  ;;  %v11187_v27 = vcombine.low %v1374_v24, %v1378_v21 }
 0x3ad   :  { %7813 = vmatpush2.bf16.msra.mxu0 %v11227_v20  ;;  %v1506_v11 = vld [vmem:[#allocation8 + $0x1670] sm:$0xff] }
 0x3ae   :  { %7854 = vmatpush2.bf16.msra.mxu1 %v11355_v55  ;;  %7814 = vmatprep.subr.bf16.mxu0 %v11220_v61  ;;  %v11316_v60 = vcombine.high %v1502_v9, %v1506_v11  ;;  %v1366_v20 = vld [vmem:[#allocation8 + $0x1210] sm:$0xff]  ;;  %v11315_v19 = vcombine.low %v1502_v9, %v1506_v11 }
 0x3af   :  { %7855 = vmatprep.subr.bf16.mxu1 %v11348_v41  ;;  %v1370_v55 = vld [vmem:[#allocation8 + $0x1230] sm:$0xff] }
 0x3b0   :  { %v1494_v61 = vld [vmem:[#allocation8 + $0x1610] sm:$0xff]  ;;  %v11180_v54 = vcombine.high %v1366_v20, %v1370_v55  ;;  %v11179_v59 = vcombine.low %v1366_v20, %v1370_v55 }
 0x3b1   :  { %7815 = vmatpush2.bf16.msra.mxu0 %v11219_v33  ;;  %v1498_v41 = vld [vmem:[#allocation8 + $0x1630] sm:$0xff] }
 0x3b2   :  { %7856 = vmatpush2.bf16.msra.mxu1 %v11347_v36  ;;  %7816 = vmatprep.subr.bf16.mxu0 %v11212_v56  ;;  %v11308_v40 = vcombine.high %v1494_v61, %v1498_v41  ;;  %v1614_v33 = vld [vmem:[#allocation8 + $0x19d0] sm:$0xff]  ;;  %v11307_v45 = vcombine.low %v1494_v61, %v1498_v41 }
 0x3b3   :  { %7857 = vmatprep.subr.bf16.mxu1 %v11340_v42  ;;  %v1618_v36 = vld [vmem:[#allocation8 + $0x19f0] sm:$0xff] }
 0x3b4   :  { %v1742_v56 = vld [vmem:[#allocation8 + $0x1dd0] sm:$0xff]  ;;  %v11428_v50 = vcombine.high %v1614_v33, %v1618_v36 }
 0x3b5   :  { %7817 = vmatpush2.bf16.msra.mxu0 %v11211_v51  ;;  %v1746_v42 = vld [vmem:[#allocation8 + $0x1df0] sm:$0xff] }
 0x3b6   :  { %7858 = vmatpush2.bf16.msra.mxu1 %v11339_v52  ;;  %7818 = vmatprep.subr.bf16.mxu0 %v11204_v7  ;;  %v11556_v8 = vcombine.high %v1742_v56, %v1746_v42  ;;  %v1606_v51 = vld [vmem:[#allocation8 + $0x1990] sm:$0xff]  ;;  %v11427_v7 = vcombine.low %v1614_v33, %v1618_v36  ;;  %v11555_v13 = vcombine.low %v1742_v56, %v1746_v42 }
 0x3b7   :  { %7859 = vmatprep.subr.bf16.mxu1 %v11332_v57  ;;  %v1610_v52 = vld [vmem:[#allocation8 + $0x19b0] sm:$0xff] }
 0x3b8   :  { %v1734_v57 = vld [vmem:[#allocation8 + $0x1d90] sm:$0xff]  ;;  %v11420_v32 = vcombine.high %v1606_v51, %v1610_v52  ;;  %v11419_v11 = vcombine.low %v1606_v51, %v1610_v52 }
 0x3b9   :  { %7819 = vmatpush2.bf16.msra.mxu0 %v11203_v1  ;;  %v1738_v58 = vld [vmem:[#allocation8 + $0x1db0] sm:$0xff] }
 0x3ba   :  { %7860 = vmatpush2.bf16.msra.mxu1 %v11331_v2  ;;  %7820 = vmatprep.subr.bf16.mxu0 %v11196_v4  ;;  %v1598_v35 = vld [vmem:[#allocation8 + $0x1950] sm:$0xff]  ;;  %v11548_v4 = vcombine.high %v1734_v57, %v1738_v58 }
 0x3bb   :  { %7861 = vmatprep.subr.bf16.mxu1 %v11324_v5  ;;  %v1602_v1 = vld [vmem:[#allocation8 + $0x1970] sm:$0xff] }
 0x3bc   :  { %v1726_v5 = vld [vmem:[#allocation8 + $0x1d50] sm:$0xff]  ;;  %v11411_v36 = vcombine.low %v1598_v35, %v1602_v1 }
 0x3bd   :  { %7821 = vmatpush2.bf16.msra.mxu0 %v11195_v28  ;;  %v1730_v24 = vld [vmem:[#allocation8 + $0x1d70] sm:$0xff] }
 0x3be   :  { %7862 = vmatpush2.bf16.msra.mxu1 %v11323_v12  ;;  %7822 = vmatprep.subr.bf16.mxu0 %v11188_v53  ;;  %v11547_v12 = vcombine.low %v1734_v57, %v1738_v58  ;;  %v11412_v53 = vcombine.high %v1598_v35, %v1602_v1  ;;  %v1590_v61 = vld [vmem:[#allocation8 + $0x1910] sm:$0xff]  ;;  %v11539_v42 = vcombine.low %v1726_v5, %v1730_v24 }
 0x3bf   :  { %7863 = vmatprep.subr.bf16.mxu1 %v11316_v60  ;;  %v1594_v41 = vld [vmem:[#allocation8 + $0x1930] sm:$0xff] }
 0x3c0   :  { %v1710_v51 = vld [vmem:[#allocation8 + $0x1cd0] sm:$0xff] }
 0x3c1   :  { %7823 = vmatpush2.bf16.msra.mxu0 %v11187_v27  ;;  %v1714_v52 = vld [vmem:[#allocation8 + $0x1cf0] sm:$0xff] }
 0x3c2   :  { %7864 = vmatpush2.bf16.msra.mxu1 %v11315_v19  ;;  %7824 = vmatprep.subr.bf16.mxu0 %v11180_v54  ;;  %v1718_v19 = vld [vmem:[#allocation8 + $0x1d10] sm:$0xff] }
 0x3c3   :  { %7865 = vmatprep.subr.bf16.mxu1 %v11308_v40  ;;  %v1722_v54 = vld [vmem:[#allocation8 + $0x1d30] sm:$0xff] }
 0x3c4   :  { %v11531_v57 = vcombine.low %v1718_v19, %v1722_v54  ;;  %v1578_v35 = vld [vmem:[#allocation8 + $0x18b0] sm:$0xff] }
 0x3c5   :  { %7825 = vmatpush2.bf16.msra.mxu0 %v11179_v59  ;;  %v11404_v59 = vcombine.high %v1590_v61, %v1594_v41  ;;  %v1702_v1 = vld [vmem:[#allocation8 + $0x1c90] sm:$0xff] }
 0x3c6   :  { %7866 = vmatpush2.bf16.msra.mxu1 %v11307_v45  ;;  %7876 = vmatprep.subr.bf16.mxu0 %v11428_v50  ;;  %v11532_v45 = vcombine.high %v1718_v19, %v1722_v54  ;;  %v1582_v50 = vld [vmem:[#allocation8 + $0x18d0] sm:$0xff] }
 0x3c7   :  { %7917 = vmatprep.subr.bf16.mxu1 %v11556_v8  ;;  %v1586_v8 = vld [vmem:[#allocation8 + $0x18f0] sm:$0xff] }
 0x3c8   :  { %v7582_v2 = vpop.f32.mrf.mxu0  ;;  %7827 = vmatmul.mubr.bf16.vlgmr.msra.gmra.mxu0 %v12873_v25  ;;  %v11396_v58 = vcombine.high %v1582_v50, %v1586_v8  ;;  %v1690_v19 = vld [vmem:[#allocation8 + $0x1c30] sm:$0xff] }
 0x3c9   :  { %v7583_v21 = vadd.f32 %v7582_v2, %v12953_v29  ;;  %v7623_v9 = vpop.f32.mrf.mxu1  ;;  %7868 = vmatmul.mubr.bf16.vlgmr.msra.gmra.mxu1 %v12871_v15  ;;  %7877 = vmatpush1.bf16.msra.mxu0 %v11427_v7  ;;  %v11540_v29 = vcombine.high %v1726_v5, %v1730_v24  ;;  %v11403_v7 = vcombine.low %v1590_v61, %v1594_v41  ;;  %v1706_v2 = vld [vmem:[#allocation8 + $0x1cb0] sm:$0xff] }
 0x3ca   :  { %7908 = vmatprep.mubr.bf16.mxu0 %v12875_v31  ;;  %7918 = vmatpush1.bf16.msra.mxu1 %v11555_v13  ;;  %v7584_v28 = vpop.f32.mrf.mxu0  ;;  %v11524_v13 = vcombine.high %v1710_v51, %v1714_v52  ;;  %v11523_v5 = vcombine.low %v1710_v51, %v1714_v52  ;;  %v1558_v61 = vld [vmem:[#allocation8 + $0x1810] sm:$0xff] }
 0x3cb   :  { %v12963_v60 = vadd.f32 %v7623_v9, %v7583_v21  ;;  %7949 = vmatprep.mubr.bf16.mxu1 %v12877_v37  ;;  %v7585_v20 = vadd.f32 %v7584_v28, %v12957_v39  ;;  %v7625_v55 = vpop.f32.mrf.mxu1  ;;  %7878 = vmatprep.subr.bf16.mxu0 %v11420_v32  ;;  %v1574_v32 = vld [vmem:[#allocation8 + $0x1890] sm:$0xff]  ;;  %v11516_v21 = vcombine.high %v1702_v1, %v1706_v2 }
 0x3cc   :  { %v7586_v27 = vpop.f32.mrf.mxu0  ;;  %7919 = vmatprep.subr.bf16.mxu1 %v11548_v4  ;;  %v11395_v4 = vcombine.low %v1582_v50, %v1586_v8  ;;  %v11388_v24 = vcombine.high %v1574_v32, %v1578_v35  ;;  %v1566_v9 = vld [vmem:[#allocation8 + $0x1850] sm:$0xff] }
 0x3cd   :  { %v12967_v40 = vadd.f32 %v7625_v55, %v7585_v20  ;;  %v7627_v33 = vpop.f32.mrf.mxu1  ;;  %7879 = vmatpush1.bf16.msra.mxu0 %v11419_v11  ;;  %v1570_v11 = vld [vmem:[#allocation8 + $0x1870] sm:$0xff]  ;;  %v11515_v20 = vcombine.low %v1702_v1, %v1706_v2 }
 0x3ce   :  { %7920 = vmatpush1.bf16.msra.mxu1 %v11547_v12  ;;  %v7587_v56 = vpop.f32.mrf.mxu0  ;;  %7880 = vmatprep.subr.bf16.mxu0 %v11412_v53  ;;  %v1694_v28 = vld [vmem:[#allocation8 + $0x1c50] sm:$0xff]  ;;  %v11387_v53 = vcombine.low %v1574_v32, %v1578_v35  ;;  %v11380_v55 = vcombine.high %v1566_v9, %v1570_v11  ;;  %v11379_v54 = vcombine.low %v1566_v9, %v1570_v11 }
 0x3cf   :  { %v7628_v39 = vpop.f32.mrf.mxu1  ;;  %7921 = vmatprep.subr.bf16.mxu1 %v11540_v29  ;;  %v1698_v12 = vld [vmem:[#allocation8 + $0x1c70] sm:$0xff] }
 0x3d0   :  { %v11508_v29 = vcombine.high %v1694_v28, %v1698_v12  ;;  %v1562_v41 = vld [vmem:[#allocation8 + $0x1830] sm:$0xff]  ;;  %v11507_v33 = vcombine.low %v1694_v28, %v1698_v12 }
 0x3d1   :  { %7881 = vmatpush1.bf16.msra.mxu0 %v11411_v36  ;;  %v1686_v27 = vld [vmem:[#allocation8 + $0x1c10] sm:$0xff]  ;;  %v11372_v36 = vcombine.high %v1558_v61, %v1562_v41  ;;  %v11371_v50 = vcombine.low %v1558_v61, %v1562_v41 }
 0x3d2   :  { %7922 = vmatpush1.bf16.msra.mxu1 %v11539_v42  ;;  %7882 = vmatprep.subr.bf16.mxu0 %v11404_v59  ;;  %v11500_v56 = vcombine.high %v1686_v27, %v1690_v19  ;;  %v1678_v42 = vld [vmem:[#allocation8 + $0x1bd0] sm:$0xff]  ;;  %v11499_v8 = vcombine.low %v1686_v27, %v1690_v19 }
 0x3d3   :  { %7923 = vmatprep.subr.bf16.mxu1 %v11532_v45  ;;  %v1682_v59 = vld [vmem:[#allocation8 + $0x1bf0] sm:$0xff] }
 0x3d4   :  { %v1806_v39 = vld [vmem:[#allocation8 + $0x1fd0] sm:$0xff]  ;;  %v11492_v51 = vcombine.high %v1678_v42, %v1682_v59  ;;  %v11491_v32 = vcombine.low %v1678_v42, %v1682_v59 }
 0x3d5   :  { %7883 = vmatpush1.bf16.msra.mxu0 %v11403_v7  ;;  %v1810_v45 = vld [vmem:[#allocation8 + $0x1ff0] sm:$0xff] }
 0x3d6   :  { %7924 = vmatpush1.bf16.msra.mxu1 %v11531_v57  ;;  %7884 = vmatprep.subr.bf16.mxu0 %v11396_v58  ;;  %v11620_v52 = vcombine.high %v1806_v39, %v1810_v45  ;;  %v1670_v7 = vld [vmem:[#allocation8 + $0x1b90] sm:$0xff]  ;;  %v11619_v35 = vcombine.low %v1806_v39, %v1810_v45 }
 0x3d7   :  { %7925 = vmatprep.subr.bf16.mxu1 %v11524_v13  ;;  %v1674_v57 = vld [vmem:[#allocation8 + $0x1bb0] sm:$0xff] }
 0x3d8   :  { %v1798_v58 = vld [vmem:[#allocation8 + $0x1f90] sm:$0xff]  ;;  %v11484_v1 = vcombine.high %v1670_v7, %v1674_v57  ;;  %v11483_v9 = vcombine.low %v1670_v7, %v1674_v57 }
 0x3d9   :  { %7885 = vmatpush1.bf16.msra.mxu0 %v11395_v4  ;;  %v1802_v13 = vld [vmem:[#allocation8 + $0x1fb0] sm:$0xff] }
 0x3da   :  { %7926 = vmatpush1.bf16.msra.mxu1 %v11523_v5  ;;  %7886 = vmatprep.subr.bf16.mxu0 %v11388_v24  ;;  %v11612_v2 = vcombine.high %v1798_v58, %v1802_v13  ;;  %v1662_v4 = vld [vmem:[#allocation8 + $0x1b50] sm:$0xff]  ;;  %v11611_v11 = vcombine.low %v1798_v58, %v1802_v13 }
 0x3db   :  { %7927 = vmatprep.subr.bf16.mxu1 %v11516_v21  ;;  %v1666_v5 = vld [vmem:[#allocation8 + $0x1b70] sm:$0xff] }
 0x3dc   :  { %v1790_v24 = vld [vmem:[#allocation8 + $0x1f50] sm:$0xff]  ;;  %v11476_v28 = vcombine.high %v1662_v4, %v1666_v5  ;;  %v11475_v61 = vcombine.low %v1662_v4, %v1666_v5 }
 0x3dd   :  { %7887 = vmatpush1.bf16.msra.mxu0 %v11387_v53  ;;  %v1794_v21 = vld [vmem:[#allocation8 + $0x1f70] sm:$0xff] }
 0x3de   :  { %7928 = vmatpush1.bf16.msra.mxu1 %v11515_v20  ;;  %7888 = vmatprep.subr.bf16.mxu0 %v11380_v55  ;;  %v11604_v12 = vcombine.high %v1790_v24, %v1794_v21  ;;  %v1654_v53 = vld [vmem:[#allocation8 + $0x1b10] sm:$0xff]  ;;  %v11603_v41 = vcombine.low %v1790_v24, %v1794_v21 }
 0x3df   :  { %7929 = vmatprep.subr.bf16.mxu1 %v11508_v29  ;;  %v1658_v20 = vld [vmem:[#allocation8 + $0x1b30] sm:$0xff] }
 0x3e0   :  { %v1782_v55 = vld [vmem:[#allocation8 + $0x1f10] sm:$0xff]  ;;  %v11468_v27 = vcombine.high %v1654_v53, %v1658_v20  ;;  %v11467_v42 = vcombine.low %v1654_v53, %v1658_v20 }
 0x3e1   :  { %7889 = vmatpush1.bf16.msra.mxu0 %v11379_v54  ;;  %v1786_v29 = vld [vmem:[#allocation8 + $0x1f30] sm:$0xff] }
 0x3e2   :  { %7930 = vmatpush1.bf16.msra.mxu1 %v11507_v33  ;;  %7890 = vmatprep.subr.bf16.mxu0 %v11372_v36  ;;  %v11596_v19 = vcombine.high %v1782_v55, %v1786_v29  ;;  %v1646_v54 = vld [vmem:[#allocation8 + $0x1ad0] sm:$0xff]  ;;  %v11595_v59 = vcombine.low %v1782_v55, %v1786_v29 }
 0x3e3   :  { %7931 = vmatprep.subr.bf16.mxu1 %v11500_v56  ;;  %v1650_v33 = vld [vmem:[#allocation8 + $0x1af0] sm:$0xff] }
 0x3e4   :  { %v1774_v36 = vld [vmem:[#allocation8 + $0x1ed0] sm:$0xff]  ;;  %v11460_v39 = vcombine.high %v1646_v54, %v1650_v33  ;;  %v11459_v7 = vcombine.low %v1646_v54, %v1650_v33 }
 0x3e5   :  { %7891 = vmatpush1.bf16.msra.mxu0 %v11371_v50  ;;  %v1778_v56 = vld [vmem:[#allocation8 + $0x1ef0] sm:$0xff] }
 0x3e6   :  { %7932 = vmatpush1.bf16.msra.mxu1 %v11499_v8  ;;  %7892 = vmatprep.subr.bf16.mxu0 %v11492_v51  ;;  %v11588_v45 = vcombine.high %v1774_v36, %v1778_v56  ;;  %v1638_v50 = vld [vmem:[#allocation8 + $0x1a90] sm:$0xff]  ;;  %v11587_v57 = vcombine.low %v1774_v36, %v1778_v56 }
 0x3e7   :  { %7933 = vmatprep.subr.bf16.mxu1 %v11620_v52  ;;  %v1642_v8 = vld [vmem:[#allocation8 + $0x1ab0] sm:$0xff] }
 0x3e8   :  { %v1766_v51 = vld [vmem:[#allocation8 + $0x1e90] sm:$0xff]  ;;  %v11452_v58 = vcombine.high %v1638_v50, %v1642_v8  ;;  %v11451_v4 = vcombine.low %v1638_v50, %v1642_v8  ;;  %v967_v8 = vld [vmem:[#allocation8 + $0x598] sm:$0xff] }
 0x3e9   :  { %7893 = vmatpush2.bf16.msra.mxu0 %v11491_v32  ;;  %v1770_v52 = vld [vmem:[#allocation8 + $0x1eb0] sm:$0xff] }
 0x3ea   :  { %7934 = vmatpush2.bf16.msra.mxu1 %v11619_v35  ;;  %7894 = vmatprep.subr.bf16.mxu0 %v11484_v1  ;;  %v11580_v13 = vcombine.high %v1766_v51, %v1770_v52  ;;  %v1630_v32 = vld [vmem:[#allocation8 + $0x1a50] sm:$0xff]  ;;  %v11579_v5 = vcombine.low %v1766_v51, %v1770_v52  ;;  %v971_v51 = vld [vmem:[#allocation8 + $0x5b8] sm:$0xff] }
 0x3eb   :  { %7935 = vmatprep.subr.bf16.mxu1 %v11612_v2  ;;  %v1634_v35 = vld [vmem:[#allocation8 + $0x1a70] sm:$0xff] }
 0x3ec   :  { %v1758_v1 = vld [vmem:[#allocation8 + $0x1e50] sm:$0xff]  ;;  %v11444_v24 = vcombine.high %v1630_v32, %v1634_v35  ;;  %v11443_v53 = vcombine.low %v1630_v32, %v1634_v35  ;;  %v10782_v35 = vcombine.high %v967_v8, %v971_v51 }
 0x3ed   :  { %7895 = vmatpush2.bf16.msra.mxu0 %v11483_v9  ;;  %v1762_v2 = vld [vmem:[#allocation8 + $0x1e70] sm:$0xff] }
 0x3ee   :  { %7936 = vmatpush2.bf16.msra.mxu1 %v11611_v11  ;;  %7896 = vmatprep.subr.bf16.mxu0 %v11476_v28  ;;  %v11572_v21 = vcombine.high %v1758_v1, %v1762_v2  ;;  %v1622_v9 = vld [vmem:[#allocation8 + $0x1a10] sm:$0xff]  ;;  %v11571_v20 = vcombine.low %v1758_v1, %v1762_v2  ;;  %v959_v1 = vld [vmem:[#allocation8 + $0x558] sm:$0xff] }
 0x3ef   :  { %7937 = vmatprep.subr.bf16.mxu1 %v11604_v12  ;;  %v1626_v11 = vld [vmem:[#allocation8 + $0x1a30] sm:$0xff]  ;;  %v963_v2 = vld [vmem:[#allocation8 + $0x578] sm:$0xff] }
 0x3f0   :  { %v1750_v28 = vld [vmem:[#allocation8 + $0x1e10] sm:$0xff]  ;;  %v11436_v55 = vcombine.high %v1622_v9, %v1626_v11  ;;  %v11435_v54 = vcombine.low %v1622_v9, %v1626_v11 }
 0x3f1   :  { %7897 = vmatpush2.bf16.msra.mxu0 %v11475_v61  ;;  %v1754_v12 = vld [vmem:[#allocation8 + $0x1e30] sm:$0xff]  ;;  %v847_v61 = vld [vmem:[#allocation8 + $0x1d8] sm:$0xff] }
 0x3f2   :  { %7938 = vmatpush2.bf16.msra.mxu1 %v11603_v41  ;;  %7898 = vmatprep.subr.bf16.mxu0 %v11468_v27  ;;  %v11564_v29 = vcombine.high %v1750_v28, %v1754_v12  ;;  %v851_v41 = vld [vmem:[#allocation8 + $0x1f8] sm:$0xff]  ;;  %v11563_v33 = vcombine.low %v1750_v28, %v1754_v12  ;;  %v10774_v12 = vcombine.high %v959_v1, %v963_v2 }
 0x3f3   :  { %7939 = vmatprep.subr.bf16.mxu1 %v11596_v19  ;;  %v975_v27 = vld [vmem:[#allocation8 + $0x5d8] sm:$0xff]  ;;  %v10662_v36 = vcombine.high %v847_v61, %v851_v41  ;;  %v10661_v50 = vcombine.low %v847_v61, %v851_v41 }
 0x3f4   :  { %v979_v19 = vld [vmem:[#allocation8 + $0x5f8] sm:$0xff] }
 0x3f5   :  { %7899 = vmatpush2.bf16.msra.mxu0 %v11467_v42  ;;  %v10790_v56 = vcombine.high %v975_v27, %v979_v19  ;;  %v839_v42 = vld [vmem:[#allocation8 + $0x198] sm:$0xff]  ;;  %v10789_v52 = vcombine.low %v975_v27, %v979_v19 }
 0x3f6   :  { %7940 = vmatpush2.bf16.msra.mxu1 %v11595_v59  ;;  %7900 = vmatprep.subr.bf16.mxu0 %v11460_v39  ;;  %v843_v59 = vld [vmem:[#allocation8 + $0x1b8] sm:$0xff]  ;;  %v12391_v39 = vld [vmem:[#allocation10] sm:$0xff] }
 0x3f7   :  { %7941 = vmatprep.subr.bf16.mxu1 %v11588_v45  ;;  %v1833_v45 = vrot.slane %v12391_v39, %v12814_v26  ;;  %v955_v61 = vld [vmem:[#allocation8 + $0x538] sm:$0xff] }
 0x3f9   :  { %7901 = vmatpush2.bf16.msra.mxu0 %v11459_v7  ;;  %v1837_v7 = vrot.slane %v12391_v39, %v12770_v30  ;;  %v10781_v30 = vcombine.low %v967_v8, %v971_v51  ;;  %v947_v39 = vld [vmem:[#allocation8 + $0x4f8] sm:$0xff] }
 0x3fa   :  { %7942 = vmatpush2.bf16.msra.mxu1 %v11587_v57  ;;  %7902 = vmatprep.subr.bf16.mxu0 %v11452_v58  ;;  %v10654_v57 = vcombine.high %v839_v42, %v843_v59  ;;  %v831_v58 = vld [vmem:[#allocation8 + $0x158] sm:$0xff] }
 0x3fb   :  { %7943 = vmatprep.subr.bf16.mxu1 %v11580_v13  ;;  %v835_v13 = vld [vmem:[#allocation8 + $0x178] sm:$0xff] }
 0x3fc   :  { %v10645_v27 = vcombine.low %v831_v58, %v835_v13 }
 0x3fd   :  { %7903 = vmatpush2.bf16.msra.mxu0 %v11451_v4 }
 0x3fe   :  { %7944 = vmatpush2.bf16.msra.mxu1 %v11579_v5  ;;  %7904 = vmatprep.subr.bf16.mxu0 %v11444_v24  ;;  %v10653_v5 = vcombine.low %v839_v42, %v843_v59  ;;  %v819_v42 = vld [vmem:[#allocation8 + $0xf8] sm:$0xff] }
 0x3ff   :  { %7945 = vmatprep.subr.bf16.mxu1 %v11572_v21  ;;  %v10646_v21 = vcombine.high %v831_v58, %v835_v13  ;;  %v943_v59 = vld [vmem:[#allocation8 + $0x4d8] sm:$0xff] }
 0x400   :  { %v10758_v51 = vcombine.high %v943_v59, %v947_v39  ;;  %v939_v58 = vld [vmem:[#allocation8 + $0x4b8] sm:$0xff] }
 0x401   :  { %7905 = vmatpush2.bf16.msra.mxu0 %v11443_v53  ;;  %v823_v53 = vld [vmem:[#allocation8 + $0x118] sm:$0xff] }
 0x402   :  { %7946 = vmatpush2.bf16.msra.mxu1 %v11571_v20  ;;  %7906 = vmatprep.subr.bf16.mxu0 %v11436_v55  ;;  %v827_v20 = vld [vmem:[#allocation8 + $0x138] sm:$0xff] }
 0x403   :  { %7947 = vmatprep.subr.bf16.mxu1 %v11564_v29  ;;  %v951_v29 = vld [vmem:[#allocation8 + $0x518] sm:$0xff] }
 0x405   :  { %7907 = vmatpush2.bf16.msra.mxu0 %v11435_v54  ;;  %v10773_v54 = vcombine.low %v959_v1, %v963_v2  ;;  %v799_v2 = vld [vmem:[#allocation8 + $0x58] sm:$0xff] }
 0x406   :  { %7948 = vmatpush2.bf16.msra.mxu1 %v11563_v33  ;;  %7958 = vmatprep.subr.bf16.mxu0 %v10662_v36  ;;  %v10766_v36 = vcombine.high %v951_v29, %v955_v61 }
 0x407   :  { %7999 = vmatprep.subr.bf16.mxu1 %v10790_v56  ;;  %v815_v56 = vld [vmem:[#allocation8 + $0xd8] sm:$0xff] }
 0x408   :  { %v7664_v32 = vpop.f32.mrf.mxu0  ;;  %7909 = vmatmul.mubr.bf16.vlgmr.msra.gmra.mxu0 %v12886_v46  ;;  %v10630_v8 = vcombine.high %v815_v56, %v819_v42  ;;  %v10629_v13 = vcombine.low %v815_v56, %v819_v42 }
 0x409   :  { %v7665_v4 = vadd.f32 %v7664_v32, %v1833_v45  ;;  %v7705_v26 = vpop.f32.mrf.mxu1  ;;  %7950 = vmatmul.mubr.bf16.vlgmr.msra.gmra.mxu1 %v12888_v49  ;;  %7959 = vmatpush1.bf16.msra.mxu0 %v10661_v50  ;;  %v10637_v45 = vcombine.low %v823_v53, %v827_v20  ;;  %v10765_v50 = vcombine.low %v951_v29, %v955_v61 }
 0x40a   :  { %7990 = vmatprep.mubr.bf16.mxu0 %v12777_v44  ;;  %8000 = vmatpush1.bf16.msra.mxu1 %v10789_v52  ;;  %v7666_v24 = vpop.f32.mrf.mxu0  ;;  %v807_v52 = vld [vmem:[#allocation8 + $0x98] sm:$0xff]  ;;  %v10757_v32 = vcombine.low %v943_v59, %v947_v39 }
 0x40b   :  { %v12974_v9 = vadd.f32 %v7705_v26, %v7665_v4  ;;  %8031 = vmatprep.mubr.bf16.mxu1 %v12783_v48  ;;  %v7667_v11 = vadd.f32 %v7666_v24, %v1837_v7  ;;  %v7707_v28 = vpop.f32.mrf.mxu1  ;;  %7960 = vmatprep.subr.bf16.mxu0 %v10654_v57  ;;  %v10638_v48 = vcombine.high %v823_v53, %v827_v20  ;;  %v811_v7 = vld [vmem:[#allocation8 + $0xb8] sm:$0xff] }
 0x40c   :  { %v7668_v55 = vpop.f32.mrf.mxu0  ;;  %8001 = vmatprep.subr.bf16.mxu1 %v10782_v35  ;;  %v935_v57 = vld [vmem:[#allocation8 + $0x498] sm:$0xff]  ;;  %v10622_v35 = vcombine.high %v807_v52, %v811_v7  ;;  %v10621_v24 = vcombine.low %v807_v52, %v811_v7 }
 0x40d   :  { %v12977_v41 = vadd.f32 %v7707_v28, %v7667_v11  ;;  %v7709_v44 = vpop.f32.mrf.mxu1  ;;  %7961 = vmatpush1.bf16.msra.mxu0 %v10653_v5  ;;  %v10750_v1 = vcombine.high %v935_v57, %v939_v58  ;;  %v803_v4 = vld [vmem:[#allocation8 + $0x78] sm:$0xff] }
 0x40e   :  { %8002 = vmatpush1.bf16.msra.mxu1 %v10781_v30  ;;  %v7669_v19 = vpop.f32.mrf.mxu0  ;;  %7962 = vmatprep.subr.bf16.mxu0 %v10646_v21  ;;  %v927_v26 = vld [vmem:[#allocation8 + $0x458] sm:$0xff]  ;;  %v10749_v30 = vcombine.low %v935_v57, %v939_v58  ;;  %v10614_v21 = vcombine.high %v799_v2, %v803_v4  ;;  %v10613_v55 = vcombine.low %v799_v2, %v803_v4 }
 0x40f   :  { %v7710_v33 = vpop.f32.mrf.mxu1  ;;  %8003 = vmatprep.subr.bf16.mxu1 %v10774_v12  ;;  %v931_v5 = vld [vmem:[#allocation8 + $0x478] sm:$0xff] }
 0x410   :  { %v10742_v11 = vcombine.high %v927_v26, %v931_v5  ;;  %v791_v28 = vld [vmem:[#allocation8 + $0x18] sm:$0xff]  ;;  %v10741_v29 = vcombine.low %v927_v26, %v931_v5 }
 0x411   :  { %7963 = vmatpush1.bf16.msra.mxu0 %v10645_v27  ;;  %v795_v12 = vld [vmem:[#allocation8 + $0x38] sm:$0xff] }
 0x412   :  { %8004 = vmatpush1.bf16.msra.mxu1 %v10773_v54  ;;  %7964 = vmatprep.subr.bf16.mxu0 %v10638_v48  ;;  %v919_v53 = vld [vmem:[#allocation8 + $0x418] sm:$0xff]  ;;  %v10606_v61 = vcombine.high %v791_v28, %v795_v12  ;;  %v10605_v33 = vcombine.low %v791_v28, %v795_v12 }
 0x413   :  { %8005 = vmatprep.subr.bf16.mxu1 %v10766_v36  ;;  %v923_v20 = vld [vmem:[#allocation8 + $0x438] sm:$0xff] }
 0x414   :  { %v10734_v44 = vcombine.high %v919_v53, %v923_v20  ;;  %v911_v27 = vld [vmem:[#allocation8 + $0x3d8] sm:$0xff]  ;;  %v10733_v36 = vcombine.low %v919_v53, %v923_v20 }
 0x415   :  { %7965 = vmatpush1.bf16.msra.mxu0 %v10637_v45  ;;  %v915_v19 = vld [vmem:[#allocation8 + $0x3f8] sm:$0xff] }
 0x416   :  { %8006 = vmatpush1.bf16.msra.mxu1 %v10765_v50  ;;  %7966 = vmatprep.subr.bf16.mxu0 %v10630_v8  ;;  %v1039_v54 = vld [vmem:[#allocation8 + $0x7d8] sm:$0xff]  ;;  %v10726_v56 = vcombine.high %v911_v27, %v915_v19  ;;  %v10725_v8 = vcombine.low %v911_v27, %v915_v19 }
 0x417   :  { %8007 = vmatprep.subr.bf16.mxu1 %v10758_v51  ;;  %v1043_v48 = vld [vmem:[#allocation8 + $0x7f8] sm:$0xff] }
 0x418   :  { %v10854_v42 = vcombine.high %v1039_v54, %v1043_v48  ;;  %v903_v59 = vld [vmem:[#allocation8 + $0x398] sm:$0xff]  ;;  %v10853_v51 = vcombine.low %v1039_v54, %v1043_v48 }
 0x419   :  { %7967 = vmatpush1.bf16.msra.mxu0 %v10629_v13  ;;  %v907_v39 = vld [vmem:[#allocation8 + $0x3b8] sm:$0xff] }
 0x41a   :  { %8008 = vmatpush1.bf16.msra.mxu1 %v10757_v32  ;;  %7968 = vmatprep.subr.bf16.mxu0 %v10622_v35  ;;  %v1031_v45 = vld [vmem:[#allocation8 + $0x798] sm:$0xff]  ;;  %v10718_v52 = vcombine.high %v903_v59, %v907_v39  ;;  %v10717_v35 = vcombine.low %v903_v59, %v907_v39 }
 0x41b   :  { %8009 = vmatprep.subr.bf16.mxu1 %v10750_v1  ;;  %v1035_v50 = vld [vmem:[#allocation8 + $0x7b8] sm:$0xff] }
 0x41c   :  { %v10846_v7 = vcombine.high %v1031_v45, %v1035_v50  ;;  %v895_v57 = vld [vmem:[#allocation8 + $0x358] sm:$0xff]  ;;  %v10845_v1 = vcombine.low %v1031_v45, %v1035_v50 }
 0x41d   :  { %7969 = vmatpush1.bf16.msra.mxu0 %v10621_v24  ;;  %v899_v58 = vld [vmem:[#allocation8 + $0x378] sm:$0xff] }
 0x41e   :  { %8010 = vmatpush1.bf16.msra.mxu1 %v10749_v30  ;;  %7970 = vmatprep.subr.bf16.mxu0 %v10614_v21  ;;  %v1023_v13 = vld [vmem:[#allocation8 + $0x758] sm:$0xff]  ;;  %v10710_v2 = vcombine.high %v895_v57, %v899_v58  ;;  %v10709_v21 = vcombine.low %v895_v57, %v899_v58 }
 0x41f   :  { %8011 = vmatprep.subr.bf16.mxu1 %v10742_v11  ;;  %v1027_v32 = vld [vmem:[#allocation8 + $0x778] sm:$0xff] }
 0x420   :  { %v10838_v4 = vcombine.high %v1023_v13, %v1027_v32  ;;  %v887_v26 = vld [vmem:[#allocation8 + $0x318] sm:$0xff]  ;;  %v10837_v11 = vcombine.low %v1023_v13, %v1027_v32 }
 0x421   :  { %7971 = vmatpush1.bf16.msra.mxu0 %v10613_v55  ;;  %v891_v5 = vld [vmem:[#allocation8 + $0x338] sm:$0xff] }
 0x422   :  { %8012 = vmatpush1.bf16.msra.mxu1 %v10741_v29  ;;  %7972 = vmatprep.subr.bf16.mxu0 %v10606_v61  ;;  %v1015_v24 = vld [vmem:[#allocation8 + $0x718] sm:$0xff]  ;;  %v10702_v28 = vcombine.high %v887_v26, %v891_v5  ;;  %v10701_v61 = vcombine.low %v887_v26, %v891_v5 }
 0x423   :  { %8013 = vmatprep.subr.bf16.mxu1 %v10734_v44  ;;  %v1019_v30 = vld [vmem:[#allocation8 + $0x738] sm:$0xff] }
 0x424   :  { %v10830_v12 = vcombine.high %v1015_v24, %v1019_v30  ;;  %v879_v53 = vld [vmem:[#allocation8 + $0x2d8] sm:$0xff]  ;;  %v10829_v44 = vcombine.low %v1015_v24, %v1019_v30 }
 0x425   :  { %7973 = vmatpush1.bf16.msra.mxu0 %v10605_v33  ;;  %v883_v20 = vld [vmem:[#allocation8 + $0x2f8] sm:$0xff] }
 0x426   :  { %8014 = vmatpush1.bf16.msra.mxu1 %v10733_v36  ;;  %7974 = vmatprep.subr.bf16.mxu0 %v10726_v56  ;;  %v1007_v55 = vld [vmem:[#allocation8 + $0x6d8] sm:$0xff]  ;;  %v10694_v27 = vcombine.high %v879_v53, %v883_v20  ;;  %v10693_v56 = vcombine.low %v879_v53, %v883_v20 }
 0x427   :  { %8015 = vmatprep.subr.bf16.mxu1 %v10854_v42  ;;  %v1011_v29 = vld [vmem:[#allocation8 + $0x6f8] sm:$0xff] }
 0x428   :  { %v10822_v19 = vcombine.high %v1007_v55, %v1011_v29  ;;  %v871_v54 = vld [vmem:[#allocation8 + $0x298] sm:$0xff]  ;;  %v10821_v42 = vcombine.low %v1007_v55, %v1011_v29 }
 0x429   :  { %7975 = vmatpush2.bf16.msra.mxu0 %v10725_v8  ;;  %v875_v48 = vld [vmem:[#allocation8 + $0x2b8] sm:$0xff] }
 0x42a   :  { %8016 = vmatpush2.bf16.msra.mxu1 %v10853_v51  ;;  %7976 = vmatprep.subr.bf16.mxu0 %v10718_v52  ;;  %v999_v33 = vld [vmem:[#allocation8 + $0x698] sm:$0xff]  ;;  %v10686_v59 = vcombine.high %v871_v54, %v875_v48  ;;  %v10685_v52 = vcombine.low %v871_v54, %v875_v48 }
 0x42b   :  { %8017 = vmatprep.subr.bf16.mxu1 %v10846_v7  ;;  %v1003_v36 = vld [vmem:[#allocation8 + $0x6b8] sm:$0xff] }
 0x42c   :  { %v10814_v39 = vcombine.high %v999_v33, %v1003_v36  ;;  %v863_v45 = vld [vmem:[#allocation8 + $0x258] sm:$0xff]  ;;  %v10813_v7 = vcombine.low %v999_v33, %v1003_v36 }
 0x42d   :  { %7977 = vmatpush2.bf16.msra.mxu0 %v10717_v35  ;;  %v867_v50 = vld [vmem:[#allocation8 + $0x278] sm:$0xff] }
 0x42e   :  { %8018 = vmatpush2.bf16.msra.mxu1 %v10845_v1  ;;  %7978 = vmatprep.subr.bf16.mxu0 %v10710_v2  ;;  %v991_v8 = vld [vmem:[#allocation8 + $0x658] sm:$0xff]  ;;  %v10678_v57 = vcombine.high %v863_v45, %v867_v50  ;;  %v10677_v2 = vcombine.low %v863_v45, %v867_v50 }
 0x42f   :  { %8019 = vmatprep.subr.bf16.mxu1 %v10838_v4  ;;  %v995_v51 = vld [vmem:[#allocation8 + $0x678] sm:$0xff] }
 0x430   :  { %v10806_v58 = vcombine.high %v991_v8, %v995_v51  ;;  %v855_v13 = vld [vmem:[#allocation8 + $0x218] sm:$0xff]  ;;  %v10805_v4 = vcombine.low %v991_v8, %v995_v51 }
 0x431   :  { %7979 = vmatpush2.bf16.msra.mxu0 %v10709_v21  ;;  %v859_v32 = vld [vmem:[#allocation8 + $0x238] sm:$0xff] }
 0x432   :  { %8020 = vmatpush2.bf16.msra.mxu1 %v10837_v11  ;;  %7980 = vmatprep.subr.bf16.mxu0 %v10702_v28  ;;  %v983_v35 = vld [vmem:[#allocation8 + $0x618] sm:$0xff]  ;;  %v10670_v26 = vcombine.high %v855_v13, %v859_v32  ;;  %v10669_v28 = vcombine.low %v855_v13, %v859_v32 }
 0x433   :  { %8021 = vmatprep.subr.bf16.mxu1 %v10830_v12  ;;  %v987_v1 = vld [vmem:[#allocation8 + $0x638] sm:$0xff] }
 0x434   :  { %v10798_v5 = vcombine.high %v983_v35, %v987_v1  ;;  %v1103_v24 = vld [vmem:[#allocation8 + $0x9d8] sm:$0xff]  ;;  %v10797_v12 = vcombine.low %v983_v35, %v987_v1 }
 0x435   :  { %7981 = vmatpush2.bf16.msra.mxu0 %v10701_v61  ;;  %v1107_v30 = vld [vmem:[#allocation8 + $0x9f8] sm:$0xff] }
 0x436   :  { %8022 = vmatpush2.bf16.msra.mxu1 %v10829_v44  ;;  %7982 = vmatprep.subr.bf16.mxu0 %v10694_v27  ;;  %v1231_v21 = vld [vmem:[#allocation8 + $0xdd8] sm:$0xff]  ;;  %v10918_v53 = vcombine.high %v1103_v24, %v1107_v30  ;;  %v10917_v61 = vcombine.low %v1103_v24, %v1107_v30 }
 0x437   :  { %8023 = vmatprep.subr.bf16.mxu1 %v10822_v19  ;;  %v1235_v11 = vld [vmem:[#allocation8 + $0xdf8] sm:$0xff] }
 0x438   :  { %v11046_v20 = vcombine.high %v1231_v21, %v1235_v11  ;;  %v1095_v55 = vld [vmem:[#allocation8 + $0x998] sm:$0xff]  ;;  %v11045_v19 = vcombine.low %v1231_v21, %v1235_v11 }
 0x439   :  { %7983 = vmatpush2.bf16.msra.mxu0 %v10693_v56  ;;  %v1099_v29 = vld [vmem:[#allocation8 + $0x9b8] sm:$0xff] }
 0x43a   :  { %8024 = vmatpush2.bf16.msra.mxu1 %v10821_v42  ;;  %7984 = vmatprep.subr.bf16.mxu0 %v10686_v59  ;;  %v1223_v44 = vld [vmem:[#allocation8 + $0xd98] sm:$0xff]  ;;  %v10910_v54 = vcombine.high %v1095_v55, %v1099_v29  ;;  %v10909_v50 = vcombine.low %v1095_v55, %v1099_v29 }
 0x43b   :  { %8025 = vmatprep.subr.bf16.mxu1 %v10814_v39  ;;  %v1227_v27 = vld [vmem:[#allocation8 + $0xdb8] sm:$0xff] }
 0x43c   :  { %v1087_v48 = vld [vmem:[#allocation8 + $0x958] sm:$0xff]  ;;  %v11038_v56 = vcombine.high %v1223_v44, %v1227_v27  ;;  %v11037_v51 = vcombine.low %v1223_v44, %v1227_v27 }
 0x43d   :  { %7985 = vmatpush2.bf16.msra.mxu0 %v10685_v52  ;;  %v1091_v33 = vld [vmem:[#allocation8 + $0x978] sm:$0xff] }
 0x43e   :  { %8026 = vmatpush2.bf16.msra.mxu1 %v10813_v7  ;;  %7986 = vmatprep.subr.bf16.mxu0 %v10678_v57  ;;  %v1215_v42 = vld [vmem:[#allocation8 + $0xd58] sm:$0xff]  ;;  %v10902_v52 = vcombine.high %v1087_v48, %v1091_v33 }
 0x43f   :  { %8027 = vmatprep.subr.bf16.mxu1 %v10806_v58  ;;  %v1219_v59 = vld [vmem:[#allocation8 + $0xd78] sm:$0xff] }
 0x440   :  { %v1079_v58 = vld [vmem:[#allocation8 + $0x918] sm:$0xff] }
 0x441   :  { %7987 = vmatpush2.bf16.msra.mxu0 %v10677_v2  ;;  %v1083_v13 = vld [vmem:[#allocation8 + $0x938] sm:$0xff]  ;;  %v10901_v2 = vcombine.low %v1087_v48, %v1091_v33 }
 0x442   :  { %8028 = vmatpush2.bf16.msra.mxu1 %v10805_v4  ;;  %7988 = vmatprep.subr.bf16.mxu0 %v10670_v26  ;;  %v1207_v32 = vld [vmem:[#allocation8 + $0xd18] sm:$0xff]  ;;  %v10894_v26 = vcombine.high %v1079_v58, %v1083_v13 }
 0x443   :  { %8029 = vmatprep.subr.bf16.mxu1 %v10798_v5  ;;  %v1211_v35 = vld [vmem:[#allocation8 + $0xd38] sm:$0xff] }
 0x444   :  { %v11022_v5 = vcombine.high %v1207_v32, %v1211_v35  ;;  %v1071_v24 = vld [vmem:[#allocation8 + $0x8d8] sm:$0xff] }
 0x445   :  { %7989 = vmatpush2.bf16.msra.mxu0 %v10669_v28  ;;  %v1075_v30 = vld [vmem:[#allocation8 + $0x8f8] sm:$0xff]  ;;  %v10893_v28 = vcombine.low %v1079_v58, %v1083_v13 }
 0x446   :  { %8030 = vmatpush2.bf16.msra.mxu1 %v10797_v12  ;;  %8040 = vmatprep.subr.bf16.mxu0 %v10918_v53  ;;  %v1199_v21 = vld [vmem:[#allocation8 + $0xcd8] sm:$0xff]  ;;  %v11021_v12 = vcombine.low %v1207_v32, %v1211_v35  ;;  %v10886_v53 = vcombine.high %v1071_v24, %v1075_v30  ;;  %v10885_v27 = vcombine.low %v1071_v24, %v1075_v30 }
 0x447   :  { %8081 = vmatprep.subr.bf16.mxu1 %v11046_v20  ;;  %v1203_v11 = vld [vmem:[#allocation8 + $0xcf8] sm:$0xff] }
 0x448   :  { %v7746_v36 = vpop.f32.mrf.mxu0  ;;  %7991 = vmatmul.mubr.bf16.vlgmr.msra.gmra.mxu0 %v12781_v47  ;;  %v11014_v20 = vcombine.high %v1199_v21, %v1203_v11  ;;  %v1063_v55 = vld [vmem:[#allocation8 + $0x898] sm:$0xff] }
 0x449   :  { %v7747_v39 = vadd.f32 %v7746_v36, %v12974_v9  ;;  %v7787_v45 = vpop.f32.mrf.mxu1  ;;  %8032 = vmatmul.mubr.bf16.vlgmr.msra.gmra.mxu1 %v12775_v43  ;;  %8041 = vmatpush1.bf16.msra.mxu0 %v10917_v61  ;;  %v11030_v9 = vcombine.high %v1215_v42, %v1219_v59  ;;  %v1067_v29 = vld [vmem:[#allocation8 + $0x8b8] sm:$0xff] }
 0x44a   :  { %8072 = vmatprep.mubr.bf16.mxu0 %v12801_v0  ;;  %8082 = vmatpush1.bf16.msra.mxu1 %v11045_v19  ;;  %v7748_v8 = vpop.f32.mrf.mxu0  ;;  %v1191_v61 = vld [vmem:[#allocation8 + $0xc98] sm:$0xff]  ;;  %v11013_v19 = vcombine.low %v1199_v21, %v1203_v11 }
 0x44b   :  { %v12983_v7 = vadd.f32 %v7787_v45, %v7747_v39  ;;  %8113 = vmatprep.mubr.bf16.mxu1 %v12803_v22  ;;  %v7749_v47 = vadd.f32 %v7748_v8, %v12977_v41  ;;  %v7789_v57 = vpop.f32.mrf.mxu1  ;;  %8042 = vmatprep.subr.bf16.mxu0 %v10910_v54  ;;  %v11029_v22 = vcombine.low %v1215_v42, %v1219_v59  ;;  %v1195_v44 = vld [vmem:[#allocation8 + $0xcb8] sm:$0xff] }
 0x44c   :  { %v7750_v43 = vpop.f32.mrf.mxu0  ;;  %8083 = vmatprep.subr.bf16.mxu1 %v11038_v56  ;;  %v10878_v54 = vcombine.high %v1063_v55, %v1067_v29  ;;  %v11006_v48 = vcombine.high %v1191_v61, %v1195_v44  ;;  %v1055_v33 = vld [vmem:[#allocation8 + $0x858] sm:$0xff]  ;;  %v10877_v59 = vcombine.low %v1063_v55, %v1067_v29  ;;  %v11005_v39 = vcombine.low %v1191_v61, %v1195_v44 }
 0x44d   :  { %v12987_v0 = vadd.f32 %v7789_v57, %v7749_v47  ;;  %v7791_v1 = vpop.f32.mrf.mxu1  ;;  %8043 = vmatpush1.bf16.msra.mxu0 %v10909_v50  ;;  %v1059_v36 = vld [vmem:[#allocation8 + $0x878] sm:$0xff] }
 0x44e   :  { %8084 = vmatpush1.bf16.msra.mxu1 %v11037_v51  ;;  %v7751_v4 = vpop.f32.mrf.mxu0  ;;  %8044 = vmatprep.subr.bf16.mxu0 %v10902_v52  ;;  %v1183_v56 = vld [vmem:[#allocation8 + $0xc58] sm:$0xff]  ;;  %v10870_v45 = vcombine.high %v1055_v33, %v1059_v36  ;;  %v10869_v57 = vcombine.low %v1055_v33, %v1059_v36 }
 0x44f   :  { %v7792_v41 = vpop.f32.mrf.mxu1  ;;  %8085 = vmatprep.subr.bf16.mxu1 %v11030_v9  ;;  %v1187_v42 = vld [vmem:[#allocation8 + $0xc78] sm:$0xff] }
 0x450   :  { %v10998_v50 = vcombine.high %v1183_v56, %v1187_v42  ;;  %v1047_v8 = vld [vmem:[#allocation8 + $0x818] sm:$0xff]  ;;  %v10997_v9 = vcombine.low %v1183_v56, %v1187_v42 }
 0x451   :  { %8045 = vmatpush1.bf16.msra.mxu0 %v10901_v2  ;;  %v1051_v51 = vld [vmem:[#allocation8 + $0x838] sm:$0xff] }
 0x452   :  { %8086 = vmatpush1.bf16.msra.mxu1 %v11029_v22  ;;  %8046 = vmatprep.subr.bf16.mxu0 %v10894_v26  ;;  %v1175_v52 = vld [vmem:[#allocation8 + $0xc18] sm:$0xff]  ;;  %v10862_v58 = vcombine.high %v1047_v8, %v1051_v51  ;;  %v10861_v2 = vcombine.low %v1047_v8, %v1051_v51 }
 0x453   :  { %8087 = vmatprep.subr.bf16.mxu1 %v11022_v5  ;;  %v1179_v47 = vld [vmem:[#allocation8 + $0xc38] sm:$0xff] }
 0x454   :  { %v10990_v13 = vcombine.high %v1175_v52, %v1179_v47  ;;  %v1167_v43 = vld [vmem:[#allocation8 + $0xbd8] sm:$0xff]  ;;  %v10989_v4 = vcombine.low %v1175_v52, %v1179_v47 }
 0x455   :  { %8047 = vmatpush1.bf16.msra.mxu0 %v10893_v28  ;;  %v1171_v32 = vld [vmem:[#allocation8 + $0xbf8] sm:$0xff] }
 0x456   :  { %8088 = vmatpush1.bf16.msra.mxu1 %v11021_v12  ;;  %8048 = vmatprep.subr.bf16.mxu0 %v10886_v53  ;;  %v1295_v35 = vld [vmem:[#allocation8 + $0xfd8] sm:$0xff]  ;;  %v10982_v22 = vcombine.high %v1167_v43, %v1171_v32  ;;  %v10981_v21 = vcombine.low %v1167_v43, %v1171_v32 }
 0x457   :  { %8089 = vmatprep.subr.bf16.mxu1 %v11014_v20  ;;  %v1299_v1 = vld [vmem:[#allocation8 + $0xff8] sm:$0xff] }
 0x458   :  { %v11110_v26 = vcombine.high %v1295_v35, %v1299_v1  ;;  %v1159_v41 = vld [vmem:[#allocation8 + $0xb98] sm:$0xff]  ;;  %v11109_v11 = vcombine.low %v1295_v35, %v1299_v1 }
 0x459   :  { %8049 = vmatpush1.bf16.msra.mxu0 %v10885_v27  ;;  %v1163_v5 = vld [vmem:[#allocation8 + $0xbb8] sm:$0xff] }
 0x45a   :  { %8090 = vmatpush1.bf16.msra.mxu1 %v11013_v19  ;;  %8050 = vmatprep.subr.bf16.mxu0 %v10878_v54  ;;  %v1287_v24 = vld [vmem:[#allocation8 + $0xf98] sm:$0xff]  ;;  %v10974_v28 = vcombine.high %v1159_v41, %v1163_v5  ;;  %v10973_v61 = vcombine.low %v1159_v41, %v1163_v5 }
 0x45b   :  { %8091 = vmatprep.subr.bf16.mxu1 %v11006_v48  ;;  %v1291_v30 = vld [vmem:[#allocation8 + $0xfb8] sm:$0xff] }
 0x45c   :  { %v11102_v12 = vcombine.high %v1287_v24, %v1291_v30  ;;  %v1151_v53 = vld [vmem:[#allocation8 + $0xb58] sm:$0xff]  ;;  %v11101_v44 = vcombine.low %v1287_v24, %v1291_v30 }
 0x45d   :  { %8051 = vmatpush1.bf16.msra.mxu0 %v10877_v59  ;;  %v1155_v20 = vld [vmem:[#allocation8 + $0xb78] sm:$0xff] }
 0x45e   :  { %8092 = vmatpush1.bf16.msra.mxu1 %v11005_v39  ;;  %8052 = vmatprep.subr.bf16.mxu0 %v10870_v45  ;;  %v1279_v55 = vld [vmem:[#allocation8 + $0xf58] sm:$0xff]  ;;  %v10966_v27 = vcombine.high %v1151_v53, %v1155_v20  ;;  %v10965_v56 = vcombine.low %v1151_v53, %v1155_v20 }
 0x45f   :  { %8093 = vmatprep.subr.bf16.mxu1 %v10998_v50  ;;  %v1283_v29 = vld [vmem:[#allocation8 + $0xf78] sm:$0xff] }
 0x460   :  { %v11094_v19 = vcombine.high %v1279_v55, %v1283_v29  ;;  %v1143_v54 = vld [vmem:[#allocation8 + $0xb18] sm:$0xff]  ;;  %v11093_v42 = vcombine.low %v1279_v55, %v1283_v29 }
 0x461   :  { %8053 = vmatpush1.bf16.msra.mxu0 %v10869_v57  ;;  %v1147_v48 = vld [vmem:[#allocation8 + $0xb38] sm:$0xff] }
 0x462   :  { %8094 = vmatpush1.bf16.msra.mxu1 %v10997_v9  ;;  %8054 = vmatprep.subr.bf16.mxu0 %v10862_v58  ;;  %v1271_v33 = vld [vmem:[#allocation8 + $0xf18] sm:$0xff]  ;;  %v10958_v59 = vcombine.high %v1143_v54, %v1147_v48  ;;  %v10957_v52 = vcombine.low %v1143_v54, %v1147_v48 }
 0x463   :  { %8095 = vmatprep.subr.bf16.mxu1 %v10990_v13  ;;  %v1275_v36 = vld [vmem:[#allocation8 + $0xf38] sm:$0xff] }
 0x464   :  { %v11086_v39 = vcombine.high %v1271_v33, %v1275_v36  ;;  %v1135_v45 = vld [vmem:[#allocation8 + $0xad8] sm:$0xff]  ;;  %v11085_v47 = vcombine.low %v1271_v33, %v1275_v36 }
 0x465   :  { %8055 = vmatpush1.bf16.msra.mxu0 %v10861_v2  ;;  %v1139_v50 = vld [vmem:[#allocation8 + $0xaf8] sm:$0xff] }
 0x466   :  { %8096 = vmatpush1.bf16.msra.mxu1 %v10989_v4  ;;  %8056 = vmatprep.subr.bf16.mxu0 %v10982_v22  ;;  %v1263_v8 = vld [vmem:[#allocation8 + $0xed8] sm:$0xff]  ;;  %v10950_v57 = vcombine.high %v1135_v45, %v1139_v50  ;;  %v10949_v35 = vcombine.low %v1135_v45, %v1139_v50 }
 0x467   :  { %8097 = vmatprep.subr.bf16.mxu1 %v11110_v26  ;;  %v1267_v51 = vld [vmem:[#allocation8 + $0xef8] sm:$0xff] }
 0x468   :  { %v11078_v9 = vcombine.high %v1263_v8, %v1267_v51  ;;  %v1127_v58 = vld [vmem:[#allocation8 + $0xa98] sm:$0xff]  ;;  %v11077_v1 = vcombine.low %v1263_v8, %v1267_v51 }
 0x469   :  { %8057 = vmatpush2.bf16.msra.mxu0 %v10981_v21  ;;  %v1131_v13 = vld [vmem:[#allocation8 + $0xab8] sm:$0xff] }
 0x46a   :  { %8098 = vmatpush2.bf16.msra.mxu1 %v11109_v11  ;;  %8058 = vmatprep.subr.bf16.mxu0 %v10974_v28  ;;  %v1255_v43 = vld [vmem:[#allocation8 + $0xe98] sm:$0xff]  ;;  %v10942_v2 = vcombine.high %v1127_v58, %v1131_v13  ;;  %v10941_v24 = vcombine.low %v1127_v58, %v1131_v13 }
 0x46b   :  { %8099 = vmatprep.subr.bf16.mxu1 %v11102_v12  ;;  %v1259_v32 = vld [vmem:[#allocation8 + $0xeb8] sm:$0xff] }
 0x46c   :  { %v11070_v4 = vcombine.high %v1255_v43, %v1259_v32  ;;  %v1119_v22 = vld [vmem:[#allocation8 + $0xa58] sm:$0xff]  ;;  %v11069_v30 = vcombine.low %v1255_v43, %v1259_v32 }
 0x46d   :  { %8059 = vmatpush2.bf16.msra.mxu0 %v10973_v61  ;;  %v1123_v26 = vld [vmem:[#allocation8 + $0xa78] sm:$0xff] }
 0x46e   :  { %8100 = vmatpush2.bf16.msra.mxu1 %v11101_v44  ;;  %8060 = vmatprep.subr.bf16.mxu0 %v10966_v27  ;;  %v1247_v41 = vld [vmem:[#allocation8 + $0xe58] sm:$0xff]  ;;  %v10934_v21 = vcombine.high %v1119_v22, %v1123_v26  ;;  %v10933_v55 = vcombine.low %v1119_v22, %v1123_v26 }
 0x46f   :  { %8101 = vmatprep.subr.bf16.mxu1 %v11094_v19  ;;  %v1251_v5 = vld [vmem:[#allocation8 + $0xe78] sm:$0xff] }
 0x470   :  { %v11062_v11 = vcombine.high %v1247_v41, %v1251_v5  ;;  %v1111_v28 = vld [vmem:[#allocation8 + $0xa18] sm:$0xff]  ;;  %v11061_v29 = vcombine.low %v1247_v41, %v1251_v5 }
 0x471   :  { %8061 = vmatpush2.bf16.msra.mxu0 %v10965_v56  ;;  %v1115_v12 = vld [vmem:[#allocation8 + $0xa38] sm:$0xff] }
 0x472   :  { %8102 = vmatpush2.bf16.msra.mxu1 %v11093_v42  ;;  %8062 = vmatprep.subr.bf16.mxu0 %v10958_v59  ;;  %v1239_v53 = vld [vmem:[#allocation8 + $0xe18] sm:$0xff]  ;;  %v10926_v61 = vcombine.high %v1111_v28, %v1115_v12  ;;  %v10925_v33 = vcombine.low %v1111_v28, %v1115_v12 }
 0x473   :  { %8103 = vmatprep.subr.bf16.mxu1 %v11086_v39  ;;  %v1243_v20 = vld [vmem:[#allocation8 + $0xe38] sm:$0xff] }
 0x474   :  { %v11054_v44 = vcombine.high %v1239_v53, %v1243_v20  ;;  %v1359_v27 = vld [vmem:[#allocation8 + $0x11d8] sm:$0xff]  ;;  %v11053_v36 = vcombine.low %v1239_v53, %v1243_v20 }
 0x475   :  { %8063 = vmatpush2.bf16.msra.mxu0 %v10957_v52  ;;  %v1363_v19 = vld [vmem:[#allocation8 + $0x11f8] sm:$0xff] }
 0x476   :  { %8104 = vmatpush2.bf16.msra.mxu1 %v11085_v47  ;;  %8064 = vmatprep.subr.bf16.mxu0 %v10950_v57  ;;  %v1487_v54 = vld [vmem:[#allocation8 + $0x15d8] sm:$0xff]  ;;  %v11174_v56 = vcombine.high %v1359_v27, %v1363_v19  ;;  %v11173_v45 = vcombine.low %v1359_v27, %v1363_v19 }
 0x477   :  { %8105 = vmatprep.subr.bf16.mxu1 %v11078_v9  ;;  %v1491_v48 = vld [vmem:[#allocation8 + $0x15f8] sm:$0xff] }
 0x478   :  { %v11302_v42 = vcombine.high %v1487_v54, %v1491_v48  ;;  %v1351_v59 = vld [vmem:[#allocation8 + $0x1198] sm:$0xff]  ;;  %v11301_v51 = vcombine.low %v1487_v54, %v1491_v48 }
 0x479   :  { %8065 = vmatpush2.bf16.msra.mxu0 %v10949_v35  ;;  %v1355_v39 = vld [vmem:[#allocation8 + $0x11b8] sm:$0xff] }
 0x47a   :  { %8106 = vmatpush2.bf16.msra.mxu1 %v11077_v1  ;;  %8066 = vmatprep.subr.bf16.mxu0 %v10942_v2  ;;  %v1479_v50 = vld [vmem:[#allocation8 + $0x1598] sm:$0xff]  ;;  %v11166_v52 = vcombine.high %v1351_v59, %v1355_v39  ;;  %v11165_v1 = vcombine.low %v1351_v59, %v1355_v39 }
 0x47b   :  { %8107 = vmatprep.subr.bf16.mxu1 %v11070_v4  ;;  %v1483_v8 = vld [vmem:[#allocation8 + $0x15b8] sm:$0xff] }
 0x47c   :  { %v1343_v47 = vld [vmem:[#allocation8 + $0x1158] sm:$0xff]  ;;  %v11294_v58 = vcombine.high %v1479_v50, %v1483_v8  ;;  %v11293_v4 = vcombine.low %v1479_v50, %v1483_v8 }
 0x47d   :  { %8067 = vmatpush2.bf16.msra.mxu0 %v10941_v24  ;;  %v1347_v57 = vld [vmem:[#allocation8 + $0x1178] sm:$0xff] }
 0x47e   :  { %8108 = vmatpush2.bf16.msra.mxu1 %v11069_v30  ;;  %8068 = vmatprep.subr.bf16.mxu0 %v10934_v21  ;;  %v1471_v13 = vld [vmem:[#allocation8 + $0x1558] sm:$0xff]  ;;  %v11158_v22 = vcombine.high %v1343_v47, %v1347_v57  ;;  %v11157_v28 = vcombine.low %v1343_v47, %v1347_v57 }
 0x47f   :  { %8109 = vmatprep.subr.bf16.mxu1 %v11062_v11  ;;  %v1475_v43 = vld [vmem:[#allocation8 + $0x1578] sm:$0xff] }
 0x480   :  { %v1335_v5 = vld [vmem:[#allocation8 + $0x1118] sm:$0xff] }
 0x481   :  { %8069 = vmatpush2.bf16.msra.mxu0 %v10933_v55  ;;  %v1339_v24 = vld [vmem:[#allocation8 + $0x1138] sm:$0xff] }
 0x482   :  { %8110 = vmatpush2.bf16.msra.mxu1 %v11061_v29  ;;  %8070 = vmatprep.subr.bf16.mxu0 %v10926_v61  ;;  %v1463_v30 = vld [vmem:[#allocation8 + $0x1518] sm:$0xff]  ;;  %v11150_v53 = vcombine.high %v1335_v5, %v1339_v24  ;;  %v11149_v27 = vcombine.low %v1335_v5, %v1339_v24 }
 0x483   :  { %8111 = vmatprep.subr.bf16.mxu1 %v11054_v44  ;;  %v1467_v21 = vld [vmem:[#allocation8 + $0x1538] sm:$0xff] }
 0x484   :  { %v11278_v20 = vcombine.high %v1463_v30, %v1467_v21  ;;  %v1327_v55 = vld [vmem:[#allocation8 + $0x10d8] sm:$0xff]  ;;  %v11277_v19 = vcombine.low %v1463_v30, %v1467_v21 }
 0x485   :  { %8071 = vmatpush2.bf16.msra.mxu0 %v10925_v33  ;;  %v1331_v29 = vld [vmem:[#allocation8 + $0x10f8] sm:$0xff] }
 0x486   :  { %8112 = vmatpush2.bf16.msra.mxu1 %v11053_v36  ;;  %8122 = vmatprep.subr.bf16.mxu0 %v11174_v56  ;;  %v1455_v61 = vld [vmem:[#allocation8 + $0x14d8] sm:$0xff]  ;;  %v11142_v54 = vcombine.high %v1327_v55, %v1331_v29  ;;  %v11141_v59 = vcombine.low %v1327_v55, %v1331_v29 }
 0x487   :  { %8163 = vmatprep.subr.bf16.mxu1 %v11302_v42  ;;  %v1459_v44 = vld [vmem:[#allocation8 + $0x14f8] sm:$0xff] }
 0x488   :  { %v7828_v9 = vpop.f32.mrf.mxu0  ;;  %8073 = vmatmul.mubr.bf16.vlgmr.msra.gmra.mxu0 %v12853_v63  ;;  %v11270_v48 = vcombine.high %v1455_v61, %v1459_v44  ;;  %v1319_v33 = vld [vmem:[#allocation8 + $0x1098] sm:$0xff]  ;;  %v11269_v39 = vcombine.low %v1455_v61, %v1459_v44 }
 0x489   :  { %v7829_v32 = vadd.f32 %v7828_v9, %v12983_v7  ;;  %v7869_v35 = vpop.f32.mrf.mxu1  ;;  %8114 = vmatmul.mubr.bf16.vlgmr.msra.gmra.mxu1 %v12851_v62  ;;  %8123 = vmatpush1.bf16.msra.mxu0 %v11173_v45  ;;  %v11286_v7 = vcombine.high %v1471_v13, %v1475_v43  ;;  %v1323_v36 = vld [vmem:[#allocation8 + $0x10b8] sm:$0xff] }
 0x48a   :  { %8154 = vmatprep.mubr.bf16.mxu0 %v12855_v6  ;;  %8164 = vmatpush1.bf16.msra.mxu1 %v11301_v51  ;;  %v7830_v2 = vpop.f32.mrf.mxu0  ;;  %v1447_v56 = vld [vmem:[#allocation8 + $0x1498] sm:$0xff]  ;;  %v11134_v45 = vcombine.high %v1319_v33, %v1323_v36  ;;  %v11133_v57 = vcombine.low %v1319_v33, %v1323_v36 }
 0x48b   :  { %v12993_v26 = vadd.f32 %v7869_v35, %v7829_v32  ;;  %8195 = vmatprep.mubr.bf16.mxu1 %v12858_v10  ;;  %v7831_v63 = vadd.f32 %v7830_v2, %v12987_v0  ;;  %v7871_v41 = vpop.f32.mrf.mxu1  ;;  %8124 = vmatprep.subr.bf16.mxu0 %v11166_v52  ;;  %v11285_v10 = vcombine.low %v1471_v13, %v1475_v43  ;;  %v1451_v42 = vld [vmem:[#allocation8 + $0x14b8] sm:$0xff] }
 0x48c   :  { %v7832_v62 = vpop.f32.mrf.mxu0  ;;  %8165 = vmatprep.subr.bf16.mxu1 %v11294_v58  ;;  %v11262_v50 = vcombine.high %v1447_v56, %v1451_v42  ;;  %v1311_v8 = vld [vmem:[#allocation8 + $0x1058] sm:$0xff]  ;;  %v11261_v9 = vcombine.low %v1447_v56, %v1451_v42 }
 0x48d   :  { %v12997_v6 = vadd.f32 %v7871_v41, %v7831_v63  ;;  %v7873_v11 = vpop.f32.mrf.mxu1  ;;  %8125 = vmatpush1.bf16.msra.mxu0 %v11165_v1  ;;  %v1315_v51 = vld [vmem:[#allocation8 + $0x1078] sm:$0xff] }
 0x48e   :  { %8166 = vmatpush1.bf16.msra.mxu1 %v11293_v4  ;;  %v7833_v12 = vpop.f32.mrf.mxu0  ;;  %8126 = vmatprep.subr.bf16.mxu0 %v11158_v22  ;;  %v1439_v52 = vld [vmem:[#allocation8 + $0x1458] sm:$0xff]  ;;  %v11126_v58 = vcombine.high %v1311_v8, %v1315_v51  ;;  %v11125_v2 = vcombine.low %v1311_v8, %v1315_v51 }
 0x48f   :  { %v7874_v0 = vpop.f32.mrf.mxu1  ;;  %8167 = vmatprep.subr.bf16.mxu1 %v11286_v7  ;;  %v1443_v47 = vld [vmem:[#allocation8 + $0x1478] sm:$0xff] }
 0x490   :  { %v11254_v13 = vcombine.high %v1439_v52, %v1443_v47  ;;  %v1303_v43 = vld [vmem:[#allocation8 + $0x1018] sm:$0xff]  ;;  %v11253_v4 = vcombine.low %v1439_v52, %v1443_v47 }
 0x491   :  { %8127 = vmatpush1.bf16.msra.mxu0 %v11157_v28  ;;  %v1307_v32 = vld [vmem:[#allocation8 + $0x1038] sm:$0xff] }
 0x492   :  { %8168 = vmatpush1.bf16.msra.mxu1 %v11285_v10  ;;  %8128 = vmatprep.subr.bf16.mxu0 %v11150_v53  ;;  %v1431_v35 = vld [vmem:[#allocation8 + $0x1418] sm:$0xff]  ;;  %v11118_v22 = vcombine.high %v1303_v43, %v1307_v32  ;;  %v11117_v62 = vcombine.low %v1303_v43, %v1307_v32 }
 0x493   :  { %8169 = vmatprep.subr.bf16.mxu1 %v11278_v20  ;;  %v1435_v1 = vld [vmem:[#allocation8 + $0x1438] sm:$0xff] }
 0x494   :  { %v11246_v63 = vcombine.high %v1431_v35, %v1435_v1  ;;  %v1423_v41 = vld [vmem:[#allocation8 + $0x13d8] sm:$0xff]  ;;  %v11245_v30 = vcombine.low %v1431_v35, %v1435_v1 }
 0x495   :  { %8129 = vmatpush1.bf16.msra.mxu0 %v11149_v27  ;;  %v1427_v7 = vld [vmem:[#allocation8 + $0x13f8] sm:$0xff] }
 0x496   :  { %8170 = vmatpush1.bf16.msra.mxu1 %v11277_v19  ;;  %8130 = vmatprep.subr.bf16.mxu0 %v11142_v54  ;;  %v1551_v5 = vld [vmem:[#allocation8 + $0x17d8] sm:$0xff]  ;;  %v11238_v21 = vcombine.high %v1423_v41, %v1427_v7  ;;  %v11237_v0 = vcombine.low %v1423_v41, %v1427_v7 }
 0x497   :  { %8171 = vmatprep.subr.bf16.mxu1 %v11270_v48  ;;  %v1555_v24 = vld [vmem:[#allocation8 + $0x17f8] sm:$0xff] }
 0x498   :  { %v11366_v11 = vcombine.high %v1551_v5, %v1555_v24  ;;  %v1415_v28 = vld [vmem:[#allocation8 + $0x1398] sm:$0xff]  ;;  %v11365_v20 = vcombine.low %v1551_v5, %v1555_v24 }
 0x499   :  { %8131 = vmatpush1.bf16.msra.mxu0 %v11141_v59  ;;  %v1419_v12 = vld [vmem:[#allocation8 + $0x13b8] sm:$0xff] }
 0x49a   :  { %8172 = vmatpush1.bf16.msra.mxu1 %v11269_v39  ;;  %8132 = vmatprep.subr.bf16.mxu0 %v11134_v45  ;;  %v1543_v10 = vld [vmem:[#allocation8 + $0x1798] sm:$0xff]  ;;  %v11230_v55 = vcombine.high %v1415_v28, %v1419_v12  ;;  %v11229_v54 = vcombine.low %v1415_v28, %v1419_v12 }
 0x49b   :  { %8173 = vmatprep.subr.bf16.mxu1 %v11262_v50  ;;  %v1547_v53 = vld [vmem:[#allocation8 + $0x17b8] sm:$0xff] }
 0x49c   :  { %v11358_v29 = vcombine.high %v1543_v10, %v1547_v53  ;;  %v1407_v61 = vld [vmem:[#allocation8 + $0x1358] sm:$0xff]  ;;  %v11357_v48 = vcombine.low %v1543_v10, %v1547_v53 }
 0x49d   :  { %8133 = vmatpush1.bf16.msra.mxu0 %v11133_v57  ;;  %v1411_v44 = vld [vmem:[#allocation8 + $0x1378] sm:$0xff] }
 0x49e   :  { %8174 = vmatpush1.bf16.msra.mxu1 %v11261_v9  ;;  %8134 = vmatprep.subr.bf16.mxu0 %v11126_v58  ;;  %v1535_v27 = vld [vmem:[#allocation8 + $0x1758] sm:$0xff]  ;;  %v11222_v33 = vcombine.high %v1407_v61, %v1411_v44  ;;  %v11221_v45 = vcombine.low %v1407_v61, %v1411_v44 }
 0x49f   :  { %8175 = vmatprep.subr.bf16.mxu1 %v11254_v13  ;;  %v1539_v19 = vld [vmem:[#allocation8 + $0x1778] sm:$0xff] }
 0x4a0   :  { %v11350_v36 = vcombine.high %v1535_v27, %v1539_v19  ;;  %v1399_v56 = vld [vmem:[#allocation8 + $0x1318] sm:$0xff]  ;;  %v11349_v50 = vcombine.low %v1535_v27, %v1539_v19 }
 0x4a1   :  { %8135 = vmatpush1.bf16.msra.mxu0 %v11125_v2  ;;  %v1403_v42 = vld [vmem:[#allocation8 + $0x1338] sm:$0xff] }
 0x4a2   :  { %8176 = vmatpush1.bf16.msra.mxu1 %v11253_v4  ;;  %8136 = vmatprep.subr.bf16.mxu0 %v11118_v22  ;;  %v1527_v59 = vld [vmem:[#allocation8 + $0x1718] sm:$0xff]  ;;  %v11214_v8 = vcombine.high %v1399_v56, %v1403_v42  ;;  %v11213_v58 = vcombine.low %v1399_v56, %v1403_v42 }
 0x4a3   :  { %8177 = vmatprep.subr.bf16.mxu1 %v11246_v63  ;;  %v1531_v39 = vld [vmem:[#allocation8 + $0x1738] sm:$0xff] }
 0x4a4   :  { %v11342_v51 = vcombine.high %v1527_v59, %v1531_v39  ;;  %v1391_v52 = vld [vmem:[#allocation8 + $0x12d8] sm:$0xff]  ;;  %v11341_v13 = vcombine.low %v1527_v59, %v1531_v39 }
 0x4a5   :  { %8137 = vmatpush1.bf16.msra.mxu0 %v11117_v62  ;;  %v1395_v47 = vld [vmem:[#allocation8 + $0x12f8] sm:$0xff] }
 0x4a6   :  { %8178 = vmatpush1.bf16.msra.mxu1 %v11245_v30  ;;  %8138 = vmatprep.subr.bf16.mxu0 %v11238_v21  ;;  %v1519_v57 = vld [vmem:[#allocation8 + $0x16d8] sm:$0xff]  ;;  %v11206_v43 = vcombine.high %v1391_v52, %v1395_v47  ;;  %v11205_v22 = vcombine.low %v1391_v52, %v1395_v47 }
 0x4a7   :  { %8179 = vmatprep.subr.bf16.mxu1 %v11366_v11  ;;  %v1523_v9 = vld [vmem:[#allocation8 + $0x16f8] sm:$0xff] }
 0x4a8   :  { %v11334_v32 = vcombine.high %v1519_v57, %v1523_v9  ;;  %v1383_v35 = vld [vmem:[#allocation8 + $0x1298] sm:$0xff]  ;;  %v11333_v63 = vcombine.low %v1519_v57, %v1523_v9 }
 0x4a9   :  { %8139 = vmatpush2.bf16.msra.mxu0 %v11237_v0  ;;  %v1387_v1 = vld [vmem:[#allocation8 + $0x12b8] sm:$0xff] }
 0x4aa   :  { %8180 = vmatpush2.bf16.msra.mxu1 %v11365_v20  ;;  %8140 = vmatprep.subr.bf16.mxu0 %v11230_v55  ;;  %v1511_v2 = vld [vmem:[#allocation8 + $0x1698] sm:$0xff]  ;;  %v11198_v41 = vcombine.high %v1383_v35, %v1387_v1  ;;  %v11197_v21 = vcombine.low %v1383_v35, %v1387_v1 }
 0x4ab   :  { %8181 = vmatprep.subr.bf16.mxu1 %v11358_v29  ;;  %v1515_v4 = vld [vmem:[#allocation8 + $0x16b8] sm:$0xff] }
 0x4ac   :  { %v11326_v7 = vcombine.high %v1511_v2, %v1515_v4  ;;  %v1375_v5 = vld [vmem:[#allocation8 + $0x1258] sm:$0xff]  ;;  %v11325_v11 = vcombine.low %v1511_v2, %v1515_v4 }
 0x4ad   :  { %8141 = vmatpush2.bf16.msra.mxu0 %v11229_v54  ;;  %v1379_v24 = vld [vmem:[#allocation8 + $0x1278] sm:$0xff] }
 0x4ae   :  { %8182 = vmatpush2.bf16.msra.mxu1 %v11357_v48  ;;  %8142 = vmatprep.subr.bf16.mxu0 %v11222_v33  ;;  %v1503_v62 = vld [vmem:[#allocation8 + $0x1658] sm:$0xff]  ;;  %v11190_v28 = vcombine.high %v1375_v5, %v1379_v24  ;;  %v11189_v55 = vcombine.low %v1375_v5, %v1379_v24 }
 0x4af   :  { %8183 = vmatprep.subr.bf16.mxu1 %v11350_v36  ;;  %v1507_v30 = vld [vmem:[#allocation8 + $0x1678] sm:$0xff] }
 0x4b0   :  { %v11318_v12 = vcombine.high %v1503_v62, %v1507_v30  ;;  %v1367_v10 = vld [vmem:[#allocation8 + $0x1218] sm:$0xff]  ;;  %v11317_v29 = vcombine.low %v1503_v62, %v1507_v30 }
 0x4b1   :  { %8143 = vmatpush2.bf16.msra.mxu0 %v11221_v45  ;;  %v1371_v53 = vld [vmem:[#allocation8 + $0x1238] sm:$0xff] }
 0x4b2   :  { %8184 = vmatpush2.bf16.msra.mxu1 %v11349_v50  ;;  %8144 = vmatprep.subr.bf16.mxu0 %v11214_v8  ;;  %v1495_v0 = vld [vmem:[#allocation8 + $0x1618] sm:$0xff]  ;;  %v11182_v61 = vcombine.high %v1367_v10, %v1371_v53  ;;  %v11181_v33 = vcombine.low %v1367_v10, %v1371_v53 }
 0x4b3   :  { %8185 = vmatprep.subr.bf16.mxu1 %v11342_v51  ;;  %v1499_v20 = vld [vmem:[#allocation8 + $0x1638] sm:$0xff] }
 0x4b4   :  { %v11310_v44 = vcombine.high %v1495_v0, %v1499_v20  ;;  %v1615_v27 = vld [vmem:[#allocation8 + $0x19d8] sm:$0xff]  ;;  %v11309_v36 = vcombine.low %v1495_v0, %v1499_v20 }
 0x4b5   :  { %8145 = vmatpush2.bf16.msra.mxu0 %v11213_v58  ;;  %v1619_v19 = vld [vmem:[#allocation8 + $0x19f8] sm:$0xff] }
 0x4b6   :  { %8186 = vmatpush2.bf16.msra.mxu1 %v11341_v13  ;;  %8146 = vmatprep.subr.bf16.mxu0 %v11206_v43  ;;  %v1743_v54 = vld [vmem:[#allocation8 + $0x1dd8] sm:$0xff]  ;;  %v11430_v56 = vcombine.high %v1615_v27, %v1619_v19  ;;  %v11429_v45 = vcombine.low %v1615_v27, %v1619_v19 }
 0x4b7   :  { %8187 = vmatprep.subr.bf16.mxu1 %v11334_v32  ;;  %v1747_v48 = vld [vmem:[#allocation8 + $0x1df8] sm:$0xff] }
 0x4b8   :  { %v11558_v42 = vcombine.high %v1743_v54, %v1747_v48  ;;  %v1607_v59 = vld [vmem:[#allocation8 + $0x1998] sm:$0xff]  ;;  %v11557_v51 = vcombine.low %v1743_v54, %v1747_v48 }
 0x4b9   :  { %8147 = vmatpush2.bf16.msra.mxu0 %v11205_v22  ;;  %v1611_v39 = vld [vmem:[#allocation8 + $0x19b8] sm:$0xff] }
 0x4ba   :  { %8188 = vmatpush2.bf16.msra.mxu1 %v11333_v63  ;;  %8148 = vmatprep.subr.bf16.mxu0 %v11198_v41  ;;  %v1735_v50 = vld [vmem:[#allocation8 + $0x1d98] sm:$0xff]  ;;  %v11422_v52 = vcombine.high %v1607_v59, %v1611_v39  ;;  %v11421_v1 = vcombine.low %v1607_v59, %v1611_v39 }
 0x4bb   :  { %8189 = vmatprep.subr.bf16.mxu1 %v11326_v7  ;;  %v1739_v8 = vld [vmem:[#allocation8 + $0x1db8] sm:$0xff] }
 0x4bc   :  { %v1599_v47 = vld [vmem:[#allocation8 + $0x1958] sm:$0xff]  ;;  %v11550_v58 = vcombine.high %v1735_v50, %v1739_v8  ;;  %v11549_v4 = vcombine.low %v1735_v50, %v1739_v8 }
 0x4bd   :  { %8149 = vmatpush2.bf16.msra.mxu0 %v11197_v21  ;;  %v1603_v57 = vld [vmem:[#allocation8 + $0x1978] sm:$0xff] }
 0x4be   :  { %8190 = vmatpush2.bf16.msra.mxu1 %v11325_v11  ;;  %8150 = vmatprep.subr.bf16.mxu0 %v11190_v28  ;;  %v1727_v13 = vld [vmem:[#allocation8 + $0x1d58] sm:$0xff]  ;;  %v11414_v22 = vcombine.high %v1599_v47, %v1603_v57  ;;  %v11413_v21 = vcombine.low %v1599_v47, %v1603_v57 }
 0x4bf   :  { %8191 = vmatprep.subr.bf16.mxu1 %v11318_v12  ;;  %v1731_v43 = vld [vmem:[#allocation8 + $0x1d78] sm:$0xff] }
 0x4c0   :  { %v1591_v7 = vld [vmem:[#allocation8 + $0x1918] sm:$0xff] }
 0x4c1   :  { %8151 = vmatpush2.bf16.msra.mxu0 %v11189_v55  ;;  %v1595_v5 = vld [vmem:[#allocation8 + $0x1938] sm:$0xff] }
 0x4c2   :  { %8192 = vmatpush2.bf16.msra.mxu1 %v11317_v29  ;;  %8152 = vmatprep.subr.bf16.mxu0 %v11182_v61  ;;  %v1719_v24 = vld [vmem:[#allocation8 + $0x1d18] sm:$0xff]  ;;  %v11406_v28 = vcombine.high %v1591_v7, %v1595_v5  ;;  %v11405_v55 = vcombine.low %v1591_v7, %v1595_v5 }
 0x4c3   :  { %8193 = vmatprep.subr.bf16.mxu1 %v11310_v44  ;;  %v1723_v62 = vld [vmem:[#allocation8 + $0x1d38] sm:$0xff] }
 0x4c4   :  { %v11534_v12 = vcombine.high %v1719_v24, %v1723_v62  ;;  %v1583_v10 = vld [vmem:[#allocation8 + $0x18d8] sm:$0xff]  ;;  %v11533_v29 = vcombine.low %v1719_v24, %v1723_v62 }
 0x4c5   :  { %8153 = vmatpush2.bf16.msra.mxu0 %v11181_v33  ;;  %v1587_v53 = vld [vmem:[#allocation8 + $0x18f8] sm:$0xff] }
 0x4c6   :  { %8194 = vmatpush2.bf16.msra.mxu1 %v11309_v36  ;;  %8204 = vmatprep.subr.bf16.mxu0 %v11430_v56  ;;  %v1711_v0 = vld [vmem:[#allocation8 + $0x1cd8] sm:$0xff]  ;;  %v11398_v61 = vcombine.high %v1583_v10, %v1587_v53  ;;  %v11397_v33 = vcombine.low %v1583_v10, %v1587_v53 }
 0x4c7   :  { %8245 = vmatprep.subr.bf16.mxu1 %v11558_v42  ;;  %v1715_v20 = vld [vmem:[#allocation8 + $0x1cf8] sm:$0xff] }
 0x4c8   :  { %v7910_v9 = vpop.f32.mrf.mxu0  ;;  %8155 = vmatmul.mubr.bf16.vlgmr.msra.gmra.mxu0 %v12873_v25  ;;  %v11526_v44 = vcombine.high %v1711_v0, %v1715_v20  ;;  %v1575_v27 = vld [vmem:[#allocation8 + $0x1898] sm:$0xff]  ;;  %v11525_v36 = vcombine.low %v1711_v0, %v1715_v20 }
 0x4c9   :  { %v7911_v32 = vadd.f32 %v7910_v9, %v12993_v26  ;;  %v7951_v35 = vpop.f32.mrf.mxu1  ;;  %8196 = vmatmul.mubr.bf16.vlgmr.msra.gmra.mxu1 %v12871_v15  ;;  %8205 = vmatpush1.bf16.msra.mxu0 %v11429_v45  ;;  %v11542_v26 = vcombine.high %v1727_v13, %v1731_v43  ;;  %v1579_v19 = vld [vmem:[#allocation8 + $0x18b8] sm:$0xff] }
 0x4ca   :  { %8236 = vmatprep.mubr.bf16.mxu0 %v12875_v31  ;;  %8246 = vmatpush1.bf16.msra.mxu1 %v11557_v51  ;;  %v7912_v2 = vpop.f32.mrf.mxu0  ;;  %v1703_v54 = vld [vmem:[#allocation8 + $0x1c98] sm:$0xff]  ;;  %v11390_v56 = vcombine.high %v1575_v27, %v1579_v19  ;;  %v11389_v8 = vcombine.low %v1575_v27, %v1579_v19 }
 0x4cb   :  { %v13003_v63 = vadd.f32 %v7951_v35, %v7911_v32  ;;  %8277 = vmatprep.mubr.bf16.mxu1 %v12877_v37  ;;  %v7913_v25 = vadd.f32 %v7912_v2, %v12997_v6  ;;  %v7953_v41 = vpop.f32.mrf.mxu1  ;;  %8206 = vmatprep.subr.bf16.mxu0 %v11422_v52  ;;  %v11541_v37 = vcombine.low %v1727_v13, %v1731_v43  ;;  %v1707_v48 = vld [vmem:[#allocation8 + $0x1cb8] sm:$0xff] }
 0x4cc   :  { %v7914_v15 = vpop.f32.mrf.mxu0  ;;  %8247 = vmatprep.subr.bf16.mxu1 %v11550_v58  ;;  %v11518_v42 = vcombine.high %v1703_v54, %v1707_v48  ;;  %v1567_v59 = vld [vmem:[#allocation8 + $0x1858] sm:$0xff]  ;;  %v11517_v51 = vcombine.low %v1703_v54, %v1707_v48 }
 0x4cd   :  { %v13007_v31 = vadd.f32 %v7953_v41, %v7913_v25  ;;  %v7955_v30 = vpop.f32.mrf.mxu1  ;;  %8207 = vmatpush1.bf16.msra.mxu0 %v11421_v1  ;;  %v1571_v39 = vld [vmem:[#allocation8 + $0x1878] sm:$0xff] }
 0x4ce   :  { %8248 = vmatpush1.bf16.msra.mxu1 %v11549_v4  ;;  %v7915_v11 = vpop.f32.mrf.mxu0  ;;  %8208 = vmatprep.subr.bf16.mxu0 %v11414_v22  ;;  %v1695_v45 = vld [vmem:[#allocation8 + $0x1c58] sm:$0xff]  ;;  %v11382_v52 = vcombine.high %v1567_v59, %v1571_v39  ;;  %v11381_v43 = vcombine.low %v1567_v59, %v1571_v39 }
 0x4cf   :  { %v7956_v6 = vpop.f32.mrf.mxu1  ;;  %8249 = vmatprep.subr.bf16.mxu1 %v11542_v26  ;;  %v1699_v50 = vld [vmem:[#allocation8 + $0x1c78] sm:$0xff] }
 0x4d0   :  { %v11510_v47 = vcombine.high %v1695_v45, %v1699_v50  ;;  %v1559_v57 = vld [vmem:[#allocation8 + $0x1818] sm:$0xff]  ;;  %v11509_v32 = vcombine.low %v1695_v45, %v1699_v50 }
 0x4d1   :  { %8209 = vmatpush1.bf16.msra.mxu0 %v11413_v21  ;;  %v1563_v9 = vld [vmem:[#allocation8 + $0x1838] sm:$0xff] }
 0x4d2   :  { %8250 = vmatpush1.bf16.msra.mxu1 %v11541_v37  ;;  %8210 = vmatprep.subr.bf16.mxu0 %v11406_v28  ;;  %v1687_v58 = vld [vmem:[#allocation8 + $0x1c18] sm:$0xff]  ;;  %v11374_v35 = vcombine.high %v1559_v57, %v1563_v9  ;;  %v11373_v41 = vcombine.low %v1559_v57, %v1563_v9 }
 0x4d3   :  { %8251 = vmatprep.subr.bf16.mxu1 %v11534_v12  ;;  %v1691_v13 = vld [vmem:[#allocation8 + $0x1c38] sm:$0xff] }
 0x4d4   :  { %v11502_v1 = vcombine.high %v1687_v58, %v1691_v13  ;;  %v1679_v2 = vld [vmem:[#allocation8 + $0x1bd8] sm:$0xff]  ;;  %v11501_v26 = vcombine.low %v1687_v58, %v1691_v13 }
 0x4d5   :  { %8211 = vmatpush1.bf16.msra.mxu0 %v11405_v55  ;;  %v1683_v4 = vld [vmem:[#allocation8 + $0x1bf8] sm:$0xff] }
 0x4d6   :  { %8252 = vmatpush1.bf16.msra.mxu1 %v11533_v29  ;;  %8212 = vmatprep.subr.bf16.mxu0 %v11398_v61  ;;  %v1807_v22 = vld [vmem:[#allocation8 + $0x1fd8] sm:$0xff]  ;;  %v11494_v7 = vcombine.high %v1679_v2, %v1683_v4  ;;  %v11493_v21 = vcombine.low %v1679_v2, %v1683_v4 }
 0x4d7   :  { %8253 = vmatprep.subr.bf16.mxu1 %v11526_v44  ;;  %v1811_v25 = vld [vmem:[#allocation8 + $0x1ff8] sm:$0xff] }
 0x4d8   :  { %v11622_v5 = vcombine.high %v1807_v22, %v1811_v25  ;;  %v1671_v15 = vld [vmem:[#allocation8 + $0x1b98] sm:$0xff]  ;;  %v11621_v11 = vcombine.low %v1807_v22, %v1811_v25 }
 0x4d9   :  { %8213 = vmatpush1.bf16.msra.mxu0 %v11397_v33  ;;  %v1675_v24 = vld [vmem:[#allocation8 + $0x1bb8] sm:$0xff] }
 0x4da   :  { %8254 = vmatpush1.bf16.msra.mxu1 %v11525_v36  ;;  %8214 = vmatprep.subr.bf16.mxu0 %v11390_v56  ;;  %v1799_v62 = vld [vmem:[#allocation8 + $0x1f98] sm:$0xff]  ;;  %v11486_v37 = vcombine.high %v1671_v15, %v1675_v24  ;;  %v11485_v0 = vcombine.low %v1671_v15, %v1675_v24 }
 0x4db   :  { %8255 = vmatprep.subr.bf16.mxu1 %v11518_v42  ;;  %v1803_v30 = vld [vmem:[#allocation8 + $0x1fb8] sm:$0xff] }
 0x4dc   :  { %v11614_v28 = vcombine.high %v1799_v62, %v1803_v30  ;;  %v1663_v6 = vld [vmem:[#allocation8 + $0x1b58] sm:$0xff]  ;;  %v11613_v20 = vcombine.low %v1799_v62, %v1803_v30 }
 0x4dd   :  { %8215 = vmatpush1.bf16.msra.mxu0 %v11389_v8  ;;  %v1667_v12 = vld [vmem:[#allocation8 + $0x1b78] sm:$0xff] }
 0x4de   :  { %8256 = vmatpush1.bf16.msra.mxu1 %v11517_v51  ;;  %8216 = vmatprep.subr.bf16.mxu0 %v11382_v52  ;;  %v1791_v10 = vld [vmem:[#allocation8 + $0x1f58] sm:$0xff]  ;;  %v11478_v55 = vcombine.high %v1663_v6, %v1667_v12  ;;  %v11477_v54 = vcombine.low %v1663_v6, %v1667_v12 }
 0x4df   :  { %8257 = vmatprep.subr.bf16.mxu1 %v11510_v47  ;;  %v1795_v53 = vld [vmem:[#allocation8 + $0x1f78] sm:$0xff] }
 0x4e0   :  { %v11606_v29 = vcombine.high %v1791_v10, %v1795_v53  ;;  %v1655_v61 = vld [vmem:[#allocation8 + $0x1b18] sm:$0xff]  ;;  %v11605_v48 = vcombine.low %v1791_v10, %v1795_v53  ;;  %v8287_v10 = vmax.f32 %v12927_v23, 0.0  ;;  %v8289_v53 = vmax.f32 %v12967_v40, 0.0 }
 0x4e1   :  { %8217 = vmatpush1.bf16.msra.mxu0 %v11381_v43  ;;  %v1659_v44 = vld [vmem:[#allocation8 + $0x1b38] sm:$0xff] }
 0x4e2   :  { %8258 = vmatpush1.bf16.msra.mxu1 %v11509_v32  ;;  %8218 = vmatprep.subr.bf16.mxu0 %v11374_v35  ;;  %v1783_v27 = vld [vmem:[#allocation8 + $0x1f18] sm:$0xff]  ;;  %v11470_v33 = vcombine.high %v1655_v61, %v1659_v44  ;;  %v11469_v45 = vcombine.low %v1655_v61, %v1659_v44 }
 0x4e3   :  { %8259 = vmatprep.subr.bf16.mxu1 %v11502_v1  ;;  %v1787_v19 = vld [vmem:[#allocation8 + $0x1f38] sm:$0xff] }
 0x4e4   :  { %v11598_v36 = vcombine.high %v1783_v27, %v1787_v19  ;;  %v1647_v56 = vld [vmem:[#allocation8 + $0x1ad8] sm:$0xff]  ;;  %v11597_v50 = vcombine.low %v1783_v27, %v1787_v19  ;;  %v13013_v27 = vpack.c.bf16 %v8287_v10, %v8287_v10 }
 0x4e5   :  { %8219 = vmatpush1.bf16.msra.mxu0 %v11373_v41  ;;  %v1651_v42 = vld [vmem:[#allocation8 + $0x1af8] sm:$0xff] }
 0x4e6   :  { %8260 = vmatpush1.bf16.msra.mxu1 %v11501_v26  ;;  %8220 = vmatprep.subr.bf16.mxu0 %v11494_v7  ;;  %v1775_v59 = vld [vmem:[#allocation8 + $0x1ed8] sm:$0xff]  ;;  %v11462_v8 = vcombine.high %v1647_v56, %v1651_v42  ;;  %v11461_v58 = vcombine.low %v1647_v56, %v1651_v42 }
 0x4e7   :  { %8261 = vmatprep.subr.bf16.mxu1 %v11622_v5  ;;  %v1779_v39 = vld [vmem:[#allocation8 + $0x1ef8] sm:$0xff] }
 0x4e8   :  { %v11590_v51 = vcombine.high %v1775_v59, %v1779_v39  ;;  %v1639_v52 = vld [vmem:[#allocation8 + $0x1a98] sm:$0xff]  ;;  %v11589_v13 = vcombine.low %v1775_v59, %v1779_v39 }
 0x4e9   :  { %8221 = vmatpush2.bf16.msra.mxu0 %v11493_v21  ;;  %v1643_v47 = vld [vmem:[#allocation8 + $0x1ab8] sm:$0xff] }
 0x4ea   :  { %8262 = vmatpush2.bf16.msra.mxu1 %v11621_v11  ;;  %8222 = vmatprep.subr.bf16.mxu0 %v11486_v37  ;;  %v1767_v57 = vld [vmem:[#allocation8 + $0x1e98] sm:$0xff]  ;;  %v11454_v43 = vcombine.high %v1639_v52, %v1643_v47  ;;  %v11453_v22 = vcombine.low %v1639_v52, %v1643_v47 }
 0x4eb   :  { %8263 = vmatprep.subr.bf16.mxu1 %v11614_v28  ;;  %v1771_v9 = vld [vmem:[#allocation8 + $0x1eb8] sm:$0xff] }
 0x4ec   :  { %v11582_v32 = vcombine.high %v1767_v57, %v1771_v9  ;;  %v1631_v35 = vld [vmem:[#allocation8 + $0x1a58] sm:$0xff]  ;;  %v11581_v25 = vcombine.low %v1767_v57, %v1771_v9 }
 0x4ed   :  { %8223 = vmatpush2.bf16.msra.mxu0 %v11485_v0  ;;  %v1635_v1 = vld [vmem:[#allocation8 + $0x1a78] sm:$0xff]  ;;  %v12392_v0 = vld [vmem:[#allocation10] sm:$0xff] }
 0x4ee   :  { %8264 = vmatpush2.bf16.msra.mxu1 %v11613_v20  ;;  %8224 = vmatprep.subr.bf16.mxu0 %v11478_v55  ;;  %v1759_v2 = vld [vmem:[#allocation8 + $0x1e58] sm:$0xff]  ;;  %v11446_v41 = vcombine.high %v1631_v35, %v1635_v1  ;;  %v11445_v62 = vcombine.low %v1631_v35, %v1635_v1  ;;  %v1841_v20 = vrot.slane %v12392_v0, %v12819_v38 }
 0x4ef   :  { %8265 = vmatprep.subr.bf16.mxu1 %v11606_v29  ;;  %v1763_v4 = vld [vmem:[#allocation8 + $0x1e78] sm:$0xff]  ;;  %v1845_v61 = vrot.slane %v12392_v0, %v12773_v34 }
 0x4f0   :  { %v11574_v26 = vcombine.high %v1759_v2, %v1763_v4  ;;  %v1623_v7 = vld [vmem:[#allocation8 + $0x1a18] sm:$0xff]  ;;  %v11573_v30 = vcombine.low %v1759_v2, %v1763_v4 }
 0x4f1   :  { %8225 = vmatpush2.bf16.msra.mxu0 %v11477_v54  ;;  %v1627_v5 = vld [vmem:[#allocation8 + $0x1a38] sm:$0xff]  ;;  %v13016_v54 = vpack.c.bf16 %v8289_v53, %v8289_v53 }
 0x4f2   :  { %8266 = vmatpush2.bf16.msra.mxu1 %v11605_v48  ;;  %8226 = vmatprep.subr.bf16.mxu0 %v11470_v33  ;;  %v1751_v15 = vld [vmem:[#allocation8 + $0x1e18] sm:$0xff]  ;;  %v11438_v21 = vcombine.high %v1623_v7, %v1627_v5  ;;  %v11437_v37 = vcombine.low %v1623_v7, %v1627_v5 }
 0x4f3   :  { %8267 = vmatprep.subr.bf16.mxu1 %v11598_v36  ;;  %v1755_v24 = vld [vmem:[#allocation8 + $0x1e38] sm:$0xff] }
 0x4f4   :  { %v11566_v11 = vcombine.high %v1751_v15, %v1755_v24  ;;  %v11565_v28 = vcombine.low %v1751_v15, %v1755_v24  ;;  %v11976_v6 = vld [vmem:[#allocation11 + $0xe4] ss:$16 sps:$4 sm:$0xff]   ;;  %v11974_v55 = vld [vmem:[#allocation11 + $0xe0] ss:$16 sps:$4 sm:$0xff]  }
 0x4f5   :  { %8227 = vmatpush2.bf16.msra.mxu0 %v11469_v45  ;;  %v11979_v12 = vld [vmem:[#allocation11 + $0x2e4] ss:$16 sps:$4 sm:$0xff]   ;;  %v11977_v29 = vld [vmem:[#allocation11 + $0x2e0] ss:$16 sps:$4 sm:$0xff]  }
 0x4f6   :  { %8268 = vmatpush2.bf16.msra.mxu1 %v11597_v50  ;;  %8228 = vmatprep.subr.bf16.mxu0 %v11462_v8  ;;  %v11982_v44 = vld [vmem:[#allocation11 + $0xc4] ss:$16 sps:$4 sm:$0xff]   ;;  %v11980_v38 = vld [vmem:[#allocation11 + $0xc0] ss:$16 sps:$4 sm:$0xff]  }
 0x4f7   :  { %8269 = vmatprep.subr.bf16.mxu1 %v11590_v51  ;;  %v11985_v23 = vld [vmem:[#allocation11 + $0x2c4] ss:$16 sps:$4 sm:$0xff]   ;;  %v11983_v34 = vld [vmem:[#allocation11 + $0x2c0] ss:$16 sps:$4 sm:$0xff]  }
 0x4f8   :  { %v11988_v36 = vld [vmem:[#allocation11 + $0xa4] ss:$16 sps:$4 sm:$0xff]   ;;  %v11986_v50 = vld [vmem:[#allocation11 + $0xa0] ss:$16 sps:$4 sm:$0xff]  }
 0x4f9   :  { %8229 = vmatpush2.bf16.msra.mxu0 %v11461_v58  ;;  %v11991_v59 = vld [vmem:[#allocation11 + $0x2a4] ss:$16 sps:$4 sm:$0xff]   ;;  %v11989_v51 = vld [vmem:[#allocation11 + $0x2a0] ss:$16 sps:$4 sm:$0xff]  }
 0x4fa   :  { %8270 = vmatpush2.bf16.msra.mxu1 %v11589_v13  ;;  %8230 = vmatprep.subr.bf16.mxu0 %v11454_v43  ;;  %v11994_v52 = vld [vmem:[#allocation11 + $0x84] ss:$16 sps:$4 sm:$0xff]   ;;  %v11992_v9 = vld [vmem:[#allocation11 + $0x80] ss:$16 sps:$4 sm:$0xff]  }
 0x4fb   :  { %8271 = vmatprep.subr.bf16.mxu1 %v11582_v32  ;;  %v11997_v57 = vld [vmem:[#allocation11 + $0x284] ss:$16 sps:$4 sm:$0xff]   ;;  %v11995_v58 = vld [vmem:[#allocation11 + $0x280] ss:$16 sps:$4 sm:$0xff]  }
 0x4fc   :  { %v12000_v13 = vld [vmem:[#allocation11 + $0x64] ss:$16 sps:$4 sm:$0xff]   ;;  %v11998_v32 = vld [vmem:[#allocation11 + $0x60] ss:$16 sps:$4 sm:$0xff]  }
 0x4fd   :  { %8231 = vmatpush2.bf16.msra.mxu0 %v11453_v22  ;;  %v12003_v43 = vld [vmem:[#allocation11 + $0x264] ss:$16 sps:$4 sm:$0xff]   ;;  %v12001_v35 = vld [vmem:[#allocation11 + $0x260] ss:$16 sps:$4 sm:$0xff]  }
 0x4fe   :  { %8272 = vmatpush2.bf16.msra.mxu1 %v11581_v25  ;;  %8232 = vmatprep.subr.bf16.mxu0 %v11446_v41  ;;  %v12006_v1 = vld [vmem:[#allocation11 + $0x44] ss:$16 sps:$4 sm:$0xff]   ;;  %v12004_v4 = vld [vmem:[#allocation11 + $0x40] ss:$16 sps:$4 sm:$0xff]  }
 0x4ff   :  { %8273 = vmatprep.subr.bf16.mxu1 %v11574_v26  ;;  %v12009_v2 = vld [vmem:[#allocation11 + $0x244] ss:$16 sps:$4 sm:$0xff]   ;;  %v12007_v22 = vld [vmem:[#allocation11 + $0x240] ss:$16 sps:$4 sm:$0xff]  }
 0x500   :  { %v12012_v25 = vld [vmem:[#allocation11 + $0x24] ss:$16 sps:$4 sm:$0xff]   ;;  %v12010_v26 = vld [vmem:[#allocation11 + $0x20] ss:$16 sps:$4 sm:$0xff]  }
 0x501   :  { %8233 = vmatpush2.bf16.msra.mxu0 %v11445_v62  ;;  %v12015_v41 = vld [vmem:[#allocation11 + $0x224] ss:$16 sps:$4 sm:$0xff]   ;;  %v12013_v7 = vld [vmem:[#allocation11 + $0x220] ss:$16 sps:$4 sm:$0xff]  }
 0x502   :  { %8274 = vmatpush2.bf16.msra.mxu1 %v11573_v30  ;;  %8234 = vmatprep.subr.bf16.mxu0 %v11438_v21  ;;  %v12018_v5 = vld [vmem:[#allocation11 + $0x4] ss:$16 sps:$4 sm:$0xff]   ;;  %v12016_v24 = vld [vmem:[#allocation11] ss:$16 sps:$4 sm:$0xff]  }
 0x503   :  { %8275 = vmatprep.subr.bf16.mxu1 %v11566_v11  ;;  %v12021_v15 = vld [vmem:[#allocation11 + $0x204] ss:$16 sps:$4 sm:$0xff]   ;;  %v12019_v62 = vld [vmem:[#allocation11 + $0x200] ss:$16 sps:$4 sm:$0xff]  }
 0x504   :  { %v12024_v30 = vld [vmem:[#allocation11 + $0x1e4] ss:$16 sps:$4 sm:$0xff]   ;;  %v12022_v11 = vld [vmem:[#allocation11 + $0x1e0] ss:$16 sps:$4 sm:$0xff]  }
 0x505   :  { %8235 = vmatpush2.bf16.msra.mxu0 %v11437_v37  ;;  %v12027_v21 = vld [vmem:[#allocation11 + $0x3e4] ss:$16 sps:$4 sm:$0xff]   ;;  %v12025_v37 = vld [vmem:[#allocation11 + $0x3e0] ss:$16 sps:$4 sm:$0xff]  }
 0x506   :  { %8276 = vmatpush2.bf16.msra.mxu1 %v11565_v28  ;;  %9860 = vmatprep.subr.bf16.mxu0 %v11976_v6  ;;  %v12030_v28 = vld [vmem:[#allocation11 + $0x1c4] ss:$16 sps:$4 sm:$0xff]   ;;  %v12031_v10 = vld [vmem:[#allocation11 + $0x3c0] ss:$16 sps:$4 sm:$0xff]  }
 0x507   :  { %9901 = vmatprep.subr.bf16.mxu1 %v11979_v12  ;;  %v12033_v6 = vld [vmem:[#allocation11 + $0x3c4] ss:$16 sps:$4 sm:$0xff]   ;;  %v12028_v12 = vld [vmem:[#allocation11 + $0x1c0] ss:$16 sps:$4 sm:$0xff]  }
 0x508   :  { %v7992_v19 = vpop.f32.mrf.mxu0  ;;  %8237 = vmatmul.mubr.bf16.vlgmr.msra.gmra.mxu0 %v12886_v46  ;;  %v12036_v53 = vld [vmem:[#allocation11 + $0x1a4] ss:$16 sps:$4 sm:$0xff]  }
 0x509   :  { %v7993_v40 = vadd.f32 %v7992_v19, %v1841_v20  ;;  %v8033_v48 = vpop.f32.mrf.mxu1  ;;  %8278 = vmatmul.mubr.bf16.vlgmr.msra.gmra.mxu1 %v12888_v49  ;;  %9861 = vmatpush1.bf16.msra.mxu0 %v11974_v55  ;;  %v12039_v0 = vld [vmem:[#allocation11 + $0x3a4] ss:$16 sps:$4 sm:$0xff]   ;;  %v12034_v20 = vld [vmem:[#allocation11 + $0x1a0] ss:$16 sps:$4 sm:$0xff]  }
 0x50a   :  { %9892 = vmatprep.mubr.bf16.mxu0 %v13013_v27  ;;  %9902 = vmatpush1.bf16.msra.mxu1 %v11977_v29  ;;  %v7994_v33 = vpop.f32.mrf.mxu0  ;;  %v12037_v55 = vld [vmem:[#allocation11 + $0x3a0] ss:$16 sps:$4 sm:$0xff]   ;;  %v12042_v29 = vld [vmem:[#allocation11 + $0x184] ss:$16 sps:$4 sm:$0xff]  }
 0x50b   :  { %v13020_v56 = vadd.f32 %v8033_v48, %v7993_v40  ;;  %9933 = vmatprep.mubr.bf16.mxu1 %v13016_v54  ;;  %v7995_v46 = vadd.f32 %v7994_v33, %v1845_v61  ;;  %v8035_v42 = vpop.f32.mrf.mxu1  ;;  %9862 = vmatprep.subr.bf16.mxu0 %v11982_v44  ;;  %v12045_v61 = vld [vmem:[#allocation11 + $0x384] ss:$16 sps:$4 sm:$0xff]   ;;  %v12040_v44 = vld [vmem:[#allocation11 + $0x180] ss:$16 sps:$4 sm:$0xff]  }
 0x50c   :  { %v7996_v39 = vpop.f32.mrf.mxu0  ;;  %9903 = vmatprep.subr.bf16.mxu1 %v11985_v23  ;;  %v12043_v19 = vld [vmem:[#allocation11 + $0x380] ss:$16 sps:$4 sm:$0xff]   ;;  %v12048_v23 = vld [vmem:[#allocation11 + $0x164] ss:$16 sps:$4 sm:$0xff]  }
 0x50d   :  { %v13023_v45 = vadd.f32 %v8035_v42, %v7995_v46  ;;  %v8037_v49 = vpop.f32.mrf.mxu1  ;;  %9863 = vmatpush1.bf16.msra.mxu0 %v11980_v38  ;;  %v12051_v40 = vld [vmem:[#allocation11 + $0x364] ss:$16 sps:$4 sm:$0xff]   ;;  %v12046_v48 = vld [vmem:[#allocation11 + $0x160] ss:$16 sps:$4 sm:$0xff]  }
 0x50e   :  { %9904 = vmatpush1.bf16.msra.mxu1 %v11983_v34  ;;  %v7997_v8 = vpop.f32.mrf.mxu0  ;;  %9864 = vmatprep.subr.bf16.mxu0 %v11988_v36  ;;  %v12049_v38 = vld [vmem:[#allocation11 + $0x360] ss:$16 sps:$4 sm:$0xff]   ;;  %v12054_v33 = vld [vmem:[#allocation11 + $0x144] ss:$16 sps:$4 sm:$0xff]  }
 0x50f   :  { %v8038_v47 = vpop.f32.mrf.mxu1  ;;  %9905 = vmatprep.subr.bf16.mxu1 %v11991_v59  ;;  %v12057_v34 = vld [vmem:[#allocation11 + $0x344] ss:$16 sps:$4 sm:$0xff]   ;;  %v12052_v36 = vld [vmem:[#allocation11 + $0x140] ss:$16 sps:$4 sm:$0xff]  }
 0x510   :  { %v12055_v46 = vld [vmem:[#allocation11 + $0x340] ss:$16 sps:$4 sm:$0xff]   ;;  %v12060_v42 = vld [vmem:[#allocation11 + $0x124] ss:$16 sps:$4 sm:$0xff]  }
 0x511   :  { %9865 = vmatpush1.bf16.msra.mxu0 %v11986_v50  ;;  %v12063_v59 = vld [vmem:[#allocation11 + $0x324] ss:$16 sps:$4 sm:$0xff]   ;;  %v12058_v39 = vld [vmem:[#allocation11 + $0x120] ss:$16 sps:$4 sm:$0xff]  }
 0x512   :  { %9906 = vmatpush1.bf16.msra.mxu1 %v11989_v51  ;;  %9866 = vmatprep.subr.bf16.mxu0 %v11994_v52  ;;  %v12061_v49 = vld [vmem:[#allocation11 + $0x320] ss:$16 sps:$4 sm:$0xff]   ;;  %v12066_v50 = vld [vmem:[#allocation11 + $0x104] ss:$16 sps:$4 sm:$0xff]   ;;  %v8286_v52 = vmax.f32 %v12923_v3, 0.0 }
 0x513   :  { %9907 = vmatprep.subr.bf16.mxu1 %v11997_v57  ;;  %v12069_v8 = vld [vmem:[#allocation11 + $0x304] ss:$16 sps:$4 sm:$0xff]   ;;  %v12064_v51 = vld [vmem:[#allocation11 + $0x100] ss:$16 sps:$4 sm:$0xff]  }
 0x514   :  { %v12067_v47 = vld [vmem:[#allocation11 + $0x300] ss:$16 sps:$4 sm:$0xff]   ;;  %v12072_v57 = vld [vmem:[#allocation11 + $0x4e4] ss:$16 sps:$4 sm:$0xff]  }
 0x515   :  { %9867 = vmatpush1.bf16.msra.mxu0 %v11992_v9  ;;  %v8288_v9 = vmax.f32 %v12963_v60, 0.0  ;;  %v12127_v3 = vld [vmem:[#allocation11 + $0x6e0] ss:$16 sps:$4 sm:$0xff]   ;;  %v12135_v60 = vld [vmem:[#allocation11 + $0x6c4] ss:$16 sps:$4 sm:$0xff]  }
 0x516   :  { %9908 = vmatpush1.bf16.msra.mxu1 %v11995_v58  ;;  %9868 = vmatprep.subr.bf16.mxu0 %v12000_v13  ;;  %v12129_v58 = vld [vmem:[#allocation11 + $0x6e4] ss:$16 sps:$4 sm:$0xff]   ;;  %v8291_v13 = vmax.f32 %v13007_v31, 0.0 }
 0x517   :  { %9909 = vmatprep.subr.bf16.mxu1 %v12003_v43  ;;  %v12070_v43 = vld [vmem:[#allocation11 + $0x4e0] ss:$16 sps:$4 sm:$0xff]  }
 0x519   :  { %9869 = vmatpush1.bf16.msra.mxu0 %v11998_v32  ;;  %v13028_v32 = vpack.c.bf16 %v8286_v52, %v8286_v52  ;;  %v12097_v52 = vld [vmem:[#allocation11 + $0x5c0] ss:$16 sps:$4 sm:$0xff]  }
 0x51a   :  { %9910 = vmatpush1.bf16.msra.mxu1 %v12001_v35  ;;  %9870 = vmatprep.subr.bf16.mxu0 %v12006_v1  ;;  %v12075_v35 = vld [vmem:[#allocation11 + $0x4c4] ss:$16 sps:$4 sm:$0xff]   ;;  %v13030_v1 = vpack.c.bf16 %v8288_v9, %v8288_v9 }
 0x51b   :  { %9911 = vmatprep.subr.bf16.mxu1 %v12009_v2  ;;  %v13032_v2 = vpack.c.bf16 %v8291_v13, %v8291_v13  ;;  %v12189_v9 = vld [vmem:[#allocation11 + $0x7a4] ss:$16 sps:$4 sm:$0xff]  }
 0x51c   :  { %v12105_v13 = vld [vmem:[#allocation11 + $0x584] ss:$16 sps:$4 sm:$0xff]  }
 0x51d   :  { %9871 = vmatpush1.bf16.msra.mxu0 %v12004_v4 }
 0x51e   :  { %9912 = vmatpush1.bf16.msra.mxu1 %v12007_v22  ;;  %9872 = vmatprep.subr.bf16.mxu0 %v12012_v25  ;;  %v12073_v25 = vld [vmem:[#allocation11 + $0x4c0] ss:$16 sps:$4 sm:$0xff]  }
 0x51f   :  { %9913 = vmatprep.subr.bf16.mxu1 %v12015_v41 }
 0x521   :  { %9873 = vmatpush1.bf16.msra.mxu0 %v12010_v26  ;;  %v12078_v26 = vld [vmem:[#allocation11 + $0x4a4] ss:$16 sps:$4 sm:$0xff]  }
 0x522   :  { %9914 = vmatpush1.bf16.msra.mxu1 %v12013_v7  ;;  %9874 = vmatprep.subr.bf16.mxu0 %v12018_v5 }
 0x523   :  { %9915 = vmatprep.subr.bf16.mxu1 %v12021_v15 }
 0x525   :  { %9875 = vmatpush1.bf16.msra.mxu0 %v12016_v24  ;;  %v12133_v24 = vld [vmem:[#allocation11 + $0x6c0] ss:$16 sps:$4 sm:$0xff]  }
 0x526   :  { %9916 = vmatpush1.bf16.msra.mxu1 %v12019_v62  ;;  %9876 = vmatprep.subr.bf16.mxu0 %v12024_v30 }
 0x527   :  { %9917 = vmatprep.subr.bf16.mxu1 %v12027_v21 }
 0x529   :  { %9877 = vmatpush2.bf16.msra.mxu0 %v12022_v11  ;;  %v12076_v11 = vld [vmem:[#allocation11 + $0x4a0] ss:$16 sps:$4 sm:$0xff]  }
 0x52a   :  { %9918 = vmatpush2.bf16.msra.mxu1 %v12025_v37  ;;  %9878 = vmatprep.subr.bf16.mxu0 %v12030_v28  ;;  %v12081_v28 = vld [vmem:[#allocation11 + $0x484] ss:$16 sps:$4 sm:$0xff]  }
 0x52b   :  { %9919 = vmatprep.subr.bf16.mxu1 %v12033_v6 }
 0x52d   :  { %9879 = vmatpush2.bf16.msra.mxu0 %v12028_v12  ;;  %v12139_v12 = vld [vmem:[#allocation11 + $0x6a0] ss:$16 sps:$4 sm:$0xff]  }
 0x52e   :  { %9920 = vmatpush2.bf16.msra.mxu1 %v12031_v10  ;;  %9880 = vmatprep.subr.bf16.mxu0 %v12036_v53  ;;  %v12147_v10 = vld [vmem:[#allocation11 + $0x684] ss:$16 sps:$4 sm:$0xff]  }
 0x52f   :  { %9921 = vmatprep.subr.bf16.mxu1 %v12039_v0  ;;  %v12084_v53 = vld [vmem:[#allocation11 + $0x464] ss:$16 sps:$4 sm:$0xff]   ;;  %v12145_v0 = vld [vmem:[#allocation11 + $0x680] ss:$16 sps:$4 sm:$0xff]  }
 0x531   :  { %9881 = vmatpush2.bf16.msra.mxu0 %v12034_v20  ;;  %v12153_v20 = vld [vmem:[#allocation11 + $0x664] ss:$16 sps:$4 sm:$0xff]  }
 0x532   :  { %9922 = vmatpush2.bf16.msra.mxu1 %v12037_v55  ;;  %9882 = vmatprep.subr.bf16.mxu0 %v12042_v29  ;;  %v12082_v55 = vld [vmem:[#allocation11 + $0x460] ss:$16 sps:$4 sm:$0xff]   ;;  %v12087_v29 = vld [vmem:[#allocation11 + $0x444] ss:$16 sps:$4 sm:$0xff]  }
 0x533   :  { %9923 = vmatprep.subr.bf16.mxu1 %v12045_v61  ;;  %v12151_v61 = vld [vmem:[#allocation11 + $0x660] ss:$16 sps:$4 sm:$0xff]  }
 0x535   :  { %9883 = vmatpush2.bf16.msra.mxu0 %v12040_v44  ;;  %v12159_v44 = vld [vmem:[#allocation11 + $0x644] ss:$16 sps:$4 sm:$0xff]  }
 0x536   :  { %9924 = vmatpush2.bf16.msra.mxu1 %v12043_v19  ;;  %9884 = vmatprep.subr.bf16.mxu0 %v12048_v23  ;;  %v12085_v19 = vld [vmem:[#allocation11 + $0x440] ss:$16 sps:$4 sm:$0xff]   ;;  %v12090_v23 = vld [vmem:[#allocation11 + $0x424] ss:$16 sps:$4 sm:$0xff]  }
 0x537   :  { %9925 = vmatprep.subr.bf16.mxu1 %v12051_v40  ;;  %v12157_v40 = vld [vmem:[#allocation11 + $0x640] ss:$16 sps:$4 sm:$0xff]  }
 0x539   :  { %9885 = vmatpush2.bf16.msra.mxu0 %v12046_v48  ;;  %v12165_v48 = vld [vmem:[#allocation11 + $0x624] ss:$16 sps:$4 sm:$0xff]  }
 0x53a   :  { %9926 = vmatpush2.bf16.msra.mxu1 %v12049_v38  ;;  %9886 = vmatprep.subr.bf16.mxu0 %v12054_v33  ;;  %v12088_v38 = vld [vmem:[#allocation11 + $0x420] ss:$16 sps:$4 sm:$0xff]   ;;  %v12093_v33 = vld [vmem:[#allocation11 + $0x404] ss:$16 sps:$4 sm:$0xff]  }
 0x53b   :  { %9927 = vmatprep.subr.bf16.mxu1 %v12057_v34  ;;  %v12163_v34 = vld [vmem:[#allocation11 + $0x620] ss:$16 sps:$4 sm:$0xff]  }
 0x53d   :  { %9887 = vmatpush2.bf16.msra.mxu0 %v12052_v36  ;;  %v12171_v36 = vld [vmem:[#allocation11 + $0x604] ss:$16 sps:$4 sm:$0xff]  }
 0x53e   :  { %9928 = vmatpush2.bf16.msra.mxu1 %v12055_v46  ;;  %9888 = vmatprep.subr.bf16.mxu0 %v12060_v42  ;;  %v12091_v46 = vld [vmem:[#allocation11 + $0x400] ss:$16 sps:$4 sm:$0xff]   ;;  %v12096_v42 = vld [vmem:[#allocation11 + $0x5e4] ss:$16 sps:$4 sm:$0xff]  }
 0x53f   :  { %9929 = vmatprep.subr.bf16.mxu1 %v12063_v59  ;;  %v12169_v59 = vld [vmem:[#allocation11 + $0x600] ss:$16 sps:$4 sm:$0xff]  }
 0x541   :  { %9889 = vmatpush2.bf16.msra.mxu0 %v12058_v39  ;;  %v12177_v39 = vld [vmem:[#allocation11 + $0x7e4] ss:$16 sps:$4 sm:$0xff]  }
 0x542   :  { %9930 = vmatpush2.bf16.msra.mxu1 %v12061_v49  ;;  %9890 = vmatprep.subr.bf16.mxu0 %v12066_v50  ;;  %v12094_v49 = vld [vmem:[#allocation11 + $0x5e0] ss:$16 sps:$4 sm:$0xff]   ;;  %v12099_v50 = vld [vmem:[#allocation11 + $0x5c4] ss:$16 sps:$4 sm:$0xff]  }
 0x543   :  { %9931 = vmatprep.subr.bf16.mxu1 %v12069_v8  ;;  %v12175_v8 = vld [vmem:[#allocation11 + $0x7e0] ss:$16 sps:$4 sm:$0xff]  }
 0x545   :  { %9891 = vmatpush2.bf16.msra.mxu0 %v12064_v51  ;;  %v12183_v51 = vld [vmem:[#allocation11 + $0x7c4] ss:$16 sps:$4 sm:$0xff]  }
 0x546   :  { %9932 = vmatpush2.bf16.msra.mxu1 %v12067_v47  ;;  %9942 = vmatprep.subr.bf16.mxu0 %v12072_v57  ;;  %v12102_v47 = vld [vmem:[#allocation11 + $0x5a4] ss:$16 sps:$4 sm:$0xff]   ;;  %v12181_v57 = vld [vmem:[#allocation11 + $0x7c0] ss:$16 sps:$4 sm:$0xff]  }
 0x547   :  { %9983 = vmatprep.subr.bf16.mxu1 %v12129_v58  ;;  %v12100_v58 = vld [vmem:[#allocation11 + $0x5a0] ss:$16 sps:$4 sm:$0xff]  }
 0x548   :  { %v8074_v4 = vpop.f32.mrf.mxu0  ;;  %9893 = vmatmul.mubr.bf16.vlgmr.msra.gmra.mxu0 %v13028_v32 }
 0x549   :  { %v8075_v22 = vadd.f32 %v8074_v4, %v13020_v56  ;;  %v8115_v31 = vpop.f32.mrf.mxu1  ;;  %9934 = vmatmul.mubr.bf16.vlgmr.msra.gmra.mxu1 %v13030_v1  ;;  %9943 = vmatpush1.bf16.msra.mxu0 %v12070_v43  ;;  %v12141_v56 = vld [vmem:[#allocation11 + $0x6a4] ss:$16 sps:$4 sm:$0xff]   ;;  %v12187_v43 = vld [vmem:[#allocation11 + $0x7a0] ss:$16 sps:$4 sm:$0xff]  }
 0x54a   :  { %9974 = vmatprep.mubr.bf16.mxu0 %v13032_v2  ;;  %v8076_v41 = vpop.f32.mrf.mxu0  ;;  %9944 = vmatprep.subr.bf16.mxu0 %v12075_v35  ;;  %v12195_v35 = vld [vmem:[#allocation11 + $0x784] ss:$16 sps:$4 sm:$0xff]  }
 0x54b   :  { %v13038_v7 = vadd.f32 %v8115_v31, %v8075_v22  ;;  %v8077_v5 = vadd.f32 %v8076_v41, %v13023_v45  ;;  %v8117_v15 = vpop.f32.mrf.mxu1  ;;  %9984 = vmatpush1.bf16.msra.mxu1 %v12127_v3  ;;  %v12079_v45 = vld [vmem:[#allocation11 + $0x480] ss:$16 sps:$4 sm:$0xff]   ;;  %v12108_v4 = vld [vmem:[#allocation11 + $0x564] ss:$16 sps:$4 sm:$0xff]  }
 0x54c   :  { %v8078_v62 = vpop.f32.mrf.mxu0  ;;  %9985 = vmatprep.subr.bf16.mxu1 %v12135_v60  ;;  %v12103_v3 = vld [vmem:[#allocation11 + $0x580] ss:$16 sps:$4 sm:$0xff]   ;;  %v12201_v22 = vld [vmem:[#allocation11 + $0x764] ss:$16 sps:$4 sm:$0xff]  }
 0x54d   :  { %v13041_v30 = vadd.f32 %v8117_v15, %v8077_v5  ;;  %v8119_v21 = vpop.f32.mrf.mxu1  ;;  %9945 = vmatpush1.bf16.msra.mxu0 %v12073_v25  ;;  %v12193_v60 = vld [vmem:[#allocation11 + $0x780] ss:$16 sps:$4 sm:$0xff]   ;;  %v12111_v25 = vld [vmem:[#allocation11 + $0x544] ss:$16 sps:$4 sm:$0xff]  }
 0x54e   :  { %v8079_v37 = vpop.f32.mrf.mxu0  ;;  %9946 = vmatprep.subr.bf16.mxu0 %v12078_v26  ;;  %v12106_v31 = vld [vmem:[#allocation11 + $0x560] ss:$16 sps:$4 sm:$0xff]   ;;  %v12207_v26 = vld [vmem:[#allocation11 + $0x744] ss:$16 sps:$4 sm:$0xff]  }
 0x54f   :  { %v8120_v6 = vpop.f32.mrf.mxu1  ;;  %9986 = vmatpush1.bf16.msra.mxu1 %v12133_v24  ;;  %v12199_v41 = vld [vmem:[#allocation11 + $0x760] ss:$16 sps:$4 sm:$0xff]   ;;  %v12114_v15 = vld [vmem:[#allocation11 + $0x524] ss:$16 sps:$4 sm:$0xff]  }
 0x550   :  { %9987 = vmatprep.subr.bf16.mxu1 %v12141_v56  ;;  %v12109_v5 = vld [vmem:[#allocation11 + $0x540] ss:$16 sps:$4 sm:$0xff]   ;;  %v12213_v62 = vld [vmem:[#allocation11 + $0x724] ss:$16 sps:$4 sm:$0xff]   ;;  %v8290_v6 = vmax.f32 %v13003_v63, 0.0 }
 0x551   :  { %9947 = vmatpush1.bf16.msra.mxu0 %v12076_v11  ;;  %v12205_v24 = vld [vmem:[#allocation11 + $0x740] ss:$16 sps:$4 sm:$0xff]   ;;  %v12117_v21 = vld [vmem:[#allocation11 + $0x504] ss:$16 sps:$4 sm:$0xff]  }
 0x552   :  { %9948 = vmatprep.subr.bf16.mxu0 %v12081_v28  ;;  %v12112_v56 = vld [vmem:[#allocation11 + $0x520] ss:$16 sps:$4 sm:$0xff]   ;;  %v12219_v37 = vld [vmem:[#allocation11 + $0x704] ss:$16 sps:$4 sm:$0xff]  }
 0x553   :  { %9988 = vmatpush1.bf16.msra.mxu1 %v12139_v12  ;;  %v12211_v11 = vld [vmem:[#allocation11 + $0x720] ss:$16 sps:$4 sm:$0xff]   ;;  %v12120_v12 = vld [vmem:[#allocation11 + $0xec] ss:$16 sps:$4 sm:$0xff]  }
 0x554   :  { %9989 = vmatprep.subr.bf16.mxu1 %v12147_v10  ;;  %v12115_v28 = vld [vmem:[#allocation11 + $0x500] ss:$16 sps:$4 sm:$0xff]  }
 0x555   :  { %9949 = vmatpush1.bf16.msra.mxu0 %v12079_v45  ;;  %v12217_v10 = vld [vmem:[#allocation11 + $0x700] ss:$16 sps:$4 sm:$0xff]   ;;  %v12225_v45 = vld [vmem:[#allocation11 + $0x2ec] ss:$16 sps:$4 sm:$0xff]  }
 0x556   :  { %9950 = vmatprep.subr.bf16.mxu0 %v12084_v53  ;;  %v12118_v53 = vld [vmem:[#allocation11 + $0xe8] ss:$16 sps:$4 sm:$0xff]  }
 0x557   :  { %9990 = vmatpush1.bf16.msra.mxu1 %v12145_v0  ;;  %v13044_v0 = vpack.c.bf16 %v8290_v6, %v8290_v6 }
 0x558   :  { %9991 = vmatprep.subr.bf16.mxu1 %v12153_v20  ;;  %v12123_v20 = vld [vmem:[#allocation11 + $0xcc] ss:$16 sps:$4 sm:$0xff]  }
 0x559   :  { %9951 = vmatpush1.bf16.msra.mxu0 %v12082_v55 }
 0x55a   :  { %9952 = vmatprep.subr.bf16.mxu0 %v12087_v29 }
 0x55b   :  { %9992 = vmatpush1.bf16.msra.mxu1 %v12151_v61  ;;  %v12121_v61 = vld [vmem:[#allocation11 + $0xc8] ss:$16 sps:$4 sm:$0xff]  }
 0x55c   :  { %9993 = vmatprep.subr.bf16.mxu1 %v12159_v44 }
 0x55d   :  { %9953 = vmatpush1.bf16.msra.mxu0 %v12085_v19  ;;  %v12126_v19 = vld [vmem:[#allocation11 + $0xac] ss:$16 sps:$4 sm:$0xff]  }
 0x55e   :  { %9954 = vmatprep.subr.bf16.mxu0 %v12090_v23 }
 0x55f   :  { %9994 = vmatpush1.bf16.msra.mxu1 %v12157_v40 }
 0x560   :  { %9995 = vmatprep.subr.bf16.mxu1 %v12165_v48 }
 0x561   :  { %9955 = vmatpush1.bf16.msra.mxu0 %v12088_v38 }
 0x562   :  { %9956 = vmatprep.subr.bf16.mxu0 %v12093_v33  ;;  %v12124_v33 = vld [vmem:[#allocation11 + $0xa8] ss:$16 sps:$4 sm:$0xff]  }
 0x563   :  { %9996 = vmatpush1.bf16.msra.mxu1 %v12163_v34 }
 0x564   :  { %9997 = vmatprep.subr.bf16.mxu1 %v12171_v36 }
 0x565   :  { %9957 = vmatpush1.bf16.msra.mxu0 %v12091_v46  ;;  %v12130_v46 = vld [vmem:[#allocation11 + $0x88] ss:$16 sps:$4 sm:$0xff]  }
 0x566   :  { %9958 = vmatprep.subr.bf16.mxu0 %v12096_v42  ;;  %v12136_v42 = vld [vmem:[#allocation11 + $0x68] ss:$16 sps:$4 sm:$0xff]  }
 0x567   :  { %9998 = vmatpush1.bf16.msra.mxu1 %v12169_v59  ;;  %v12144_v59 = vld [vmem:[#allocation11 + $0x4c] ss:$16 sps:$4 sm:$0xff]  }
 0x568   :  { %9999 = vmatprep.subr.bf16.mxu1 %v12177_v39  ;;  %v12142_v39 = vld [vmem:[#allocation11 + $0x48] ss:$16 sps:$4 sm:$0xff]  }
 0x569   :  { %9959 = vmatpush2.bf16.msra.mxu0 %v12094_v49  ;;  %v12150_v49 = vld [vmem:[#allocation11 + $0x2c] ss:$16 sps:$4 sm:$0xff]  }
 0x56a   :  { %9960 = vmatprep.subr.bf16.mxu0 %v12099_v50  ;;  %v12148_v50 = vld [vmem:[#allocation11 + $0x28] ss:$16 sps:$4 sm:$0xff]  }
 0x56b   :  { %10000 = vmatpush2.bf16.msra.mxu1 %v12175_v8  ;;  %v12156_v8 = vld [vmem:[#allocation11 + $0xc] ss:$16 sps:$4 sm:$0xff]  }
 0x56c   :  { %10001 = vmatprep.subr.bf16.mxu1 %v12183_v51  ;;  %v12154_v51 = vld [vmem:[#allocation11 + $0x8] ss:$16 sps:$4 sm:$0xff]  }
 0x56d   :  { %9961 = vmatpush2.bf16.msra.mxu0 %v12097_v52  ;;  %v12162_v52 = vld [vmem:[#allocation11 + $0x1ec] ss:$16 sps:$4 sm:$0xff]  }
 0x56e   :  { %9962 = vmatprep.subr.bf16.mxu0 %v12102_v47  ;;  %v12160_v47 = vld [vmem:[#allocation11 + $0x1e8] ss:$16 sps:$4 sm:$0xff]  }
 0x56f   :  { %10002 = vmatpush2.bf16.msra.mxu1 %v12181_v57  ;;  %v12168_v57 = vld [vmem:[#allocation11 + $0x1cc] ss:$16 sps:$4 sm:$0xff]  }
 0x570   :  { %10003 = vmatprep.subr.bf16.mxu1 %v12189_v9  ;;  %v12166_v9 = vld [vmem:[#allocation11 + $0x1c8] ss:$16 sps:$4 sm:$0xff]  }
 0x571   :  { %9963 = vmatpush2.bf16.msra.mxu0 %v12100_v58  ;;  %v12174_v58 = vld [vmem:[#allocation11 + $0x1ac] ss:$16 sps:$4 sm:$0xff]  }
 0x572   :  { %9964 = vmatprep.subr.bf16.mxu0 %v12105_v13  ;;  %v12172_v13 = vld [vmem:[#allocation11 + $0x1a8] ss:$16 sps:$4 sm:$0xff]  }
 0x573   :  { %10004 = vmatpush2.bf16.msra.mxu1 %v12187_v43  ;;  %v12180_v43 = vld [vmem:[#allocation11 + $0x18c] ss:$16 sps:$4 sm:$0xff]  }
 0x574   :  { %10005 = vmatprep.subr.bf16.mxu1 %v12195_v35  ;;  %v12178_v35 = vld [vmem:[#allocation11 + $0x188] ss:$16 sps:$4 sm:$0xff]  }
 0x575   :  { %9965 = vmatpush2.bf16.msra.mxu0 %v12103_v3  ;;  %v12186_v3 = vld [vmem:[#allocation11 + $0x16c] ss:$16 sps:$4 sm:$0xff]  }
 0x576   :  { %9966 = vmatprep.subr.bf16.mxu0 %v12108_v4  ;;  %v12184_v4 = vld [vmem:[#allocation11 + $0x168] ss:$16 sps:$4 sm:$0xff]  }
 0x577   :  { %10006 = vmatpush2.bf16.msra.mxu1 %v12193_v60  ;;  %v12192_v60 = vld [vmem:[#allocation11 + $0x14c] ss:$16 sps:$4 sm:$0xff]  }
 0x578   :  { %10007 = vmatprep.subr.bf16.mxu1 %v12201_v22  ;;  %v12190_v22 = vld [vmem:[#allocation11 + $0x148] ss:$16 sps:$4 sm:$0xff]  }
 0x579   :  { %9967 = vmatpush2.bf16.msra.mxu0 %v12106_v31  ;;  %v12198_v31 = vld [vmem:[#allocation11 + $0x12c] ss:$16 sps:$4 sm:$0xff]  }
 0x57a   :  { %9968 = vmatprep.subr.bf16.mxu0 %v12111_v25  ;;  %v12196_v25 = vld [vmem:[#allocation11 + $0x128] ss:$16 sps:$4 sm:$0xff]  }
 0x57b   :  { %10008 = vmatpush2.bf16.msra.mxu1 %v12199_v41  ;;  %v12204_v41 = vld [vmem:[#allocation11 + $0x10c] ss:$16 sps:$4 sm:$0xff]  }
 0x57c   :  { %10009 = vmatprep.subr.bf16.mxu1 %v12207_v26  ;;  %v12202_v26 = vld [vmem:[#allocation11 + $0x108] ss:$16 sps:$4 sm:$0xff]  }
 0x57d   :  { %9969 = vmatpush2.bf16.msra.mxu0 %v12109_v5  ;;  %v12210_v5 = vld [vmem:[#allocation11 + $0x4ec] ss:$16 sps:$4 sm:$0xff]  }
 0x57e   :  { %9970 = vmatprep.subr.bf16.mxu0 %v12114_v15 }
 0x57f   :  { %10010 = vmatpush2.bf16.msra.mxu1 %v12205_v24  ;;  %v12208_v24 = vld [vmem:[#allocation11 + $0x4e8] ss:$16 sps:$4 sm:$0xff]  }
 0x580   :  { %10011 = vmatprep.subr.bf16.mxu1 %v12213_v62  ;;  %v12216_v62 = vld [vmem:[#allocation11 + $0x4cc] ss:$16 sps:$4 sm:$0xff]  }
 0x581   :  { %9971 = vmatpush2.bf16.msra.mxu0 %v12112_v56 }
 0x582   :  { %9972 = vmatprep.subr.bf16.mxu0 %v12117_v21 }
 0x583   :  { %10012 = vmatpush2.bf16.msra.mxu1 %v12211_v11 }
 0x584   :  { %10013 = vmatprep.subr.bf16.mxu1 %v12219_v37 }
 0x585   :  { %9973 = vmatpush2.bf16.msra.mxu0 %v12115_v28  ;;  %v12214_v28 = vld [vmem:[#allocation11 + $0x4c8] ss:$16 sps:$4 sm:$0xff]  }
 0x586   :  { %10024 = vmatprep.subr.bf16.mxu0 %v12120_v12  ;;  %v12222_v12 = vld [vmem:[#allocation11 + $0x4ac] ss:$16 sps:$4 sm:$0xff]  }
 0x587   :  { %10014 = vmatpush2.bf16.msra.mxu1 %v12217_v10 }
 0x588   :  { %v8156_v55 = vpop.f32.mrf.mxu0  ;;  %9975 = vmatmul.mubr.bf16.vlgmr.msra.gmra.mxu0 %v13044_v0  ;;  %10065 = vmatprep.subr.bf16.mxu1 %v12225_v45 }
 0x589   :  { %v8157_v29 = vadd.f32 %v8156_v55, %v13038_v7  ;;  %v8197_v63 = vpop.f32.mrf.mxu1  ;;  %10025 = vmatpush1.bf16.msra.mxu0 %v12118_v53  ;;  %10056 = vmatprep.mubr.bf16.mxu0 %v13013_v27  ;;  %v12132_v7 = vld [vmem:[#allocation11 + $0x8c] ss:$16 sps:$4 sm:$0xff]  }
 0x58a   :  { %v13049_v44 = vpop.f32.mrf.mxu0  ;;  %10026 = vmatprep.subr.bf16.mxu0 %v12123_v20  ;;  %v12138_v27 = vld [vmem:[#allocation11 + $0x6c] ss:$16 sps:$4 sm:$0xff]  }
 0x58b   :  { %v13051_v23 = vadd.f32 %v8197_v63, %v8157_v29  ;;  %v13053_v40 = vpop.f32.mrf.mxu1  ;;  %v8159_v15 = vadd.f32 %v13049_v44, %v13041_v30 }
 0x58c   :  { %v8160_v48 = vpop.f32.mrf.mxu0 }
 0x58d   :  { %v8201_v38 = vpop.f32.mrf.mxu1  ;;  %10027 = vmatpush1.bf16.msra.mxu0 %v12121_v61  ;;  %v8200_v21 = vadd.f32 %v13053_v40, %v8159_v15  ;;  %v12228_v61 = vld [vmem:[#allocation11 + $0x48c] ss:$16 sps:$4 sm:$0xff]   ;;  %v12226_v48 = vld [vmem:[#allocation11 + $0x488] ss:$16 sps:$4 sm:$0xff]  }
 0x58e   :  { %v8161_v34 = vpop.f32.mrf.mxu0  ;;  %10028 = vmatprep.subr.bf16.mxu0 %v12126_v19  ;;  %v12231_v38 = vld [vmem:[#allocation11 + $0x2cc] ss:$16 sps:$4 sm:$0xff]  }
 0x58f   :  { %v8202_v36 = vpop.f32.mrf.mxu1  ;;  %v12229_v34 = vld [vmem:[#allocation11 + $0x2c8] ss:$16 sps:$4 sm:$0xff]   ;;  %v12279_v15 = vld [vmem:[#allocation11 + $0x3cc] ss:$16 sps:$4 sm:$0xff]  }
 0x590   :  { %v12237_v36 = vld [vmem:[#allocation11 + $0x2ac] ss:$16 sps:$4 sm:$0xff]  }
 0x591   :  { %10029 = vmatpush1.bf16.msra.mxu0 %v12124_v33  ;;  %v12234_v33 = vld [vmem:[#allocation11 + $0x46c] ss:$16 sps:$4 sm:$0xff]  }
 0x592   :  { %10030 = vmatprep.subr.bf16.mxu0 %v12132_v7  ;;  %v12232_v7 = vld [vmem:[#allocation11 + $0x468] ss:$16 sps:$4 sm:$0xff]  }
 0x595   :  { %10031 = vmatpush1.bf16.msra.mxu0 %v12130_v46  ;;  %v12240_v46 = vld [vmem:[#allocation11 + $0x44c] ss:$16 sps:$4 sm:$0xff]  }
 0x596   :  { %10032 = vmatprep.subr.bf16.mxu0 %v12138_v27  ;;  %v12235_v27 = vld [vmem:[#allocation11 + $0x2a8] ss:$16 sps:$4 sm:$0xff]  }
 0x599   :  { %10033 = vmatpush1.bf16.msra.mxu0 %v12136_v42  ;;  %v12238_v42 = vld [vmem:[#allocation11 + $0x448] ss:$16 sps:$4 sm:$0xff]  }
 0x59a   :  { %10034 = vmatprep.subr.bf16.mxu0 %v12144_v59  ;;  %v12243_v59 = vld [vmem:[#allocation11 + $0x28c] ss:$16 sps:$4 sm:$0xff]  }
 0x59d   :  { %10035 = vmatpush1.bf16.msra.mxu0 %v12142_v39  ;;  %v12246_v39 = vld [vmem:[#allocation11 + $0x42c] ss:$16 sps:$4 sm:$0xff]  }
 0x59e   :  { %10036 = vmatprep.subr.bf16.mxu0 %v12150_v49  ;;  %v12241_v49 = vld [vmem:[#allocation11 + $0x288] ss:$16 sps:$4 sm:$0xff]  }
 0x5a1   :  { %10037 = vmatpush1.bf16.msra.mxu0 %v12148_v50  ;;  %v12249_v50 = vld [vmem:[#allocation11 + $0x26c] ss:$16 sps:$4 sm:$0xff]  }
 0x5a2   :  { %10038 = vmatprep.subr.bf16.mxu0 %v12156_v8  ;;  %v12252_v8 = vld [vmem:[#allocation11 + $0x40c] ss:$16 sps:$4 sm:$0xff]  }
 0x5a5   :  { %10039 = vmatpush1.bf16.msra.mxu0 %v12154_v51  ;;  %v12247_v51 = vld [vmem:[#allocation11 + $0x268] ss:$16 sps:$4 sm:$0xff]  }
 0x5a6   :  { %10040 = vmatprep.subr.bf16.mxu0 %v12162_v52  ;;  %v12250_v52 = vld [vmem:[#allocation11 + $0x408] ss:$16 sps:$4 sm:$0xff]  }
 0x5a9   :  { %10041 = vmatpush2.bf16.msra.mxu0 %v12160_v47  ;;  %v12255_v47 = vld [vmem:[#allocation11 + $0x24c] ss:$16 sps:$4 sm:$0xff]  }
 0x5aa   :  { %10042 = vmatprep.subr.bf16.mxu0 %v12168_v57  ;;  %v12258_v57 = vld [vmem:[#allocation11 + $0x5ec] ss:$16 sps:$4 sm:$0xff]  }
 0x5ad   :  { %10043 = vmatpush2.bf16.msra.mxu0 %v12166_v9  ;;  %v12253_v9 = vld [vmem:[#allocation11 + $0x248] ss:$16 sps:$4 sm:$0xff]  }
 0x5ae   :  { %10044 = vmatprep.subr.bf16.mxu0 %v12174_v58  ;;  %v12256_v58 = vld [vmem:[#allocation11 + $0x5e8] ss:$16 sps:$4 sm:$0xff]  }
 0x5b1   :  { %10045 = vmatpush2.bf16.msra.mxu0 %v12172_v13  ;;  %v12261_v13 = vld [vmem:[#allocation11 + $0x22c] ss:$16 sps:$4 sm:$0xff]  }
 0x5b2   :  { %10046 = vmatprep.subr.bf16.mxu0 %v12180_v43  ;;  %v12264_v43 = vld [vmem:[#allocation11 + $0x5cc] ss:$16 sps:$4 sm:$0xff]  }
 0x5b5   :  { %10047 = vmatpush2.bf16.msra.mxu0 %v12178_v35  ;;  %v12259_v35 = vld [vmem:[#allocation11 + $0x228] ss:$16 sps:$4 sm:$0xff]  }
 0x5b6   :  { %10048 = vmatprep.subr.bf16.mxu0 %v12186_v3  ;;  %v12262_v3 = vld [vmem:[#allocation11 + $0x5c8] ss:$16 sps:$4 sm:$0xff]  }
 0x5b9   :  { %10049 = vmatpush2.bf16.msra.mxu0 %v12184_v4  ;;  %v12267_v4 = vld [vmem:[#allocation11 + $0x20c] ss:$16 sps:$4 sm:$0xff]  }
 0x5ba   :  { %10050 = vmatprep.subr.bf16.mxu0 %v12192_v60  ;;  %v12270_v60 = vld [vmem:[#allocation11 + $0x5ac] ss:$16 sps:$4 sm:$0xff]  }
 0x5bd   :  { %10051 = vmatpush2.bf16.msra.mxu0 %v12190_v22  ;;  %v12265_v22 = vld [vmem:[#allocation11 + $0x208] ss:$16 sps:$4 sm:$0xff]  }
 0x5be   :  { %10052 = vmatprep.subr.bf16.mxu0 %v12198_v31  ;;  %v12268_v31 = vld [vmem:[#allocation11 + $0x5a8] ss:$16 sps:$4 sm:$0xff]  }
 0x5c1   :  { %10053 = vmatpush2.bf16.msra.mxu0 %v12196_v25  ;;  %v12273_v25 = vld [vmem:[#allocation11 + $0x3ec] ss:$16 sps:$4 sm:$0xff]  }
 0x5c2   :  { %10054 = vmatprep.subr.bf16.mxu0 %v12204_v41  ;;  %v12276_v41 = vld [vmem:[#allocation11 + $0x58c] ss:$16 sps:$4 sm:$0xff]  }
 0x5c5   :  { %10055 = vmatpush2.bf16.msra.mxu0 %v12202_v26  ;;  %v12271_v26 = vld [vmem:[#allocation11 + $0x3e8] ss:$16 sps:$4 sm:$0xff]  }
 0x5c6   :  { %10106 = vmatprep.subr.bf16.mxu0 %v12210_v5  ;;  %v12274_v5 = vld [vmem:[#allocation11 + $0x588] ss:$16 sps:$4 sm:$0xff]  }
 0x5c8   :  { %v8238_v56 = vpop.f32.mrf.mxu0  ;;  %10057 = vmatmul.mubr.bf16.vlgmr.msra.gmra.mxu0 %v13028_v32  ;;  %v12220_v32 = vld [vmem:[#allocation11 + $0x4a8] ss:$16 sps:$4 sm:$0xff]  }
 0x5c9   :  { %v8239_v11 = vadd.f32 %v8238_v56, %v13051_v23  ;;  %v8279_v37 = vpop.f32.mrf.mxu1  ;;  %10107 = vmatpush1.bf16.msra.mxu0 %v12208_v24  ;;  %10138 = vmatprep.mubr.bf16.mxu0 %v13032_v2  ;;  %v12223_v2 = vld [vmem:[#allocation11 + $0x2e8] ss:$16 sps:$4 sm:$0xff]   ;;  %v12282_v24 = vld [vmem:[#allocation11 + $0x56c] ss:$16 sps:$4 sm:$0xff]  }
 0x5ca   :  { %v8240_v6 = vpop.f32.mrf.mxu0  ;;  %10108 = vmatprep.subr.bf16.mxu0 %v12216_v62  ;;  %v12277_v62 = vld [vmem:[#allocation11 + $0x3c8] ss:$16 sps:$4 sm:$0xff]  }
 0x5cb   :  { %v8280_v30 = vadd.f32 %v8279_v37, %v8239_v11  ;;  %v8241_v10 = vadd.f32 %v8240_v6, %v8200_v21  ;;  %v8281_v45 = vpop.f32.mrf.mxu1  ;;  %v12280_v56 = vld [vmem:[#allocation11 + $0x568] ss:$16 sps:$4 sm:$0xff]   ;;  %v12285_v21 = vld [vmem:[#allocation11 + $0x3ac] ss:$16 sps:$4 sm:$0xff]  }
 0x5cc   :  { %v8242_v53 = vpop.f32.mrf.mxu0  ;;  %v12288_v11 = vld [vmem:[#allocation11 + $0x54c] ss:$16 sps:$4 sm:$0xff]   ;;  %v12283_v37 = vld [vmem:[#allocation11 + $0x3a8] ss:$16 sps:$4 sm:$0xff]  }
 0x5cd   :  { %v8282_v20 = vadd.f32 %v8281_v45, %v8241_v10  ;;  %v8283_v55 = vpop.f32.mrf.mxu1  ;;  %10109 = vmatpush1.bf16.msra.mxu0 %v12214_v28  ;;  %v8292_v29 = vmax.f32 %v8280_v30, 0.0  ;;  %v12286_v28 = vld [vmem:[#allocation11 + $0x548] ss:$16 sps:$4 sm:$0xff]   ;;  %v12291_v6 = vld [vmem:[#allocation11 + $0x38c] ss:$16 sps:$4 sm:$0xff]  }
 0x5ce   :  { %v8243_v63 = vpop.f32.mrf.mxu0  ;;  %10110 = vmatprep.subr.bf16.mxu0 %v12222_v12  ;;  %v12294_v12 = vld [vmem:[#allocation11 + $0x52c] ss:$16 sps:$4 sm:$0xff]   ;;  %v12289_v30 = vld [vmem:[#allocation11 + $0x388] ss:$16 sps:$4 sm:$0xff]  }
 0x5cf   :  { %v8293_v44 = vmax.f32 %v8282_v20, 0.0  ;;  %v8284_v19 = vpop.f32.mrf.mxu1  ;;  %v13063_v40 = vpack.c.bf16 %v8292_v29, %v8292_v29  ;;  %v12292_v10 = vld [vmem:[#allocation11 + $0x528] ss:$16 sps:$4 sm:$0xff]   ;;  %v12297_v45 = vld [vmem:[#allocation11 + $0x36c] ss:$16 sps:$4 sm:$0xff]  }
 0x5d0   :  { %v12300_v53 = vld [vmem:[#allocation11 + $0x50c] ss:$16 sps:$4 sm:$0xff]   ;;  %v12295_v20 = vld [vmem:[#allocation11 + $0x368] ss:$16 sps:$4 sm:$0xff]   ;;  %v13068_v29 = vld [vmem:[#allocation13] sm:$0xf] }
 0x5d1   :  { %v13061_v23 = vpack.c.bf16 %v8293_v44, %v8293_v44  ;;  %10111 = vmatpush1.bf16.msra.mxu0 %v12220_v32  ;;  %v12298_v55 = vld [vmem:[#allocation11 + $0x508] ss:$16 sps:$4 sm:$0xff]   ;;  %v12303_v32 = vld [vmem:[#allocation11 + $0x34c] ss:$16 sps:$4 sm:$0xff]   ;;  %v8563_v44 = vrot.slane %v13068_v29, %v12748_v14 }
 0x5d2   :  { %10112 = vmatprep.subr.bf16.mxu0 %v12228_v61  ;;  %v12358_v63 = vld [vmem:[#allocation14 + $0x78] sm:$0xff]   ;;  %v12301_v61 = vld [vmem:[#allocation11 + $0x348] ss:$16 sps:$4 sm:$0xff]  }
 0x5d3   :  { %10015 = vmatprep.mubr.bf16.mxu1 %v13061_v23  ;;  %v12306_v19 = vld [vmem:[#allocation11 + $0x32c] ss:$16 sps:$4 sm:$0xff]   ;;  %v12361_v14 = vld [vmem:[#allocation14 + $0x30] sm:$0xff]  }
 0x5d4   :  { %10016 = vmatmul.mubr.bf16.vlgmr.msra.gmra.mxu1 %v13063_v40 }
 0x5d5   :  { %10066 = vmatpush1.bf16.msra.mxu1 %v12223_v2  ;;  %10097 = vmatprep.mubr.bf16.mxu1 %v13016_v54  ;;  %v12244_v54 = vld [vmem:[#allocation11 + $0x428] ss:$16 sps:$4 sm:$0xff]   ;;  %v12359_v2 = vld [vmem:[#allocation14 + $0x38] sm:$0xff]  }
 0x5d6   :  { %10113 = vmatpush1.bf16.msra.mxu0 %v12226_v48  ;;  %10067 = vmatprep.subr.bf16.mxu1 %v12231_v38  ;;  %v8567_v48 = vrot.slane %v13068_v29, %v12756_v17  ;;  %v12360_v38 = vld [vmem:[#allocation14 + $0x70] sm:$0xff]   ;;  %v12362_v17 = vld [vmem:[#allocation14 + $0x68] sm:$0xff]  }
 0x5d7   :  { %10114 = vmatprep.subr.bf16.mxu0 %v12234_v33 }
 0x5d9   :  { %10068 = vmatpush1.bf16.msra.mxu1 %v12229_v34 }
 0x5da   :  { %10115 = vmatpush1.bf16.msra.mxu0 %v12232_v7  ;;  %10069 = vmatprep.subr.bf16.mxu1 %v12237_v36  ;;  %v12304_v36 = vld [vmem:[#allocation11 + $0x328] ss:$16 sps:$4 sm:$0xff]  }
 0x5db   :  { %10116 = vmatprep.subr.bf16.mxu0 %v12240_v46 }
 0x5dd   :  { %10070 = vmatpush1.bf16.msra.mxu1 %v12235_v27  ;;  %v12309_v27 = vld [vmem:[#allocation11 + $0x30c] ss:$16 sps:$4 sm:$0xff]  }
 0x5de   :  { %10117 = vmatpush1.bf16.msra.mxu0 %v12238_v42  ;;  %10071 = vmatprep.subr.bf16.mxu1 %v12243_v59 }
 0x5df   :  { %10118 = vmatprep.subr.bf16.mxu0 %v12246_v39 }
 0x5e1   :  { %10072 = vmatpush1.bf16.msra.mxu1 %v12241_v49 }
 0x5e2   :  { %10119 = vmatpush1.bf16.msra.mxu0 %v12244_v54  ;;  %10073 = vmatprep.subr.bf16.mxu1 %v12249_v50 }
 0x5e3   :  { %10120 = vmatprep.subr.bf16.mxu0 %v12252_v8  ;;  %v12307_v8 = vld [vmem:[#allocation11 + $0x308] ss:$16 sps:$4 sm:$0xff]  }
 0x5e5   :  { %10074 = vmatpush1.bf16.msra.mxu1 %v12247_v51 }
 0x5e6   :  { %10121 = vmatpush1.bf16.msra.mxu0 %v12250_v52  ;;  %10075 = vmatprep.subr.bf16.mxu1 %v12255_v47  ;;  %v12363_v52 = vld [vmem:[#allocation14 + $0x28] sm:$0xff]  }
 0x5e7   :  { %10122 = vmatprep.subr.bf16.mxu0 %v12258_v57  ;;  %v12364_v57 = vld [vmem:[#allocation14 + $0x60] sm:$0xff]  }
 0x5e9   :  { %10076 = vmatpush1.bf16.msra.mxu1 %v12253_v9  ;;  %v12310_v9 = vld [vmem:[#allocation11 + $0x6e8] ss:$16 sps:$4 sm:$0xff]  }
 0x5ea   :  { %10123 = vmatpush2.bf16.msra.mxu0 %v12256_v58  ;;  %10077 = vmatprep.subr.bf16.mxu1 %v12261_v13  ;;  %v12315_v58 = vld [vmem:[#allocation11 + $0x6cc] ss:$16 sps:$4 sm:$0xff]   ;;  %v12365_v13 = vld [vmem:[#allocation14 + $0x20] sm:$0xff]  }
 0x5eb   :  { %10124 = vmatprep.subr.bf16.mxu0 %v12264_v43  ;;  %v12366_v43 = vld [vmem:[#allocation14 + $0x58] sm:$0xff]  }
 0x5ed   :  { %10078 = vmatpush1.bf16.msra.mxu1 %v12259_v35  ;;  %v12313_v35 = vld [vmem:[#allocation11 + $0x6c8] ss:$16 sps:$4 sm:$0xff]  }
 0x5ee   :  { %10125 = vmatpush2.bf16.msra.mxu0 %v12262_v3  ;;  %10079 = vmatprep.subr.bf16.mxu1 %v12267_v4  ;;  %v12318_v3 = vld [vmem:[#allocation11 + $0x6ac] ss:$16 sps:$4 sm:$0xff]  }
 0x5ef   :  { %10126 = vmatprep.subr.bf16.mxu0 %v12270_v60  ;;  %v12367_v4 = vld [vmem:[#allocation14 + $0x18] sm:$0xff]   ;;  %v12368_v60 = vld [vmem:[#allocation14 + $0x50] sm:$0xff]  }
 0x5f1   :  { %10080 = vmatpush1.bf16.msra.mxu1 %v12265_v22  ;;  %v12316_v22 = vld [vmem:[#allocation11 + $0x6a8] ss:$16 sps:$4 sm:$0xff]  }
 0x5f2   :  { %10127 = vmatpush2.bf16.msra.mxu0 %v12268_v31  ;;  %10081 = vmatprep.subr.bf16.mxu1 %v12273_v25  ;;  %v12321_v31 = vld [vmem:[#allocation11 + $0x68c] ss:$16 sps:$4 sm:$0xff]   ;;  %v12369_v25 = vld [vmem:[#allocation14 + $0x10] sm:$0xff]  }
 0x5f3   :  { %10128 = vmatprep.subr.bf16.mxu0 %v12276_v41  ;;  %v12370_v41 = vld [vmem:[#allocation14 + $0x48] sm:$0xff]  }
 0x5f5   :  { %10082 = vmatpush2.bf16.msra.mxu1 %v12271_v26  ;;  %v12324_v26 = vld [vmem:[#allocation11 + $0x66c] ss:$16 sps:$4 sm:$0xff]  }
 0x5f6   :  { %10129 = vmatpush2.bf16.msra.mxu0 %v12274_v5  ;;  %10083 = vmatprep.subr.bf16.mxu1 %v12279_v15  ;;  %v12372_v5 = vld [vmem:[#allocation14 + $0x40] sm:$0xff]  }
 0x5f7   :  { %10130 = vmatprep.subr.bf16.mxu0 %v12282_v24  ;;  %v12322_v15 = vld [vmem:[#allocation11 + $0x668] ss:$16 sps:$4 sm:$0xff]   ;;  %v12327_v24 = vld [vmem:[#allocation11 + $0x64c] ss:$16 sps:$4 sm:$0xff]  }
 0x5f9   :  { %10084 = vmatpush2.bf16.msra.mxu1 %v12277_v62  ;;  %v12373_v62 = vld [vmem:[#allocation14] sm:$0xff]  }
 0x5fa   :  { %10131 = vmatpush2.bf16.msra.mxu0 %v12280_v56  ;;  %10085 = vmatprep.subr.bf16.mxu1 %v12285_v21  ;;  %v12325_v56 = vld [vmem:[#allocation11 + $0x648] ss:$16 sps:$4 sm:$0xff]   ;;  %v12330_v21 = vld [vmem:[#allocation11 + $0x62c] ss:$16 sps:$4 sm:$0xff]  }
 0x5fb   :  { %10132 = vmatprep.subr.bf16.mxu0 %v12288_v11  ;;  %v12328_v11 = vld [vmem:[#allocation11 + $0x628] ss:$16 sps:$4 sm:$0xff]  }
 0x5fd   :  { %10086 = vmatpush2.bf16.msra.mxu1 %v12283_v37  ;;  %v12333_v37 = vld [vmem:[#allocation11 + $0x60c] ss:$16 sps:$4 sm:$0xff]  }
 0x5fe   :  { %10133 = vmatpush2.bf16.msra.mxu0 %v12286_v28  ;;  %10087 = vmatprep.subr.bf16.mxu1 %v12291_v6  ;;  %v12331_v28 = vld [vmem:[#allocation11 + $0x608] ss:$16 sps:$4 sm:$0xff]   ;;  %v12336_v6 = vld [vmem:[#allocation11 + $0x7ec] ss:$16 sps:$4 sm:$0xff]  }
 0x5ff   :  { %10134 = vmatprep.subr.bf16.mxu0 %v12294_v12  ;;  %v12334_v12 = vld [vmem:[#allocation11 + $0x7e8] ss:$16 sps:$4 sm:$0xff]  }
 0x601   :  { %10088 = vmatpush2.bf16.msra.mxu1 %v12289_v30  ;;  %v12339_v30 = vld [vmem:[#allocation11 + $0x7cc] ss:$16 sps:$4 sm:$0xff]  }
 0x602   :  { %10135 = vmatpush2.bf16.msra.mxu0 %v12292_v10  ;;  %10089 = vmatprep.subr.bf16.mxu1 %v12297_v45  ;;  %v12337_v10 = vld [vmem:[#allocation11 + $0x7c8] ss:$16 sps:$4 sm:$0xff]   ;;  %v12342_v45 = vld [vmem:[#allocation11 + $0x7ac] ss:$16 sps:$4 sm:$0xff]  }
 0x603   :  { %10136 = vmatprep.subr.bf16.mxu0 %v12300_v53  ;;  %v12340_v53 = vld [vmem:[#allocation11 + $0x7a8] ss:$16 sps:$4 sm:$0xff]  }
 0x605   :  { %10090 = vmatpush2.bf16.msra.mxu1 %v12295_v20  ;;  %v12345_v20 = vld [vmem:[#allocation11 + $0x78c] ss:$16 sps:$4 sm:$0xff]  }
 0x606   :  { %10137 = vmatpush2.bf16.msra.mxu0 %v12298_v55  ;;  %10091 = vmatprep.subr.bf16.mxu1 %v12303_v32  ;;  %v12343_v55 = vld [vmem:[#allocation11 + $0x788] ss:$16 sps:$4 sm:$0xff]   ;;  %v12348_v32 = vld [vmem:[#allocation11 + $0x76c] ss:$16 sps:$4 sm:$0xff]  }
 0x607   :  { %11912 = vmatprep.subr.bf16.mxu0 %v12358_v63  ;;  %v12346_v63 = vld [vmem:[#allocation11 + $0x768] ss:$16 sps:$4 sm:$0xff]  }
 0x608   :  { %v9894_v33 = vpop.f32.mrf.mxu0 }
 0x609   :  { %v9895_v34 = vadd.f32 %v9894_v33, %v8563_v44  ;;  %v9935_v7 = vpop.f32.mrf.mxu1  ;;  %10092 = vmatpush2.bf16.msra.mxu1 %v12301_v61  ;;  %10139 = vmatmul.mubr.bf16.vlgmr.msra.gmra.mxu0 %v13044_v0  ;;  %v12312_v0 = vld [vmem:[#allocation11 + $0x6ec] ss:$16 sps:$4 sm:$0xff]   ;;  %v12349_v44 = vld [vmem:[#allocation11 + $0x748] ss:$16 sps:$4 sm:$0xff]  }
 0x60a   :  { %v9896_v46 = vpop.f32.mrf.mxu0  ;;  %10093 = vmatprep.subr.bf16.mxu1 %v12306_v19  ;;  %11913 = vmatpush3.bf16.msra.mxu0 %v12359_v2  ;;  %v12351_v61 = vld [vmem:[#allocation11 + $0x74c] ss:$16 sps:$4 sm:$0xff]  }
 0x60b   :  { %v13075_v42 = vadd.f32 %v9935_v7, %v9895_v34  ;;  %v9897_v59 = vadd.f32 %v9896_v46, %v8567_v48  ;;  %v9937_v39 = vpop.f32.mrf.mxu1  ;;  %11914 = vmatprep.subr.bf16.mxu0 %v12360_v38  ;;  %v12354_v19 = vld [vmem:[#allocation11 + $0x72c] ss:$16 sps:$4 sm:$0xff]   ;;  %v12352_v38 = vld [vmem:[#allocation11 + $0x728] ss:$16 sps:$4 sm:$0xff]  }
 0x60c   :  { %v9898_v49 = vpop.f32.mrf.mxu0  ;;  %v12357_v34 = vld [vmem:[#allocation11 + $0x70c] ss:$16 sps:$4 sm:$0xff]   ;;  %v12355_v46 = vld [vmem:[#allocation11 + $0x708] ss:$16 sps:$4 sm:$0xff]  }
 0x60d   :  { %v13077_v54 = vadd.f32 %v9937_v39, %v9897_v59  ;;  %v9939_v50 = vpop.f32.mrf.mxu1  ;;  %10094 = vmatpush2.bf16.msra.mxu1 %v12304_v36  ;;  %v12375_v59 = vld [vmem:[#allocation14 + $0xb8] sm:$0xff]   ;;  %v12376_v39 = vld [vmem:[#allocation14 + $0xf0] sm:$0xff]   ;;  %v12379_v49 = vld [vmem:[#allocation14 + $0xa8] sm:$0xff]  }
 0x60e   :  { %v9899_v51 = vpop.f32.mrf.mxu0  ;;  %10095 = vmatprep.subr.bf16.mxu1 %v12309_v27  ;;  %11915 = vmatpush3.bf16.msra.mxu0 %v12361_v14  ;;  %v12374_v14 = vld [vmem:[#allocation14 + $0xf8] sm:$0xff]   ;;  %v12381_v50 = vld [vmem:[#allocation14 + $0xa0] sm:$0xff]  }
 0x60f   :  { %v9940_v47 = vpop.f32.mrf.mxu1  ;;  %11916 = vmatprep.subr.bf16.mxu0 %v12362_v17  ;;  %v12378_v17 = vld [vmem:[#allocation14 + $0xe8] sm:$0xff]   ;;  %v12383_v51 = vld [vmem:[#allocation14 + $0x98] sm:$0xff]  }
 0x611   :  { %10096 = vmatpush2.bf16.msra.mxu1 %v12307_v8  ;;  %v12382_v8 = vld [vmem:[#allocation14 + $0xd8] sm:$0xff]  }
 0x612   :  { %10147 = vmatprep.subr.bf16.mxu1 %v12312_v0  ;;  %11917 = vmatpush3.bf16.msra.mxu0 %v12363_v52  ;;  %v12385_v0 = vld [vmem:[#allocation14 + $0x90] sm:$0xff]  }
 0x613   :  { %11918 = vmatprep.subr.bf16.mxu0 %v12364_v57 }
 0x614   :  { %10098 = vmatmul.mubr.bf16.vlgmr.msra.gmra.mxu1 %v13030_v1  ;;  %v12319_v1 = vld [vmem:[#allocation11 + $0x688] ss:$16 sps:$4 sm:$0xff]  }
 0x615   :  { %10148 = vmatpush1.bf16.msra.mxu1 %v12310_v9  ;;  %10179 = vmatprep.mubr.bf16.mxu1 %v13061_v23  ;;  %v12371_v23 = vld [vmem:[#allocation14 + $0x8] sm:$0xff]  }
 0x616   :  { %10149 = vmatprep.subr.bf16.mxu1 %v12315_v58  ;;  %11919 = vmatpush3.bf16.msra.mxu0 %v12365_v13 }
 0x617   :  { %11920 = vmatprep.subr.bf16.mxu0 %v12366_v43  ;;  %v12386_v43 = vld [vmem:[#allocation14 + $0xc8] sm:$0xff]  }
 0x619   :  { %10150 = vmatpush1.bf16.msra.mxu1 %v12313_v35 }
 0x61a   :  { %10151 = vmatprep.subr.bf16.mxu1 %v12318_v3  ;;  %11921 = vmatpush3.bf16.msra.mxu0 %v12367_v4  ;;  %v12387_v3 = vld [vmem:[#allocation14 + $0x88] sm:$0xff]  }
 0x61b   :  { %11922 = vmatprep.subr.bf16.mxu0 %v12368_v60 }
 0x61d   :  { %10152 = vmatpush1.bf16.msra.mxu1 %v12316_v22 }
 0x61e   :  { %10153 = vmatprep.subr.bf16.mxu1 %v12321_v31  ;;  %11923 = vmatpush3.bf16.msra.mxu0 %v12369_v25  ;;  %v12388_v25 = vld [vmem:[#allocation14 + $0xc0] sm:$0xff]  }
 0x61f   :  { %11924 = vmatprep.subr.bf16.mxu0 %v12370_v41 }
 0x621   :  { %10154 = vmatpush1.bf16.msra.mxu1 %v12319_v1  ;;  %v12389_v1 = vld [vmem:[#allocation14 + $0x80] sm:$0xff]  }
 0x622   :  { %10155 = vmatprep.subr.bf16.mxu1 %v12324_v26  ;;  %11925 = vmatpush3.bf16.msra.mxu0 %v12371_v23 }
 0x623   :  { %11926 = vmatprep.subr.bf16.mxu0 %v12372_v5 }
 0x625   :  { %10156 = vmatpush1.bf16.msra.mxu1 %v12322_v15 }
 0x626   :  { %10157 = vmatprep.subr.bf16.mxu1 %v12327_v24  ;;  %11927 = vmatpush3.bf16.msra.mxu0 %v12373_v62  ;;  %v8571_v62 = vrot.slane %v13068_v29, %v12753_v16 }
 0x629   :  { %10158 = vmatpush1.bf16.msra.mxu1 %v12325_v56 }
 0x62a   :  { %10159 = vmatprep.subr.bf16.mxu1 %v12330_v21  ;;  %v8575_v21 = vrot.slane %v13068_v29, %v12759_v18 }
 0x62d   :  { %10160 = vmatpush1.bf16.msra.mxu1 %v12328_v11 }
 0x62e   :  { %10161 = vmatprep.subr.bf16.mxu1 %v12333_v37 }
 0x631   :  { %10162 = vmatpush1.bf16.msra.mxu1 %v12331_v28 }
 0x632   :  { %10163 = vmatprep.subr.bf16.mxu1 %v12336_v6 }
 0x635   :  { %10164 = vmatpush2.bf16.msra.mxu1 %v12334_v12 }
 0x636   :  { %10165 = vmatprep.subr.bf16.mxu1 %v12339_v30 }
 0x639   :  { %10166 = vmatpush2.bf16.msra.mxu1 %v12337_v10 }
 0x63a   :  { %10167 = vmatprep.subr.bf16.mxu1 %v12342_v45 }
 0x63d   :  { %10168 = vmatpush2.bf16.msra.mxu1 %v12340_v53 }
 0x63e   :  { %10169 = vmatprep.subr.bf16.mxu1 %v12345_v20 }
 0x641   :  { %10170 = vmatpush2.bf16.msra.mxu1 %v12343_v55 }
 0x642   :  { %10171 = vmatprep.subr.bf16.mxu1 %v12348_v32 }
 0x645   :  { %10172 = vmatpush2.bf16.msra.mxu1 %v12346_v63 }
 0x646   :  { %10173 = vmatprep.subr.bf16.mxu1 %v12351_v61 }
 0x648   :  { %v9976_v2 = vpop.f32.mrf.mxu0 }
 0x649   :  { %v9977_v48 = vadd.f32 %v9976_v2, %v13075_v42  ;;  %10174 = vmatpush2.bf16.msra.mxu1 %v12349_v44  ;;  %v12377_v42 = vld [vmem:[#allocation14 + $0xb0] sm:$0xff]  }
 0x64a   :  { %v9978_v33 = vpop.f32.mrf.mxu0  ;;  %10175 = vmatprep.subr.bf16.mxu1 %v12354_v19 }
 0x64b   :  { %v9979_v7 = vadd.f32 %v9978_v33, %v13077_v54  ;;  %v12380_v54 = vld [vmem:[#allocation14 + $0xe0] sm:$0xff]  }
 0x64c   :  { %v9980_v36 = vpop.f32.mrf.mxu0 }
 0x64d   :  { %10176 = vmatpush2.bf16.msra.mxu1 %v12352_v38  ;;  %v11879_v36 = vld [vmem:[#allocation16] ss:$0 sm:$0xff] }
 0x64e   :  { %v9981_v27 = vpop.f32.mrf.mxu0  ;;  %10177 = vmatprep.subr.bf16.mxu1 %v12357_v34 }
 0x651   :  { %10178 = vmatpush2.bf16.msra.mxu1 %v12355_v46 }
 0x652   :  { %11934 = vmatprep.subr.bf16.mxu1 %v12374_v14 }
 0x654   :  { %10180 = vmatmul.mubr.bf16.vlgmr.msra.gmra.mxu1 %v13063_v40  ;;  %v12384_v40 = vld [vmem:[#allocation14 + $0xd0] sm:$0xff]  }
 0x655   :  { %11935 = vmatpush3.bf16.msra.mxu1 %v12375_v59 }
 0x656   :  { %11936 = vmatprep.subr.bf16.mxu1 %v12376_v39 }
 0x659   :  { %11937 = vmatpush3.bf16.msra.mxu1 %v12377_v42 }
 0x65a   :  { %11938 = vmatprep.subr.bf16.mxu1 %v12378_v17 }
 0x65d   :  { %11939 = vmatpush3.bf16.msra.mxu1 %v12379_v49 }
 0x65e   :  { %11940 = vmatprep.subr.bf16.mxu1 %v12380_v54 }
 0x661   :  { %11941 = vmatpush3.bf16.msra.mxu1 %v12381_v50 }
 0x662   :  { %11942 = vmatprep.subr.bf16.mxu1 %v12382_v8 }
 0x665   :  { %11943 = vmatpush3.bf16.msra.mxu1 %v12383_v51 }
 0x666   :  { %11944 = vmatprep.subr.bf16.mxu1 %v12384_v40 }
 0x669   :  { %11945 = vmatpush3.bf16.msra.mxu1 %v12385_v0 }
 0x66a   :  { %11946 = vmatprep.subr.bf16.mxu1 %v12386_v43 }
 0x66d   :  { %11947 = vmatpush3.bf16.msra.mxu1 %v12387_v3 }
 0x66e   :  { %11948 = vmatprep.subr.bf16.mxu1 %v12388_v25 }
 0x671   :  { %11949 = vmatpush3.bf16.msra.mxu1 %v12389_v1 }
 0x688   :  { %v10058_v52 = vpop.f32.mrf.mxu0 }
 0x689   :  { %v10059_v11 = vadd.f32 %v10058_v52, %v8571_v62 }
 0x68a   :  { %v10060_v47 = vpop.f32.mrf.mxu0 }
 0x68b   :  { %v10061_v28 = vadd.f32 %v10060_v47, %v8575_v21 }
 0x68c   :  { %v10062_v57 = vpop.f32.mrf.mxu0 }
 0x68e   :  { %v10063_v9 = vpop.f32.mrf.mxu0 }
 0x694   :  { %v10017_v58 = vpop.f32.mrf.mxu1 }
 0x695   :  { %v10018_v13 = vadd.f32 %v10017_v58, %v9977_v48 }
 0x696   :  { %v10019_v35 = vpop.f32.mrf.mxu1 }
 0x697   :  { %v10020_v4 = vadd.f32 %v10019_v35, %v9979_v7  ;;  %v10188_v60 = vmax.f32 %v10018_v13, 0.0 }
 0x698   :  { %v10021_v22 = vpop.f32.mrf.mxu1 }
 0x699   :  { %v10189_v31 = vmax.f32 %v10020_v4, 0.0  ;;  %v10192_v23 = vpack.c.bf16 %v10188_v60, %v10188_v60 }
 0x69a   :  { %v10022_v41 = vpop.f32.mrf.mxu1 }
 0x69b   :  { %v10193_v26 = vpack.c.bf16 %v10189_v31, %v10189_v31 }
 0x69d   :  { %10491 = vmatprep.mubr.bf16.mxu0 %v10193_v26 }
 0x69e   :  { %10492 = vmatmul.mubr.bf16.vlgmr.msra.gmra.mxu0 %v10192_v23 }
 0x6c9   :  { %v10140_v5 = vpop.f32.mrf.mxu0 }
 0x6cb   :  { %v10142_v15 = vpop.f32.mrf.mxu0 }
 0x6cd   :  { %v10144_v24 = vpop.f32.mrf.mxu0 }
 0x6cf   :  { %v10145_v56 = vpop.f32.mrf.mxu0 }
 0x6d4   :  { %v10099_v37 = vpop.f32.mrf.mxu1 }
 0x6d5   :  { %v10100_v6 = vadd.f32 %v10099_v37, %v10059_v11 }
 0x6d6   :  { %v10101_v12 = vpop.f32.mrf.mxu1 }
 0x6d7   :  { %v10102_v30 = vadd.f32 %v10101_v12, %v10061_v28  ;;  %v10141_v10 = vadd.f32 %v10140_v5, %v10100_v6 }
 0x6d8   :  { %v10103_v45 = vpop.f32.mrf.mxu1 }
 0x6d9   :  { %v10143_v53 = vadd.f32 %v10142_v15, %v10102_v30 }
 0x6da   :  { %v10104_v20 = vpop.f32.mrf.mxu1 }
 0x714   :  { %v10181_v55 = vpop.f32.mrf.mxu1 }
 0x715   :  { %v10182_v32 = vadd.f32 %v10181_v55, %v10141_v10 }
 0x716   :  { %v10183_v63 = vpop.f32.mrf.mxu1 }
 0x717   :  { %v10184_v61 = vadd.f32 %v10183_v63, %v10143_v53  ;;  %v10190_v44 = vmax.f32 %v10182_v32, 0.0 }
 0x718   :  { %v10185_v16 = vpop.f32.mrf.mxu1 }
 0x719   :  { %v10191_v19 = vmax.f32 %v10184_v61, 0.0  ;;  %v10194_v18 = vpack.c.bf16 %v10190_v44, %v10190_v44 }
 0x71a   :  { %v10186_v2 = vpop.f32.mrf.mxu1 }
 0x71b   :  { %v10195_v48 = vpack.c.bf16 %v10191_v19, %v10191_v19 }
 0x71d   :  { %10531 = vmatprep.mubr.bf16.mxu1 %v10195_v48 }
 0x71e   :  { %10532 = vmatmul.mubr.bf16.vlgmr.msra.gmra.mxu1 %v10194_v18 }
 0x75e   :  { %v11928_v29 = vpop.f32.mrf.mxu0 }
 0x760   :  { %v11929_v38 = vpop.f32.mrf.mxu0 }
 0x761   :  { %v11930_v33 = vadd.f32 %v11929_v38, %v11928_v29 }
 0x762   :  { %v11931_v34 = vpop.f32.mrf.mxu0 }
 0x763   :  { %v10494_v14 = vadd.f32 %v11930_v33, %v11879_v36 }
 0x764   :  { %v11932_v7 = vpop.f32.mrf.mxu0 }
 0x7de   :  { %v11950_v46 = vpop.f32.mrf.mxu1 }
 0x7e0   :  { %v11951_v27 = vpop.f32.mrf.mxu1 }
 0x7e1   :  { %v11952_v59 = vadd.f32 %v11951_v27, %v11950_v46 }
 0x7e2   :  { %v11953_v39 = vpop.f32.mrf.mxu1 }
 0x7e3   :  { %v10534_v42 = vadd.f32 %v11952_v59, %v10494_v14 }
 0x7e4   :  { %v11954_v17 = vpop.f32.mrf.mxu1 }
 0x7e5   :  { %10539 = vst [vmem:[#allocation17] sm:$0xff] %v10534_v42 }
 0x7e6   :  { %12584 = shalt.err (!%p12581_p7)
}
 0x7e7   :  { %10549 = dma.vmem_to_hbm [thread:$0]  %s10547_s8, 128, %s13100_s9, [#allocation4]  }
 0x7e8   :  { %12603 = dma.done.wait [#allocation4], 128  }
 0x7e9   :  { %12604 = vsyncadd [#allocation4], 4294967168 }
 0x7ea   :  { %10553 = vsyncpa [#allocation3], 1 }
 0x7eb   :  { %10554 = vsyncpa [#allocation6], 1 }
 0x7ec   :  { %10555 = vsyncpa [#allocation9], 1 }
 0x7ed   :  { %10556 = vsyncpa [#allocation12], 1 }
 0x7ee   :  { %10557 = vsyncpa [#allocation15], 1 }
 0x7ef   :  { %10558 = vsyncpa [#allocation4], 1 }

</bundles_post_ra>
